<compile_context>
chip_gen: v5e
topology: v5e:2x2
jax: 0.10.0
libtpu: 0.0.40
codegen_flags: <defaults>
</compile_context>

<pallas_src>
import functools

import jax
import jax.numpy as jnp
from jax.experimental import pallas as pl
from jax.experimental.pallas import tpu as pltpu


# ---------------------------------------------------------------------------
# Kernel
# ---------------------------------------------------------------------------
def lstm_kernel(x_ref, wih0_ref, whh0_ref, b0_ref, w1_ref, b1_ref,
                wlin_ref, blin_ref, out_ref, xb0_ref, *, fuse_layer1):
    # Static shapes:
    #   x_ref:    (T, B, I)   time-major batch of sequences
    #   wih0_ref: (I, 4H)     whh0_ref: (H, 4H)    b0_ref: (1, 4H)
    #   w1_ref:   (2H, 4H)    (= [W_ih1^T ; W_hh1^T] stacked)  b1_ref: (1, 4H)
    #   wlin_ref: (H, O)      blin_ref: (1, O)     out_ref: (B, O)
    #   xb0_ref:  (T, B, 4H)  f32 VMEM scratch
    # NOTE: i/f/o gate columns of all gate weights/biases are pre-scaled by
    # 0.5 at pack time (sigmoid(z) = 0.5*tanh(0.5 z) + 0.5).
    H = whh0_ref.shape[0]
    T, B, I = x_ref.shape
    mxu_dtype = whh0_ref.dtype          # f32 or bf16 — the weights decide

    # ---- Layer-0 input projection + bias for ALL (t, b) at once -----------
    # Off the recurrence critical path; staged in VMEM scratch to keep the
    # 64-vreg budget for the per-step gate/cell temporaries.
    b0 = b0_ref[...].astype(jnp.float32)                       # (1, 4H)
    if I == 1:
        # Degenerates to a broadcasted multiply (pure VPU).
        wih0 = wih0_ref[...].astype(jnp.float32).reshape(4 * H)  # (4H,)
        xb0 = x_ref[...].astype(jnp.float32) * wih0 + b0          # (T, B, 4H)
    else:
        xb0 = (jnp.einsum("tbi,ig->tbg", x_ref[...].astype(mxu_dtype),
                          wih0_ref[...],
                          preferred_element_type=jnp.float32) + b0)
    xb0_ref[...] = xb0

    b1 = b1_ref[...].astype(jnp.float32)

    def cell(gates, c):
        # PyTorch gate order: i, f, g, o.  One wide tanh over (B, 4H); the
        # 0.5 pre-scale of i/f/o already lives in the weights, so
        # sigmoid(z) == 0.5 * tanh(gate) + 0.5 here.
        th = jnp.tanh(gates)
        i = 0.5 * th[:, 0 * H:1 * H] + 0.5
        f = 0.5 * th[:, 1 * H:2 * H] + 0.5
        g = th[:, 2 * H:3 * H]
        o = 0.5 * th[:, 3 * H:4 * H] + 0.5
        c_new = f * c + i * g
        h_new = o * jnp.tanh(c_new)
        return h_new, c_new

    zeros = jnp.zeros((B, H), jnp.float32)
    h0, c0, h1, c1 = zeros, zeros, zeros, zeros

    whh0 = whh0_ref[...]                                       # (H, 4H)
    if fuse_layer1:
        w1 = w1_ref[...]                                       # (2H, 4H)
    else:
        # v5-class: 128-deep MXU gains nothing from K=256 fusion; splitting
        # lets h1_prev @ W_hh1 overlap layer-0 work and drops the lane concat.
        wih1 = w1_ref[0:H, :]                                  # (H, 4H)
        whh1 = w1_ref[H:2 * H, :]                              # (H, 4H)

    # ---- Fully unrolled recurrence (T is static) ---------------------------
    for t in range(T):
        g0 = xb0_ref[t] + jnp.dot(h0.astype(mxu_dtype), whh0,
                                  preferred_element_type=jnp.float32)
        h0, c0 = cell(g0, c0)

        if fuse_layer1:
            h01 = jnp.concatenate([h0, h1], axis=-1).astype(mxu_dtype)
            g1 = jnp.dot(h01, w1, preferred_element_type=jnp.float32) + b1
        else:
            g1 = (jnp.dot(h0.astype(mxu_dtype), wih1,
                          preferred_element_type=jnp.float32)
                  + jnp.dot(h1.astype(mxu_dtype), whh1,
                            preferred_element_type=jnp.float32)
                  + b1)
        h1, c1 = cell(g1, c1)

    # predictions[-1] per sequence == Linear(h1 of last timestep)
    out_ref[...] = (jnp.dot(h1.astype(wlin_ref.dtype), wlin_ref[...],
                            preferred_element_type=jnp.float32)
                    + blin_ref[...].astype(jnp.float32)).astype(out_ref.dtype)


# ---------------------------------------------------------------------------
# Wrappers
# ---------------------------------------------------------------------------
def _should_fuse_layer1():
    """Fuse the layer-1 K=2H matmul except on 128-deep-MXU (v5-class) chips."""
    try:
        kind = jax.devices()[0].device_kind.lower()
        return "v5" not in kind
    except Exception:  # pragma: no cover - be robust to odd backends
        return True


def lstm_forward(x, params):
    """x: (B, T, I) f32 — B independent sequences.  Returns (B, O) f32,
    each row == the module's predictions[-1] for that sequence."""
    B, T, I = x.shape
    H = params["whh0_t"].shape[0]
    O = params["wlin_t"].shape[1]

    # Pad batch to a multiple of 8 sublanes (min 8) so state tensors fill
    # whole vregs; padded rows are zeros and simply ignored on output.
    Bp = max(8, ((B + 7) // 8) * 8)
    if Bp != B:
        x = jnp.concatenate([x, jnp.zeros((Bp - B, T, I), x.dtype)], axis=0)
    x_tm = jnp.transpose(x, (1, 0, 2))                # (T, Bp, I) time-major

    vmem = pl.BlockSpec(memory_space=pltpu.MemorySpace.VMEM)
    kernel = functools.partial(lstm_kernel, fuse_layer1=_should_fuse_layer1())
    out = pl.pallas_call(
        kernel,
        out_shape=jax.ShapeDtypeStruct((Bp, O), jnp.float32),
        in_specs=[vmem] * 8,
        out_specs=vmem,
        scratch_shapes=[pltpu.VMEM((T, Bp, 4 * H), jnp.float32)],
    )(x_tm,
      params["wih0_t"], params["whh0_t"], params["b0"],
      params["w1_t"], params["b1"],
      params["wlin_t"], params["blin"])
    return out[:B]


def lstm_module_forward(seq, params):
    """Exact equivalent of LSTM.forward(input_seq): seq (T,) or (T, I) → (O,)."""
    seq = jnp.asarray(seq, jnp.float32)
    if seq.ndim == 1:
        seq = seq[:, None]
    return lstm_forward(seq[None], params)[0]


# ---------------------------------------------------------------------------
# Parameters
# ---------------------------------------------------------------------------
def init_raw_params(key, input_size=1, hidden=128, output_size=1):
    """PyTorch-layout weights, uniform(-1/sqrt(H), 1/sqrt(H)) like nn.LSTM."""
    k = 1.0 / jnp.sqrt(jnp.float32(hidden))
    keys = jax.random.split(key, 12)

    def u(kk, shape):
        return jax.random.uniform(kk, shape, jnp.float32, -k, k)

    return {
        "wih0": u(keys[0], (4 * hidden, input_size)),
        "whh0": u(keys[1], (4 * hidden, hidden)),
        "bih0": u(keys[2], (4 * hidden,)),
        "bhh0": u(keys[3], (4 * hidden,)),
        "wih1": u(keys[4], (4 * hidden, hidden)),
        "whh1": u(keys[5], (4 * hidden, hidden)),
        "bih1": u(keys[6], (4 * hidden,)),
        "bhh1": u(keys[7], (4 * hidden,)),
        "wlin": u(keys[8], (output_size, hidden)),
        "blin": u(keys[9], (output_size,)),
    }


def pack_params(raw):
    """Pre-transpose, stack layer-1 weights, sum biases, and fold the 0.5
    sigmoid pre-scale into the i/f/o gate columns (g gate stays unscaled)."""
    H4 = raw["whh0"].shape[0]
    H = H4 // 4
    O = raw["wlin"].shape[0]
    scale = (jnp.ones((H4,), jnp.float32)
             .at[:2 * H].set(0.5)          # i, f
             .at[3 * H:].set(0.5))         # o

    def fold(w):                           # w: (4H, X) -> (X, 4H), scaled
        return (w * scale[:, None]).T

    w1_t = jnp.concatenate([fold(raw["wih1"]), fold(raw["whh1"])], axis=0)
    return {
        "wih0_t": fold(raw["wih0"]),                                # (I, 4H)
        "whh0_t": fold(raw["whh0"]),                                # (H, 4H)
        "b0": ((raw["bih0"] + raw["bhh0"]) * scale).reshape(1, H4),
        "w1_t": w1_t,                                               # (2H, 4H)
        "b1": ((raw["bih1"] + raw["bhh1"]) * scale).reshape(1, H4),
        "wlin_t": raw["wlin"].T,                                    # (H, O)
        "blin": raw["blin"].reshape(1, O),
    }


def cast_mxu_weights(params, dtype):
    """Cast only the matmul operands to `dtype`; biases stay f32.
    Valid on all generations (v5e included) — cell math remains f32."""
    out = dict(params)
    for name in ("wih0_t", "whh0_t", "w1_t", "wlin_t"):
        out[name] = params[name].astype(dtype)
    return out


# ---------------------------------------------------------------------------
# Pure-JAX reference (same math as torch nn.LSTM(2 layers) + Linear, batch=1)
# ---------------------------------------------------------------------------
def ref_forward(x_seq, raw):
    H = raw["whh0"].shape[1]
    h0 = c0 = h1 = c1 = jnp.zeros((1, H), jnp.float32)

    def cell(g, c):
        i = jax.nn.sigmoid(g[:, :H])
        f = jax.nn.sigmoid(g[:, H:2 * H])
        gg = jnp.tanh(g[:, 2 * H:3 * H])
        o = jax.nn.sigmoid(g[:, 3 * H:])
        c = f * c + i * gg
        return o * jnp.tanh(c), c

    for t in range(x_seq.shape[0]):
        g0 = (x_seq[t:t + 1] @ raw["wih0"].T + h0 @ raw["whh0"].T
              + raw["bih0"] + raw["bhh0"])
        h0, c0 = cell(g0, c0)
        g1 = (h0 @ raw["wih1"].T + h1 @ raw["whh1"].T
              + raw["bih1"] + raw["bhh1"])
        h1, c1 = cell(g1, c1)
    return (h1 @ raw["wlin"].T + raw["blin"]).reshape(-1)


# ---------------------------------------------------------------------------
if __name__ == "__main__":
    SEQ, INPUT, HIDDEN, OUTPUT, BATCH = 8, 1, 128, 1, 8

    key = jax.random.PRNGKey(0)
    k_x, k_p = jax.random.split(key)
    # B independent sequences; the torch module processes one (T, 1, 1)
    # sequence — each batch row here reproduces exactly that forward pass.
    x = jax.random.normal(k_x, (BATCH, SEQ, INPUT), jnp.float32)
    raw = init_raw_params(k_p, INPUT, HIDDEN, OUTPUT)
    params_f32 = pack_params(raw)

    ref = jnp.stack([ref_forward(x[b], raw) for b in range(BATCH)])  # (B, O)

    # 1) f32 MXU operands: tight correctness check (0.5 folding only changes
    #    rounding order, covered by 1e-4).
    out_f32 = jax.block_until_ready(lstm_forward(x, params_f32))
    assert out_f32.shape == (BATCH, OUTPUT)
    assert jnp.allclose(out_f32, ref, atol=1e-4, rtol=1e-4), (out_f32, ref)

    # 2) bf16 MXU operands (all generations): cell state / elementwise math
    #    stays f32, drift bounded — loosened tolerance.
    params_bf16 = cast_mxu_weights(params_f32, jnp.bfloat16)
    out_bf16 = jax.block_until_ready(lstm_forward(x, params_bf16))
    assert out_bf16.shape == (BATCH, OUTPUT)
    assert jnp.allclose(out_bf16, ref, atol=3e-2, rtol=3e-2), (out_bf16, ref)

    # 3) Module-equivalent single-sequence call (predictions[-1]).
    single = jax.block_until_ready(lstm_module_forward(x[0, :, 0], params_f32))
    assert single.shape == (OUTPUT,)
    assert jnp.allclose(single, ref[0], atol=1e-4, rtol=1e-4), (single, ref[0])

    print("KERNEL_OK")
</pallas_src>

<mosaic_0001>
module attributes {stable_mosaic.version = 11 : i64} {
  func.func @lstm_kernel(%arg0: memref<8x8x1xf32, #tpu.memory_space<vmem>>, %arg1: memref<1x512xf32, #tpu.memory_space<vmem>>, %arg2: memref<128x512xf32, #tpu.memory_space<vmem>>, %arg3: memref<1x512xf32, #tpu.memory_space<vmem>>, %arg4: memref<256x512xf32, #tpu.memory_space<vmem>>, %arg5: memref<1x512xf32, #tpu.memory_space<vmem>>, %arg6: memref<128x1xf32, #tpu.memory_space<vmem>>, %arg7: memref<1x1xf32, #tpu.memory_space<vmem>>, %arg8: memref<8x1xf32, #tpu.memory_space<vmem>>, %arg9: memref<8x8x512xf32, #tpu.memory_space<vmem>>) attributes {dimension_semantics = [], scalar_prefetch = 0 : i64, scratch_operands = 1 : i64, tpu.core_type = #tpu.core_type<tc>} {
    %c0 = arith.constant 0 : index
    %c0_0 = arith.constant 0 : index
    %0 = vector.load %arg3[%c0, %c0_0] : memref<1x512xf32, #tpu.memory_space<vmem>>, vector<1x512xf32>
    %c0_1 = arith.constant 0 : index
    %c0_2 = arith.constant 0 : index
    %1 = vector.load %arg1[%c0_1, %c0_2] : memref<1x512xf32, #tpu.memory_space<vmem>>, vector<1x512xf32>
    %2 = vector.shape_cast %1 : vector<1x512xf32> to vector<512xf32>
    %c0_3 = arith.constant 0 : index
    %c0_4 = arith.constant 0 : index
    %c0_5 = arith.constant 0 : index
    %3 = vector.load %arg0[%c0_3, %c0_4, %c0_5] : memref<8x8x1xf32, #tpu.memory_space<vmem>>, vector<8x8x1xf32>
    %4 = vector.shape_cast %2 : vector<512xf32> to vector<1x1x512xf32>
    %5 = vector.broadcast %3 : vector<8x8x1xf32> to vector<8x8x512xf32>
    %6 = vector.broadcast %4 : vector<1x1x512xf32> to vector<8x8x512xf32>
    %7 = arith.mulf %5, %6 : vector<8x8x512xf32>
    %8 = vector.shape_cast %0 : vector<1x512xf32> to vector<1x1x512xf32>
    %9 = vector.broadcast %8 : vector<1x1x512xf32> to vector<8x8x512xf32>
    %10 = arith.addf %7, %9 : vector<8x8x512xf32>
    %c0_6 = arith.constant 0 : index
    %c0_7 = arith.constant 0 : index
    %c0_8 = arith.constant 0 : index
    %11 = vector.load %arg9[%c0_6, %c0_7, %c0_8] : memref<8x8x512xf32, #tpu.memory_space<vmem>>, vector<8x8x512xf32>
    tpu.vector_store %arg9[%c0_6, %c0_7, %c0_8], %10 {strides = array<i32>} : memref<8x8x512xf32, #tpu.memory_space<vmem>>, vector<8x8x512xf32>,
    %c0_9 = arith.constant 0 : index
    %c0_10 = arith.constant 0 : index
    %12 = vector.load %arg5[%c0_9, %c0_10] : memref<1x512xf32, #tpu.memory_space<vmem>>, vector<1x512xf32>
    %cst = arith.constant 0.000000e+00 : f32
    %13 = vector.broadcast %cst : f32 to vector<8x128xf32>
    %c0_11 = arith.constant 0 : index
    %c0_12 = arith.constant 0 : index
    %14 = vector.load %arg2[%c0_11, %c0_12] : memref<128x512xf32, #tpu.memory_space<vmem>>, vector<128x512xf32>
    %c0_13 = arith.constant 0 : index
    %c0_14 = arith.constant 0 : index
    %15 = vector.load %arg4[%c0_13, %c0_14] : memref<256x512xf32, #tpu.memory_space<vmem>>, vector<256x512xf32>
    %c0_15 = arith.constant 0 : index
    %c0_16 = arith.constant 0 : index
    %c0_17 = arith.constant 0 : index
    %16 = vector.load %arg9[%c0_15, %c0_16, %c0_17] : memref<8x8x512xf32, #tpu.memory_space<vmem>>, vector<1x8x512xf32>
    %17 = vector.shape_cast %16 : vector<1x8x512xf32> to vector<8x512xf32>
    %cst_18 = arith.constant dense<0.000000e+00> : vector<8x512xf32>
    %18 = tpu.matmul %13, %14, %cst_18 {dimension_numbers = #tpu.dot_dimension_numbers<[1], [0], [0], [1], [0, 0, 1, 1], [], []>} : vector<8x128xf32>, vector<128x512xf32>, vector<8x512xf32> -> vector<8x512xf32>
    %19 = arith.addf %17, %18 : vector<8x512xf32>
    %20 = math.tanh %19 : vector<8x512xf32>
    %21 = vector.extract_strided_slice %20 {offsets = [0, 0], sizes = [8, 128], strides = [1, 1]} : vector<8x512xf32> to vector<8x128xf32>
    %cst_19 = arith.constant 5.000000e-01 : f32
    %22 = vector.broadcast %cst_19 : f32 to vector<8x128xf32>
    %23 = arith.mulf %22, %21 : vector<8x128xf32>
    %cst_20 = arith.constant 5.000000e-01 : f32
    %24 = vector.broadcast %cst_20 : f32 to vector<8x128xf32>
    %25 = arith.addf %23, %24 : vector<8x128xf32>
    %26 = vector.extract_strided_slice %20 {offsets = [0, 128], sizes = [8, 128], strides = [1, 1]} : vector<8x512xf32> to vector<8x128xf32>
    %cst_21 = arith.constant 5.000000e-01 : f32
    %27 = vector.broadcast %cst_21 : f32 to vector<8x128xf32>
    %28 = arith.mulf %27, %26 : vector<8x128xf32>
    %cst_22 = arith.constant 5.000000e-01 : f32
    %29 = vector.broadcast %cst_22 : f32 to vector<8x128xf32>
    %30 = arith.addf %28, %29 : vector<8x128xf32>
    %31 = vector.extract_strided_slice %20 {offsets = [0, 256], sizes = [8, 128], strides = [1, 1]} : vector<8x512xf32> to vector<8x128xf32>
    %32 = vector.extract_strided_slice %20 {offsets = [0, 384], sizes = [8, 128], strides = [1, 1]} : vector<8x512xf32> to vector<8x128xf32>
    %cst_23 = arith.constant 5.000000e-01 : f32
    %33 = vector.broadcast %cst_23 : f32 to vector<8x128xf32>
    %34 = arith.mulf %33, %32 : vector<8x128xf32>
    %cst_24 = arith.constant 5.000000e-01 : f32
    %35 = vector.broadcast %cst_24 : f32 to vector<8x128xf32>
    %36 = arith.addf %34, %35 : vector<8x128xf32>
    %37 = arith.mulf %30, %13 : vector<8x128xf32>
    %38 = arith.mulf %25, %31 : vector<8x128xf32>
    %39 = arith.addf %37, %38 : vector<8x128xf32>
    %40 = math.tanh %39 : vector<8x128xf32>
    %41 = arith.mulf %36, %40 : vector<8x128xf32>
    %42 = tpu.concatenate %41, %13 in 1 : vector<8x128xf32>, vector<8x128xf32> -> vector<8x256xf32>
    %cst_25 = arith.constant dense<0.000000e+00> : vector<8x512xf32>
    %43 = tpu.matmul %42, %15, %cst_25 {dimension_numbers = #tpu.dot_dimension_numbers<[1], [0], [0], [1], [0, 0, 1, 1], [], []>} : vector<8x256xf32>, vector<256x512xf32>, vector<8x512xf32> -> vector<8x512xf32>
    %44 = vector.broadcast %12 : vector<1x512xf32> to vector<8x512xf32>
    %45 = arith.addf %43, %44 : vector<8x512xf32>
    %46 = math.tanh %45 : vector<8x512xf32>
    %47 = vector.extract_strided_slice %46 {offsets = [0, 0], sizes = [8, 128], strides = [1, 1]} : vector<8x512xf32> to vector<8x128xf32>
    %cst_26 = arith.constant 5.000000e-01 : f32
    %48 = vector.broadcast %cst_26 : f32 to vector<8x128xf32>
    %49 = arith.mulf %48, %47 : vector<8x128xf32>
    %cst_27 = arith.constant 5.000000e-01 : f32
    %50 = vector.broadcast %cst_27 : f32 to vector<8x128xf32>
    %51 = arith.addf %49, %50 : vector<8x128xf32>
    %52 = vector.extract_strided_slice %46 {offsets = [0, 128], sizes = [8, 128], strides = [1, 1]} : vector<8x512xf32> to vector<8x128xf32>
    %cst_28 = arith.constant 5.000000e-01 : f32
    %53 = vector.broadcast %cst_28 : f32 to vector<8x128xf32>
    %54 = arith.mulf %53, %52 : vector<8x128xf32>
    %cst_29 = arith.constant 5.000000e-01 : f32
    %55 = vector.broadcast %cst_29 : f32 to vector<8x128xf32>
    %56 = arith.addf %54, %55 : vector<8x128xf32>
    %57 = vector.extract_strided_slice %46 {offsets = [0, 256], sizes = [8, 128], strides = [1, 1]} : vector<8x512xf32> to vector<8x128xf32>
    %58 = vector.extract_strided_slice %46 {offsets = [0, 384], sizes = [8, 128], strides = [1, 1]} : vector<8x512xf32> to vector<8x128xf32>
    %cst_30 = arith.constant 5.000000e-01 : f32
    %59 = vector.broadcast %cst_30 : f32 to vector<8x128xf32>
    %60 = arith.mulf %59, %58 : vector<8x128xf32>
    %cst_31 = arith.constant 5.000000e-01 : f32
    %61 = vector.broadcast %cst_31 : f32 to vector<8x128xf32>
    %62 = arith.addf %60, %61 : vector<8x128xf32>
    %63 = arith.mulf %56, %13 : vector<8x128xf32>
    %64 = arith.mulf %51, %57 : vector<8x128xf32>
    %65 = arith.addf %63, %64 : vector<8x128xf32>
    %66 = math.tanh %65 : vector<8x128xf32>
    %67 = arith.mulf %62, %66 : vector<8x128xf32>
    %c1 = arith.constant 1 : index
    %c0_32 = arith.constant 0 : index
    %c0_33 = arith.constant 0 : index
    %68 = vector.load %arg9[%c1, %c0_32, %c0_33] : memref<8x8x512xf32, #tpu.memory_space<vmem>>, vector<1x8x512xf32>
    %69 = vector.shape_cast %68 : vector<1x8x512xf32> to vector<8x512xf32>
    %cst_34 = arith.constant dense<0.000000e+00> : vector<8x512xf32>
    %70 = tpu.matmul %41, %14, %cst_34 {dimension_numbers = #tpu.dot_dimension_numbers<[1], [0], [0], [1], [0, 0, 1, 1], [], []>} : vector<8x128xf32>, vector<128x512xf32>, vector<8x512xf32> -> vector<8x512xf32>
    %71 = arith.addf %69, %70 : vector<8x512xf32>
    %72 = math.tanh %71 : vector<8x512xf32>
    %73 = vector.extract_strided_slice %72 {offsets = [0, 0], sizes = [8, 128], strides = [1, 1]} : vector<8x512xf32> to vector<8x128xf32>
    %cst_35 = arith.constant 5.000000e-01 : f32
    %74 = vector.broadcast %cst_35 : f32 to vector<8x128xf32>
    %75 = arith.mulf %74, %73 : vector<8x128xf32>
    %cst_36 = arith.constant 5.000000e-01 : f32
    %76 = vector.broadcast %cst_36 : f32 to vector<8x128xf32>
    %77 = arith.addf %75, %76 : vector<8x128xf32>
    %78 = vector.extract_strided_slice %72 {offsets = [0, 128], sizes = [8, 128], strides = [1, 1]} : vector<8x512xf32> to vector<8x128xf32>
    %cst_37 = arith.constant 5.000000e-01 : f32
    %79 = vector.broadcast %cst_37 : f32 to vector<8x128xf32>
    %80 = arith.mulf %79, %78 : vector<8x128xf32>
    %cst_38 = arith.constant 5.000000e-01 : f32
    %81 = vector.broadcast %cst_38 : f32 to vector<8x128xf32>
    %82 = arith.addf %80, %81 : vector<8x128xf32>
    %83 = vector.extract_strided_slice %72 {offsets = [0, 256], sizes = [8, 128], strides = [1, 1]} : vector<8x512xf32> to vector<8x128xf32>
    %84 = vector.extract_strided_slice %72 {offsets = [0, 384], sizes = [8, 128], strides = [1, 1]} : vector<8x512xf32> to vector<8x128xf32>
    %cst_39 = arith.constant 5.000000e-01 : f32
    %85 = vector.broadcast %cst_39 : f32 to vector<8x128xf32>
    %86 = arith.mulf %85, %84 : vector<8x128xf32>
    %cst_40 = arith.constant 5.000000e-01 : f32
    %87 = vector.broadcast %cst_40 : f32 to vector<8x128xf32>
    %88 = arith.addf %86, %87 : vector<8x128xf32>
    %89 = arith.mulf %82, %39 : vector<8x128xf32>
    %90 = arith.mulf %77, %83 : vector<8x128xf32>
    %91 = arith.addf %89, %90 : vector<8x128xf32>
    %92 = math.tanh %91 : vector<8x128xf32>
    %93 = arith.mulf %88, %92 : vector<8x128xf32>
    %94 = tpu.concatenate %93, %67 in 1 : vector<8x128xf32>, vector<8x128xf32> -> vector<8x256xf32>
    %cst_41 = arith.constant dense<0.000000e+00> : vector<8x512xf32>
    %95 = tpu.matmul %94, %15, %cst_41 {dimension_numbers = #tpu.dot_dimension_numbers<[1], [0], [0], [1], [0, 0, 1, 1], [], []>} : vector<8x256xf32>, vector<256x512xf32>, vector<8x512xf32> -> vector<8x512xf32>
    %96 = vector.broadcast %12 : vector<1x512xf32> to vector<8x512xf32>
    %97 = arith.addf %95, %96 : vector<8x512xf32>
    %98 = math.tanh %97 : vector<8x512xf32>
    %99 = vector.extract_strided_slice %98 {offsets = [0, 0], sizes = [8, 128], strides = [1, 1]} : vector<8x512xf32> to vector<8x128xf32>
    %cst_42 = arith.constant 5.000000e-01 : f32
    %100 = vector.broadcast %cst_42 : f32 to vector<8x128xf32>
    %101 = arith.mulf %100, %99 : vector<8x128xf32>
    %cst_43 = arith.constant 5.000000e-01 : f32
    %102 = vector.broadcast %cst_43 : f32 to vector<8x128xf32>
    %103 = arith.addf %101, %102 : vector<8x128xf32>
    %104 = vector.extract_strided_slice %98 {offsets = [0, 128], sizes = [8, 128], strides = [1, 1]} : vector<8x512xf32> to vector<8x128xf32>
    %cst_44 = arith.constant 5.000000e-01 : f32
    %105 = vector.broadcast %cst_44 : f32 to vector<8x128xf32>
    %106 = arith.mulf %105, %104 : vector<8x128xf32>
    %cst_45 = arith.constant 5.000000e-01 : f32
    %107 = vector.broadcast %cst_45 : f32 to vector<8x128xf32>
    %108 = arith.addf %106, %107 : vector<8x128xf32>
    %109 = vector.extract_strided_slice %98 {offsets = [0, 256], sizes = [8, 128], strides = [1, 1]} : vector<8x512xf32> to vector<8x128xf32>
    %110 = vector.extract_strided_slice %98 {offsets = [0, 384], sizes = [8, 128], strides = [1, 1]} : vector<8x512xf32> to vector<8x128xf32>
    %cst_46 = arith.constant 5.000000e-01 : f32
    %111 = vector.broadcast %cst_46 : f32 to vector<8x128xf32>
    %112 = arith.mulf %111, %110 : vector<8x128xf32>
    %cst_47 = arith.constant 5.000000e-01 : f32
    %113 = vector.broadcast %cst_47 : f32 to vector<8x128xf32>
    %114 = arith.addf %112, %113 : vector<8x128xf32>
    %115 = arith.mulf %108, %65 : vector<8x128xf32>
    %116 = arith.mulf %103, %109 : vector<8x128xf32>
    %117 = arith.addf %115, %116 : vector<8x128xf32>
    %118 = math.tanh %117 : vector<8x128xf32>
    %119 = arith.mulf %114, %118 : vector<8x128xf32>
    %c2 = arith.constant 2 : index
    %c0_48 = arith.constant 0 : index
    %c0_49 = arith.constant 0 : index
    %120 = vector.load %arg9[%c2, %c0_48, %c0_49] : memref<8x8x512xf32, #tpu.memory_space<vmem>>, vector<1x8x512xf32>
    %121 = vector.shape_cast %120 : vector<1x8x512xf32> to vector<8x512xf32>
    %cst_50 = arith.constant dense<0.000000e+00> : vector<8x512xf32>
    %122 = tpu.matmul %93, %14, %cst_50 {dimension_numbers = #tpu.dot_dimension_numbers<[1], [0], [0], [1], [0, 0, 1, 1], [], []>} : vector<8x128xf32>, vector<128x512xf32>, vector<8x512xf32> -> vector<8x512xf32>
    %123 = arith.addf %121, %122 : vector<8x512xf32>
    %124 = math.tanh %123 : vector<8x512xf32>
    %125 = vector.extract_strided_slice %124 {offsets = [0, 0], sizes = [8, 128], strides = [1, 1]} : vector<8x512xf32> to vector<8x128xf32>
    %cst_51 = arith.constant 5.000000e-01 : f32
    %126 = vector.broadcast %cst_51 : f32 to vector<8x128xf32>
    %127 = arith.mulf %126, %125 : vector<8x128xf32>
    %cst_52 = arith.constant 5.000000e-01 : f32
    %128 = vector.broadcast %cst_52 : f32 to vector<8x128xf32>
    %129 = arith.addf %127, %128 : vector<8x128xf32>
    %130 = vector.extract_strided_slice %124 {offsets = [0, 128], sizes = [8, 128], strides = [1, 1]} : vector<8x512xf32> to vector<8x128xf32>
    %cst_53 = arith.constant 5.000000e-01 : f32
    %131 = vector.broadcast %cst_53 : f32 to vector<8x128xf32>
    %132 = arith.mulf %131, %130 : vector<8x128xf32>
    %cst_54 = arith.constant 5.000000e-01 : f32
    %133 = vector.broadcast %cst_54 : f32 to vector<8x128xf32>
    %134 = arith.addf %132, %133 : vector<8x128xf32>
    %135 = vector.extract_strided_slice %124 {offsets = [0, 256], sizes = [8, 128], strides = [1, 1]} : vector<8x512xf32> to vector<8x128xf32>
    %136 = vector.extract_strided_slice %124 {offsets = [0, 384], sizes = [8, 128], strides = [1, 1]} : vector<8x512xf32> to vector<8x128xf32>
    %cst_55 = arith.constant 5.000000e-01 : f32
    %137 = vector.broadcast %cst_55 : f32 to vector<8x128xf32>
    %138 = arith.mulf %137, %136 : vector<8x128xf32>
    %cst_56 = arith.constant 5.000000e-01 : f32
    %139 = vector.broadcast %cst_56 : f32 to vector<8x128xf32>
    %140 = arith.addf %138, %139 : vector<8x128xf32>
    %141 = arith.mulf %134, %91 : vector<8x128xf32>
    %142 = arith.mulf %129, %135 : vector<8x128xf32>
    %143 = arith.addf %141, %142 : vector<8x128xf32>
    %144 = math.tanh %143 : vector<8x128xf32>
    %145 = arith.mulf %140, %144 : vector<8x128xf32>
    %146 = tpu.concatenate %145, %119 in 1 : vector<8x128xf32>, vector<8x128xf32> -> vector<8x256xf32>
    %cst_57 = arith.constant dense<0.000000e+00> : vector<8x512xf32>
    %147 = tpu.matmul %146, %15, %cst_57 {dimension_numbers = #tpu.dot_dimension_numbers<[1], [0], [0], [1], [0, 0, 1, 1], [], []>} : vector<8x256xf32>, vector<256x512xf32>, vector<8x512xf32> -> vector<8x512xf32>
    %148 = vector.broadcast %12 : vector<1x512xf32> to vector<8x512xf32>
    %149 = arith.addf %147, %148 : vector<8x512xf32>
    %150 = math.tanh %149 : vector<8x512xf32>
    %151 = vector.extract_strided_slice %150 {offsets = [0, 0], sizes = [8, 128], strides = [1, 1]} : vector<8x512xf32> to vector<8x128xf32>
    %cst_58 = arith.constant 5.000000e-01 : f32
    %152 = vector.broadcast %cst_58 : f32 to vector<8x128xf32>
    %153 = arith.mulf %152, %151 : vector<8x128xf32>
    %cst_59 = arith.constant 5.000000e-01 : f32
    %154 = vector.broadcast %cst_59 : f32 to vector<8x128xf32>
    %155 = arith.addf %153, %154 : vector<8x128xf32>
    %156 = vector.extract_strided_slice %150 {offsets = [0, 128], sizes = [8, 128], strides = [1, 1]} : vector<8x512xf32> to vector<8x128xf32>
    %cst_60 = arith.constant 5.000000e-01 : f32
    %157 = vector.broadcast %cst_60 : f32 to vector<8x128xf32>
    %158 = arith.mulf %157, %156 : vector<8x128xf32>
    %cst_61 = arith.constant 5.000000e-01 : f32
    %159 = vector.broadcast %cst_61 : f32 to vector<8x128xf32>
    %160 = arith.addf %158, %159 : vector<8x128xf32>
    %161 = vector.extract_strided_slice %150 {offsets = [0, 256], sizes = [8, 128], strides = [1, 1]} : vector<8x512xf32> to vector<8x128xf32>
    %162 = vector.extract_strided_slice %150 {offsets = [0, 384], sizes = [8, 128], strides = [1, 1]} : vector<8x512xf32> to vector<8x128xf32>
    %cst_62 = arith.constant 5.000000e-01 : f32
    %163 = vector.broadcast %cst_62 : f32 to vector<8x128xf32>
    %164 = arith.mulf %163, %162 : vector<8x128xf32>
    %cst_63 = arith.constant 5.000000e-01 : f32
    %165 = vector.broadcast %cst_63 : f32 to vector<8x128xf32>
    %166 = arith.addf %164, %165 : vector<8x128xf32>
    %167 = arith.mulf %160, %117 : vector<8x128xf32>
    %168 = arith.mulf %155, %161 : vector<8x128xf32>
    %169 = arith.addf %167, %168 : vector<8x128xf32>
    %170 = math.tanh %169 : vector<8x128xf32>
    %171 = arith.mulf %166, %170 : vector<8x128xf32>
    %c3 = arith.constant 3 : index
    %c0_64 = arith.constant 0 : index
    %c0_65 = arith.constant 0 : index
    %172 = vector.load %arg9[%c3, %c0_64, %c0_65] : memref<8x8x512xf32, #tpu.memory_space<vmem>>, vector<1x8x512xf32>
    %173 = vector.shape_cast %172 : vector<1x8x512xf32> to vector<8x512xf32>
    %cst_66 = arith.constant dense<0.000000e+00> : vector<8x512xf32>
    %174 = tpu.matmul %145, %14, %cst_66 {dimension_numbers = #tpu.dot_dimension_numbers<[1], [0], [0], [1], [0, 0, 1, 1], [], []>} : vector<8x128xf32>, vector<128x512xf32>, vector<8x512xf32> -> vector<8x512xf32>
    %175 = arith.addf %173, %174 : vector<8x512xf32>
    %176 = math.tanh %175 : vector<8x512xf32>
    %177 = vector.extract_strided_slice %176 {offsets = [0, 0], sizes = [8, 128], strides = [1, 1]} : vector<8x512xf32> to vector<8x128xf32>
    %cst_67 = arith.constant 5.000000e-01 : f32
    %178 = vector.broadcast %cst_67 : f32 to vector<8x128xf32>
    %179 = arith.mulf %178, %177 : vector<8x128xf32>
    %cst_68 = arith.constant 5.000000e-01 : f32
    %180 = vector.broadcast %cst_68 : f32 to vector<8x128xf32>
    %181 = arith.addf %179, %180 : vector<8x128xf32>
    %182 = vector.extract_strided_slice %176 {offsets = [0, 128], sizes = [8, 128], strides = [1, 1]} : vector<8x512xf32> to vector<8x128xf32>
    %cst_69 = arith.constant 5.000000e-01 : f32
    %183 = vector.broadcast %cst_69 : f32 to vector<8x128xf32>
    %184 = arith.mulf %183, %182 : vector<8x128xf32>
    %cst_70 = arith.constant 5.000000e-01 : f32
    %185 = vector.broadcast %cst_70 : f32 to vector<8x128xf32>
    %186 = arith.addf %184, %185 : vector<8x128xf32>
    %187 = vector.extract_strided_slice %176 {offsets = [0, 256], sizes = [8, 128], strides = [1, 1]} : vector<8x512xf32> to vector<8x128xf32>
    %188 = vector.extract_strided_slice %176 {offsets = [0, 384], sizes = [8, 128], strides = [1, 1]} : vector<8x512xf32> to vector<8x128xf32>
    %cst_71 = arith.constant 5.000000e-01 : f32
    %189 = vector.broadcast %cst_71 : f32 to vector<8x128xf32>
    %190 = arith.mulf %189, %188 : vector<8x128xf32>
    %cst_72 = arith.constant 5.000000e-01 : f32
    %191 = vector.broadcast %cst_72 : f32 to vector<8x128xf32>
    %192 = arith.addf %190, %191 : vector<8x128xf32>
    %193 = arith.mulf %186, %143 : vector<8x128xf32>
    %194 = arith.mulf %181, %187 : vector<8x128xf32>
    %195 = arith.addf %193, %194 : vector<8x128xf32>
    %196 = math.tanh %195 : vector<8x128xf32>
    %197 = arith.mulf %192, %196 : vector<8x128xf32>
    %198 = tpu.concatenate %197, %171 in 1 : vector<8x128xf32>, vector<8x128xf32> -> vector<8x256xf32>
    %cst_73 = arith.constant dense<0.000000e+00> : vector<8x512xf32>
    %199 = tpu.matmul %198, %15, %cst_73 {dimension_numbers = #tpu.dot_dimension_numbers<[1], [0], [0], [1], [0, 0, 1, 1], [], []>} : vector<8x256xf32>, vector<256x512xf32>, vector<8x512xf32> -> vector<8x512xf32>
    %200 = vector.broadcast %12 : vector<1x512xf32> to vector<8x512xf32>
    %201 = arith.addf %199, %200 : vector<8x512xf32>
    %202 = math.tanh %201 : vector<8x512xf32>
    %203 = vector.extract_strided_slice %202 {offsets = [0, 0], sizes = [8, 128], strides = [1, 1]} : vector<8x512xf32> to vector<8x128xf32>
    %cst_74 = arith.constant 5.000000e-01 : f32
    %204 = vector.broadcast %cst_74 : f32 to vector<8x128xf32>
    %205 = arith.mulf %204, %203 : vector<8x128xf32>
    %cst_75 = arith.constant 5.000000e-01 : f32
    %206 = vector.broadcast %cst_75 : f32 to vector<8x128xf32>
    %207 = arith.addf %205, %206 : vector<8x128xf32>
    %208 = vector.extract_strided_slice %202 {offsets = [0, 128], sizes = [8, 128], strides = [1, 1]} : vector<8x512xf32> to vector<8x128xf32>
    %cst_76 = arith.constant 5.000000e-01 : f32
    %209 = vector.broadcast %cst_76 : f32 to vector<8x128xf32>
    %210 = arith.mulf %209, %208 : vector<8x128xf32>
    %cst_77 = arith.constant 5.000000e-01 : f32
    %211 = vector.broadcast %cst_77 : f32 to vector<8x128xf32>
    %212 = arith.addf %210, %211 : vector<8x128xf32>
    %213 = vector.extract_strided_slice %202 {offsets = [0, 256], sizes = [8, 128], strides = [1, 1]} : vector<8x512xf32> to vector<8x128xf32>
    %214 = vector.extract_strided_slice %202 {offsets = [0, 384], sizes = [8, 128], strides = [1, 1]} : vector<8x512xf32> to vector<8x128xf32>
    %cst_78 = arith.constant 5.000000e-01 : f32
    %215 = vector.broadcast %cst_78 : f32 to vector<8x128xf32>
    %216 = arith.mulf %215, %214 : vector<8x128xf32>
    %cst_79 = arith.constant 5.000000e-01 : f32
    %217 = vector.broadcast %cst_79 : f32 to vector<8x128xf32>
    %218 = arith.addf %216, %217 : vector<8x128xf32>
    %219 = arith.mulf %212, %169 : vector<8x128xf32>
    %220 = arith.mulf %207, %213 : vector<8x128xf32>
    %221 = arith.addf %219, %220 : vector<8x128xf32>
    %222 = math.tanh %221 : vector<8x128xf32>
    %223 = arith.mulf %218, %222 : vector<8x128xf32>
    %c4 = arith.constant 4 : index
    %c0_80 = arith.constant 0 : index
    %c0_81 = arith.constant 0 : index
    %224 = vector.load %arg9[%c4, %c0_80, %c0_81] : memref<8x8x512xf32, #tpu.memory_space<vmem>>, vector<1x8x512xf32>
    %225 = vector.shape_cast %224 : vector<1x8x512xf32> to vector<8x512xf32>
    %cst_82 = arith.constant dense<0.000000e+00> : vector<8x512xf32>
    %226 = tpu.matmul %197, %14, %cst_82 {dimension_numbers = #tpu.dot_dimension_numbers<[1], [0], [0], [1], [0, 0, 1, 1], [], []>} : vector<8x128xf32>, vector<128x512xf32>, vector<8x512xf32> -> vector<8x512xf32>
    %227 = arith.addf %225, %226 : vector<8x512xf32>
    %228 = math.tanh %227 : vector<8x512xf32>
    %229 = vector.extract_strided_slice %228 {offsets = [0, 0], sizes = [8, 128], strides = [1, 1]} : vector<8x512xf32> to vector<8x128xf32>
    %cst_83 = arith.constant 5.000000e-01 : f32
    %230 = vector.broadcast %cst_83 : f32 to vector<8x128xf32>
    %231 = arith.mulf %230, %229 : vector<8x128xf32>
    %cst_84 = arith.constant 5.000000e-01 : f32
    %232 = vector.broadcast %cst_84 : f32 to vector<8x128xf32>
    %233 = arith.addf %231, %232 : vector<8x128xf32>
    %234 = vector.extract_strided_slice %228 {offsets = [0, 128], sizes = [8, 128], strides = [1, 1]} : vector<8x512xf32> to vector<8x128xf32>
    %cst_85 = arith.constant 5.000000e-01 : f32
    %235 = vector.broadcast %cst_85 : f32 to vector<8x128xf32>
    %236 = arith.mulf %235, %234 : vector<8x128xf32>
    %cst_86 = arith.constant 5.000000e-01 : f32
    %237 = vector.broadcast %cst_86 : f32 to vector<8x128xf32>
    %238 = arith.addf %236, %237 : vector<8x128xf32>
    %239 = vector.extract_strided_slice %228 {offsets = [0, 256], sizes = [8, 128], strides = [1, 1]} : vector<8x512xf32> to vector<8x128xf32>
    %240 = vector.extract_strided_slice %228 {offsets = [0, 384], sizes = [8, 128], strides = [1, 1]} : vector<8x512xf32> to vector<8x128xf32>
    %cst_87 = arith.constant 5.000000e-01 : f32
    %241 = vector.broadcast %cst_87 : f32 to vector<8x128xf32>
    %242 = arith.mulf %241, %240 : vector<8x128xf32>
    %cst_88 = arith.constant 5.000000e-01 : f32
    %243 = vector.broadcast %cst_88 : f32 to vector<8x128xf32>
    %244 = arith.addf %242, %243 : vector<8x128xf32>
    %245 = arith.mulf %238, %195 : vector<8x128xf32>
    %246 = arith.mulf %233, %239 : vector<8x128xf32>
    %247 = arith.addf %245, %246 : vector<8x128xf32>
    %248 = math.tanh %247 : vector<8x128xf32>
    %249 = arith.mulf %244, %248 : vector<8x128xf32>
    %250 = tpu.concatenate %249, %223 in 1 : vector<8x128xf32>, vector<8x128xf32> -> vector<8x256xf32>
    %cst_89 = arith.constant dense<0.000000e+00> : vector<8x512xf32>
    %251 = tpu.matmul %250, %15, %cst_89 {dimension_numbers = #tpu.dot_dimension_numbers<[1], [0], [0], [1], [0, 0, 1, 1], [], []>} : vector<8x256xf32>, vector<256x512xf32>, vector<8x512xf32> -> vector<8x512xf32>
    %252 = vector.broadcast %12 : vector<1x512xf32> to vector<8x512xf32>
    %253 = arith.addf %251, %252 : vector<8x512xf32>
    %254 = math.tanh %253 : vector<8x512xf32>
    %255 = vector.extract_strided_slice %254 {offsets = [0, 0], sizes = [8, 128], strides = [1, 1]} : vector<8x512xf32> to vector<8x128xf32>
    %cst_90 = arith.constant 5.000000e-01 : f32
    %256 = vector.broadcast %cst_90 : f32 to vector<8x128xf32>
    %257 = arith.mulf %256, %255 : vector<8x128xf32>
    %cst_91 = arith.constant 5.000000e-01 : f32
    %258 = vector.broadcast %cst_91 : f32 to vector<8x128xf32>
    %259 = arith.addf %257, %258 : vector<8x128xf32>
    %260 = vector.extract_strided_slice %254 {offsets = [0, 128], sizes = [8, 128], strides = [1, 1]} : vector<8x512xf32> to vector<8x128xf32>
    %cst_92 = arith.constant 5.000000e-01 : f32
    %261 = vector.broadcast %cst_92 : f32 to vector<8x128xf32>
    %262 = arith.mulf %261, %260 : vector<8x128xf32>
    %cst_93 = arith.constant 5.000000e-01 : f32
    %263 = vector.broadcast %cst_93 : f32 to vector<8x128xf32>
    %264 = arith.addf %262, %263 : vector<8x128xf32>
    %265 = vector.extract_strided_slice %254 {offsets = [0, 256], sizes = [8, 128], strides = [1, 1]} : vector<8x512xf32> to vector<8x128xf32>
    %266 = vector.extract_strided_slice %254 {offsets = [0, 384], sizes = [8, 128], strides = [1, 1]} : vector<8x512xf32> to vector<8x128xf32>
    %cst_94 = arith.constant 5.000000e-01 : f32
    %267 = vector.broadcast %cst_94 : f32 to vector<8x128xf32>
    %268 = arith.mulf %267, %266 : vector<8x128xf32>
    %cst_95 = arith.constant 5.000000e-01 : f32
    %269 = vector.broadcast %cst_95 : f32 to vector<8x128xf32>
    %270 = arith.addf %268, %269 : vector<8x128xf32>
    %271 = arith.mulf %264, %221 : vector<8x128xf32>
    %272 = arith.mulf %259, %265 : vector<8x128xf32>
    %273 = arith.addf %271, %272 : vector<8x128xf32>
    %274 = math.tanh %273 : vector<8x128xf32>
    %275 = arith.mulf %270, %274 : vector<8x128xf32>
    %c5 = arith.constant 5 : index
    %c0_96 = arith.constant 0 : index
    %c0_97 = arith.constant 0 : index
    %276 = vector.load %arg9[%c5, %c0_96, %c0_97] : memref<8x8x512xf32, #tpu.memory_space<vmem>>, vector<1x8x512xf32>
    %277 = vector.shape_cast %276 : vector<1x8x512xf32> to vector<8x512xf32>
    %cst_98 = arith.constant dense<0.000000e+00> : vector<8x512xf32>
    %278 = tpu.matmul %249, %14, %cst_98 {dimension_numbers = #tpu.dot_dimension_numbers<[1], [0], [0], [1], [0, 0, 1, 1], [], []>} : vector<8x128xf32>, vector<128x512xf32>, vector<8x512xf32> -> vector<8x512xf32>
    %279 = arith.addf %277, %278 : vector<8x512xf32>
    %280 = math.tanh %279 : vector<8x512xf32>
    %281 = vector.extract_strided_slice %280 {offsets = [0, 0], sizes = [8, 128], strides = [1, 1]} : vector<8x512xf32> to vector<8x128xf32>
    %cst_99 = arith.constant 5.000000e-01 : f32
    %282 = vector.broadcast %cst_99 : f32 to vector<8x128xf32>
    %283 = arith.mulf %282, %281 : vector<8x128xf32>
    %cst_100 = arith.constant 5.000000e-01 : f32
    %284 = vector.broadcast %cst_100 : f32 to vector<8x128xf32>
    %285 = arith.addf %283, %284 : vector<8x128xf32>
    %286 = vector.extract_strided_slice %280 {offsets = [0, 128], sizes = [8, 128], strides = [1, 1]} : vector<8x512xf32> to vector<8x128xf32>
    %cst_101 = arith.constant 5.000000e-01 : f32
    %287 = vector.broadcast %cst_101 : f32 to vector<8x128xf32>
    %288 = arith.mulf %287, %286 : vector<8x128xf32>
    %cst_102 = arith.constant 5.000000e-01 : f32
    %289 = vector.broadcast %cst_102 : f32 to vector<8x128xf32>
    %290 = arith.addf %288, %289 : vector<8x128xf32>
    %291 = vector.extract_strided_slice %280 {offsets = [0, 256], sizes = [8, 128], strides = [1, 1]} : vector<8x512xf32> to vector<8x128xf32>
    %292 = vector.extract_strided_slice %280 {offsets = [0, 384], sizes = [8, 128], strides = [1, 1]} : vector<8x512xf32> to vector<8x128xf32>
    %cst_103 = arith.constant 5.000000e-01 : f32
    %293 = vector.broadcast %cst_103 : f32 to vector<8x128xf32>
    %294 = arith.mulf %293, %292 : vector<8x128xf32>
    %cst_104 = arith.constant 5.000000e-01 : f32
    %295 = vector.broadcast %cst_104 : f32 to vector<8x128xf32>
    %296 = arith.addf %294, %295 : vector<8x128xf32>
    %297 = arith.mulf %290, %247 : vector<8x128xf32>
    %298 = arith.mulf %285, %291 : vector<8x128xf32>
    %299 = arith.addf %297, %298 : vector<8x128xf32>
    %300 = math.tanh %299 : vector<8x128xf32>
    %301 = arith.mulf %296, %300 : vector<8x128xf32>
    %302 = tpu.concatenate %301, %275 in 1 : vector<8x128xf32>, vector<8x128xf32> -> vector<8x256xf32>
    %cst_105 = arith.constant dense<0.000000e+00> : vector<8x512xf32>
    %303 = tpu.matmul %302, %15, %cst_105 {dimension_numbers = #tpu.dot_dimension_numbers<[1], [0], [0], [1], [0, 0, 1, 1], [], []>} : vector<8x256xf32>, vector<256x512xf32>, vector<8x512xf32> -> vector<8x512xf32>
    %304 = vector.broadcast %12 : vector<1x512xf32> to vector<8x512xf32>
    %305 = arith.addf %303, %304 : vector<8x512xf32>
    %306 = math.tanh %305 : vector<8x512xf32>
    %307 = vector.extract_strided_slice %306 {offsets = [0, 0], sizes = [8, 128], strides = [1, 1]} : vector<8x512xf32> to vector<8x128xf32>
    %cst_106 = arith.constant 5.000000e-01 : f32
    %308 = vector.broadcast %cst_106 : f32 to vector<8x128xf32>
    %309 = arith.mulf %308, %307 : vector<8x128xf32>
    %cst_107 = arith.constant 5.000000e-01 : f32
    %310 = vector.broadcast %cst_107 : f32 to vector<8x128xf32>
    %311 = arith.addf %309, %310 : vector<8x128xf32>
    %312 = vector.extract_strided_slice %306 {offsets = [0, 128], sizes = [8, 128], strides = [1, 1]} : vector<8x512xf32> to vector<8x128xf32>
    %cst_108 = arith.constant 5.000000e-01 : f32
    %313 = vector.broadcast %cst_108 : f32 to vector<8x128xf32>
    %314 = arith.mulf %313, %312 : vector<8x128xf32>
    %cst_109 = arith.constant 5.000000e-01 : f32
    %315 = vector.broadcast %cst_109 : f32 to vector<8x128xf32>
    %316 = arith.addf %314, %315 : vector<8x128xf32>
    %317 = vector.extract_strided_slice %306 {offsets = [0, 256], sizes = [8, 128], strides = [1, 1]} : vector<8x512xf32> to vector<8x128xf32>
    %318 = vector.extract_strided_slice %306 {offsets = [0, 384], sizes = [8, 128], strides = [1, 1]} : vector<8x512xf32> to vector<8x128xf32>
    %cst_110 = arith.constant 5.000000e-01 : f32
    %319 = vector.broadcast %cst_110 : f32 to vector<8x128xf32>
    %320 = arith.mulf %319, %318 : vector<8x128xf32>
    %cst_111 = arith.constant 5.000000e-01 : f32
    %321 = vector.broadcast %cst_111 : f32 to vector<8x128xf32>
    %322 = arith.addf %320, %321 : vector<8x128xf32>
    %323 = arith.mulf %316, %273 : vector<8x128xf32>
    %324 = arith.mulf %311, %317 : vector<8x128xf32>
    %325 = arith.addf %323, %324 : vector<8x128xf32>
    %326 = math.tanh %325 : vector<8x128xf32>
    %327 = arith.mulf %322, %326 : vector<8x128xf32>
    %c6 = arith.constant 6 : index
    %c0_112 = arith.constant 0 : index
    %c0_113 = arith.constant 0 : index
    %328 = vector.load %arg9[%c6, %c0_112, %c0_113] : memref<8x8x512xf32, #tpu.memory_space<vmem>>, vector<1x8x512xf32>
    %329 = vector.shape_cast %328 : vector<1x8x512xf32> to vector<8x512xf32>
    %cst_114 = arith.constant dense<0.000000e+00> : vector<8x512xf32>
    %330 = tpu.matmul %301, %14, %cst_114 {dimension_numbers = #tpu.dot_dimension_numbers<[1], [0], [0], [1], [0, 0, 1, 1], [], []>} : vector<8x128xf32>, vector<128x512xf32>, vector<8x512xf32> -> vector<8x512xf32>
    %331 = arith.addf %329, %330 : vector<8x512xf32>
    %332 = math.tanh %331 : vector<8x512xf32>
    %333 = vector.extract_strided_slice %332 {offsets = [0, 0], sizes = [8, 128], strides = [1, 1]} : vector<8x512xf32> to vector<8x128xf32>
    %cst_115 = arith.constant 5.000000e-01 : f32
    %334 = vector.broadcast %cst_115 : f32 to vector<8x128xf32>
    %335 = arith.mulf %334, %333 : vector<8x128xf32>
    %cst_116 = arith.constant 5.000000e-01 : f32
    %336 = vector.broadcast %cst_116 : f32 to vector<8x128xf32>
    %337 = arith.addf %335, %336 : vector<8x128xf32>
    %338 = vector.extract_strided_slice %332 {offsets = [0, 128], sizes = [8, 128], strides = [1, 1]} : vector<8x512xf32> to vector<8x128xf32>
    %cst_117 = arith.constant 5.000000e-01 : f32
    %339 = vector.broadcast %cst_117 : f32 to vector<8x128xf32>
    %340 = arith.mulf %339, %338 : vector<8x128xf32>
    %cst_118 = arith.constant 5.000000e-01 : f32
    %341 = vector.broadcast %cst_118 : f32 to vector<8x128xf32>
    %342 = arith.addf %340, %341 : vector<8x128xf32>
    %343 = vector.extract_strided_slice %332 {offsets = [0, 256], sizes = [8, 128], strides = [1, 1]} : vector<8x512xf32> to vector<8x128xf32>
    %344 = vector.extract_strided_slice %332 {offsets = [0, 384], sizes = [8, 128], strides = [1, 1]} : vector<8x512xf32> to vector<8x128xf32>
    %cst_119 = arith.constant 5.000000e-01 : f32
    %345 = vector.broadcast %cst_119 : f32 to vector<8x128xf32>
    %346 = arith.mulf %345, %344 : vector<8x128xf32>
    %cst_120 = arith.constant 5.000000e-01 : f32
    %347 = vector.broadcast %cst_120 : f32 to vector<8x128xf32>
    %348 = arith.addf %346, %347 : vector<8x128xf32>
    %349 = arith.mulf %342, %299 : vector<8x128xf32>
    %350 = arith.mulf %337, %343 : vector<8x128xf32>
    %351 = arith.addf %349, %350 : vector<8x128xf32>
    %352 = math.tanh %351 : vector<8x128xf32>
    %353 = arith.mulf %348, %352 : vector<8x128xf32>
    %354 = tpu.concatenate %353, %327 in 1 : vector<8x128xf32>, vector<8x128xf32> -> vector<8x256xf32>
    %cst_121 = arith.constant dense<0.000000e+00> : vector<8x512xf32>
    %355 = tpu.matmul %354, %15, %cst_121 {dimension_numbers = #tpu.dot_dimension_numbers<[1], [0], [0], [1], [0, 0, 1, 1], [], []>} : vector<8x256xf32>, vector<256x512xf32>, vector<8x512xf32> -> vector<8x512xf32>
    %356 = vector.broadcast %12 : vector<1x512xf32> to vector<8x512xf32>
    %357 = arith.addf %355, %356 : vector<8x512xf32>
    %358 = math.tanh %357 : vector<8x512xf32>
    %359 = vector.extract_strided_slice %358 {offsets = [0, 0], sizes = [8, 128], strides = [1, 1]} : vector<8x512xf32> to vector<8x128xf32>
    %cst_122 = arith.constant 5.000000e-01 : f32
    %360 = vector.broadcast %cst_122 : f32 to vector<8x128xf32>
    %361 = arith.mulf %360, %359 : vector<8x128xf32>
    %cst_123 = arith.constant 5.000000e-01 : f32
    %362 = vector.broadcast %cst_123 : f32 to vector<8x128xf32>
    %363 = arith.addf %361, %362 : vector<8x128xf32>
    %364 = vector.extract_strided_slice %358 {offsets = [0, 128], sizes = [8, 128], strides = [1, 1]} : vector<8x512xf32> to vector<8x128xf32>
    %cst_124 = arith.constant 5.000000e-01 : f32
    %365 = vector.broadcast %cst_124 : f32 to vector<8x128xf32>
    %366 = arith.mulf %365, %364 : vector<8x128xf32>
    %cst_125 = arith.constant 5.000000e-01 : f32
    %367 = vector.broadcast %cst_125 : f32 to vector<8x128xf32>
    %368 = arith.addf %366, %367 : vector<8x128xf32>
    %369 = vector.extract_strided_slice %358 {offsets = [0, 256], sizes = [8, 128], strides = [1, 1]} : vector<8x512xf32> to vector<8x128xf32>
    %370 = vector.extract_strided_slice %358 {offsets = [0, 384], sizes = [8, 128], strides = [1, 1]} : vector<8x512xf32> to vector<8x128xf32>
    %cst_126 = arith.constant 5.000000e-01 : f32
    %371 = vector.broadcast %cst_126 : f32 to vector<8x128xf32>
    %372 = arith.mulf %371, %370 : vector<8x128xf32>
    %cst_127 = arith.constant 5.000000e-01 : f32
    %373 = vector.broadcast %cst_127 : f32 to vector<8x128xf32>
    %374 = arith.addf %372, %373 : vector<8x128xf32>
    %375 = arith.mulf %368, %325 : vector<8x128xf32>
    %376 = arith.mulf %363, %369 : vector<8x128xf32>
    %377 = arith.addf %375, %376 : vector<8x128xf32>
    %378 = math.tanh %377 : vector<8x128xf32>
    %379 = arith.mulf %374, %378 : vector<8x128xf32>
    %c7 = arith.constant 7 : index
    %c0_128 = arith.constant 0 : index
    %c0_129 = arith.constant 0 : index
    %380 = vector.load %arg9[%c7, %c0_128, %c0_129] : memref<8x8x512xf32, #tpu.memory_space<vmem>>, vector<1x8x512xf32>
    %381 = vector.shape_cast %380 : vector<1x8x512xf32> to vector<8x512xf32>
    %cst_130 = arith.constant dense<0.000000e+00> : vector<8x512xf32>
    %382 = tpu.matmul %353, %14, %cst_130 {dimension_numbers = #tpu.dot_dimension_numbers<[1], [0], [0], [1], [0, 0, 1, 1], [], []>} : vector<8x128xf32>, vector<128x512xf32>, vector<8x512xf32> -> vector<8x512xf32>
    %383 = arith.addf %381, %382 : vector<8x512xf32>
    %384 = math.tanh %383 : vector<8x512xf32>
    %385 = vector.extract_strided_slice %384 {offsets = [0, 0], sizes = [8, 128], strides = [1, 1]} : vector<8x512xf32> to vector<8x128xf32>
    %cst_131 = arith.constant 5.000000e-01 : f32
    %386 = vector.broadcast %cst_131 : f32 to vector<8x128xf32>
    %387 = arith.mulf %386, %385 : vector<8x128xf32>
    %cst_132 = arith.constant 5.000000e-01 : f32
    %388 = vector.broadcast %cst_132 : f32 to vector<8x128xf32>
    %389 = arith.addf %387, %388 : vector<8x128xf32>
    %390 = vector.extract_strided_slice %384 {offsets = [0, 128], sizes = [8, 128], strides = [1, 1]} : vector<8x512xf32> to vector<8x128xf32>
    %cst_133 = arith.constant 5.000000e-01 : f32
    %391 = vector.broadcast %cst_133 : f32 to vector<8x128xf32>
    %392 = arith.mulf %391, %390 : vector<8x128xf32>
    %cst_134 = arith.constant 5.000000e-01 : f32
    %393 = vector.broadcast %cst_134 : f32 to vector<8x128xf32>
    %394 = arith.addf %392, %393 : vector<8x128xf32>
    %395 = vector.extract_strided_slice %384 {offsets = [0, 256], sizes = [8, 128], strides = [1, 1]} : vector<8x512xf32> to vector<8x128xf32>
    %396 = vector.extract_strided_slice %384 {offsets = [0, 384], sizes = [8, 128], strides = [1, 1]} : vector<8x512xf32> to vector<8x128xf32>
    %cst_135 = arith.constant 5.000000e-01 : f32
    %397 = vector.broadcast %cst_135 : f32 to vector<8x128xf32>
    %398 = arith.mulf %397, %396 : vector<8x128xf32>
    %cst_136 = arith.constant 5.000000e-01 : f32
    %399 = vector.broadcast %cst_136 : f32 to vector<8x128xf32>
    %400 = arith.addf %398, %399 : vector<8x128xf32>
    %401 = arith.mulf %394, %351 : vector<8x128xf32>
    %402 = arith.mulf %389, %395 : vector<8x128xf32>
    %403 = arith.addf %401, %402 : vector<8x128xf32>
    %404 = math.tanh %403 : vector<8x128xf32>
    %405 = arith.mulf %400, %404 : vector<8x128xf32>
    %406 = tpu.concatenate %405, %379 in 1 : vector<8x128xf32>, vector<8x128xf32> -> vector<8x256xf32>
    %cst_137 = arith.constant dense<0.000000e+00> : vector<8x512xf32>
    %407 = tpu.matmul %406, %15, %cst_137 {dimension_numbers = #tpu.dot_dimension_numbers<[1], [0], [0], [1], [0, 0, 1, 1], [], []>} : vector<8x256xf32>, vector<256x512xf32>, vector<8x512xf32> -> vector<8x512xf32>
    %408 = vector.broadcast %12 : vector<1x512xf32> to vector<8x512xf32>
    %409 = arith.addf %407, %408 : vector<8x512xf32>
    %410 = math.tanh %409 : vector<8x512xf32>
    %411 = vector.extract_strided_slice %410 {offsets = [0, 0], sizes = [8, 128], strides = [1, 1]} : vector<8x512xf32> to vector<8x128xf32>
    %cst_138 = arith.constant 5.000000e-01 : f32
    %412 = vector.broadcast %cst_138 : f32 to vector<8x128xf32>
    %413 = arith.mulf %412, %411 : vector<8x128xf32>
    %cst_139 = arith.constant 5.000000e-01 : f32
    %414 = vector.broadcast %cst_139 : f32 to vector<8x128xf32>
    %415 = arith.addf %413, %414 : vector<8x128xf32>
    %416 = vector.extract_strided_slice %410 {offsets = [0, 128], sizes = [8, 128], strides = [1, 1]} : vector<8x512xf32> to vector<8x128xf32>
    %cst_140 = arith.constant 5.000000e-01 : f32
    %417 = vector.broadcast %cst_140 : f32 to vector<8x128xf32>
    %418 = arith.mulf %417, %416 : vector<8x128xf32>
    %cst_141 = arith.constant 5.000000e-01 : f32
    %419 = vector.broadcast %cst_141 : f32 to vector<8x128xf32>
    %420 = arith.addf %418, %419 : vector<8x128xf32>
    %421 = vector.extract_strided_slice %410 {offsets = [0, 256], sizes = [8, 128], strides = [1, 1]} : vector<8x512xf32> to vector<8x128xf32>
    %422 = vector.extract_strided_slice %410 {offsets = [0, 384], sizes = [8, 128], strides = [1, 1]} : vector<8x512xf32> to vector<8x128xf32>
    %cst_142 = arith.constant 5.000000e-01 : f32
    %423 = vector.broadcast %cst_142 : f32 to vector<8x128xf32>
    %424 = arith.mulf %423, %422 : vector<8x128xf32>
    %cst_143 = arith.constant 5.000000e-01 : f32
    %425 = vector.broadcast %cst_143 : f32 to vector<8x128xf32>
    %426 = arith.addf %424, %425 : vector<8x128xf32>
    %427 = arith.mulf %420, %377 : vector<8x128xf32>
    %428 = arith.mulf %415, %421 : vector<8x128xf32>
    %429 = arith.addf %427, %428 : vector<8x128xf32>
    %430 = math.tanh %429 : vector<8x128xf32>
    %431 = arith.mulf %426, %430 : vector<8x128xf32>
    %c0_144 = arith.constant 0 : index
    %c0_145 = arith.constant 0 : index
    %432 = vector.load %arg6[%c0_144, %c0_145] : memref<128x1xf32, #tpu.memory_space<vmem>>, vector<128x1xf32>
    %cst_146 = arith.constant dense<0.000000e+00> : vector<8x1xf32>
    %433 = tpu.matmul %431, %432, %cst_146 {dimension_numbers = #tpu.dot_dimension_numbers<[1], [0], [0], [1], [0, 0, 1, 1], [], []>} : vector<8x128xf32>, vector<128x1xf32>, vector<8x1xf32> -> vector<8x1xf32>
    %c0_147 = arith.constant 0 : index
    %c0_148 = arith.constant 0 : index
    %434 = vector.load %arg7[%c0_147, %c0_148] : memref<1x1xf32, #tpu.memory_space<vmem>>, vector<1x1xf32>
    %435 = vector.broadcast %434 : vector<1x1xf32> to vector<8x1xf32>
    %436 = arith.addf %433, %435 : vector<8x1xf32>
    %c0_149 = arith.constant 0 : index
    %c0_150 = arith.constant 0 : index
    %437 = vector.load %arg8[%c0_149, %c0_150] : memref<8x1xf32, #tpu.memory_space<vmem>>, vector<8x1xf32>
    tpu.vector_store %arg8[%c0_149, %c0_150], %436 {strides = array<i32>} : memref<8x1xf32, #tpu.memory_space<vmem>>, vector<8x1xf32>,
    return
  }
}

</mosaic_0001>

<bundles_post_ra>
// kernel: tpu_custom_call.1
= control target key start
LH: loop header
LB: loop body
LE: loop exit
PB: predicated region body
PF: predicated region fallthrough
CT: control target
= control target key end

     0   :  { %s6961_s0 = inlined_call_operand.vmem [shape: f32[8,8,1], index: 0, kind: input, shape index: {}]   ;;  %s6962_s1 = inlined_call_operand.vmem [shape: f32[1,512], index: 1, kind: input, shape index: {}]   ;;  %s6963_s2 = inlined_call_operand.hbm [shape: f32[128,512], index: 2, kind: input, shape index: {}]   ;;  %s6964_s3 = inlined_call_operand.vmem [shape: f32[1,512], index: 3, kind: input, shape index: {}]   ;;  %s6965_s4 = inlined_call_operand.hbm [shape: f32[256,512], index: 4, kind: input, shape index: {}]   ;;  %s6966_s5 = inlined_call_operand.vmem [shape: f32[1,512], index: 5, kind: input, shape index: {}]   ;;  %s6967_s6 = inlined_call_operand.vmem [shape: f32[128,1], index: 6, kind: input, shape index: {}]   ;;  %s6968_s7 = inlined_call_operand.<no memory space> [shape: f32[1,1], index: 7, kind: input, shape index: {}]   ;;  %s6969_s8 = inlined_call_operand.vmem [shape: f32[8,1], index: 8, kind: output, shape index: {}]  }
   0x1   :  { %v13_v0 = vstv %s6968_s7 }
   0x2   :  { %14 = vst [vmem:[#allocation3] sm:$0x1] %v13_v0 }
   0x3   :  { %15 = vsyncpa [#allocation5], 0  ;;  %s25_s9 = sshll.u32 %s6963_s2, 4  ;;  %s26_s9 = int_to_ptr.hbm [resolvable:$true] %s25_s9 }
   0x4   :  { %16 = vsyncpa [#allocation7], 0  ;;  %s3507_s10 = smov [#allocation4]   ;;  %s40_s14 = sshll.u32 %s6965_s4, 4  ;;  %s41_s14 = int_to_ptr.hbm [resolvable:$true] %s40_s14 }
   0x5   :  { %s27_s11 = sshll.u32 %s3507_s10, 4  ;;  %s3508_s15 = smov 512   ;;  %s28_s11 = int_to_ptr.vmem [resolvable:$true] %s27_s11 }
   0x6   :  { %s3509_s16 = smov 32   ;;  %s3510_s7 = smov [#allocation6]  }
   0x7   :  { %33 = dma.hbm_to_vmem [thread:$0]  %s26_s9, 8192, %s28_s11, [#allocation5], %s3508_s15, %s3508_s15, %s3509_s16  }
   0x8   :  { %s42_s17 = sshll.u32 %s3510_s7, 4  ;;  %s43_s17 = int_to_ptr.vmem [resolvable:$true] %s42_s17 }
   0x9   :  { %48 = dma.hbm_to_vmem [thread:$0]  %s41_s14, 16384, %s43_s17, [#allocation7], %s3508_s15, %s3508_s15, %s3509_s16  }
   0xa   :  { %3503 = dma.done.wait [#allocation5], 8192  }
   0xb   :  { %3504 = vsyncadd [#allocation5], 4294959104 }
   0xc   :  { %3505 = dma.done.wait [#allocation7], 16384  }
   0xd   :  { %3506 = vsyncadd [#allocation7], 4294950912  ;;  %v3511_v1 = vmov 0   ;;  %v290_v2 = vld [vmem:[#allocation4 + $0x1f0] sm:$0xff]  ;;  %v3567_v3 = vld [vmem:[#allocation4 + $0x1f8] sm:$0xff]  ;;  %vm2700_vm0 = vcmask 7168  }
   0xe   :  { %2714 = vset.pattern.permute.xlu0 %v3511_v1  ;;  %2715 = vset.pattern.permute.xlu1 %v3511_v1  ;;  %v3569_v4 = vld [vmem:[#allocation4 + $0x1e0] sm:$0xff]  ;;  %v3572_v5 = vld [vmem:[#allocation4 + $0x1e8] sm:$0xff]  ;;  %v3574_v6 = vld [vmem:[#allocation4 + $0x1d0] sm:$0xff] }
   0xf   :  { %2716 = vset.pattern.permute.xlu2 %v3511_v1  ;;  %7558 = vst [vmem:[#allocation10_spill] sm:$0xff] %v3569_v4  ;;  %464 = vmatpush.msra.mxu2 %v290_v2  ;;  %v3576_v7 = vld [vmem:[#allocation4 + $0x1d8] sm:$0xff]  ;;  %v3580_v8 = vld [vmem:[#allocation4 + $0x1c0] sm:$0xff]  ;;  %v3582_v9 = vld [vmem:[#allocation4 + $0x1c8] sm:$0xff] }
  0x10   :  { %484 = vmatpush.msra.mxu3 %v3567_v3  ;;  %7559 = vst [vmem:[#allocation11_spill] sm:$0xff] %v3574_v6  ;;  %424 = vmatpush.msra.mxu0 %v3569_v4  ;;  %v3584_v10 = vld [vmem:[#allocation4 + $0x1b0] sm:$0xff]  ;;  %v3588_v11 = vld [vmem:[#allocation4 + $0x1b8] sm:$0xff]  ;;  %v3590_v12 = vld [vmem:[#allocation4 + $0x1a0] sm:$0xff] }
  0x11   :  { %444 = vmatpush.msra.mxu1 %v3572_v5  ;;  %7560 = vst [vmem:[#allocation12_spill] sm:$0xff] %v3580_v8  ;;  %465 = vmatpush.msra.mxu2 %v3574_v6  ;;  %v3592_v13 = vld [vmem:[#allocation4 + $0x1a8] sm:$0xff]  ;;  %v3596_v14 = vld [vmem:[#allocation4 + $0x190] sm:$0xff]  ;;  %v3598_v15 = vld [vmem:[#allocation4 + $0x198] sm:$0xff] }
  0x12   :  { %7561 = vst [vmem:[#allocation13_spill] sm:$0xff] %v3584_v10  ;;  %485 = vmatpush.msra.mxu3 %v3576_v7  ;;  %425 = vmatpush.msra.mxu0 %v3580_v8  ;;  %v3602_v16 = vld [vmem:[#allocation4 + $0x180] sm:$0xff]  ;;  %v3604_v17 = vld [vmem:[#allocation4 + $0x188] sm:$0xff]  ;;  %v3608_v18 = vld [vmem:[#allocation4 + $0x170] sm:$0xff] }
  0x13   :  { %7562 = vst [vmem:[#allocation14_spill] sm:$0xff] %v3590_v12  ;;  %445 = vmatpush.msra.mxu1 %v3582_v9  ;;  %466 = vmatpush.msra.mxu2 %v3584_v10  ;;  %v3610_v19 = vld [vmem:[#allocation4 + $0x178] sm:$0xff]  ;;  %v3614_v20 = vld [vmem:[#allocation4 + $0x160] sm:$0xff]  ;;  %v3616_v21 = vld [vmem:[#allocation4 + $0x168] sm:$0xff] }
  0x14   :  { %7563 = vst [vmem:[#allocation15_spill] sm:$0xff] %v3596_v14  ;;  %486 = vmatpush.msra.mxu3 %v3588_v11  ;;  %426 = vmatpush.msra.mxu0 %v3590_v12  ;;  %v3620_v22 = vld [vmem:[#allocation4 + $0x150] sm:$0xff]  ;;  %v3622_v23 = vld [vmem:[#allocation4 + $0x158] sm:$0xff]  ;;  %v3626_v24 = vld [vmem:[#allocation4 + $0x140] sm:$0xff] }
  0x15   :  { %7564 = vst [vmem:[#allocation16_spill] sm:$0xff] %v3602_v16  ;;  %446 = vmatpush.msra.mxu1 %v3592_v13  ;;  %467 = vmatpush.msra.mxu2 %v3596_v14  ;;  %v3628_v25 = vld [vmem:[#allocation4 + $0x148] sm:$0xff]  ;;  %v3632_v26 = vld [vmem:[#allocation4 + $0x130] sm:$0xff]  ;;  %v3634_v27 = vld [vmem:[#allocation4 + $0x138] sm:$0xff] }
  0x16   :  { %7565 = vst [vmem:[#allocation17_spill] sm:$0xff] %v3608_v18  ;;  %487 = vmatpush.msra.mxu3 %v3598_v15  ;;  %427 = vmatpush.msra.mxu0 %v3602_v16  ;;  %v3638_v28 = vld [vmem:[#allocation4 + $0x120] sm:$0xff]  ;;  %v3640_v29 = vld [vmem:[#allocation4 + $0x128] sm:$0xff]  ;;  %v3644_v30 = vld [vmem:[#allocation4 + $0x110] sm:$0xff] }
  0x17   :  { %7566 = vst [vmem:[#allocation18_spill] sm:$0xff] %v3614_v20  ;;  %447 = vmatpush.msra.mxu1 %v3604_v17  ;;  %468 = vmatpush.msra.mxu2 %v3608_v18  ;;  %v3646_v31 = vld [vmem:[#allocation4 + $0x118] sm:$0xff]  ;;  %v3650_v32 = vld [vmem:[#allocation4 + $0x100] sm:$0xff]  ;;  %v3652_v33 = vld [vmem:[#allocation4 + $0x108] sm:$0xff] }
  0x18   :  { %7567 = vst [vmem:[#allocation19_spill] sm:$0xff] %v3620_v22  ;;  %488 = vmatpush.msra.mxu3 %v3610_v19  ;;  %428 = vmatpush.msra.mxu0 %v3614_v20  ;;  %v3656_v34 = vld [vmem:[#allocation4 + $0xf0] sm:$0xff]  ;;  %v3658_v35 = vld [vmem:[#allocation4 + $0xf8] sm:$0xff]  ;;  %v3662_v36 = vld [vmem:[#allocation4 + $0xe0] sm:$0xff] }
  0x19   :  { %7568 = vst [vmem:[#allocation20_spill] sm:$0xff] %v3626_v24  ;;  %448 = vmatpush.msra.mxu1 %v3616_v21  ;;  %469 = vmatpush.msra.mxu2 %v3620_v22  ;;  %v3664_v37 = vld [vmem:[#allocation4 + $0xe8] sm:$0xff]  ;;  %v3668_v38 = vld [vmem:[#allocation4 + $0xd0] sm:$0xff]  ;;  %v3670_v39 = vld [vmem:[#allocation4 + $0xd8] sm:$0xff] }
  0x1a   :  { %7569 = vst [vmem:[#allocation21_spill] sm:$0xff] %v3632_v26  ;;  %489 = vmatpush.msra.mxu3 %v3622_v23  ;;  %429 = vmatpush.msra.mxu0 %v3626_v24  ;;  %v3674_v40 = vld [vmem:[#allocation4 + $0xc0] sm:$0xff]  ;;  %v3676_v41 = vld [vmem:[#allocation4 + $0xc8] sm:$0xff]  ;;  %v3680_v42 = vld [vmem:[#allocation4 + $0xb0] sm:$0xff] }
  0x1b   :  { %7570 = vst [vmem:[#allocation22_spill] sm:$0xff] %v3638_v28  ;;  %449 = vmatpush.msra.mxu1 %v3628_v25  ;;  %470 = vmatpush.msra.mxu2 %v3632_v26  ;;  %v3682_v43 = vld [vmem:[#allocation4 + $0xb8] sm:$0xff]  ;;  %v3686_v44 = vld [vmem:[#allocation4 + $0xa0] sm:$0xff]  ;;  %v3688_v45 = vld [vmem:[#allocation4 + $0xa8] sm:$0xff] }
  0x1c   :  { %7571 = vst [vmem:[#allocation23_spill] sm:$0xff] %v3644_v30  ;;  %490 = vmatpush.msra.mxu3 %v3634_v27  ;;  %430 = vmatpush.msra.mxu0 %v3638_v28  ;;  %v3692_v46 = vld [vmem:[#allocation4 + $0x90] sm:$0xff]  ;;  %v3694_v47 = vld [vmem:[#allocation4 + $0x98] sm:$0xff]  ;;  %v3698_v48 = vld [vmem:[#allocation4 + $0x80] sm:$0xff] }
  0x1d   :  { %7572 = vst [vmem:[#allocation24_spill] sm:$0xff] %v3650_v32  ;;  %450 = vmatpush.msra.mxu1 %v3640_v29  ;;  %471 = vmatpush.msra.mxu2 %v3644_v30  ;;  %v3700_v49 = vld [vmem:[#allocation4 + $0x88] sm:$0xff]  ;;  %v3704_v50 = vld [vmem:[#allocation4 + $0x70] sm:$0xff]  ;;  %v3706_v51 = vld [vmem:[#allocation4 + $0x78] sm:$0xff] }
  0x1e   :  { %7573 = vst [vmem:[#allocation25_spill] sm:$0xff] %v3656_v34  ;;  %491 = vmatpush.msra.mxu3 %v3646_v31  ;;  %431 = vmatpush.msra.mxu0 %v3650_v32  ;;  %v65_v52 = vld [vmem:[%s6961_s0] sm:$0xff]  ;;  %v3717_v54 = vld [vmem:[#allocation4 + $0x68] sm:$0xff]  ;;  %v3719_v55 = vld [vmem:[#allocation4 + $0x50] sm:$0xff] }
  0x1f   :  { %7574 = vst [vmem:[#allocation26_spill] sm:$0xff] %v3662_v36  ;;  %451 = vmatpush.msra.mxu1 %v3652_v33  ;;  %472 = vmatpush.msra.mxu2 %v3656_v34  ;;  %v3713_v53 = vld [vmem:[#allocation4 + $0x60] sm:$0xff]  ;;  %v3723_v56 = vld [vmem:[#allocation4 + $0x58] sm:$0xff]  ;;  %v3728_v58 = vld [vmem:[#allocation4 + $0x48] sm:$0xff] }
  0x20   :  { %7575 = vst [vmem:[#allocation27_spill] sm:$0xff] %v3668_v38  ;;  %492 = vmatpush.msra.mxu3 %v3658_v35  ;;  %432 = vmatpush.msra.mxu0 %v3662_v36  ;;  %v3725_v57 = vld [vmem:[#allocation4 + $0x40] sm:$0xff]  ;;  %v3730_v59 = vld [vmem:[#allocation4 + $0x30] sm:$0xff]  ;;  %v3734_v60 = vld [vmem:[#allocation4 + $0x38] sm:$0xff] }
  0x21   :  { %7576 = vst [vmem:[#allocation28_spill] sm:$0xff] %v3674_v40  ;;  %452 = vmatpush.msra.mxu1 %v3664_v37  ;;  %473 = vmatpush.msra.mxu2 %v3668_v38  ;;  %v3736_v61 = vld [vmem:[#allocation4 + $0x20] sm:$0xff]  ;;  %v3740_v62 = vld [vmem:[#allocation4 + $0x28] sm:$0xff]  ;;  %v3742_v63 = vld [vmem:[#allocation4 + $0x10] sm:$0xff] }
  0x22   :  { %7577 = vst [vmem:[#allocation29_spill] sm:$0xff] %v3680_v42  ;;  %493 = vmatpush.msra.mxu3 %v3670_v39  ;;  %433 = vmatpush.msra.mxu0 %v3674_v40  ;;  %v3746_v0 = vld [vmem:[#allocation4 + $0x18] sm:$0xff]  ;;  %v3750_v1 = vld [vmem:[#allocation4] sm:$0xff]  ;;  %v3754_v2 = vld [vmem:[#allocation4 + $0x8] sm:$0xff] }
  0x23   :  { %7578 = vst [vmem:[#allocation30_spill] sm:$0xff] %v3686_v44  ;;  %453 = vmatpush.msra.mxu1 %v3676_v41  ;;  %474 = vmatpush.msra.mxu2 %v3680_v42  ;;  %v3794_v42 = vld [vmem:[#allocation6 + $0x1a8] sm:$0xff]  ;;  %v3799_v38 = vld [vmem:[#allocation6 + $0x380] sm:$0xff] }
  0x24   :  { %7579 = vst [vmem:[#allocation31_spill] sm:$0xff] %v3692_v46  ;;  %494 = vmatpush.msra.mxu3 %v3682_v43  ;;  %434 = vmatpush.msra.mxu0 %v3686_v44  ;;  %v71_v44 = vld [vmem:[%s6961_s0 + $0x30] sm:$0xff]  ;;  %v3809_v40 = vld [vmem:[#allocation6 + $0x360] sm:$0xff] }
  0x25   :  { %7580 = vst [vmem:[#allocation32_spill] sm:$0xff] %v3698_v48  ;;  %454 = vmatpush.msra.mxu1 %v3688_v45  ;;  %475 = vmatpush.msra.mxu2 %v3692_v46  ;;  %v3782_v46 = vld [vmem:[#allocation6 + $0x1c8] sm:$0xff]  ;;  %v3821_v36 = vld [vmem:[#allocation6 + $0x340] sm:$0xff] }
  0x26   :  { %7581 = vst [vmem:[#allocation33_spill] sm:$0xff] %v3704_v50  ;;  %495 = vmatpush.msra.mxu3 %v3694_v47  ;;  %435 = vmatpush.msra.mxu0 %v3698_v48  ;;  %v3786_v48 = vld [vmem:[#allocation6 + $0x3a8] sm:$0xff]  ;;  %v3842_v26 = vld [vmem:[#allocation6 + $0x120] sm:$0xff] }
  0x27   :  { %7582 = vst [vmem:[#allocation34_spill] sm:$0xff] %v3713_v53  ;;  %455 = vmatpush.msra.mxu1 %v3700_v49  ;;  %476 = vmatpush.msra.mxu2 %v3704_v50  ;;  %v3774_v50 = vld [vmem:[#allocation6 + $0x1e0] sm:$0xff]  ;;  %v3813_v34 = vld [vmem:[#allocation6 + $0x188] sm:$0xff] }
  0x28   :  { %7583 = vst [vmem:[#allocation35_spill] sm:$0xff] %v3719_v55  ;;  %496 = vmatpush.msra.mxu3 %v3706_v51  ;;  %75 = vperm.xlu0 %2714, %v65_v52   ;;  %v66_v52 = vld [vmem:[%s6961_s0 + $0x8] sm:$0xff] }
  0x29   :  { %7584 = vst [vmem:[#allocation36_spill] sm:$0xff] %v3725_v57  ;;  %436 = vmatpush.msra.mxu0 %v3713_v53  ;;  %456 = vmatpush.msra.mxu1 %v3717_v54  ;;  %v3776_v53 = vld [vmem:[#allocation6 + $0x1e8] sm:$0xff]  ;;  %v3854_v22 = vld [vmem:[#allocation6 + $0x100] sm:$0xff] }
  0x2a   :  { %7585 = vst [vmem:[#allocation37_spill] sm:$0xff] %v3730_v59  ;;  %477 = vmatpush.msra.mxu2 %v3719_v55  ;;  %497 = vmatpush.msra.mxu3 %v3723_v56  ;;  %v3765_v55 = vld [vmem:[#allocation6 + $0x3e8] sm:$0xff]  ;;  %v3867_v18 = vld [vmem:[#allocation6 + $0x2c0] sm:$0xff] }
  0x2b   :  { %7586 = vst [vmem:[#allocation38_spill] sm:$0xff] %v3736_v61  ;;  %437 = vmatpush.msra.mxu0 %v3725_v57  ;;  %457 = vmatpush.msra.mxu1 %v3728_v58  ;;  %v3772_v57 = vld [vmem:[#allocation6 + $0x3c8] sm:$0xff]  ;;  %v3887_v14 = vld [vmem:[#allocation6 + $0x260] sm:$0xff] }
  0x2c   :  { %7587 = vst [vmem:[#allocation39_spill] sm:$0xff] %v3742_v63  ;;  %478 = vmatpush.msra.mxu2 %v3730_v59  ;;  %498 = vmatpush.msra.mxu3 %v3734_v60  ;;  %v6980_v59 = vmov 0.0   ;;  %v3824_v30 = vld [vmem:[#allocation6 + $0x168] sm:$0xff]  ;;  %v3893_v16 = vld [vmem:[#allocation6 + $0x240] sm:$0xff] }
  0x2d   :  { %438 = vmatpush.msra.mxu0 %v3736_v61  ;;  %7588 = vst [vmem:[#allocation40_spill] sm:$0xff] %v3750_v1  ;;  %458 = vmatpush.msra.mxu1 %v3740_v62  ;;  %v3763_v61 = vld [vmem:[#allocation6 + $0x3e0] sm:$0xff]  ;;  %v3836_v32 = vld [vmem:[#allocation6 + $0x148] sm:$0xff] }
  0x2e   :  { %479 = vmatpush.msra.mxu2 %v3742_v63  ;;  %499 = vmatpush.msra.mxu3 %v3746_v0  ;;  %v3768_v63 = vld [vmem:[#allocation6 + $0x3c0] sm:$0xff]  ;;  %7589 = vst [vmem:[#allocation41_spill] sm:$0xff] %v3774_v50  ;;  %v3848_v28 = vld [vmem:[#allocation6 + $0x128] sm:$0xff] }
  0x2f   :  { %480 = vmatmul.f32.vlgmr.msra.gmra.mxu2 %v6980_v59  ;;  %500 = vmatmul.f32.vlgmr.msra.gmra.mxu3 %v6980_v59  ;;  %7590 = vst [vmem:[#allocation42_spill] sm:$0xff] %v3776_v53  ;;  %v3860_v24 = vld [vmem:[#allocation6 + $0x108] sm:$0xff]  ;;  %v3899_v12 = vld [vmem:[#allocation6 + $0x220] sm:$0xff] }
  0x30   :  { %439 = vmatpush.msra.mxu0 %v3750_v1  ;;  %459 = vmatpush.msra.mxu1 %v3754_v2  ;;  %v3780_v1 = vld [vmem:[#allocation6 + $0x1c0] sm:$0xff]  ;;  %7592 = vst [vmem:[#allocation44_spill] sm:$0xff] %v3782_v46  ;;  %v3878_v20 = vld [vmem:[#allocation6 + $0x2a8] sm:$0xff] }
  0x31   :  { %80 = vperm.xlu0 %2714, %v66_v52   ;;  %440 = vmatmul.f32.vlgmr.msra.gmra.mxu0 %v6980_v59  ;;  %7591 = vst [vmem:[#allocation43_spill] sm:$0xff] %v3780_v1  ;;  %v3784_v52 = vld [vmem:[#allocation6 + $0x3a0] sm:$0xff]  ;;  %v3896_v10 = vld [vmem:[#allocation6 + $0x248] sm:$0xff] }
  0x32   :  { %460 = vmatmul.f32.vlgmr.msra.gmra.mxu1 %v6980_v59  ;;  %592 = vmatpush.msrb.mxu3 %v3765_v55  ;;  %v3792_v59 = vld [vmem:[#allocation6 + $0x1a0] sm:$0xff]  ;;  %7594 = vst [vmem:[#allocation46_spill] sm:$0xff] %v3794_v42  ;;  %v3902_v6 = vld [vmem:[#allocation6 + $0x228] sm:$0xff] }
  0x33   :  { %552 = vmatpush.msrb.mxu1 %v3763_v61  ;;  %532 = vmatpush.msrb.mxu0 %v3774_v50  ;;  %7593 = vst [vmem:[#allocation45_spill] sm:$0xff] %v3792_v59  ;;  %v3807_v50 = vld [vmem:[#allocation6 + $0x180] sm:$0xff]  ;;  %v3908_v4 = vld [vmem:[#allocation6 + $0x208] sm:$0xff] }
  0x34   :  { %572 = vmatpush.msrb.mxu2 %v3776_v53  ;;  %593 = vmatpush.msrb.mxu3 %v3772_v57  ;;  %v3805_v53 = vld [vmem:[#allocation6 + $0x388] sm:$0xff]  ;;  %7595 = vst [vmem:[#allocation47_spill] sm:$0xff] %v3807_v50  ;;  %v3905_v8 = vld [vmem:[#allocation6 + $0x200] sm:$0xff] }
  0x35   :  { %553 = vmatpush.msrb.mxu1 %v3768_v63  ;;  %533 = vmatpush.msrb.mxu0 %v3780_v1  ;;  %7596 = vst [vmem:[#allocation48_spill] sm:$0xff] %v3813_v34  ;;  %v3818_v1 = vld [vmem:[#allocation6 + $0x160] sm:$0xff] }
  0x36   :  { %573 = vmatpush.msrb.mxu2 %v3782_v46  ;;  %594 = vmatpush.msrb.mxu3 %v3786_v48  ;;  %v3816_v46 = vld [vmem:[#allocation6 + $0x368] sm:$0xff]  ;;  %7597 = vst [vmem:[#allocation49_spill] sm:$0xff] %v3818_v1 }
  0x37   :  { %554 = vmatpush.msrb.mxu1 %v3784_v52  ;;  %534 = vmatpush.msrb.mxu0 %v3792_v59  ;;  %7598 = vst [vmem:[#allocation50_spill] sm:$0xff] %v3824_v30  ;;  %v3833_v59 = vld [vmem:[#allocation6 + $0x320] sm:$0xff] }
  0x38   :  { %574 = vmatpush.msrb.mxu2 %v3794_v42  ;;  %595 = vmatpush.msrb.mxu3 %v3805_v53  ;;  %v3827_v42 = vld [vmem:[#allocation6 + $0x348] sm:$0xff]  ;;  %7600 = vst [vmem:[#allocation52_spill] sm:$0xff] %v3836_v32 }
  0x39   :  { %105 = vperm.xlu0 %2714, %v71_v44   ;;  %555 = vmatpush.msrb.mxu1 %v3799_v38  ;;  %v3830_v44 = vld [vmem:[#allocation6 + $0x140] sm:$0xff]  ;;  %7601 = vst [vmem:[#allocation53_spill] sm:$0xff] %v3842_v26 }
  0x3a   :  { %535 = vmatpush.msrb.mxu0 %v3807_v50  ;;  %575 = vmatpush.msrb.mxu2 %v3813_v34  ;;  %7599 = vst [vmem:[#allocation51_spill] sm:$0xff] %v3830_v44  ;;  %v3839_v50 = vld [vmem:[#allocation6 + $0x328] sm:$0xff]  ;;  %v3845_v34 = vld [vmem:[#allocation6 + $0x300] sm:$0xff] }
  0x3b   :  { %556 = vmatpush.msrb.mxu1 %v3809_v40  ;;  %596 = vmatpush.msrb.mxu3 %v3816_v46  ;;  %7602 = vst [vmem:[#allocation54_spill] sm:$0xff] %v3848_v28 }
  0x3c   :  { %536 = vmatpush.msrb.mxu0 %v3818_v1  ;;  %576 = vmatpush.msrb.mxu2 %v3824_v30  ;;  %v3851_v1 = vld [vmem:[#allocation6 + $0x308] sm:$0xff]  ;;  %7603 = vst [vmem:[#allocation55_spill] sm:$0xff] %v3854_v22  ;;  %v3857_v30 = vld [vmem:[#allocation6 + $0x2e0] sm:$0xff] }
  0x3d   :  { %557 = vmatpush.msrb.mxu1 %v3821_v36  ;;  %597 = vmatpush.msrb.mxu3 %v3827_v42  ;;  %7604 = vst [vmem:[#allocation56_spill] sm:$0xff] %v3860_v24 }
  0x3e   :  { %537 = vmatpush.msrb.mxu0 %v3830_v44  ;;  %577 = vmatpush.msrb.mxu2 %v3836_v32  ;;  %v3863_v44 = vld [vmem:[#allocation6 + $0x2e8] sm:$0xff]  ;;  %7606 = vst [vmem:[#allocation58_spill] sm:$0xff] %v3878_v20 }
  0x3f   :  { %558 = vmatpush.msrb.mxu1 %v3833_v59  ;;  %598 = vmatpush.msrb.mxu3 %v3839_v50  ;;  %v3871_v32 = vld [vmem:[#allocation6 + $0x2c8] sm:$0xff]  ;;  %7609 = vst [vmem:[#allocation61_spill] sm:$0xff] %v3887_v14 }
  0x40   :  { %538 = vmatpush.msrb.mxu0 %v3842_v26  ;;  %578 = vmatpush.msrb.mxu2 %v3848_v28  ;;  %v3875_v26 = vld [vmem:[#allocation6 + $0x2a0] sm:$0xff]  ;;  %7611 = vst [vmem:[#allocation63_spill] sm:$0xff] %v3893_v16 }
  0x41   :  { %559 = vmatpush.msrb.mxu1 %v3845_v34  ;;  %599 = vmatpush.msrb.mxu3 %v3851_v1  ;;  %7605 = vst [vmem:[#allocation57_spill] sm:$0xff] %v3875_v26  ;;  %v3881_v28 = vld [vmem:[#allocation6 + $0x280] sm:$0xff] }
  0x42   :  { %539 = vmatpush.msrb.mxu0 %v3854_v22  ;;  %579 = vmatpush.msrb.mxu2 %v3860_v24  ;;  %7607 = vst [vmem:[#allocation59_spill] sm:$0xff] %v3881_v28  ;;  %v3884_v22 = vld [vmem:[#allocation6 + $0x288] sm:$0xff] }
  0x43   :  { %560 = vmatpush.msrb.mxu1 %v3857_v30  ;;  %600 = vmatpush.msrb.mxu3 %v3863_v44  ;;  %7608 = vst [vmem:[#allocation60_spill] sm:$0xff] %v3884_v22  ;;  %v3890_v24 = vld [vmem:[#allocation6 + $0x268] sm:$0xff] }
  0x44   :  { %7610 = vst [vmem:[#allocation62_spill] sm:$0xff] %v3890_v24 }
  0x45   :  { %561 = vmatpush.msrb.mxu1 %v3867_v18  ;;  %601 = vmatpush.msrb.mxu3 %v3871_v32  ;;  %7612 = vst [vmem:[#allocation64_spill] sm:$0xff] %v3896_v10 }
  0x46   :  { %7613 = vst [vmem:[#allocation65_spill] sm:$0xff] %v3899_v12 }
  0x47   :  { %562 = vmatpush.msrb.mxu1 %v3875_v26  ;;  %602 = vmatpush.msrb.mxu3 %v3878_v20  ;;  %7614 = vst [vmem:[#allocation66_spill] sm:$0xff] %v3902_v6  ;;  %v3991_v20 = vld [vmem:[#allocation6 + $0x2b8] sm:$0xff]  ;;  %v4055_v26 = vld [vmem:[#allocation6 + $0x1f0] sm:$0xff] }
  0x48   :  { %7615 = vst [vmem:[#allocation67_spill] sm:$0xff] %v3905_v8 }
  0x49   :  { %563 = vmatpush.msrb.mxu1 %v3881_v28  ;;  %603 = vmatpush.msrb.mxu3 %v3884_v22  ;;  %7616 = vst [vmem:[#allocation68_spill] sm:$0xff] %v3908_v4  ;;  %v3910_v22 = vld [vmem:[#allocation6 + $0x3f0] sm:$0xff]  ;;  %v3975_v28 = vld [vmem:[#allocation6 + $0xc8] sm:$0xff] }
  0x4a   :  { %7617 = vst [vmem:[#allocation69_spill] sm:$0xff] %v3910_v22 }
  0x4b   :  { %564 = vmatpush.msrb.mxu1 %v3887_v14  ;;  %604 = vmatpush.msrb.mxu3 %v3890_v24  ;;  %v3913_v14 = vld [vmem:[#allocation6 + $0x3f8] sm:$0xff]  ;;  %v3916_v24 = vld [vmem:[#allocation6 + $0x3d0] sm:$0xff]  ;;  %7639 = vst [vmem:[#allocation90_spill] sm:$0xff] %v3975_v28 }
  0x4c   :  { %7618 = vst [vmem:[#allocation70_spill] sm:$0xff] %v3913_v14 }
  0x4d   :  { %565 = vmatpush.msrb.mxu1 %v3893_v16  ;;  %605 = vmatpush.msrb.mxu3 %v3896_v10  ;;  %7619 = vst [vmem:[#allocation71_spill] sm:$0xff] %v3916_v24  ;;  %v3920_v10 = vld [vmem:[#allocation6 + $0x3d8] sm:$0xff]  ;;  %v7622_v16 = vmov 0.0  }
  0x4e   :  { %7620 = vst [vmem:[#allocation72_spill] sm:$0xff] %v3920_v10 }
  0x4f   :  { %566 = vmatpush.msrb.mxu1 %v3899_v12  ;;  %606 = vmatpush.msrb.mxu3 %v3902_v6  ;;  %v3923_v12 = vld [vmem:[#allocation6 + $0x3b0] sm:$0xff]  ;;  %v3927_v6 = vld [vmem:[#allocation6 + $0x3b8] sm:$0xff]  ;;  %7645 = vst [vmem:[#allocation96_spill] sm:$0xff] %v3991_v20 }
  0x50   :  { %7621 = vst [vmem:[#allocation73_spill] sm:$0xff] %v3923_v12 }
  0x51   :  { %567 = vmatpush.msrb.mxu1 %v3905_v8  ;;  %607 = vmatpush.msrb.mxu3 %v3908_v4  ;;  %7623 = vst [vmem:[#allocation74_spill] sm:$0xff] %v3927_v6  ;;  %v3931_v8 = vld [vmem:[#allocation6 + $0x390] sm:$0xff]  ;;  %v3940_v4 = vld [vmem:[#allocation6 + $0x378] sm:$0xff] }
  0x52   :  { %568 = vmatmul.f32.vlgmr.msrb.gmra.mxu1 %v7622_v16  ;;  %608 = vmatmul.f32.vlgmr.msrb.gmra.mxu3 %v7622_v16  ;;  %7624 = vst [vmem:[#allocation75_spill] sm:$0xff] %v3931_v8 }
  0x53   :  { %632 = vmatpush.msra.mxu1 %v3910_v22  ;;  %672 = vmatpush.msra.mxu3 %v3913_v14  ;;  %v3934_v22 = vld [vmem:[#allocation6 + $0x398] sm:$0xff]  ;;  %v3937_v14 = vld [vmem:[#allocation6 + $0x370] sm:$0xff]  ;;  %7627 = vst [vmem:[#allocation78_spill] sm:$0xff] %v3940_v4 }
  0x54   :  { %7625 = vst [vmem:[#allocation76_spill] sm:$0xff] %v3934_v22 }
  0x55   :  { %633 = vmatpush.msra.mxu1 %v3916_v24  ;;  %673 = vmatpush.msra.mxu3 %v3920_v10  ;;  %7626 = vst [vmem:[#allocation77_spill] sm:$0xff] %v3937_v14  ;;  %v3943_v24 = vld [vmem:[#allocation6 + $0x350] sm:$0xff]  ;;  %v3946_v10 = vld [vmem:[#allocation6 + $0x358] sm:$0xff] }
  0x56   :  { %7628 = vst [vmem:[#allocation79_spill] sm:$0xff] %v3943_v24 }
  0x57   :  { %634 = vmatpush.msra.mxu1 %v3923_v12  ;;  %674 = vmatpush.msra.mxu3 %v3927_v6  ;;  %7629 = vst [vmem:[#allocation80_spill] sm:$0xff] %v3946_v10  ;;  %v3949_v12 = vld [vmem:[#allocation6 + $0x330] sm:$0xff]  ;;  %v3952_v6 = vld [vmem:[#allocation6 + $0x338] sm:$0xff] }
  0x58   :  { %7630 = vst [vmem:[#allocation81_spill] sm:$0xff] %v3949_v12 }
  0x59   :  { %635 = vmatpush.msra.mxu1 %v3931_v8  ;;  %675 = vmatpush.msra.mxu3 %v3934_v22  ;;  %7631 = vst [vmem:[#allocation82_spill] sm:$0xff] %v3952_v6  ;;  %v3955_v8 = vld [vmem:[#allocation6 + $0x310] sm:$0xff]  ;;  %v3958_v22 = vld [vmem:[#allocation6 + $0x318] sm:$0xff] }
  0x5a   :  { %7632 = vst [vmem:[#allocation83_spill] sm:$0xff] %v3955_v8 }
  0x5b   :  { %636 = vmatpush.msra.mxu1 %v3937_v14  ;;  %676 = vmatpush.msra.mxu3 %v3940_v4  ;;  %7633 = vst [vmem:[#allocation84_spill] sm:$0xff] %v3958_v22  ;;  %v3963_v4 = vld [vmem:[#allocation6 + $0xe0] sm:$0xff]  ;;  %v3965_v14 = vld [vmem:[#allocation6 + $0xe8] sm:$0xff] }
  0x5c   :  { %7634 = vst [vmem:[#allocation85_spill] sm:$0xff] %v3963_v4  ;;  %540 = vmatpush.msrb.mxu0 %v3963_v4  ;;  %580 = vmatpush.msrb.mxu2 %v3965_v14  ;;  %v3989_v4 = vld [vmem:[#allocation6 + $0x2b0] sm:$0xff] }
  0x5d   :  { %637 = vmatpush.msra.mxu1 %v3943_v24  ;;  %677 = vmatpush.msra.mxu3 %v3946_v10  ;;  %7635 = vst [vmem:[#allocation86_spill] sm:$0xff] %v3965_v14  ;;  %v3967_v24 = vld [vmem:[#allocation6 + $0x2f0] sm:$0xff]  ;;  %v3971_v10 = vld [vmem:[#allocation6 + $0x2f8] sm:$0xff]  ;;  %v3987_v14 = vld [vmem:[#allocation6 + $0xa8] sm:$0xff] }
  0x5e   :  { %7636 = vst [vmem:[#allocation87_spill] sm:$0xff] %v3967_v24  ;;  %581 = vmatpush.msrb.mxu2 %v3975_v28  ;;  %v4003_v28 = vld [vmem:[#allocation6 + $0x298] sm:$0xff] }
  0x5f   :  { %638 = vmatpush.msra.mxu1 %v3949_v12  ;;  %678 = vmatpush.msra.mxu3 %v3952_v6  ;;  %7637 = vst [vmem:[#allocation88_spill] sm:$0xff] %v3971_v10  ;;  %v3973_v12 = vld [vmem:[#allocation6 + $0xc0] sm:$0xff] }
  0x60   :  { %7638 = vst [vmem:[#allocation89_spill] sm:$0xff] %v3973_v12  ;;  %v3983_v6 = vld [vmem:[#allocation6 + $0xa0] sm:$0xff]  ;;  %541 = vmatpush.msrb.mxu0 %v3973_v12  ;;  %582 = vmatpush.msrb.mxu2 %v3987_v14  ;;  %v4001_v12 = vld [vmem:[#allocation6 + $0x290] sm:$0xff] }
  0x61   :  { %639 = vmatpush.msra.mxu1 %v3955_v8  ;;  %679 = vmatpush.msra.mxu3 %v3958_v22  ;;  %v3979_v22 = vld [vmem:[#allocation6 + $0x2d0] sm:$0xff]  ;;  %v3981_v8 = vld [vmem:[#allocation6 + $0x2d8] sm:$0xff]  ;;  %7642 = vst [vmem:[#allocation93_spill] sm:$0xff] %v3983_v6 }
  0x62   :  { %7640 = vst [vmem:[#allocation91_spill] sm:$0xff] %v3979_v22  ;;  %542 = vmatpush.msrb.mxu0 %v3983_v6  ;;  %v4013_v6 = vld [vmem:[#allocation6 + $0x68] sm:$0xff] }
  0x63   :  { %640 = vmatpush.msra.mxu1 %v3967_v24  ;;  %680 = vmatpush.msra.mxu3 %v3971_v10  ;;  %7641 = vst [vmem:[#allocation92_spill] sm:$0xff] %v3981_v8  ;;  %v3995_v10 = vld [vmem:[#allocation6 + $0x80] sm:$0xff]  ;;  %v3997_v24 = vld [vmem:[#allocation6 + $0x88] sm:$0xff] }
  0x64   :  { %7643 = vst [vmem:[#allocation94_spill] sm:$0xff] %v3987_v14  ;;  %543 = vmatpush.msrb.mxu0 %v3995_v10  ;;  %583 = vmatpush.msrb.mxu2 %v3997_v24  ;;  %v4015_v14 = vld [vmem:[#allocation6 + $0x270] sm:$0xff] }
  0x65   :  { %7644 = vst [vmem:[#allocation95_spill] sm:$0xff] %v3989_v4  ;;  %641 = vmatpush.msra.mxu1 %v3979_v22  ;;  %681 = vmatpush.msra.mxu3 %v3981_v8  ;;  %v4011_v8 = vld [vmem:[#allocation6 + $0x60] sm:$0xff]  ;;  %v4039_v22 = vld [vmem:[#allocation6 + $0x238] sm:$0xff] }
  0x66   :  { %7646 = vst [vmem:[#allocation97_spill] sm:$0xff] %v3995_v10  ;;  %544 = vmatpush.msrb.mxu0 %v4011_v8  ;;  %584 = vmatpush.msrb.mxu2 %v4013_v6  ;;  %v4023_v10 = vld [vmem:[#allocation6 + $0x48] sm:$0xff] }
  0x67   :  { %7647 = vst [vmem:[#allocation98_spill] sm:$0xff] %v3997_v24  ;;  %642 = vmatpush.msra.mxu1 %v3989_v4  ;;  %682 = vmatpush.msra.mxu3 %v3991_v20  ;;  %v4019_v4 = vld [vmem:[#allocation6 + $0x278] sm:$0xff]  ;;  %v4021_v20 = vld [vmem:[#allocation6 + $0x40] sm:$0xff]  ;;  %v4027_v24 = vld [vmem:[#allocation6 + $0x250] sm:$0xff] }
  0x68   :  { %7648 = vst [vmem:[#allocation99_spill] sm:$0xff] %v4001_v12  ;;  %545 = vmatpush.msrb.mxu0 %v4021_v20  ;;  %585 = vmatpush.msrb.mxu2 %v4023_v10 }
  0x69   :  { %7649 = vst [vmem:[#allocation100_spill] sm:$0xff] %v4003_v28  ;;  %643 = vmatpush.msra.mxu1 %v4001_v12  ;;  %683 = vmatpush.msra.mxu3 %v4003_v28  ;;  %v4029_v28 = vld [vmem:[#allocation6 + $0x258] sm:$0xff]  ;;  %v4031_v12 = vld [vmem:[#allocation6 + $0x20] sm:$0xff] }
  0x6a   :  { %7650 = vst [vmem:[#allocation101_spill] sm:$0xff] %v4011_v8  ;;  %v4037_v8 = vld [vmem:[#allocation6 + $0x230] sm:$0xff]  ;;  %546 = vmatpush.msrb.mxu0 %v4031_v12 }
  0x6b   :  { %7651 = vst [vmem:[#allocation102_spill] sm:$0xff] %v4013_v6  ;;  %644 = vmatpush.msra.mxu1 %v4015_v14  ;;  %684 = vmatpush.msra.mxu3 %v4019_v4  ;;  %v4035_v6 = vld [vmem:[#allocation6 + $0x28] sm:$0xff] }
  0x6c   :  { %7652 = vst [vmem:[#allocation103_spill] sm:$0xff] %v4015_v14  ;;  %v4045_v14 = vld [vmem:[#allocation6 + $0x8] sm:$0xff]  ;;  %586 = vmatpush.msrb.mxu2 %v4035_v6 }
  0x6d   :  { %7653 = vst [vmem:[#allocation104_spill] sm:$0xff] %v4019_v4  ;;  %645 = vmatpush.msra.mxu1 %v4027_v24  ;;  %685 = vmatpush.msra.mxu3 %v4029_v28  ;;  %v4043_v4 = vld [vmem:[#allocation6] sm:$0xff] }
  0x6e   :  { %7654 = vst [vmem:[#allocation105_spill] sm:$0xff] %v4021_v20  ;;  %v4049_v20 = vld [vmem:[#allocation6 + $0x210] sm:$0xff]  ;;  %547 = vmatpush.msrb.mxu0 %v4043_v4  ;;  %587 = vmatpush.msrb.mxu2 %v4045_v14 }
  0x6f   :  { %7655 = vst [vmem:[#allocation106_spill] sm:$0xff] %v4023_v10  ;;  %v4051_v10 = vld [vmem:[#allocation6 + $0x218] sm:$0xff]  ;;  %646 = vmatpush.msra.mxu1 %v4037_v8  ;;  %686 = vmatpush.msra.mxu3 %v4039_v22 }
  0x70   :  { %7656 = vst [vmem:[#allocation107_spill] sm:$0xff] %v4027_v24  ;;  %v4057_v24 = vld [vmem:[#allocation6 + $0x1f8] sm:$0xff]  ;;  %612 = vmatpush.msra.mxu0 %v4055_v26 }
  0x71   :  { %7657 = vst [vmem:[#allocation108_spill] sm:$0xff] %v4031_v12  ;;  %647 = vmatpush.msra.mxu1 %v4049_v20  ;;  %687 = vmatpush.msra.mxu3 %v4051_v10  ;;  %v4067_v12 = vld [vmem:[#allocation6 + $0x1d8] sm:$0xff] }
  0x72   :  { %7658 = vst [vmem:[#allocation109_spill] sm:$0xff] %v4035_v6  ;;  %652 = vmatpush.msra.mxu2 %v4057_v24  ;;  %v4065_v6 = vld [vmem:[#allocation6 + $0x1d0] sm:$0xff]  ;;  %648 = vmatmul.f32.vlgmr.msra.gmra.mxu1 %v7622_v16 }
  0x73   :  { %7659 = vst [vmem:[#allocation110_spill] sm:$0xff] %v4045_v14  ;;  %732 = vmatpush.msrb.mxu1 %v3572_v5  ;;  %772 = vmatpush.msrb.mxu3 %v3567_v3  ;;  %v4075_v14 = vld [vmem:[#allocation6 + $0x1b0] sm:$0xff]  ;;  %v4085_v5 = vld [vmem:[#allocation6 + $0x198] sm:$0xff] }
  0x74   :  { %7660 = vst [vmem:[#allocation111_spill] sm:$0xff] %v4055_v26  ;;  %613 = vmatpush.msra.mxu0 %v4065_v6  ;;  %653 = vmatpush.msra.mxu2 %v4067_v12  ;;  %v4077_v26 = vld [vmem:[#allocation6 + $0x1b8] sm:$0xff]  ;;  %v4083_v3 = vld [vmem:[#allocation6 + $0x190] sm:$0xff] }
  0x75   :  { %733 = vmatpush.msrb.mxu1 %v3582_v9  ;;  %773 = vmatpush.msrb.mxu3 %v3576_v7  ;;  %v4091_v7 = vld [vmem:[#allocation6 + $0x170] sm:$0xff]  ;;  %v4093_v9 = vld [vmem:[#allocation6 + $0x178] sm:$0xff] }
  0x76   :  { %614 = vmatpush.msra.mxu0 %v4075_v14  ;;  %654 = vmatpush.msra.mxu2 %v4077_v26 }
  0x77   :  { %734 = vmatpush.msrb.mxu1 %v3592_v13  ;;  %774 = vmatpush.msrb.mxu3 %v3588_v11  ;;  %v4099_v11 = vld [vmem:[#allocation6 + $0x150] sm:$0xff]  ;;  %v4101_v13 = vld [vmem:[#allocation6 + $0x158] sm:$0xff] }
  0x78   :  { %615 = vmatpush.msra.mxu0 %v4083_v3  ;;  %655 = vmatpush.msra.mxu2 %v4085_v5 }
  0x79   :  { %735 = vmatpush.msrb.mxu1 %v3604_v17  ;;  %775 = vmatpush.msrb.mxu3 %v3598_v15  ;;  %v4107_v15 = vld [vmem:[#allocation6 + $0x130] sm:$0xff]  ;;  %v4109_v17 = vld [vmem:[#allocation6 + $0x138] sm:$0xff] }
  0x7a   :  { %616 = vmatpush.msra.mxu0 %v4091_v7  ;;  %656 = vmatpush.msra.mxu2 %v4093_v9 }
  0x7b   :  { %736 = vmatpush.msrb.mxu1 %v3616_v21  ;;  %776 = vmatpush.msrb.mxu3 %v3610_v19  ;;  %v4115_v19 = vld [vmem:[#allocation6 + $0x110] sm:$0xff]  ;;  %v4117_v21 = vld [vmem:[#allocation6 + $0x118] sm:$0xff] }
  0x7c   :  { %617 = vmatpush.msra.mxu0 %v4099_v11  ;;  %657 = vmatpush.msra.mxu2 %v4101_v13 }
  0x7d   :  { %737 = vmatpush.msrb.mxu1 %v3628_v25  ;;  %777 = vmatpush.msrb.mxu3 %v3622_v23  ;;  %v4123_v23 = vld [vmem:[#allocation6 + $0xf0] sm:$0xff]  ;;  %v4125_v25 = vld [vmem:[#allocation6 + $0xf8] sm:$0xff] }
  0x7e   :  { %618 = vmatpush.msra.mxu0 %v4107_v15  ;;  %658 = vmatpush.msra.mxu2 %v4109_v17  ;;  %7661 = vst [vmem:[#allocation112_spill] sm:$0xff] %v4123_v23 }
  0x7f   :  { %738 = vmatpush.msrb.mxu1 %v3640_v29  ;;  %778 = vmatpush.msrb.mxu3 %v3634_v27  ;;  %7662 = vst [vmem:[#allocation113_spill] sm:$0xff] %v4125_v25  ;;  %v4130_v27 = vld [vmem:[#allocation6 + $0xd0] sm:$0xff]  ;;  %v4132_v29 = vld [vmem:[#allocation6 + $0xd8] sm:$0xff] }
  0x80   :  { %619 = vmatpush.msra.mxu0 %v4115_v19  ;;  %659 = vmatpush.msra.mxu2 %v4117_v21  ;;  %7663 = vst [vmem:[#allocation114_spill] sm:$0xff] %v4130_v27 }
  0x81   :  { %739 = vmatpush.msrb.mxu1 %v3652_v33  ;;  %779 = vmatpush.msrb.mxu3 %v3646_v31  ;;  %7664 = vst [vmem:[#allocation115_spill] sm:$0xff] %v4132_v29  ;;  %v4137_v31 = vld [vmem:[#allocation6 + $0xb0] sm:$0xff]  ;;  %v4139_v33 = vld [vmem:[#allocation6 + $0xb8] sm:$0xff] }
  0x82   :  { %620 = vmatpush.msra.mxu0 %v4123_v23  ;;  %660 = vmatpush.msra.mxu2 %v4125_v25  ;;  %7665 = vst [vmem:[#allocation116_spill] sm:$0xff] %v4137_v31 }
  0x83   :  { %740 = vmatpush.msrb.mxu1 %v3664_v37  ;;  %780 = vmatpush.msrb.mxu3 %v3658_v35  ;;  %7666 = vst [vmem:[#allocation117_spill] sm:$0xff] %v4139_v33  ;;  %v64_v37 = vld [vmem:[%s6962_s1] sm:$0xf]  ;;  %v4148_v35 = vld [vmem:[#allocation6 + $0x90] sm:$0xff] }
  0x84   :  { %621 = vmatpush.msra.mxu0 %v4130_v27  ;;  %661 = vmatpush.msra.mxu2 %v4132_v29  ;;  %7667 = vst [vmem:[#allocation118_spill] sm:$0xff] %v4148_v35  ;;  %v4150_v27 = vld [vmem:[#allocation6 + $0x98] sm:$0xff]  ;;  %v4160_v29 = vperm.slane %v64_v37, 0 }
  0x85   :  { %741 = vmatpush.msrb.mxu1 %v3676_v41  ;;  %781 = vmatpush.msrb.mxu3 %v3670_v39  ;;  %7668 = vst [vmem:[#allocation119_spill] sm:$0xff] %v4150_v27  ;;  %v4156_v39 = vld [vmem:[#allocation6 + $0x70] sm:$0xff]  ;;  %v4158_v41 = vld [vmem:[#allocation6 + $0x78] sm:$0xff] }
  0x86   :  { %622 = vmatpush.msra.mxu0 %v4137_v31  ;;  %662 = vmatpush.msra.mxu2 %v4139_v33  ;;  %7669 = vst [vmem:[#allocation120_spill] sm:$0xff] %v4158_v41  ;;  %v4162_v31 = vperm.slane %v64_v37, 1 }
  0x87   :  { %742 = vmatpush.msrb.mxu1 %v3688_v45  ;;  %782 = vmatpush.msrb.mxu3 %v3682_v43  ;;  %7670 = vst [vmem:[#allocation121_spill] sm:$0xff] %v4160_v29  ;;  %v63_v43 = vld [vmem:[%s6964_s3] sm:$0xf]  ;;  %v4171_v45 = vld [vmem:[#allocation6 + $0x50] sm:$0xff] }
  0x88   :  { %623 = vmatpush.msra.mxu0 %v4148_v35  ;;  %663 = vmatpush.msra.mxu2 %v4150_v27  ;;  %7671 = vst [vmem:[#allocation122_spill] sm:$0xff] %v4162_v31  ;;  %v4173_v27 = vld [vmem:[#allocation6 + $0x58] sm:$0xff]  ;;  %v4187_v23 = vperm.slane %v63_v43, 1 }
  0x89   :  { %743 = vmatpush.msrb.mxu1 %v3700_v49  ;;  %783 = vmatpush.msrb.mxu3 %v3694_v47  ;;  %7672 = vst [vmem:[#allocation123_spill] sm:$0xff] %v4173_v27  ;;  %v4179_v47 = vld [vmem:[#allocation6 + $0x30] sm:$0xff]  ;;  %v4181_v49 = vld [vmem:[#allocation6 + $0x38] sm:$0xff] }
  0x8a   :  { %688 = vmatmul.f32.vlgmr.msra.gmra.mxu3 %v7622_v16  ;;  %624 = vmatpush.msra.mxu0 %v4156_v39  ;;  %v4184_v16 = vperm.slane %v63_v43, 0 }
  0x8b   :  { %664 = vmatpush.msra.mxu2 %v4158_v41  ;;  %744 = vmatpush.msrb.mxu1 %v3717_v54  ;;  %v4191_v41 = vperm.slane %v64_v37, 2  ;;  %v4199_v54 = vld [vmem:[#allocation6 + $0x18] sm:$0xff] }
  0x8c   :  { %784 = vmatpush.msrb.mxu3 %v3706_v51  ;;  %7673 = vst [vmem:[#allocation124_spill] sm:$0xff] %v4184_v16  ;;  %625 = vmatpush.msra.mxu0 %v4171_v45  ;;  %v4195_v51 = vld [vmem:[#allocation6 + $0x10] sm:$0xff] }
  0x8d   :  { %665 = vmatpush.msra.mxu2 %v4173_v27  ;;  %7674 = vst [vmem:[#allocation125_spill] sm:$0xff] %v4191_v41  ;;  %745 = vmatpush.msrb.mxu1 %v3728_v58  ;;  %v4209_v27 = vperm.slane %v63_v43, 2 }
  0x8e   :  { %785 = vmatpush.msrb.mxu3 %v3723_v56  ;;  %626 = vmatpush.msra.mxu0 %v4179_v47 }
  0x8f   :  { %666 = vmatpush.msra.mxu2 %v4181_v49  ;;  %746 = vmatpush.msrb.mxu1 %v3740_v62 }
  0x90   :  { %786 = vmatpush.msrb.mxu3 %v3734_v60  ;;  %627 = vmatpush.msra.mxu0 %v4195_v51 }
  0x91   :  { %667 = vmatpush.msra.mxu2 %v4199_v54  ;;  %747 = vmatpush.msrb.mxu1 %v3754_v2 }
  0x92   :  { %787 = vmatpush.msrb.mxu3 %v3746_v0 }
  0x93   :  { %831 = vmatpush.msra.mxu1 %v3763_v61 }
  0x94   :  { %871 = vmatpush.msra.mxu3 %v3765_v55 }
  0x95   :  { %832 = vmatpush.msra.mxu1 %v3768_v63 }
  0x96   :  { %872 = vmatpush.msra.mxu3 %v3772_v57 }
  0x97   :  { %833 = vmatpush.msra.mxu1 %v3784_v52 }
  0x98   :  { %873 = vmatpush.msra.mxu3 %v3786_v48 }
  0x99   :  { %834 = vmatpush.msra.mxu1 %v3799_v38 }
  0x9a   :  { %v76_v35 = vpop.permute.xlu0 %75  ;;  %874 = vmatpush.msra.mxu3 %v3805_v53 }
  0x9b   :  { %v122_v33 = vmul.f32 %v4160_v29, %v76_v35  ;;  %v123_v25 = vmul.f32 %v4162_v31, %v76_v35  ;;  %v4203_v29 = vperm.slane %v64_v37, 3  ;;  %v124_v56 = vmul.f32 %v4191_v41, %v76_v35  ;;  %835 = vmatpush.msra.mxu1 %v3809_v40 }
  0x9c   :  { %875 = vmatpush.msra.mxu3 %v3816_v46 }
  0x9d   :  { %v163_v31 = vadd.f32 %v4184_v16, %v122_v33  ;;  %v164_v58 = vadd.f32 %v4187_v23, %v123_v25  ;;  %v125_v37 = vmul.f32 %v4203_v29, %v76_v35  ;;  %v4217_v16 = vperm.slane %v63_v43, 3  ;;  %836 = vmatpush.msra.mxu1 %v3821_v36  ;;  %v7680_v43 = vld [vmem:[#allocation62_spill] sm:$0xff] }
  0x9e   :  { %v165_v41 = vadd.f32 %v4209_v27, %v124_v56  ;;  %876 = vmatpush.msra.mxu3 %v3827_v42  ;;  %v7682_v56 = vld [vmem:[#allocation64_spill] sm:$0xff] }
  0x9f   :  { %v166_v55 = vadd.f32 %v4217_v16, %v125_v37  ;;  %837 = vmatpush.msra.mxu1 %v3833_v59  ;;  %v7676_v59 = vld [vmem:[#allocation58_spill] sm:$0xff] }
  0xa0   :  { %877 = vmatpush.msra.mxu3 %v3839_v50  ;;  %v7675_v50 = vld [vmem:[#allocation57_spill] sm:$0xff]  ;;  %v7686_v37 = vld [vmem:[#allocation66_spill] sm:$0xff] }
  0xa1   :  { %838 = vmatpush.msra.mxu1 %v3845_v34 }
  0xa2   :  { %878 = vmatpush.msra.mxu3 %v3851_v1  ;;  %v7677_v1 = vld [vmem:[#allocation59_spill] sm:$0xff] }
  0xa3   :  { %839 = vmatpush.msra.mxu1 %v3857_v30  ;;  %v7679_v30 = vld [vmem:[#allocation61_spill] sm:$0xff] }
  0xa4   :  { %879 = vmatpush.msra.mxu3 %v3863_v44 }
  0xa5   :  { %840 = vmatpush.msra.mxu1 %v3867_v18  ;;  %v7681_v18 = vld [vmem:[#allocation63_spill] sm:$0xff] }
  0xa6   :  { %880 = vmatpush.msra.mxu3 %v3871_v32 }
  0xa7   :  { %841 = vmatpush.msra.mxu1 %v7675_v50  ;;  %v7702_v50 = vld [vmem:[#allocation73_spill] sm:$0xff] }
  0xa8   :  { %881 = vmatpush.msra.mxu3 %v7676_v59  ;;  %v7704_v59 = vld [vmem:[#allocation74_spill] sm:$0xff] }
  0xa9   :  { %842 = vmatpush.msra.mxu1 %v7677_v1  ;;  %v7705_v1 = vld [vmem:[#allocation21_spill] sm:$0xff] }
  0xab   :  { %843 = vmatpush.msra.mxu1 %v7679_v30  ;;  %v7707_v30 = vld [vmem:[#allocation24_spill] sm:$0xff] }
  0xad   :  { %844 = vmatpush.msra.mxu1 %v7681_v18  ;;  %v7711_v18 = vld [vmem:[#allocation26_spill] sm:$0xff] }
  0xae   :  { %v441_v60 = vpop.f32.mrf.mxu0 }
  0xaf   :  { %v461_v62 = vpop.f32.mrf.mxu1  ;;  %v504_v33 = vadd.f32 %v441_v60, %v163_v31  ;;  %v7683_v60 = vld [vmem:[#allocation65_spill] sm:$0xff] }
  0xb0   :  { %v505_v25 = vadd.f32 %v461_v62, %v164_v58  ;;  %845 = vmatpush.msra.mxu1 %v7683_v60  ;;  %v7684_v62 = vld [vmem:[#allocation10_spill] sm:$0xff]  ;;  %v7713_v60 = vld [vmem:[#allocation25_spill] sm:$0xff] }
  0xb1   :  { %2718 = vtanh.f32 %v504_v33  ;;  %v4257_v33 = vld [vmem:[#allocation4 + $0x1f0] sm:$0xff] }
  0xb2   :  { %v481_v0 = vpop.f32.mrf.mxu2  ;;  %2720 = vtanh.f32 %v505_v25  ;;  %v501_v2 = vpop.f32.mrf.mxu3  ;;  %v7685_v25 = vld [vmem:[#allocation12_spill] sm:$0xff] }
  0xb3   :  { %v506_v61 = vadd.f32 %v481_v0, %v165_v41  ;;  %v507_v63 = vadd.f32 %v501_v2, %v166_v55  ;;  %v7678_v41 = vld [vmem:[#allocation60_spill] sm:$0xff]  ;;  %v7687_v0 = vld [vmem:[#allocation11_spill] sm:$0xff]  ;;  %v7689_v2 = vld [vmem:[#allocation14_spill] sm:$0xff] }
  0xb4   :  { %882 = vmatpush.msra.mxu3 %v7678_v41  ;;  %v7690_v55 = vld [vmem:[#allocation68_spill] sm:$0xff]  ;;  %v7706_v41 = vld [vmem:[#allocation75_spill] sm:$0xff] }
  0xb5   :  { %2722 = vtanh.f32 %v506_v61  ;;  %v7688_v61 = vld [vmem:[#allocation67_spill] sm:$0xff] }
  0xb6   :  { %2724 = vtanh.f32 %v507_v63  ;;  %883 = vmatpush.msra.mxu3 %v7680_v43  ;;  %846 = vmatpush.msra.mxu1 %v7688_v61  ;;  %v7691_v63 = vld [vmem:[#allocation13_spill] sm:$0xff]  ;;  %v7709_v43 = vld [vmem:[#allocation23_spill] sm:$0xff] }
  0xb7   :  { %v2719_v57 = vpop.eup %2718  ;;  %v7718_v61 = vld [vmem:[#allocation81_spill] sm:$0xff] }
  0xb8   :  { %v2721_v52 = vpop.eup %2720  ;;  %v512_v31 = vmul.f32 0.5, %v2719_v57  ;;  %884 = vmatpush.msra.mxu3 %v7682_v56  ;;  %v7692_v57 = vld [vmem:[#allocation69_spill] sm:$0xff]  ;;  %v7712_v56 = vld [vmem:[#allocation78_spill] sm:$0xff] }
  0xb9   :  { %v514_v48 = vmul.f32 0.5, %v2721_v52  ;;  %v7693_v52 = vld [vmem:[#allocation16_spill] sm:$0xff] }
  0xba   :  { %v513_v35 = vadd.f32 0.5, %v512_v31  ;;  %885 = vmatpush.msra.mxu3 %v7686_v37  ;;  %v7694_v31 = vld [vmem:[#allocation70_spill] sm:$0xff]  ;;  %v7716_v37 = vld [vmem:[#allocation80_spill] sm:$0xff] }
  0xbb   :  { %v2723_v38 = vpop.eup %2722  ;;  %v515_v53 = vadd.f32 0.5, %v514_v48  ;;  %v7695_v48 = vld [vmem:[#allocation15_spill] sm:$0xff] }
  0xbc   :  { %v519_v40 = vmul.f32 %v2723_v38, %v513_v35  ;;  %v2725_v36 = vpop.eup %2724  ;;  %886 = vmatpush.msra.mxu3 %v7690_v55  ;;  %v7696_v38 = vld [vmem:[#allocation18_spill] sm:$0xff]  ;;  %v7697_v35 = vld [vmem:[#allocation17_spill] sm:$0xff] }
  0xbd   :  { %v518_v46 = vmul.f32 0.0, %v515_v53  ;;  %v516_v34 = vmul.f32 0.5, %v2725_v36  ;;  %v7698_v53 = vld [vmem:[#allocation71_spill] sm:$0xff]  ;;  %v7720_v55 = vld [vmem:[#allocation82_spill] sm:$0xff] }
  0xbe   :  { %v7701_v36 = vld [vmem:[#allocation19_spill] sm:$0xff] }
  0xbf   :  { %v4237_v42 = vadd.f32 %v519_v40, %v518_v46  ;;  %v517_v44 = vadd.f32 0.5, %v516_v34  ;;  %v7699_v40 = vld [vmem:[#allocation20_spill] sm:$0xff]  ;;  %v7703_v34 = vld [vmem:[#allocation22_spill] sm:$0xff] }
  0xc0   :  { %v7700_v46 = vld [vmem:[#allocation72_spill] sm:$0xff] }
  0xc1   :  { %2726 = vtanh.f32 %v4237_v42 }
  0xc7   :  { %v2727_v58 = vpop.eup %2726 }
  0xc8   :  { %v4249_v32 = vmul.f32 %v2727_v58, %v517_v44  ;;  %v7708_v44 = vld [vmem:[#allocation76_spill] sm:$0xff]  ;;  %v7710_v58 = vld [vmem:[#allocation77_spill] sm:$0xff] }
  0xca   :  { %548 = vmatmul.f32.vlgmr.msrb.gmra.mxu0 %v4249_v32  ;;  %588 = vmatmul.f32.vlgmr.msrb.gmra.mxu2 %v4249_v32 }
  0xcb   :  { %712 = vmatpush.msrb.mxu0 %v7684_v62  ;;  %748 = vmatmul.f32.vlgmr.msrb.gmra.mxu1 %v4249_v32  ;;  %v7714_v62 = vld [vmem:[#allocation79_spill] sm:$0xff] }
  0xcc   :  { %752 = vmatpush.msrb.mxu2 %v4257_v33  ;;  %788 = vmatmul.f32.vlgmr.msrb.gmra.mxu3 %v4249_v32 }
  0xcd   :  { %713 = vmatpush.msrb.mxu0 %v7685_v25  ;;  %911 = vmatpush.msrb.mxu1 %v7692_v57  ;;  %v7715_v25 = vld [vmem:[#allocation28_spill] sm:$0xff]  ;;  %v7722_v57 = vld [vmem:[#allocation83_spill] sm:$0xff] }
  0xce   :  { %753 = vmatpush.msrb.mxu2 %v7687_v0  ;;  %951 = vmatpush.msrb.mxu3 %v7694_v31  ;;  %v7717_v0 = vld [vmem:[#allocation27_spill] sm:$0xff]  ;;  %v7724_v31 = vld [vmem:[#allocation84_spill] sm:$0xff] }
  0xcf   :  { %714 = vmatpush.msrb.mxu0 %v7689_v2  ;;  %912 = vmatpush.msrb.mxu1 %v7698_v53  ;;  %v7719_v2 = vld [vmem:[#allocation30_spill] sm:$0xff]  ;;  %v7728_v53 = vld [vmem:[#allocation88_spill] sm:$0xff] }
  0xd0   :  { %754 = vmatpush.msrb.mxu2 %v7691_v63  ;;  %952 = vmatpush.msrb.mxu3 %v7700_v46  ;;  %v7721_v63 = vld [vmem:[#allocation29_spill] sm:$0xff]  ;;  %v7730_v46 = vld [vmem:[#allocation91_spill] sm:$0xff] }
  0xd1   :  { %715 = vmatpush.msrb.mxu0 %v7693_v52  ;;  %913 = vmatpush.msrb.mxu1 %v7702_v50  ;;  %v7723_v52 = vld [vmem:[#allocation32_spill] sm:$0xff] }
  0xd2   :  { %755 = vmatpush.msrb.mxu2 %v7695_v48  ;;  %628 = vmatmul.f32.vlgmr.msra.gmra.mxu0 %v4249_v32  ;;  %v7725_v48 = vld [vmem:[#allocation31_spill] sm:$0xff]  ;;  %v7732_v50 = vld [vmem:[#allocation92_spill] sm:$0xff] }
  0xd3   :  { %668 = vmatmul.f32.vlgmr.msra.gmra.mxu2 %v4249_v32  ;;  %716 = vmatpush.msrb.mxu0 %v7696_v38  ;;  %v7726_v38 = vld [vmem:[#allocation87_spill] sm:$0xff] }
  0xd4   :  { %756 = vmatpush.msrb.mxu2 %v7697_v35  ;;  %953 = vmatpush.msrb.mxu3 %v7704_v59  ;;  %v7727_v35 = vld [vmem:[#allocation34_spill] sm:$0xff]  ;;  %v7734_v59 = vld [vmem:[#allocation95_spill] sm:$0xff] }
  0xd5   :  { %717 = vmatpush.msrb.mxu0 %v7699_v40  ;;  %914 = vmatpush.msrb.mxu1 %v7706_v41  ;;  %v7729_v40 = vld [vmem:[#allocation33_spill] sm:$0xff]  ;;  %v7736_v41 = vld [vmem:[#allocation96_spill] sm:$0xff] }
  0xd6   :  { %757 = vmatpush.msrb.mxu2 %v7701_v36  ;;  %954 = vmatpush.msrb.mxu3 %v7708_v44  ;;  %v7731_v36 = vld [vmem:[#allocation36_spill] sm:$0xff]  ;;  %v7738_v44 = vld [vmem:[#allocation99_spill] sm:$0xff] }
  0xd7   :  { %718 = vmatpush.msrb.mxu0 %v7703_v34  ;;  %915 = vmatpush.msrb.mxu1 %v7710_v58  ;;  %v7733_v34 = vld [vmem:[#allocation35_spill] sm:$0xff]  ;;  %v7740_v58 = vld [vmem:[#allocation100_spill] sm:$0xff] }
  0xd8   :  { %758 = vmatpush.msrb.mxu2 %v7705_v1  ;;  %955 = vmatpush.msrb.mxu3 %v7712_v56  ;;  %v7735_v1 = vld [vmem:[#allocation38_spill] sm:$0xff]  ;;  %v7742_v56 = vld [vmem:[#allocation41_spill] sm:$0xff] }
  0xd9   :  { %719 = vmatpush.msrb.mxu0 %v7707_v30  ;;  %916 = vmatpush.msrb.mxu1 %v7714_v62  ;;  %v7737_v30 = vld [vmem:[#allocation37_spill] sm:$0xff]  ;;  %v7744_v62 = vld [vmem:[#allocation103_spill] sm:$0xff] }
  0xda   :  { %759 = vmatpush.msrb.mxu2 %v7709_v43  ;;  %956 = vmatpush.msrb.mxu3 %v7716_v37  ;;  %v7739_v43 = vld [vmem:[#allocation40_spill] sm:$0xff] }
  0xdb   :  { %720 = vmatpush.msrb.mxu0 %v7711_v18  ;;  %917 = vmatpush.msrb.mxu1 %v7718_v61  ;;  %v7741_v18 = vld [vmem:[#allocation39_spill] sm:$0xff]  ;;  %v7746_v37 = vld [vmem:[#allocation104_spill] sm:$0xff] }
  0xdc   :  { %760 = vmatpush.msrb.mxu2 %v7713_v60  ;;  %957 = vmatpush.msrb.mxu3 %v7720_v55  ;;  %v7743_v60 = vld [vmem:[#allocation42_spill] sm:$0xff]  ;;  %v7748_v61 = vld [vmem:[#allocation107_spill] sm:$0xff] }
  0xdd   :  { %721 = vmatpush.msrb.mxu0 %v7715_v25  ;;  %918 = vmatpush.msrb.mxu1 %v7722_v57  ;;  %v7745_v25 = vld [vmem:[#allocation43_spill] sm:$0xff]  ;;  %v7750_v55 = vld [vmem:[#allocation46_spill] sm:$0xff]  ;;  %v7753_v57 = vld [vmem:[#allocation49_spill] sm:$0xff] }
  0xde   :  { %761 = vmatpush.msrb.mxu2 %v7717_v0  ;;  %958 = vmatpush.msrb.mxu3 %v7724_v31  ;;  %v7747_v0 = vld [vmem:[#allocation44_spill] sm:$0xff]  ;;  %v7755_v31 = vld [vmem:[#allocation51_spill] sm:$0xff] }
  0xdf   :  { %722 = vmatpush.msrb.mxu0 %v7719_v2  ;;  %919 = vmatpush.msrb.mxu1 %v7726_v38  ;;  %v7749_v2 = vld [vmem:[#allocation45_spill] sm:$0xff]  ;;  %v7759_v38 = vld [vmem:[#allocation55_spill] sm:$0xff] }
  0xe0   :  { %762 = vmatpush.msrb.mxu2 %v7721_v63  ;;  %959 = vmatpush.msrb.mxu3 %v7728_v53  ;;  %v7752_v63 = vld [vmem:[#allocation48_spill] sm:$0xff]  ;;  %v7763_v53 = vld [vmem:[#allocation89_spill] sm:$0xff] }
  0xe1   :  { %723 = vmatpush.msrb.mxu0 %v7723_v52  ;;  %920 = vmatpush.msrb.mxu1 %v7730_v46  ;;  %v7754_v52 = vld [vmem:[#allocation50_spill] sm:$0xff] }
  0xe2   :  { %763 = vmatpush.msrb.mxu2 %v7725_v48  ;;  %960 = vmatpush.msrb.mxu3 %v7732_v50  ;;  %v7757_v48 = vld [vmem:[#allocation53_spill] sm:$0xff]  ;;  %v7766_v46 = vld [vmem:[#allocation94_spill] sm:$0xff] }
  0xe3   :  { %724 = vmatpush.msrb.mxu0 %v7727_v35  ;;  %921 = vmatpush.msrb.mxu1 %v7734_v59  ;;  %v7761_v35 = vld [vmem:[#allocation85_spill] sm:$0xff]  ;;  %v7768_v50 = vld [vmem:[#allocation98_spill] sm:$0xff] }
  0xe4   :  { %764 = vmatpush.msrb.mxu2 %v7729_v40  ;;  %961 = vmatpush.msrb.mxu3 %v7736_v41  ;;  %v7765_v40 = vld [vmem:[#allocation93_spill] sm:$0xff]  ;;  %v7770_v59 = vld [vmem:[#allocation102_spill] sm:$0xff] }
  0xe5   :  { %725 = vmatpush.msrb.mxu0 %v7731_v36  ;;  %922 = vmatpush.msrb.mxu1 %v7738_v44  ;;  %v7767_v36 = vld [vmem:[#allocation97_spill] sm:$0xff]  ;;  %v7772_v41 = vld [vmem:[#allocation106_spill] sm:$0xff] }
  0xe6   :  { %765 = vmatpush.msrb.mxu2 %v7733_v34  ;;  %962 = vmatpush.msrb.mxu3 %v7740_v58  ;;  %v7769_v34 = vld [vmem:[#allocation101_spill] sm:$0xff]  ;;  %v7776_v58 = vld [vmem:[#allocation111_spill] sm:$0xff] }
  0xe7   :  { %726 = vmatpush.msrb.mxu0 %v7735_v1  ;;  %923 = vmatpush.msrb.mxu1 %v7744_v62  ;;  %v7771_v1 = vld [vmem:[#allocation105_spill] sm:$0xff] }
  0xe8   :  { %766 = vmatpush.msrb.mxu2 %v7737_v30  ;;  %963 = vmatpush.msrb.mxu3 %v7746_v37  ;;  %v7773_v30 = vld [vmem:[#allocation108_spill] sm:$0xff]  ;;  %v7774_v44 = vld [vmem:[#allocation109_spill] sm:$0xff] }
  0xe9   :  { %727 = vmatpush.msrb.mxu0 %v7739_v43  ;;  %924 = vmatpush.msrb.mxu1 %v7748_v61  ;;  %v7775_v43 = vld [vmem:[#allocation110_spill] sm:$0xff] }
  0xea   :  { %767 = vmatpush.msrb.mxu2 %v7741_v18  ;;  %728 = vmatmul.f32.vlgmr.msrb.gmra.mxu0 %v4249_v32 }
  0xeb   :  { %768 = vmatmul.f32.vlgmr.msrb.gmra.mxu2 %v4249_v32  ;;  %811 = vmatpush.msra.mxu0 %v7742_v56  ;;  %v7751_v32 = vld [vmem:[#allocation47_spill] sm:$0xff]  ;;  %v609_v56 = vpop.f32.mrf.mxu3 }
  0xec   :  { %851 = vmatpush.msra.mxu2 %v7743_v60  ;;  %964 = vmatpush.msrb.mxu3 %v4029_v28  ;;  %v7756_v28 = vld [vmem:[#allocation52_spill] sm:$0xff] }
  0xed   :  { %812 = vmatpush.msra.mxu0 %v7745_v25  ;;  %925 = vmatpush.msrb.mxu1 %v4037_v8  ;;  %v7758_v8 = vld [vmem:[#allocation54_spill] sm:$0xff] }
  0xee   :  { %852 = vmatpush.msra.mxu2 %v7747_v0  ;;  %965 = vmatpush.msrb.mxu3 %v4039_v22  ;;  %v7760_v22 = vld [vmem:[#allocation56_spill] sm:$0xff] }
  0xef   :  { %813 = vmatpush.msra.mxu0 %v7749_v2  ;;  %926 = vmatpush.msrb.mxu1 %v4049_v20  ;;  %v7762_v20 = vld [vmem:[#allocation86_spill] sm:$0xff] }
  0xf0   :  { %853 = vmatpush.msra.mxu2 %v7750_v55  ;;  %966 = vmatpush.msrb.mxu3 %v4051_v10  ;;  %v7764_v10 = vld [vmem:[#allocation90_spill] sm:$0xff] }
  0xf1   :  { %814 = vmatpush.msra.mxu0 %v7751_v32 }
  0xf2   :  { %854 = vmatpush.msra.mxu2 %v7752_v63 }
  0xf3   :  { %815 = vmatpush.msra.mxu0 %v7753_v57 }
  0xf4   :  { %855 = vmatpush.msra.mxu2 %v7754_v52 }
  0xf5   :  { %816 = vmatpush.msra.mxu0 %v7755_v31 }
  0xf6   :  { %856 = vmatpush.msra.mxu2 %v7756_v28 }
  0xf7   :  { %817 = vmatpush.msra.mxu0 %v7757_v48 }
  0xf8   :  { %857 = vmatpush.msra.mxu2 %v7758_v8 }
  0xf9   :  { %818 = vmatpush.msra.mxu0 %v7759_v38 }
  0xfa   :  { %858 = vmatpush.msra.mxu2 %v7760_v22 }
  0xfb   :  { %819 = vmatpush.msra.mxu0 %v7761_v35  ;;  %v81_v35 = vpop.permute.xlu0 %80 }
  0xfc   :  { %859 = vmatpush.msra.mxu2 %v7762_v20  ;;  %v7788_v20 = vld [vmem:[#allocation122_spill] sm:$0xff] }
  0xfd   :  { %820 = vmatpush.msra.mxu0 %v7763_v53  ;;  %v127_v53 = vmul.f32 %v7788_v20, %v81_v35 }
  0xfe   :  { %860 = vmatpush.msra.mxu2 %v7764_v10 }
  0xff   :  { %821 = vmatpush.msra.mxu0 %v7765_v40 }
 0x100   :  { %861 = vmatpush.msra.mxu2 %v7766_v46 }
 0x101   :  { %822 = vmatpush.msra.mxu0 %v7767_v36 }
 0x102   :  { %862 = vmatpush.msra.mxu2 %v7768_v50 }
 0x103   :  { %823 = vmatpush.msra.mxu0 %v7769_v34  ;;  %v168_v34 = vadd.f32 %v4187_v23, %v127_v53 }
 0x104   :  { %863 = vmatpush.msra.mxu2 %v7770_v59 }
 0x105   :  { %824 = vmatpush.msra.mxu0 %v7771_v1  ;;  %v7789_v1 = vld [vmem:[#allocation121_spill] sm:$0xff] }
 0x106   :  { %864 = vmatpush.msra.mxu2 %v7772_v41  ;;  %v126_v41 = vmul.f32 %v7789_v1, %v81_v35 }
 0x107   :  { %825 = vmatpush.msra.mxu0 %v7773_v30 }
 0x108   :  { %865 = vmatpush.msra.mxu2 %v7774_v44 }
 0x109   :  { %826 = vmatpush.msra.mxu0 %v4043_v4  ;;  %v7777_v4 = vld [vmem:[#allocation112_spill] sm:$0xff] }
 0x10a   :  { %866 = vmatpush.msra.mxu2 %v7775_v43  ;;  %v7790_v43 = vld [vmem:[#allocation124_spill] sm:$0xff] }
 0x10b   :  { %891 = vmatpush.msrb.mxu0 %v7776_v58  ;;  %v167_v58 = vadd.f32 %v7790_v43, %v126_v41  ;;  %v4477_v41 = vld [vmem:[#allocation4 + $0xf8] sm:$0xff] }
 0x10c   :  { %931 = vmatpush.msrb.mxu2 %v4057_v24  ;;  %v7781_v24 = vld [vmem:[#allocation116_spill] sm:$0xff] }
 0x10d   :  { %892 = vmatpush.msrb.mxu0 %v4065_v6  ;;  %v7778_v6 = vld [vmem:[#allocation113_spill] sm:$0xff]  ;;  %v689_v31 = vpop.f32.mrf.mxu3 }
 0x10e   :  { %932 = vmatpush.msrb.mxu2 %v4067_v12  ;;  %v7779_v12 = vld [vmem:[#allocation114_spill] sm:$0xff] }
 0x10f   :  { %893 = vmatpush.msrb.mxu0 %v4075_v14  ;;  %v7780_v14 = vld [vmem:[#allocation115_spill] sm:$0xff] }
 0x110   :  { %933 = vmatpush.msrb.mxu2 %v4077_v26  ;;  %v7782_v26 = vld [vmem:[#allocation117_spill] sm:$0xff] }
 0x111   :  { %894 = vmatpush.msrb.mxu0 %v4083_v3  ;;  %v7783_v3 = vld [vmem:[#allocation118_spill] sm:$0xff] }
 0x112   :  { %934 = vmatpush.msrb.mxu2 %v4085_v5  ;;  %v7784_v5 = vld [vmem:[#allocation119_spill] sm:$0xff] }
 0x113   :  { %895 = vmatpush.msrb.mxu0 %v4091_v7  ;;  %v7785_v7 = vld [vmem:[#allocation120_spill] sm:$0xff] }
 0x114   :  { %935 = vmatpush.msrb.mxu2 %v4093_v9  ;;  %v7786_v9 = vld [vmem:[#allocation123_spill] sm:$0xff] }
 0x115   :  { %896 = vmatpush.msrb.mxu0 %v4099_v11  ;;  %v227_v11 = vld [vmem:[%s6966_s5] sm:$0xf] }
 0x116   :  { %936 = vmatpush.msrb.mxu2 %v4101_v13  ;;  %v4397_v13 = vperm.slane %v227_v11, 0  ;;  %v4406_v2 = vperm.slane %v227_v11, 3 }
 0x117   :  { %897 = vmatpush.msrb.mxu0 %v4107_v15  ;;  %v569_v15 = vpop.f32.mrf.mxu1 }
 0x118   :  { %937 = vmatpush.msrb.mxu2 %v4109_v17  ;;  %7787 = vst [vmem:[#allocation57_spill] sm:$0xff] %v4397_v13 }
 0x119   :  { %898 = vmatpush.msrb.mxu0 %v4115_v19 }
 0x11a   :  { %938 = vmatpush.msrb.mxu2 %v4117_v21 }
 0x11b   :  { %899 = vmatpush.msrb.mxu0 %v7777_v4 }
 0x11c   :  { %939 = vmatpush.msrb.mxu2 %v7778_v6 }
 0x11d   :  { %900 = vmatpush.msrb.mxu0 %v7779_v12 }
 0x11e   :  { %940 = vmatpush.msrb.mxu2 %v7780_v14 }
 0x11f   :  { %901 = vmatpush.msrb.mxu0 %v7781_v24  ;;  %v649_v0 = vpop.f32.mrf.mxu1  ;;  %v7791_v24 = vld [vmem:[#allocation125_spill] sm:$0xff] }
 0x120   :  { %941 = vmatpush.msrb.mxu2 %v7782_v26  ;;  %v128_v26 = vmul.f32 %v7791_v24, %v81_v35 }
 0x121   :  { %902 = vmatpush.msrb.mxu0 %v7783_v3  ;;  %v129_v3 = vmul.f32 %v4203_v29, %v81_v35  ;;  %v4462_v35 = vld [vmem:[#allocation4 + $0x138] sm:$0xff] }
 0x122   :  { %942 = vmatpush.msrb.mxu2 %v7784_v5  ;;  %v4418_v5 = vld [vmem:[#allocation4 + $0x1e8] sm:$0xff] }
 0x123   :  { %903 = vmatpush.msrb.mxu0 %v4156_v39  ;;  %v4400_v39 = vperm.slane %v227_v11, 1 }
 0x124   :  { %943 = vmatpush.msrb.mxu2 %v7785_v7  ;;  %v4421_v7 = vld [vmem:[#allocation4 + $0x1f8] sm:$0xff] }
 0x125   :  { %904 = vmatpush.msrb.mxu0 %v4171_v45  ;;  %v4402_v45 = vperm.slane %v227_v11, 2 }
 0x126   :  { %944 = vmatpush.msrb.mxu2 %v7786_v9 }
 0x127   :  { %905 = vmatpush.msrb.mxu0 %v4179_v47 }
 0x128   :  { %945 = vmatpush.msrb.mxu2 %v4181_v49 }
 0x129   :  { %906 = vmatpush.msrb.mxu0 %v4195_v51 }
 0x12a   :  { %946 = vmatpush.msrb.mxu2 %v4199_v54 }
 0x147   :  { %v549_v17 = vpop.f32.mrf.mxu0 }
 0x148   :  { %v550_v19 = vadd.f32 %v549_v17, %v4397_v13  ;;  %v749_v36 = vpop.f32.mrf.mxu1  ;;  %v4425_v17 = vld [vmem:[#allocation4 + $0x1c8] sm:$0xff] }
 0x149   :  { %v793_v30 = vadd.f32 %v749_v36, %v168_v34  ;;  %v4469_v36 = vld [vmem:[#allocation4 + $0x118] sm:$0xff] }
 0x14a   :  { %v570_v21 = vadd.f32 %v569_v15, %v550_v19  ;;  %v169_v15 = vadd.f32 %v4209_v27, %v128_v26  ;;  %v4428_v19 = vld [vmem:[#allocation4 + $0x1d8] sm:$0xff] }
 0x14c   :  { %2728 = vtanh.f32 %v570_v21  ;;  %v170_v21 = vadd.f32 %v4217_v16, %v129_v3 }
 0x14d   :  { %v589_v18 = vpop.f32.mrf.mxu2 }
 0x14e   :  { %v590_v60 = vadd.f32 %v589_v18, %v4400_v39 }
 0x14f   :  { %v629_v62 = vpop.f32.mrf.mxu0  ;;  %v789_v11 = vpop.f32.mrf.mxu3 }
 0x150   :  { %v610_v25 = vadd.f32 %v609_v56, %v590_v60  ;;  %v630_v37 = vadd.f32 %v629_v62, %v4402_v45  ;;  %v4432_v60 = vld [vmem:[#allocation4 + $0x1a8] sm:$0xff]  ;;  %v4435_v62 = vld [vmem:[#allocation4 + $0x1b8] sm:$0xff] }
 0x152   :  { %2730 = vtanh.f32 %v610_v25  ;;  %v650_v61 = vadd.f32 %v649_v0, %v630_v37  ;;  %v2729_v55 = vpop.eup %2728  ;;  %v795_v0 = vadd.f32 %v789_v11, %v170_v21  ;;  %v4504_v11 = vld [vmem:[#allocation4 + $0x78] sm:$0xff]  ;;  %v4513_v21 = vld [vmem:[#allocation4 + $0x48] sm:$0xff] }
 0x153   :  { %v696_v63 = vmul.f32 0.5, %v2729_v55  ;;  %v4441_v55 = vld [vmem:[#allocation4 + $0x198] sm:$0xff] }
 0x154   :  { %2732 = vtanh.f32 %v650_v61  ;;  %v4438_v61 = vld [vmem:[#allocation4 + $0x188] sm:$0xff] }
 0x155   :  { %v697_v38 = vadd.f32 0.5, %v696_v63  ;;  %v4444_v63 = vld [vmem:[#allocation4 + $0x168] sm:$0xff] }
 0x156   :  { %v669_v32 = vpop.f32.mrf.mxu2 }
 0x157   :  { %v670_v57 = vadd.f32 %v669_v32, %v4406_v2 }
 0x158   :  { %v2731_v52 = vpop.eup %2730 }
 0x159   :  { %v698_v28 = vmul.f32 0.5, %v2731_v52  ;;  %v690_v48 = vadd.f32 %v689_v31, %v670_v57  ;;  %v4447_v57 = vld [vmem:[#allocation4 + $0x178] sm:$0xff]  ;;  %v67_v52 = vld [vmem:[%s6961_s0 + $0x10] sm:$0xff] }
 0x15a   :  { %v2733_v8 = vpop.eup %2732  ;;  %85 = vperm.xlu1 %2715, %v67_v52   ;;  %v4537_v52 = vld [vmem:[#allocation4 + $0x8] sm:$0xff] }
 0x15b   :  { %v699_v22 = vadd.f32 0.5, %v698_v28  ;;  %2734 = vtanh.f32 %v690_v48  ;;  %v703_v40 = vmul.f32 %v2733_v8, %v697_v38  ;;  %v4453_v28 = vld [vmem:[#allocation4 + $0x148] sm:$0xff]  ;;  %v4456_v48 = vld [vmem:[#allocation4 + $0x158] sm:$0xff]  ;;  %7794 = vst [vmem:[#allocation60_spill] sm:$0xff] %v4537_v52 }
 0x15d   :  { %v702_v10 = vmul.f32 0.0, %v699_v22  ;;  %v4459_v22 = vld [vmem:[#allocation4 + $0x128] sm:$0xff] }
 0x15f   :  { %v4410_v46 = vadd.f32 %v703_v40, %v702_v10  ;;  %v4466_v40 = vld [vmem:[#allocation4 + $0x108] sm:$0xff] }
 0x161   :  { %v2735_v50 = vpop.eup %2734  ;;  %2736 = vtanh.f32 %v4410_v46 }
 0x162   :  { %v700_v59 = vmul.f32 0.5, %v2735_v50  ;;  %2738 = vtanh.f32 %v793_v30  ;;  %v4481_v30 = vld [vmem:[#allocation4 + $0xc8] sm:$0xff] }
 0x164   :  { %v701_v44 = vadd.f32 0.5, %v700_v59  ;;  %v4474_v59 = vld [vmem:[#allocation4 + $0xe8] sm:$0xff] }
 0x167   :  { %v2737_v4 = vpop.eup %2736  ;;  %v729_v6 = vpop.f32.mrf.mxu0 }
 0x168   :  { %v706_v12 = vmul.f32 %v2737_v4, %v701_v44  ;;  %v792_v14 = vadd.f32 %v729_v6, %v167_v58  ;;  %v2739_v9 = vpop.eup %2738  ;;  %v4484_v44 = vld [vmem:[#allocation4 + $0xd8] sm:$0xff]  ;;  %v4487_v58 = vld [vmem:[#allocation4 + $0xa8] sm:$0xff] }
 0x169   :  { %v802_v37 = vmul.f32 0.5, %v2739_v9  ;;  %v4490_v4 = vld [vmem:[#allocation4 + $0xb8] sm:$0xff]  ;;  %v4501_v9 = vld [vmem:[#allocation4 + $0x68] sm:$0xff] }
 0x16a   :  { %2740 = vtanh.f32 %v792_v14  ;;  %847 = vmatmul.f32.vlgmr.msra.gmra.mxu1 %v706_v12  ;;  %887 = vmatmul.f32.vlgmr.msra.gmra.mxu3 %v706_v12  ;;  %v4496_v14 = vld [vmem:[#allocation4 + $0x98] sm:$0xff] }
 0x16b   :  { %1011 = vmatpush.msra.mxu1 %v4418_v5  ;;  %1051 = vmatpush.msra.mxu3 %v4421_v7  ;;  %v803_v31 = vadd.f32 0.5, %v802_v37  ;;  %v4525_v37 = vld [vmem:[#allocation4 + $0x28] sm:$0xff] }
 0x16d   :  { %1012 = vmatpush.msra.mxu1 %v4425_v17  ;;  %1052 = vmatpush.msra.mxu3 %v4428_v19  ;;  %v806_v53 = vmul.f32 %v803_v31, %v4237_v42  ;;  %v4540_v31 = vld [vmem:[#allocation4 + $0x18] sm:$0xff] }
 0x16e   :  { %v769_v18 = vpop.f32.mrf.mxu2  ;;  %7795 = vst [vmem:[#allocation61_spill] sm:$0xff] %v4540_v31 }
 0x16f   :  { %v794_v56 = vadd.f32 %v769_v18, %v169_v15  ;;  %1013 = vmatpush.msra.mxu1 %v4432_v60  ;;  %1053 = vmatpush.msra.mxu3 %v4435_v62  ;;  %v4509_v15 = vld [vmem:[#allocation4 + $0x1e0] sm:$0xff]  ;;  %v4516_v18 = vld [vmem:[#allocation4 + $0x58] sm:$0xff] }
 0x170   :  { %v2741_v25 = vpop.eup %2740 }
 0x171   :  { %2742 = vtanh.f32 %v794_v56  ;;  %1014 = vmatpush.msra.mxu1 %v4438_v61  ;;  %1054 = vmatpush.msra.mxu3 %v4441_v55  ;;  %v800_v32 = vmul.f32 0.5, %v2741_v25  ;;  %v4519_v56 = vld [vmem:[#allocation4 + $0x1c0] sm:$0xff]  ;;  %v4522_v25 = vld [vmem:[#allocation4 + $0x1d0] sm:$0xff] }
 0x172   :  { %927 = vmatmul.f32.vlgmr.msrb.gmra.mxu1 %v706_v12  ;;  %967 = vmatmul.f32.vlgmr.msrb.gmra.mxu3 %v706_v12  ;;  %2744 = vtanh.f32 %v795_v0  ;;  %v4493_v12 = vld [vmem:[#allocation4 + $0x88] sm:$0xff]  ;;  %v4531_v0 = vld [vmem:[#allocation4 + $0x1a0] sm:$0xff] }
 0x173   :  { %1015 = vmatpush.msra.mxu1 %v4444_v63  ;;  %1055 = vmatpush.msra.mxu3 %v4447_v57  ;;  %v801_v8 = vadd.f32 0.5, %v800_v32  ;;  %7792 = vst [vmem:[#allocation58_spill] sm:$0xff] %v4531_v0  ;;  %v4534_v32 = vld [vmem:[#allocation4 + $0x1b0] sm:$0xff] }
 0x174   :  { %7793 = vst [vmem:[#allocation59_spill] sm:$0xff] %v4534_v32 }
 0x175   :  { %1016 = vmatpush.msra.mxu1 %v4453_v28  ;;  %1056 = vmatpush.msra.mxu3 %v4456_v48 }
 0x177   :  { %v2743_v38 = vpop.eup %2742  ;;  %1017 = vmatpush.msra.mxu1 %v4459_v22  ;;  %1057 = vmatpush.msra.mxu3 %v4462_v35 }
 0x178   :  { %v807_v10 = vmul.f32 %v2743_v38, %v801_v8  ;;  %v2745_v50 = vpop.eup %2744  ;;  %v4543_v8 = vld [vmem:[#allocation4 + $0x180] sm:$0xff]  ;;  %v4547_v38 = vld [vmem:[#allocation4 + $0x190] sm:$0xff] }
 0x179   :  { %1018 = vmatpush.msra.mxu1 %v4466_v40  ;;  %1058 = vmatpush.msra.mxu3 %v4469_v36  ;;  %v804_v42 = vmul.f32 0.5, %v2745_v50  ;;  %7796 = vst [vmem:[#allocation62_spill] sm:$0xff] %v4543_v8  ;;  %v4559_v50 = vld [vmem:[#allocation4 + $0x170] sm:$0xff] }
 0x17a   :  { %v4472_v34 = vadd.f32 %v807_v10, %v806_v53  ;;  %7797 = vst [vmem:[#allocation63_spill] sm:$0xff] %v4547_v38  ;;  %v68_v53 = vld [vmem:[%s6961_s0 + $0x18] sm:$0xff]  ;;  %v4556_v10 = vld [vmem:[#allocation4 + $0x160] sm:$0xff] }
 0x17b   :  { %1019 = vmatpush.msra.mxu1 %v4474_v59  ;;  %1059 = vmatpush.msra.mxu3 %v4477_v41  ;;  %v805_v6 = vadd.f32 0.5, %v804_v42  ;;  %7798 = vst [vmem:[#allocation64_spill] sm:$0xff] %v4556_v10  ;;  %v4562_v42 = vld [vmem:[#allocation6 + $0x3e0] sm:$0xff] }
 0x17c   :  { %2746 = vtanh.f32 %v4472_v34  ;;  %7799 = vst [vmem:[#allocation65_spill] sm:$0xff] %v4559_v50  ;;  %90 = vperm.xlu1 %2715, %v68_v53   ;;  %v4577_v53 = vld [vmem:[#allocation4 + $0x120] sm:$0xff] }
 0x17d   :  { %1020 = vmatpush.msra.mxu1 %v4481_v30  ;;  %1060 = vmatpush.msra.mxu3 %v4484_v44  ;;  %7800 = vst [vmem:[#allocation10_spill] sm:$0xff] %v4562_v42 }
 0x17e   :  { %7805 = vst [vmem:[#allocation14_spill] sm:$0xff] %v4577_v53 }
 0x17f   :  { %1021 = vmatpush.msra.mxu1 %v4487_v58  ;;  %1061 = vmatpush.msra.mxu3 %v4490_v4 }
 0x181   :  { %1022 = vmatpush.msra.mxu1 %v4493_v12  ;;  %1062 = vmatpush.msra.mxu3 %v4496_v14 }
 0x182   :  { %v2747_v26 = vpop.eup %2746 }
 0x183   :  { %v4499_v3 = vmul.f32 %v2747_v26, %v805_v6  ;;  %1023 = vmatpush.msra.mxu1 %v4501_v9  ;;  %1063 = vmatpush.msra.mxu3 %v4504_v11  ;;  %v4565_v6 = vld [vmem:[#allocation4 + $0x140] sm:$0xff]  ;;  %v4568_v26 = vld [vmem:[#allocation4 + $0x150] sm:$0xff] }
 0x184   :  { %7801 = vst [vmem:[#allocation12_spill] sm:$0xff] %v4565_v6 }
 0x185   :  { %827 = vmatmul.f32.vlgmr.msra.gmra.mxu0 %v4499_v3  ;;  %867 = vmatmul.f32.vlgmr.msra.gmra.mxu2 %v4499_v3  ;;  %7802 = vst [vmem:[#allocation66_spill] sm:$0xff] %v4568_v26 }
 0x186   :  { %991 = vmatpush.msra.mxu0 %v4509_v15  ;;  %1031 = vmatpush.msra.mxu2 %v4257_v33  ;;  %v4528_v33 = vld [vmem:[#allocation4 + $0x38] sm:$0xff] }
 0x187   :  { %1024 = vmatpush.msra.mxu1 %v4513_v21  ;;  %1064 = vmatpush.msra.mxu3 %v4516_v18 }
 0x188   :  { %992 = vmatpush.msra.mxu0 %v4519_v56  ;;  %1032 = vmatpush.msra.mxu2 %v4522_v25 }
 0x189   :  { %1025 = vmatpush.msra.mxu1 %v4525_v37  ;;  %1065 = vmatpush.msra.mxu3 %v4528_v33 }
 0x18a   :  { %993 = vmatpush.msra.mxu0 %v4531_v0  ;;  %1033 = vmatpush.msra.mxu2 %v4534_v32 }
 0x18b   :  { %1026 = vmatpush.msra.mxu1 %v4537_v52  ;;  %1066 = vmatpush.msra.mxu3 %v4540_v31 }
 0x18c   :  { %994 = vmatpush.msra.mxu0 %v4543_v8  ;;  %1027 = vmatmul.f32.vlgmr.msra.gmra.mxu1 %v4499_v3 }
 0x18d   :  { %1034 = vmatpush.msra.mxu2 %v4547_v38  ;;  %1067 = vmatmul.f32.vlgmr.msra.gmra.mxu3 %v4499_v3  ;;  %v4571_v38 = vld [vmem:[#allocation6 + $0x3e8] sm:$0xff] }
 0x18e   :  { %907 = vmatmul.f32.vlgmr.msrb.gmra.mxu0 %v4499_v3  ;;  %947 = vmatmul.f32.vlgmr.msrb.gmra.mxu2 %v4499_v3  ;;  %7803 = vst [vmem:[#allocation11_spill] sm:$0xff] %v4571_v38 }
 0x18f   :  { %995 = vmatpush.msra.mxu0 %v4556_v10  ;;  %1035 = vmatpush.msra.mxu2 %v4559_v50  ;;  %v4574_v10 = vld [vmem:[#allocation6 + $0x3c0] sm:$0xff] }
 0x190   :  { %1110 = vmatpush.msrb.mxu1 %v4562_v42  ;;  %1150 = vmatpush.msrb.mxu3 %v4571_v38  ;;  %7804 = vst [vmem:[#allocation67_spill] sm:$0xff] %v4574_v10  ;;  %v4580_v42 = vld [vmem:[#allocation4 + $0x130] sm:$0xff]  ;;  %v4589_v38 = vld [vmem:[#allocation4 + $0x100] sm:$0xff] }
 0x191   :  { %996 = vmatpush.msra.mxu0 %v4565_v6  ;;  %1036 = vmatpush.msra.mxu2 %v4568_v26  ;;  %7806 = vst [vmem:[#allocation68_spill] sm:$0xff] %v4580_v42  ;;  %v4583_v6 = vld [vmem:[#allocation6 + $0x3c8] sm:$0xff]  ;;  %v4586_v26 = vld [vmem:[#allocation6 + $0x3a0] sm:$0xff] }
 0x192   :  { %1111 = vmatpush.msrb.mxu1 %v4574_v10  ;;  %7807 = vst [vmem:[#allocation13_spill] sm:$0xff] %v4583_v6  ;;  %1151 = vmatpush.msrb.mxu3 %v4583_v6  ;;  %v4592_v10 = vld [vmem:[#allocation4 + $0x110] sm:$0xff]  ;;  %v4601_v6 = vld [vmem:[#allocation6 + $0x380] sm:$0xff] }
 0x193   :  { %997 = vmatpush.msra.mxu0 %v4577_v53  ;;  %1037 = vmatpush.msra.mxu2 %v4580_v42  ;;  %7808 = vst [vmem:[#allocation69_spill] sm:$0xff] %v4586_v26  ;;  %v72_v42 = vld [vmem:[%s6961_s0 + $0x38] sm:$0xff]  ;;  %v4598_v53 = vld [vmem:[#allocation6 + $0x3a8] sm:$0xff]  ;;  %v4613_v50 = vld [vmem:[#allocation4 + $0xc0] sm:$0xff] }
 0x194   :  { %1112 = vmatpush.msrb.mxu1 %v4586_v26  ;;  %7809 = vst [vmem:[#allocation16_spill] sm:$0xff] %v4589_v38  ;;  %1152 = vmatpush.msrb.mxu3 %v4598_v53  ;;  %v4604_v26 = vld [vmem:[#allocation4 + $0xe0] sm:$0xff] }
 0x195   :  { %998 = vmatpush.msra.mxu0 %v4589_v38  ;;  %7810 = vst [vmem:[#allocation70_spill] sm:$0xff] %v4592_v10  ;;  %1038 = vmatpush.msra.mxu2 %v4592_v10  ;;  %v4607_v38 = vld [vmem:[#allocation4 + $0xf0] sm:$0xff]  ;;  %v4610_v10 = vld [vmem:[#allocation6 + $0x388] sm:$0xff] }
 0x196   :  { %7811 = vst [vmem:[#allocation15_spill] sm:$0xff] %v4598_v53  ;;  %1113 = vmatpush.msrb.mxu1 %v4601_v6  ;;  %110 = vperm.xlu1 %2715, %v72_v42   ;;  %v4616_v53 = vld [vmem:[#allocation4 + $0xd0] sm:$0xff]  ;;  %v4625_v42 = vld [vmem:[#allocation4 + $0xa0] sm:$0xff] }
 0x197   :  { %7812 = vst [vmem:[#allocation18_spill] sm:$0xff] %v4601_v6  ;;  %999 = vmatpush.msra.mxu0 %v4604_v26  ;;  %1039 = vmatpush.msra.mxu2 %v4607_v38  ;;  %v4619_v6 = vld [vmem:[#allocation6 + $0x360] sm:$0xff] }
 0x198   :  { %7813 = vst [vmem:[#allocation17_spill] sm:$0xff] %v4604_v26  ;;  %1153 = vmatpush.msrb.mxu3 %v4610_v10  ;;  %1114 = vmatpush.msrb.mxu1 %v4619_v6  ;;  %v4622_v26 = vld [vmem:[#allocation6 + $0x368] sm:$0xff] }
 0x199   :  { %7814 = vst [vmem:[#allocation71_spill] sm:$0xff] %v4607_v38  ;;  %1000 = vmatpush.msra.mxu0 %v4613_v50  ;;  %1040 = vmatpush.msra.mxu2 %v4616_v53  ;;  %v4628_v38 = vld [vmem:[#allocation4 + $0xb0] sm:$0xff] }
 0x19a   :  { %7815 = vst [vmem:[#allocation20_spill] sm:$0xff] %v4610_v10  ;;  %1154 = vmatpush.msrb.mxu3 %v4622_v26 }
 0x19b   :  { %7816 = vst [vmem:[#allocation72_spill] sm:$0xff] %v4613_v50  ;;  %1001 = vmatpush.msra.mxu0 %v4625_v42  ;;  %1041 = vmatpush.msra.mxu2 %v4628_v38  ;;  %v4631_v50 = vld [vmem:[#allocation6 + $0x340] sm:$0xff] }
 0x19c   :  { %7817 = vst [vmem:[#allocation19_spill] sm:$0xff] %v4616_v53  ;;  %1115 = vmatpush.msrb.mxu1 %v4631_v50  ;;  %v4634_v53 = vld [vmem:[#allocation6 + $0x348] sm:$0xff] }
 0x19d   :  { %7818 = vst [vmem:[#allocation73_spill] sm:$0xff] %v4619_v6  ;;  %1155 = vmatpush.msrb.mxu3 %v4634_v53  ;;  %v4637_v6 = vld [vmem:[#allocation4 + $0x80] sm:$0xff] }
 0x19e   :  { %7819 = vst [vmem:[#allocation22_spill] sm:$0xff] %v4622_v26  ;;  %1002 = vmatpush.msra.mxu0 %v4637_v6  ;;  %v4640_v26 = vld [vmem:[#allocation4 + $0x90] sm:$0xff] }
 0x19f   :  { %7820 = vst [vmem:[#allocation74_spill] sm:$0xff] %v4625_v42  ;;  %1042 = vmatpush.msra.mxu2 %v4640_v26  ;;  %v4643_v42 = vld [vmem:[#allocation6 + $0x320] sm:$0xff] }
 0x1a0   :  { %7821 = vst [vmem:[#allocation21_spill] sm:$0xff] %v4628_v38  ;;  %1116 = vmatpush.msrb.mxu1 %v4643_v42  ;;  %v4646_v38 = vld [vmem:[#allocation6 + $0x328] sm:$0xff] }
 0x1a1   :  { %7822 = vst [vmem:[#allocation75_spill] sm:$0xff] %v4631_v50  ;;  %1156 = vmatpush.msrb.mxu3 %v4646_v38  ;;  %v4649_v50 = vld [vmem:[#allocation4 + $0x60] sm:$0xff] }
 0x1a2   :  { %7823 = vst [vmem:[#allocation24_spill] sm:$0xff] %v4634_v53  ;;  %1003 = vmatpush.msra.mxu0 %v4649_v50  ;;  %v4652_v53 = vld [vmem:[#allocation4 + $0x70] sm:$0xff] }
 0x1a3   :  { %7824 = vst [vmem:[#allocation76_spill] sm:$0xff] %v4637_v6  ;;  %1043 = vmatpush.msra.mxu2 %v4652_v53  ;;  %v4655_v6 = vld [vmem:[#allocation6 + $0x300] sm:$0xff] }
 0x1a4   :  { %7825 = vst [vmem:[#allocation23_spill] sm:$0xff] %v4640_v26  ;;  %1117 = vmatpush.msrb.mxu1 %v4655_v6  ;;  %v4658_v26 = vld [vmem:[#allocation6 + $0x308] sm:$0xff] }
 0x1a5   :  { %7826 = vst [vmem:[#allocation77_spill] sm:$0xff] %v4643_v42  ;;  %1157 = vmatpush.msrb.mxu3 %v4658_v26  ;;  %v4661_v42 = vld [vmem:[#allocation4 + $0x40] sm:$0xff] }
 0x1a6   :  { %7827 = vst [vmem:[#allocation26_spill] sm:$0xff] %v4646_v38  ;;  %1004 = vmatpush.msra.mxu0 %v4661_v42  ;;  %v4664_v38 = vld [vmem:[#allocation4 + $0x50] sm:$0xff] }
 0x1a7   :  { %7828 = vst [vmem:[#allocation78_spill] sm:$0xff] %v4649_v50  ;;  %1044 = vmatpush.msra.mxu2 %v4664_v38  ;;  %v4667_v50 = vld [vmem:[#allocation6 + $0x2e0] sm:$0xff] }
 0x1a8   :  { %7829 = vst [vmem:[#allocation25_spill] sm:$0xff] %v4652_v53  ;;  %1118 = vmatpush.msrb.mxu1 %v4667_v50  ;;  %v4670_v53 = vld [vmem:[#allocation6 + $0x2e8] sm:$0xff] }
 0x1a9   :  { %7830 = vst [vmem:[#allocation79_spill] sm:$0xff] %v4655_v6  ;;  %1158 = vmatpush.msrb.mxu3 %v4670_v53  ;;  %v4673_v6 = vld [vmem:[#allocation4 + $0x20] sm:$0xff] }
 0x1aa   :  { %7831 = vst [vmem:[#allocation28_spill] sm:$0xff] %v4658_v26  ;;  %1005 = vmatpush.msra.mxu0 %v4673_v6  ;;  %v4676_v26 = vld [vmem:[#allocation4 + $0x30] sm:$0xff] }
 0x1ab   :  { %7832 = vst [vmem:[#allocation80_spill] sm:$0xff] %v4661_v42  ;;  %1045 = vmatpush.msra.mxu2 %v4676_v26  ;;  %v4679_v42 = vld [vmem:[#allocation6 + $0x2c0] sm:$0xff] }
 0x1ac   :  { %7833 = vst [vmem:[#allocation27_spill] sm:$0xff] %v4664_v38  ;;  %1119 = vmatpush.msrb.mxu1 %v4679_v42  ;;  %v4682_v38 = vld [vmem:[#allocation6 + $0x2c8] sm:$0xff] }
 0x1ad   :  { %7834 = vst [vmem:[#allocation81_spill] sm:$0xff] %v4667_v50  ;;  %1159 = vmatpush.msrb.mxu3 %v4682_v38  ;;  %v4685_v50 = vld [vmem:[#allocation4] sm:$0xff] }
 0x1ae   :  { %7835 = vst [vmem:[#allocation30_spill] sm:$0xff] %v4670_v53  ;;  %1006 = vmatpush.msra.mxu0 %v4685_v50  ;;  %v4688_v53 = vld [vmem:[#allocation4 + $0x10] sm:$0xff] }
 0x1af   :  { %7836 = vst [vmem:[#allocation82_spill] sm:$0xff] %v4673_v6  ;;  %1046 = vmatpush.msra.mxu2 %v4688_v53  ;;  %1007 = vmatmul.f32.vlgmr.msra.gmra.mxu0 %v4499_v3  ;;  %v4696_v6 = vld [vmem:[#allocation6 + $0x2a8] sm:$0xff] }
 0x1b0   :  { %7837 = vst [vmem:[#allocation29_spill] sm:$0xff] %v4676_v26  ;;  %1047 = vmatmul.f32.vlgmr.msra.gmra.mxu2 %v4499_v3  ;;  %v4693_v26 = vld [vmem:[#allocation6 + $0x2a0] sm:$0xff]  ;;  %1160 = vmatpush.msrb.mxu3 %v4696_v6  ;;  %v4708_v3 = vld [vmem:[#allocation6 + $0x288] sm:$0xff] }
 0x1b1   :  { %7838 = vst [vmem:[#allocation83_spill] sm:$0xff] %v4679_v42  ;;  %1120 = vmatpush.msrb.mxu1 %v4693_v26 }
 0x1b2   :  { %7839 = vst [vmem:[#allocation32_spill] sm:$0xff] %v4682_v38  ;;  %v4699_v38 = vld [vmem:[#allocation6 + $0x1e0] sm:$0xff]  ;;  %1161 = vmatpush.msrb.mxu3 %v4708_v3 }
 0x1b3   :  { %7840 = vst [vmem:[#allocation84_spill] sm:$0xff] %v4685_v50  ;;  %1090 = vmatpush.msrb.mxu0 %v4699_v38  ;;  %v4702_v50 = vld [vmem:[#allocation6 + $0x1e8] sm:$0xff] }
 0x1b4   :  { %7841 = vst [vmem:[#allocation31_spill] sm:$0xff] %v4688_v53  ;;  %1130 = vmatpush.msrb.mxu2 %v4702_v50  ;;  %v4705_v53 = vld [vmem:[#allocation6 + $0x280] sm:$0xff] }
 0x1b5   :  { %7842 = vst [vmem:[#allocation87_spill] sm:$0xff] %v4693_v26  ;;  %1121 = vmatpush.msrb.mxu1 %v4705_v53  ;;  %v4711_v26 = vld [vmem:[#allocation6 + $0x1c0] sm:$0xff] }
 0x1b6   :  { %7843 = vst [vmem:[#allocation34_spill] sm:$0xff] %v4696_v6  ;;  %1091 = vmatpush.msrb.mxu0 %v4711_v26  ;;  %v4714_v6 = vld [vmem:[#allocation6 + $0x1c8] sm:$0xff] }
 0x1b7   :  { %7844 = vst [vmem:[#allocation88_spill] sm:$0xff] %v4699_v38  ;;  %1131 = vmatpush.msrb.mxu2 %v4714_v6  ;;  %v4717_v38 = vld [vmem:[#allocation6 + $0x260] sm:$0xff] }
 0x1b8   :  { %7845 = vst [vmem:[#allocation33_spill] sm:$0xff] %v4702_v50  ;;  %1122 = vmatpush.msrb.mxu1 %v4717_v38  ;;  %v4720_v50 = vld [vmem:[#allocation6 + $0x268] sm:$0xff] }
 0x1b9   :  { %7846 = vst [vmem:[#allocation91_spill] sm:$0xff] %v4705_v53  ;;  %1162 = vmatpush.msrb.mxu3 %v4720_v50  ;;  %v4723_v53 = vld [vmem:[#allocation6 + $0x1a0] sm:$0xff] }
 0x1ba   :  { %7847 = vst [vmem:[#allocation36_spill] sm:$0xff] %v4708_v3  ;;  %1092 = vmatpush.msrb.mxu0 %v4723_v53  ;;  %v4726_v3 = vld [vmem:[#allocation6 + $0x1a8] sm:$0xff] }
 0x1bb   :  { %7848 = vst [vmem:[#allocation92_spill] sm:$0xff] %v4711_v26  ;;  %1132 = vmatpush.msrb.mxu2 %v4726_v3  ;;  %v4729_v26 = vld [vmem:[#allocation6 + $0x240] sm:$0xff] }
 0x1bc   :  { %7849 = vst [vmem:[#allocation35_spill] sm:$0xff] %v4714_v6  ;;  %1123 = vmatpush.msrb.mxu1 %v4729_v26  ;;  %v4732_v6 = vld [vmem:[#allocation6 + $0x248] sm:$0xff] }
 0x1bd   :  { %7850 = vst [vmem:[#allocation95_spill] sm:$0xff] %v4717_v38  ;;  %1163 = vmatpush.msrb.mxu3 %v4732_v6  ;;  %v4735_v38 = vld [vmem:[#allocation6 + $0x180] sm:$0xff] }
 0x1be   :  { %7851 = vst [vmem:[#allocation38_spill] sm:$0xff] %v4720_v50  ;;  %1093 = vmatpush.msrb.mxu0 %v4735_v38  ;;  %v4738_v50 = vld [vmem:[#allocation6 + $0x188] sm:$0xff] }
 0x1bf   :  { %7852 = vst [vmem:[#allocation96_spill] sm:$0xff] %v4723_v53  ;;  %1133 = vmatpush.msrb.mxu2 %v4738_v50  ;;  %v4741_v53 = vld [vmem:[#allocation6 + $0x220] sm:$0xff] }
 0x1c0   :  { %7853 = vst [vmem:[#allocation37_spill] sm:$0xff] %v4726_v3  ;;  %1124 = vmatpush.msrb.mxu1 %v4741_v53  ;;  %v4744_v3 = vld [vmem:[#allocation6 + $0x228] sm:$0xff] }
 0x1c1   :  { %7854 = vst [vmem:[#allocation99_spill] sm:$0xff] %v4729_v26  ;;  %1164 = vmatpush.msrb.mxu3 %v4744_v3  ;;  %v4747_v26 = vld [vmem:[#allocation6 + $0x160] sm:$0xff] }
 0x1c2   :  { %7855 = vst [vmem:[#allocation40_spill] sm:$0xff] %v4732_v6  ;;  %1094 = vmatpush.msrb.mxu0 %v4747_v26  ;;  %v4750_v6 = vld [vmem:[#allocation6 + $0x168] sm:$0xff] }
 0x1c3   :  { %7856 = vst [vmem:[#allocation100_spill] sm:$0xff] %v4735_v38  ;;  %1134 = vmatpush.msrb.mxu2 %v4750_v6  ;;  %v4753_v38 = vld [vmem:[#allocation6 + $0x200] sm:$0xff] }
 0x1c4   :  { %7857 = vst [vmem:[#allocation39_spill] sm:$0xff] %v4738_v50  ;;  %1125 = vmatpush.msrb.mxu1 %v4753_v38  ;;  %v4756_v50 = vld [vmem:[#allocation6 + $0x208] sm:$0xff] }
 0x1c5   :  { %7858 = vst [vmem:[#allocation41_spill] sm:$0xff] %v4741_v53  ;;  %1165 = vmatpush.msrb.mxu3 %v4756_v50  ;;  %v4759_v53 = vld [vmem:[#allocation6 + $0x3f0] sm:$0xff] }
 0x1c6   :  { %7859 = vst [vmem:[#allocation42_spill] sm:$0xff] %v4744_v3  ;;  %1190 = vmatpush.msra.mxu1 %v4759_v53  ;;  %v4762_v3 = vld [vmem:[#allocation6 + $0x3f8] sm:$0xff] }
 0x1c7   :  { %7860 = vst [vmem:[#allocation103_spill] sm:$0xff] %v4747_v26  ;;  %1230 = vmatpush.msra.mxu3 %v4762_v3  ;;  %v4765_v26 = vld [vmem:[#allocation6 + $0x140] sm:$0xff] }
 0x1c8   :  { %7861 = vst [vmem:[#allocation43_spill] sm:$0xff] %v4750_v6  ;;  %1095 = vmatpush.msrb.mxu0 %v4765_v26  ;;  %v4768_v6 = vld [vmem:[#allocation6 + $0x148] sm:$0xff] }
 0x1c9   :  { %7862 = vst [vmem:[#allocation104_spill] sm:$0xff] %v4753_v38  ;;  %1135 = vmatpush.msrb.mxu2 %v4768_v6  ;;  %v4771_v38 = vld [vmem:[#allocation6 + $0x3d0] sm:$0xff] }
 0x1ca   :  { %7863 = vst [vmem:[#allocation44_spill] sm:$0xff] %v4756_v50  ;;  %1191 = vmatpush.msra.mxu1 %v4771_v38  ;;  %v4774_v50 = vld [vmem:[#allocation6 + $0x3d8] sm:$0xff] }
 0x1cb   :  { %7864 = vst [vmem:[#allocation107_spill] sm:$0xff] %v4759_v53  ;;  %1231 = vmatpush.msra.mxu3 %v4774_v50  ;;  %v4777_v53 = vld [vmem:[#allocation6 + $0x120] sm:$0xff] }
 0x1cc   :  { %7865 = vst [vmem:[#allocation45_spill] sm:$0xff] %v4762_v3  ;;  %1096 = vmatpush.msrb.mxu0 %v4777_v53  ;;  %v4780_v3 = vld [vmem:[#allocation6 + $0x128] sm:$0xff] }
 0x1cd   :  { %7866 = vst [vmem:[#allocation46_spill] sm:$0xff] %v4765_v26  ;;  %1136 = vmatpush.msrb.mxu2 %v4780_v3  ;;  %v4783_v26 = vld [vmem:[#allocation6 + $0x3b0] sm:$0xff] }
 0x1ce   :  { %7867 = vst [vmem:[#allocation47_spill] sm:$0xff] %v4768_v6  ;;  %1192 = vmatpush.msra.mxu1 %v4783_v26  ;;  %v4786_v6 = vld [vmem:[#allocation6 + $0x3b8] sm:$0xff] }
 0x1cf   :  { %7868 = vst [vmem:[#allocation48_spill] sm:$0xff] %v4771_v38  ;;  %1232 = vmatpush.msra.mxu3 %v4786_v6  ;;  %v4789_v38 = vld [vmem:[#allocation6 + $0x100] sm:$0xff] }
 0x1d0   :  { %7869 = vst [vmem:[#allocation49_spill] sm:$0xff] %v4774_v50  ;;  %1097 = vmatpush.msrb.mxu0 %v4789_v38  ;;  %v4792_v50 = vld [vmem:[#allocation6 + $0x108] sm:$0xff] }
 0x1d1   :  { %7870 = vst [vmem:[#allocation50_spill] sm:$0xff] %v4777_v53  ;;  %1137 = vmatpush.msrb.mxu2 %v4792_v50  ;;  %v4795_v53 = vld [vmem:[#allocation6 + $0x390] sm:$0xff] }
 0x1d2   :  { %7871 = vst [vmem:[#allocation51_spill] sm:$0xff] %v4780_v3  ;;  %1193 = vmatpush.msra.mxu1 %v4795_v53  ;;  %v4798_v3 = vld [vmem:[#allocation6 + $0x398] sm:$0xff] }
 0x1d3   :  { %7872 = vst [vmem:[#allocation52_spill] sm:$0xff] %v4783_v26  ;;  %1233 = vmatpush.msra.mxu3 %v4798_v3  ;;  %v4801_v26 = vld [vmem:[#allocation6 + $0xe0] sm:$0xff] }
 0x1d4   :  { %7873 = vst [vmem:[#allocation53_spill] sm:$0xff] %v4786_v6  ;;  %1098 = vmatpush.msrb.mxu0 %v4801_v26  ;;  %v4804_v6 = vld [vmem:[#allocation6 + $0xe8] sm:$0xff] }
 0x1d5   :  { %7874 = vst [vmem:[#allocation54_spill] sm:$0xff] %v4789_v38  ;;  %1138 = vmatpush.msrb.mxu2 %v4804_v6  ;;  %v4807_v38 = vld [vmem:[#allocation6 + $0x370] sm:$0xff] }
 0x1d6   :  { %7875 = vst [vmem:[#allocation55_spill] sm:$0xff] %v4792_v50  ;;  %1194 = vmatpush.msra.mxu1 %v4807_v38  ;;  %v4810_v50 = vld [vmem:[#allocation6 + $0x378] sm:$0xff] }
 0x1d7   :  { %7876 = vst [vmem:[#allocation56_spill] sm:$0xff] %v4795_v53  ;;  %1234 = vmatpush.msra.mxu3 %v4810_v50  ;;  %v4813_v53 = vld [vmem:[#allocation6 + $0xc0] sm:$0xff] }
 0x1d8   :  { %7877 = vst [vmem:[#allocation85_spill] sm:$0xff] %v4798_v3  ;;  %1099 = vmatpush.msrb.mxu0 %v4813_v53  ;;  %v4816_v3 = vld [vmem:[#allocation6 + $0xc8] sm:$0xff] }
 0x1d9   :  { %7878 = vst [vmem:[#allocation86_spill] sm:$0xff] %v4801_v26  ;;  %1139 = vmatpush.msrb.mxu2 %v4816_v3  ;;  %v4819_v26 = vld [vmem:[#allocation6 + $0x350] sm:$0xff] }
 0x1da   :  { %7879 = vst [vmem:[#allocation89_spill] sm:$0xff] %v4804_v6  ;;  %1195 = vmatpush.msra.mxu1 %v4819_v26  ;;  %v4822_v6 = vld [vmem:[#allocation6 + $0x358] sm:$0xff] }
 0x1db   :  { %7880 = vst [vmem:[#allocation90_spill] sm:$0xff] %v4807_v38  ;;  %1235 = vmatpush.msra.mxu3 %v4822_v6  ;;  %v4825_v38 = vld [vmem:[#allocation6 + $0xa0] sm:$0xff] }
 0x1dc   :  { %7881 = vst [vmem:[#allocation93_spill] sm:$0xff] %v4810_v50  ;;  %1100 = vmatpush.msrb.mxu0 %v4825_v38  ;;  %v4828_v50 = vld [vmem:[#allocation6 + $0xa8] sm:$0xff] }
 0x1dd   :  { %7882 = vst [vmem:[#allocation94_spill] sm:$0xff] %v4813_v53  ;;  %1140 = vmatpush.msrb.mxu2 %v4828_v50  ;;  %v4831_v53 = vld [vmem:[#allocation6 + $0x330] sm:$0xff] }
 0x1de   :  { %7883 = vst [vmem:[#allocation97_spill] sm:$0xff] %v4816_v3  ;;  %1196 = vmatpush.msra.mxu1 %v4831_v53  ;;  %v4834_v3 = vld [vmem:[#allocation6 + $0x338] sm:$0xff] }
 0x1df   :  { %7884 = vst [vmem:[#allocation98_spill] sm:$0xff] %v4819_v26  ;;  %1236 = vmatpush.msra.mxu3 %v4834_v3  ;;  %v4837_v26 = vld [vmem:[#allocation6 + $0x80] sm:$0xff] }
 0x1e0   :  { %7885 = vst [vmem:[#allocation101_spill] sm:$0xff] %v4822_v6  ;;  %1101 = vmatpush.msrb.mxu0 %v4837_v26  ;;  %v4840_v6 = vld [vmem:[#allocation6 + $0x88] sm:$0xff] }
 0x1e1   :  { %7886 = vst [vmem:[#allocation102_spill] sm:$0xff] %v4825_v38  ;;  %1141 = vmatpush.msrb.mxu2 %v4840_v6  ;;  %v4843_v38 = vld [vmem:[#allocation6 + $0x310] sm:$0xff] }
 0x1e2   :  { %7887 = vst [vmem:[#allocation105_spill] sm:$0xff] %v4828_v50  ;;  %1197 = vmatpush.msra.mxu1 %v4843_v38  ;;  %v4846_v50 = vld [vmem:[#allocation6 + $0x318] sm:$0xff] }
 0x1e3   :  { %7888 = vst [vmem:[#allocation106_spill] sm:$0xff] %v4831_v53  ;;  %1237 = vmatpush.msra.mxu3 %v4846_v50  ;;  %v4849_v53 = vld [vmem:[#allocation6 + $0x60] sm:$0xff] }
 0x1e4   :  { %7889 = vst [vmem:[#allocation108_spill] sm:$0xff] %v4834_v3  ;;  %1102 = vmatpush.msrb.mxu0 %v4849_v53  ;;  %v4852_v3 = vld [vmem:[#allocation6 + $0x68] sm:$0xff] }
 0x1e5   :  { %7890 = vst [vmem:[#allocation109_spill] sm:$0xff] %v4837_v26  ;;  %1142 = vmatpush.msrb.mxu2 %v4852_v3  ;;  %v4855_v26 = vld [vmem:[#allocation6 + $0x2f0] sm:$0xff] }
 0x1e6   :  { %7891 = vst [vmem:[#allocation110_spill] sm:$0xff] %v4840_v6  ;;  %1198 = vmatpush.msra.mxu1 %v4855_v26  ;;  %v4858_v6 = vld [vmem:[#allocation6 + $0x2f8] sm:$0xff] }
 0x1e7   :  { %7892 = vst [vmem:[#allocation111_spill] sm:$0xff] %v4843_v38  ;;  %1238 = vmatpush.msra.mxu3 %v4858_v6  ;;  %v4861_v38 = vld [vmem:[#allocation6 + $0x40] sm:$0xff] }
 0x1e8   :  { %7893 = vst [vmem:[#allocation112_spill] sm:$0xff] %v4846_v50  ;;  %1103 = vmatpush.msrb.mxu0 %v4861_v38  ;;  %v4864_v50 = vld [vmem:[#allocation6 + $0x48] sm:$0xff] }
 0x1e9   :  { %7894 = vst [vmem:[#allocation113_spill] sm:$0xff] %v4849_v53  ;;  %1143 = vmatpush.msrb.mxu2 %v4864_v50  ;;  %v4867_v53 = vld [vmem:[#allocation6 + $0x2d0] sm:$0xff] }
 0x1ea   :  { %7895 = vst [vmem:[#allocation114_spill] sm:$0xff] %v4852_v3  ;;  %1199 = vmatpush.msra.mxu1 %v4867_v53  ;;  %v4870_v3 = vld [vmem:[#allocation6 + $0x2d8] sm:$0xff] }
 0x1eb   :  { %7896 = vst [vmem:[#allocation115_spill] sm:$0xff] %v4855_v26  ;;  %1239 = vmatpush.msra.mxu3 %v4870_v3  ;;  %v4873_v26 = vld [vmem:[#allocation6 + $0x20] sm:$0xff] }
 0x1ec   :  { %7897 = vst [vmem:[#allocation116_spill] sm:$0xff] %v4858_v6  ;;  %1104 = vmatpush.msrb.mxu0 %v4873_v26  ;;  %v4876_v6 = vld [vmem:[#allocation6 + $0x28] sm:$0xff] }
 0x1ed   :  { %7898 = vst [vmem:[#allocation117_spill] sm:$0xff] %v4861_v38  ;;  %1144 = vmatpush.msrb.mxu2 %v4876_v6  ;;  %v4879_v38 = vld [vmem:[#allocation6 + $0x2b0] sm:$0xff]  ;;  %v888_v10 = vpop.f32.mrf.mxu3 }
 0x1ee   :  { %7899 = vst [vmem:[#allocation118_spill] sm:$0xff] %v4864_v50  ;;  %1200 = vmatpush.msra.mxu1 %v4879_v38  ;;  %v4882_v50 = vld [vmem:[#allocation6 + $0x2b8] sm:$0xff] }
 0x1ef   :  { %7900 = vst [vmem:[#allocation119_spill] sm:$0xff] %v4867_v53  ;;  %1240 = vmatpush.msra.mxu3 %v4882_v50  ;;  %v4885_v53 = vld [vmem:[#allocation6] sm:$0xff] }
 0x1f0   :  { %7901 = vst [vmem:[#allocation120_spill] sm:$0xff] %v4870_v3  ;;  %1105 = vmatpush.msrb.mxu0 %v4885_v53  ;;  %v4888_v3 = vld [vmem:[#allocation6 + $0x8] sm:$0xff] }
 0x1f1   :  { %7902 = vst [vmem:[#allocation123_spill] sm:$0xff] %v4873_v26  ;;  %1145 = vmatpush.msrb.mxu2 %v4888_v3  ;;  %v4891_v26 = vld [vmem:[#allocation6 + $0x290] sm:$0xff] }
 0x1f2   :  { %7903 = vst [vmem:[#allocation122_spill] sm:$0xff] %v4876_v6  ;;  %1201 = vmatpush.msra.mxu1 %v4891_v26  ;;  %v4894_v6 = vld [vmem:[#allocation6 + $0x298] sm:$0xff] }
 0x1f3   :  { %7904 = vst [vmem:[#allocation121_spill] sm:$0xff] %v4879_v38  ;;  %1241 = vmatpush.msra.mxu3 %v4894_v6  ;;  %v4897_v38 = vld [vmem:[#allocation6 + $0x1f0] sm:$0xff] }
 0x1f4   :  { %7905 = vst [vmem:[#allocation124_spill] sm:$0xff] %v4882_v50  ;;  %1170 = vmatpush.msra.mxu0 %v4897_v38  ;;  %v4900_v50 = vld [vmem:[#allocation6 + $0x1f8] sm:$0xff] }
 0x1f5   :  { %7906 = vst [vmem:[#allocation125_spill] sm:$0xff] %v4885_v53  ;;  %1210 = vmatpush.msra.mxu2 %v4900_v50  ;;  %v4903_v53 = vld [vmem:[#allocation6 + $0x270] sm:$0xff] }
 0x1f6   :  { %7907 = vst [vmem:[#allocation126_spill] sm:$0xff] %v4888_v3  ;;  %1202 = vmatpush.msra.mxu1 %v4903_v53  ;;  %v4906_v3 = vld [vmem:[#allocation6 + $0x278] sm:$0xff] }
 0x1f7   :  { %7908 = vst [vmem:[#allocation127_spill] sm:$0xff] %v4891_v26  ;;  %1242 = vmatpush.msra.mxu3 %v4906_v3  ;;  %v4909_v26 = vld [vmem:[#allocation6 + $0x1d0] sm:$0xff] }
 0x1f8   :  { %7909 = vst [vmem:[#allocation128_spill] sm:$0xff] %v4894_v6  ;;  %1171 = vmatpush.msra.mxu0 %v4909_v26  ;;  %v4912_v6 = vld [vmem:[#allocation6 + $0x1d8] sm:$0xff] }
 0x1f9   :  { %7910 = vst [vmem:[#allocation129_spill] sm:$0xff] %v4897_v38  ;;  %1211 = vmatpush.msra.mxu2 %v4912_v6  ;;  %v4915_v38 = vld [vmem:[#allocation6 + $0x250] sm:$0xff] }
 0x1fa   :  { %7911 = vst [vmem:[#allocation130_spill] sm:$0xff] %v4900_v50  ;;  %1203 = vmatpush.msra.mxu1 %v4915_v38  ;;  %v4918_v50 = vld [vmem:[#allocation6 + $0x258] sm:$0xff] }
 0x1fb   :  { %7912 = vst [vmem:[#allocation131_spill] sm:$0xff] %v4903_v53  ;;  %1243 = vmatpush.msra.mxu3 %v4918_v50  ;;  %v4921_v53 = vld [vmem:[#allocation6 + $0x1b0] sm:$0xff] }
 0x1fc   :  { %7913 = vst [vmem:[#allocation132_spill] sm:$0xff] %v4906_v3  ;;  %1172 = vmatpush.msra.mxu0 %v4921_v53  ;;  %v4924_v3 = vld [vmem:[#allocation6 + $0x1b8] sm:$0xff] }
 0x1fd   :  { %7914 = vst [vmem:[#allocation133_spill] sm:$0xff] %v4909_v26  ;;  %1212 = vmatpush.msra.mxu2 %v4924_v3  ;;  %v4927_v26 = vld [vmem:[#allocation6 + $0x230] sm:$0xff] }
 0x1fe   :  { %7915 = vst [vmem:[#allocation134_spill] sm:$0xff] %v4912_v6  ;;  %1204 = vmatpush.msra.mxu1 %v4927_v26  ;;  %v4930_v6 = vld [vmem:[#allocation6 + $0x238] sm:$0xff] }
 0x1ff   :  { %7916 = vst [vmem:[#allocation135_spill] sm:$0xff] %v4915_v38  ;;  %1244 = vmatpush.msra.mxu3 %v4930_v6  ;;  %v4933_v38 = vld [vmem:[#allocation6 + $0x190] sm:$0xff] }
 0x200   :  { %7917 = vst [vmem:[#allocation136_spill] sm:$0xff] %v4918_v50  ;;  %1173 = vmatpush.msra.mxu0 %v4933_v38  ;;  %v4936_v50 = vld [vmem:[#allocation6 + $0x198] sm:$0xff] }
 0x201   :  { %7918 = vst [vmem:[#allocation137_spill] sm:$0xff] %v4921_v53  ;;  %1213 = vmatpush.msra.mxu2 %v4936_v50  ;;  %v4939_v53 = vld [vmem:[#allocation6 + $0x210] sm:$0xff] }
 0x202   :  { %7919 = vst [vmem:[#allocation138_spill] sm:$0xff] %v4924_v3  ;;  %1205 = vmatpush.msra.mxu1 %v4939_v53  ;;  %v4942_v3 = vld [vmem:[#allocation6 + $0x218] sm:$0xff] }
 0x203   :  { %7920 = vst [vmem:[#allocation139_spill] sm:$0xff] %v4927_v26  ;;  %1245 = vmatpush.msra.mxu3 %v4942_v3  ;;  %v4945_v26 = vld [vmem:[#allocation6 + $0x170] sm:$0xff] }
 0x204   :  { %7921 = vst [vmem:[#allocation140_spill] sm:$0xff] %v4930_v6  ;;  %1174 = vmatpush.msra.mxu0 %v4945_v26  ;;  %v4948_v6 = vld [vmem:[#allocation6 + $0x178] sm:$0xff] }
 0x205   :  { %7922 = vst [vmem:[#allocation141_spill] sm:$0xff] %v4933_v38  ;;  %1214 = vmatpush.msra.mxu2 %v4948_v6  ;;  %v4951_v38 = vld [vmem:[#allocation6 + $0x150] sm:$0xff] }
 0x206   :  { %7923 = vst [vmem:[#allocation142_spill] sm:$0xff] %v4936_v50  ;;  %1175 = vmatpush.msra.mxu0 %v4951_v38  ;;  %v4954_v50 = vld [vmem:[#allocation6 + $0x158] sm:$0xff] }
 0x207   :  { %7924 = vst [vmem:[#allocation143_spill] sm:$0xff] %v4939_v53  ;;  %1215 = vmatpush.msra.mxu2 %v4954_v50  ;;  %v4957_v53 = vld [vmem:[#allocation6 + $0x130] sm:$0xff] }
 0x208   :  { %7925 = vst [vmem:[#allocation144_spill] sm:$0xff] %v4942_v3  ;;  %1176 = vmatpush.msra.mxu0 %v4957_v53  ;;  %v4960_v3 = vld [vmem:[#allocation6 + $0x138] sm:$0xff]  ;;  %v868_v42 = vpop.f32.mrf.mxu2 }
 0x209   :  { %7926 = vst [vmem:[#allocation145_spill] sm:$0xff] %v4945_v26  ;;  %1216 = vmatpush.msra.mxu2 %v4960_v3  ;;  %v4963_v26 = vld [vmem:[#allocation6 + $0x110] sm:$0xff] }
 0x20a   :  { %7927 = vst [vmem:[#allocation146_spill] sm:$0xff] %v4948_v6  ;;  %1177 = vmatpush.msra.mxu0 %v4963_v26  ;;  %v4966_v6 = vld [vmem:[#allocation6 + $0x118] sm:$0xff] }
 0x20b   :  { %7928 = vst [vmem:[#allocation147_spill] sm:$0xff] %v4951_v38  ;;  %1217 = vmatpush.msra.mxu2 %v4966_v6  ;;  %v4969_v38 = vld [vmem:[#allocation6 + $0xf0] sm:$0xff] }
 0x20c   :  { %7929 = vst [vmem:[#allocation148_spill] sm:$0xff] %v4954_v50  ;;  %1178 = vmatpush.msra.mxu0 %v4969_v38  ;;  %v4972_v50 = vld [vmem:[#allocation6 + $0xf8] sm:$0xff] }
 0x20d   :  { %7930 = vst [vmem:[#allocation149_spill] sm:$0xff] %v4957_v53  ;;  %1218 = vmatpush.msra.mxu2 %v4972_v50  ;;  %v4975_v53 = vld [vmem:[#allocation6 + $0xd0] sm:$0xff] }
 0x20e   :  { %7931 = vst [vmem:[#allocation150_spill] sm:$0xff] %v4960_v3  ;;  %1179 = vmatpush.msra.mxu0 %v4975_v53  ;;  %v4978_v3 = vld [vmem:[#allocation6 + $0xd8] sm:$0xff] }
 0x20f   :  { %7932 = vst [vmem:[#allocation151_spill] sm:$0xff] %v4963_v26  ;;  %1219 = vmatpush.msra.mxu2 %v4978_v3  ;;  %v4981_v26 = vld [vmem:[#allocation6 + $0xb0] sm:$0xff] }
 0x210   :  { %7933 = vst [vmem:[#allocation152_spill] sm:$0xff] %v4966_v6  ;;  %1180 = vmatpush.msra.mxu0 %v4981_v26  ;;  %v4984_v6 = vld [vmem:[#allocation6 + $0xb8] sm:$0xff] }
 0x211   :  { %7934 = vst [vmem:[#allocation153_spill] sm:$0xff] %v4969_v38  ;;  %1220 = vmatpush.msra.mxu2 %v4984_v6  ;;  %v4987_v38 = vld [vmem:[#allocation6 + $0x90] sm:$0xff] }
 0x212   :  { %7935 = vst [vmem:[#allocation154_spill] sm:$0xff] %v4972_v50  ;;  %1181 = vmatpush.msra.mxu0 %v4987_v38  ;;  %v4990_v50 = vld [vmem:[#allocation6 + $0x98] sm:$0xff] }
 0x213   :  { %7936 = vst [vmem:[#allocation155_spill] sm:$0xff] %v4975_v53  ;;  %1221 = vmatpush.msra.mxu2 %v4990_v50  ;;  %v4993_v53 = vld [vmem:[#allocation6 + $0x70] sm:$0xff] }
 0x214   :  { %7937 = vst [vmem:[#allocation156_spill] sm:$0xff] %v4978_v3  ;;  %1182 = vmatpush.msra.mxu0 %v4993_v53  ;;  %v4996_v3 = vld [vmem:[#allocation6 + $0x78] sm:$0xff] }
 0x215   :  { %7938 = vst [vmem:[#allocation157_spill] sm:$0xff] %v4981_v26  ;;  %1222 = vmatpush.msra.mxu2 %v4996_v3  ;;  %v4999_v26 = vld [vmem:[#allocation6 + $0x50] sm:$0xff] }
 0x216   :  { %7939 = vst [vmem:[#allocation158_spill] sm:$0xff] %v4984_v6  ;;  %1183 = vmatpush.msra.mxu0 %v4999_v26  ;;  %v5002_v6 = vld [vmem:[#allocation6 + $0x58] sm:$0xff] }
 0x217   :  { %7940 = vst [vmem:[#allocation159_spill] sm:$0xff] %v4987_v38  ;;  %1223 = vmatpush.msra.mxu2 %v5002_v6 }
 0x218   :  { %7941 = vst [vmem:[#allocation160_spill] sm:$0xff] %v4990_v50  ;;  %1184 = vmatpush.msra.mxu0 %v4179_v47  ;;  %v848_v50 = vpop.f32.mrf.mxu1 }
 0x219   :  { %7942 = vst [vmem:[#allocation161_spill] sm:$0xff] %v4993_v53  ;;  %1224 = vmatpush.msra.mxu2 %v4181_v49  ;;  %v828_v53 = vpop.f32.mrf.mxu0 }
 0x21a   :  { %7943 = vst [vmem:[#allocation162_spill] sm:$0xff] %v4996_v3  ;;  %1185 = vmatpush.msra.mxu0 %v4195_v51  ;;  %v829_v3 = vadd.f32 %v828_v53, %v4397_v13 }
 0x21b   :  { %7944 = vst [vmem:[#allocation163_spill] sm:$0xff] %v4999_v26  ;;  %1225 = vmatpush.msra.mxu2 %v4199_v54  ;;  %v869_v26 = vadd.f32 %v868_v42, %v4400_v39  ;;  %v948_v54 = vpop.f32.mrf.mxu2 }
 0x21c   :  { %7945 = vst [vmem:[#allocation164_spill] sm:$0xff] %v5002_v6  ;;  %v849_v38 = vadd.f32 %v848_v50, %v829_v3  ;;  %v949_v32 = vadd.f32 %v948_v54, %v4406_v2  ;;  %v968_v50 = vpop.f32.mrf.mxu3  ;;  %v86_v3 = vpop.permute.xlu1 %85 }
 0x21d   :  { %v889_v8 = vadd.f32 %v888_v10, %v869_v26  ;;  %v131_v26 = vmul.f32 %v7788_v20, %v86_v3  ;;  %v130_v54 = vmul.f32 %v7789_v1, %v86_v3 }
 0x21e   :  { %2748 = vtanh.f32 %v849_v38  ;;  %v969_v38 = vadd.f32 %v968_v50, %v949_v32 }
 0x21f   :  { %2750 = vtanh.f32 %v889_v8 }
 0x220   :  { %v928_v31 = vpop.f32.mrf.mxu1 }
 0x221   :  { %v908_v6 = vpop.f32.mrf.mxu0 }
 0x222   :  { %v909_v47 = vadd.f32 %v908_v6, %v4402_v45  ;;  %v172_v6 = vadd.f32 %v4187_v23, %v131_v26 }
 0x224   :  { %v929_v49 = vadd.f32 %v928_v31, %v909_v47  ;;  %v2749_v51 = vpop.eup %2748 }
 0x225   :  { %v975_v52 = vmul.f32 0.5, %v2749_v51  ;;  %v2751_v53 = vpop.eup %2750 }
 0x226   :  { %2752 = vtanh.f32 %v929_v49  ;;  %v977_v13 = vmul.f32 0.5, %v2751_v53 }
 0x227   :  { %v976_v42 = vadd.f32 0.5, %v975_v52  ;;  %2754 = vtanh.f32 %v969_v38 }
 0x228   :  { %v978_v10 = vadd.f32 0.5, %v977_v13  ;;  %v1028_v49 = vpop.f32.mrf.mxu1  ;;  %v171_v13 = vadd.f32 %v7790_v43, %v130_v54 }
 0x229   :  { %v1072_v53 = vadd.f32 %v1028_v49, %v172_v6 }
 0x22a   :  { %v981_v8 = vmul.f32 %v978_v10, %v4410_v46  ;;  %v133_v46 = vmul.f32 %v4203_v29, %v86_v3  ;;  %v132_v10 = vmul.f32 %v7791_v24, %v86_v3 }
 0x22c   :  { %v2753_v0 = vpop.eup %2752  ;;  %v1008_v38 = vpop.f32.mrf.mxu0  ;;  %v174_v26 = vadd.f32 %v4217_v16, %v133_v46  ;;  %v173_v6 = vadd.f32 %v4209_v27, %v132_v10  ;;  %v7971_v46 = vld [vmem:[#allocation22_spill] sm:$0xff]  ;;  %v7975_v10 = vld [vmem:[#allocation24_spill] sm:$0xff] }
 0x22d   :  { %v982_v31 = vmul.f32 %v2753_v0, %v976_v42  ;;  %v2755_v51 = vpop.eup %2754  ;;  %v1071_v42 = vadd.f32 %v1008_v38, %v171_v13  ;;  %v7968_v13 = vld [vmem:[#allocation17_spill] sm:$0xff]  ;;  %v7973_v38 = vld [vmem:[#allocation19_spill] sm:$0xff] }
 0x22e   :  { %v979_v32 = vmul.f32 0.5, %v2755_v51 }
 0x22f   :  { %v5016_v47 = vadd.f32 %v982_v31, %v981_v8  ;;  %v1068_v31 = vpop.f32.mrf.mxu3 }
 0x230   :  { %v980_v52 = vadd.f32 0.5, %v979_v32  ;;  %v7966_v32 = vld [vmem:[#allocation18_spill] sm:$0xff] }
 0x231   :  { %2756 = vtanh.f32 %v5016_v47 }
 0x232   :  { %2758 = vtanh.f32 %v1072_v53  ;;  %v7967_v53 = vld [vmem:[#allocation20_spill] sm:$0xff] }
 0x233   :  { %2760 = vtanh.f32 %v1071_v42  ;;  %v1048_v49 = vpop.f32.mrf.mxu2  ;;  %v7974_v42 = vld [vmem:[#allocation75_spill] sm:$0xff] }
 0x234   :  { %v1073_v51 = vadd.f32 %v1048_v49, %v173_v6  ;;  %v7979_v6 = vld [vmem:[#allocation26_spill] sm:$0xff]  ;;  %v7980_v49 = vld [vmem:[#allocation76_spill] sm:$0xff] }
 0x236   :  { %2762 = vtanh.f32 %v1073_v51  ;;  %v7981_v51 = vld [vmem:[#allocation23_spill] sm:$0xff] }
 0x237   :  { %v2757_v50 = vpop.eup %2756 }
 0x238   :  { %v985_v0 = vmul.f32 %v2757_v50, %v980_v52  ;;  %v2759_v8 = vpop.eup %2758  ;;  %v7969_v52 = vld [vmem:[#allocation71_spill] sm:$0xff]  ;;  %v7970_v50 = vld [vmem:[#allocation73_spill] sm:$0xff] }
 0x239   :  { %v1081_v3 = vmul.f32 0.5, %v2759_v8  ;;  %v2761_v54 = vpop.eup %2760  ;;  %v7977_v8 = vld [vmem:[#allocation21_spill] sm:$0xff] }
 0x23a   :  { %1126 = vmatmul.f32.vlgmr.msrb.gmra.mxu1 %v985_v0  ;;  %1166 = vmatmul.f32.vlgmr.msrb.gmra.mxu3 %v985_v0 }
 0x23b   :  { %1290 = vmatpush.msrb.mxu1 %v4418_v5  ;;  %1330 = vmatpush.msrb.mxu3 %v4421_v7  ;;  %v1074_v5 = vadd.f32 %v1068_v31, %v174_v26  ;;  %v1079_v7 = vmul.f32 0.5, %v2761_v54  ;;  %v7976_v26 = vld [vmem:[#allocation74_spill] sm:$0xff]  ;;  %v7978_v31 = vld [vmem:[#allocation77_spill] sm:$0xff] }
 0x23c   :  { %v7984_v54 = vld [vmem:[#allocation78_spill] sm:$0xff] }
 0x23d   :  { %1291 = vmatpush.msrb.mxu1 %v4425_v17  ;;  %1331 = vmatpush.msrb.mxu3 %v4428_v19  ;;  %v1082_v17 = vadd.f32 0.5, %v1081_v3  ;;  %2764 = vtanh.f32 %v1074_v5  ;;  %v1080_v19 = vadd.f32 0.5, %v1079_v7  ;;  %v7982_v3 = vld [vmem:[#allocation79_spill] sm:$0xff]  ;;  %v7983_v5 = vld [vmem:[#allocation28_spill] sm:$0xff]  ;;  %v7985_v7 = vld [vmem:[#allocation25_spill] sm:$0xff] }
 0x23f   :  { %1292 = vmatpush.msrb.mxu1 %v4432_v60  ;;  %1332 = vmatpush.msrb.mxu3 %v4435_v62  ;;  %v2763_v60 = vpop.eup %2762  ;;  %v1085_v62 = vmul.f32 %v1082_v17, %v4472_v34  ;;  %v7948_v34 = vld [vmem:[#allocation60_spill] sm:$0xff]  ;;  %v7986_v17 = vld [vmem:[#allocation81_spill] sm:$0xff] }
 0x241   :  { %1293 = vmatpush.msrb.mxu1 %v4438_v61  ;;  %1333 = vmatpush.msrb.mxu3 %v4441_v55  ;;  %v1086_v61 = vmul.f32 %v2763_v60, %v1080_v19  ;;  %v7987_v19 = vld [vmem:[#allocation30_spill] sm:$0xff]  ;;  %v7988_v60 = vld [vmem:[#allocation80_spill] sm:$0xff] }
 0x242   :  { %1206 = vmatmul.f32.vlgmr.msra.gmra.mxu1 %v985_v0  ;;  %1246 = vmatmul.f32.vlgmr.msra.gmra.mxu3 %v985_v0  ;;  %v7972_v0 = vld [vmem:[#allocation72_spill] sm:$0xff] }
 0x243   :  { %1294 = vmatpush.msrb.mxu1 %v4444_v63  ;;  %1334 = vmatpush.msrb.mxu3 %v4447_v57  ;;  %v2765_v55 = vpop.eup %2764  ;;  %v5042_v63 = vadd.f32 %v1086_v61, %v1085_v62  ;;  %v7989_v62 = vld [vmem:[#allocation27_spill] sm:$0xff] }
 0x244   :  { %v1083_v57 = vmul.f32 0.5, %v2765_v55  ;;  %v7990_v61 = vld [vmem:[#allocation83_spill] sm:$0xff]  ;;  %v7991_v55 = vld [vmem:[#allocation32_spill] sm:$0xff] }
 0x245   :  { %1295 = vmatpush.msrb.mxu1 %v4453_v28  ;;  %1335 = vmatpush.msrb.mxu3 %v4456_v48  ;;  %2766 = vtanh.f32 %v5042_v63 }
 0x246   :  { %v1084_v28 = vadd.f32 0.5, %v1083_v57  ;;  %v7992_v57 = vld [vmem:[#allocation82_spill] sm:$0xff] }
 0x247   :  { %1296 = vmatpush.msrb.mxu1 %v4459_v22  ;;  %1336 = vmatpush.msrb.mxu3 %v4462_v35  ;;  %v5060_v35 = vld [vmem:[#allocation4 + $0x1f0] sm:$0xff] }
 0x249   :  { %1297 = vmatpush.msrb.mxu1 %v4466_v40  ;;  %1337 = vmatpush.msrb.mxu3 %v4469_v36  ;;  %v7946_v40 = vld [vmem:[#allocation58_spill] sm:$0xff]  ;;  %v7947_v36 = vld [vmem:[#allocation59_spill] sm:$0xff] }
 0x24b   :  { %1298 = vmatpush.msrb.mxu1 %v4474_v59  ;;  %1338 = vmatpush.msrb.mxu3 %v4477_v41  ;;  %v2767_v48 = vpop.eup %2766  ;;  %v7949_v59 = vld [vmem:[#allocation61_spill] sm:$0xff]  ;;  %v7950_v41 = vld [vmem:[#allocation62_spill] sm:$0xff] }
 0x24c   :  { %v5053_v22 = vmul.f32 %v2767_v48, %v1084_v28  ;;  %v7993_v28 = vld [vmem:[#allocation29_spill] sm:$0xff]  ;;  %v7994_v48 = vld [vmem:[#allocation87_spill] sm:$0xff] }
 0x24d   :  { %1299 = vmatpush.msrb.mxu1 %v4481_v30  ;;  %1339 = vmatpush.msrb.mxu3 %v4484_v44  ;;  %v7951_v30 = vld [vmem:[#allocation63_spill] sm:$0xff]  ;;  %v7952_v44 = vld [vmem:[#allocation64_spill] sm:$0xff] }
 0x24e   :  { %1106 = vmatmul.f32.vlgmr.msrb.gmra.mxu0 %v5053_v22  ;;  %1146 = vmatmul.f32.vlgmr.msrb.gmra.mxu2 %v5053_v22 }
 0x24f   :  { %1300 = vmatpush.msrb.mxu1 %v4487_v58  ;;  %1340 = vmatpush.msrb.mxu3 %v4490_v4  ;;  %v7953_v58 = vld [vmem:[#allocation65_spill] sm:$0xff]  ;;  %v7954_v4 = vld [vmem:[#allocation10_spill] sm:$0xff] }
 0x250   :  { %1270 = vmatpush.msrb.mxu0 %v4509_v15  ;;  %1310 = vmatpush.msrb.mxu2 %v5060_v35  ;;  %v7959_v15 = vld [vmem:[#allocation13_spill] sm:$0xff] }
 0x251   :  { %1301 = vmatpush.msrb.mxu1 %v4493_v12  ;;  %1341 = vmatpush.msrb.mxu3 %v4496_v14  ;;  %v7955_v12 = vld [vmem:[#allocation11_spill] sm:$0xff]  ;;  %v7956_v14 = vld [vmem:[#allocation12_spill] sm:$0xff] }
 0x252   :  { %1271 = vmatpush.msrb.mxu0 %v4519_v56  ;;  %1311 = vmatpush.msrb.mxu2 %v4522_v25  ;;  %v7962_v56 = vld [vmem:[#allocation69_spill] sm:$0xff]  ;;  %v7963_v25 = vld [vmem:[#allocation15_spill] sm:$0xff] }
 0x253   :  { %1302 = vmatpush.msrb.mxu1 %v4501_v9  ;;  %1342 = vmatpush.msrb.mxu3 %v4504_v11  ;;  %v7957_v9 = vld [vmem:[#allocation66_spill] sm:$0xff]  ;;  %v7958_v11 = vld [vmem:[#allocation67_spill] sm:$0xff] }
 0x254   :  { %1272 = vmatpush.msrb.mxu0 %v7946_v40  ;;  %1312 = vmatpush.msrb.mxu2 %v7947_v36  ;;  %v7995_v40 = vld [vmem:[#allocation34_spill] sm:$0xff]  ;;  %v7996_v36 = vld [vmem:[#allocation84_spill] sm:$0xff] }
 0x255   :  { %1303 = vmatpush.msrb.mxu1 %v4513_v21  ;;  %1343 = vmatpush.msrb.mxu3 %v4516_v18  ;;  %v7960_v21 = vld [vmem:[#allocation14_spill] sm:$0xff]  ;;  %v7961_v18 = vld [vmem:[#allocation68_spill] sm:$0xff] }
 0x256   :  { %1273 = vmatpush.msrb.mxu0 %v7950_v41  ;;  %1313 = vmatpush.msrb.mxu2 %v7951_v30  ;;  %v7999_v41 = vld [vmem:[#allocation36_spill] sm:$0xff] }
 0x257   :  { %1304 = vmatpush.msrb.mxu1 %v4525_v37  ;;  %1344 = vmatpush.msrb.mxu3 %v4528_v33  ;;  %v7964_v37 = vld [vmem:[#allocation16_spill] sm:$0xff]  ;;  %v7965_v33 = vld [vmem:[#allocation70_spill] sm:$0xff] }
 0x258   :  { %1186 = vmatmul.f32.vlgmr.msra.gmra.mxu0 %v5053_v22  ;;  %1226 = vmatmul.f32.vlgmr.msra.gmra.mxu2 %v5053_v22  ;;  %v8000_v30 = vld [vmem:[#allocation88_spill] sm:$0xff] }
 0x259   :  { %1305 = vmatpush.msrb.mxu1 %v7948_v34  ;;  %1345 = vmatpush.msrb.mxu3 %v7949_v59  ;;  %v7997_v34 = vld [vmem:[#allocation31_spill] sm:$0xff] }
 0x25a   :  { %1306 = vmatmul.f32.vlgmr.msrb.gmra.mxu1 %v5053_v22  ;;  %1346 = vmatmul.f32.vlgmr.msrb.gmra.mxu3 %v5053_v22  ;;  %v7998_v59 = vld [vmem:[#allocation91_spill] sm:$0xff] }
 0x25b   :  { %1274 = vmatpush.msrb.mxu0 %v7952_v44  ;;  %1314 = vmatpush.msrb.mxu2 %v7953_v58  ;;  %v8001_v44 = vld [vmem:[#allocation33_spill] sm:$0xff]  ;;  %v8002_v58 = vld [vmem:[#allocation95_spill] sm:$0xff] }
 0x25c   :  { %1389 = vmatpush.msra.mxu1 %v7954_v4  ;;  %1429 = vmatpush.msra.mxu3 %v7955_v12  ;;  %v8003_v4 = vld [vmem:[#allocation38_spill] sm:$0xff]  ;;  %v8004_v12 = vld [vmem:[#allocation92_spill] sm:$0xff] }
 0x25d   :  { %1275 = vmatpush.msrb.mxu0 %v7956_v14  ;;  %1315 = vmatpush.msrb.mxu2 %v7957_v9  ;;  %v8005_v14 = vld [vmem:[#allocation35_spill] sm:$0xff] }
 0x25e   :  { %1390 = vmatpush.msra.mxu1 %v7958_v11  ;;  %1430 = vmatpush.msra.mxu3 %v7959_v15  ;;  %v8006_v9 = vld [vmem:[#allocation99_spill] sm:$0xff]  ;;  %v8007_v11 = vld [vmem:[#allocation40_spill] sm:$0xff]  ;;  %v8009_v15 = vld [vmem:[#allocation37_spill] sm:$0xff] }
 0x25f   :  { %1276 = vmatpush.msrb.mxu0 %v7960_v21  ;;  %1316 = vmatpush.msrb.mxu2 %v7961_v18  ;;  %v8010_v21 = vld [vmem:[#allocation41_spill] sm:$0xff]  ;;  %v8011_v18 = vld [vmem:[#allocation42_spill] sm:$0xff] }
 0x260   :  { %1391 = vmatpush.msra.mxu1 %v7962_v56  ;;  %1431 = vmatpush.msra.mxu3 %v7963_v25  ;;  %v8012_v56 = vld [vmem:[#allocation100_spill] sm:$0xff]  ;;  %v8013_v25 = vld [vmem:[#allocation39_spill] sm:$0xff] }
 0x261   :  { %1277 = vmatpush.msrb.mxu0 %v7964_v37  ;;  %1317 = vmatpush.msrb.mxu2 %v7965_v33  ;;  %v8014_v37 = vld [vmem:[#allocation104_spill] sm:$0xff] }
 0x262   :  { %1392 = vmatpush.msra.mxu1 %v7966_v32  ;;  %1432 = vmatpush.msra.mxu3 %v7967_v53  ;;  %v8015_v33 = vld [vmem:[#allocation44_spill] sm:$0xff]  ;;  %v8016_v32 = vld [vmem:[#allocation107_spill] sm:$0xff]  ;;  %v8017_v53 = vld [vmem:[#allocation45_spill] sm:$0xff] }
 0x263   :  { %1278 = vmatpush.msrb.mxu0 %v7968_v13  ;;  %1318 = vmatpush.msrb.mxu2 %v7969_v52  ;;  %v8018_v13 = vld [vmem:[#allocation103_spill] sm:$0xff] }
 0x264   :  { %1393 = vmatpush.msra.mxu1 %v7970_v50  ;;  %1433 = vmatpush.msra.mxu3 %v7971_v46  ;;  %v8019_v52 = vld [vmem:[#allocation43_spill] sm:$0xff]  ;;  %v8020_v50 = vld [vmem:[#allocation48_spill] sm:$0xff]  ;;  %v8021_v46 = vld [vmem:[#allocation49_spill] sm:$0xff] }
 0x265   :  { %1279 = vmatpush.msrb.mxu0 %v7972_v0  ;;  %1319 = vmatpush.msrb.mxu2 %v7973_v38  ;;  %v8022_v0 = vld [vmem:[#allocation46_spill] sm:$0xff]  ;;  %v8023_v38 = vld [vmem:[#allocation47_spill] sm:$0xff] }
 0x266   :  { %1394 = vmatpush.msra.mxu1 %v7974_v42  ;;  %1434 = vmatpush.msra.mxu3 %v7975_v10  ;;  %v8024_v42 = vld [vmem:[#allocation52_spill] sm:$0xff]  ;;  %v8025_v10 = vld [vmem:[#allocation53_spill] sm:$0xff] }
 0x267   :  { %1280 = vmatpush.msrb.mxu0 %v7976_v26  ;;  %1320 = vmatpush.msrb.mxu2 %v7977_v8  ;;  %v8026_v26 = vld [vmem:[#allocation50_spill] sm:$0xff]  ;;  %v8027_v8 = vld [vmem:[#allocation51_spill] sm:$0xff] }
 0x268   :  { %1395 = vmatpush.msra.mxu1 %v7978_v31  ;;  %1435 = vmatpush.msra.mxu3 %v7979_v6  ;;  %v8028_v31 = vld [vmem:[#allocation56_spill] sm:$0xff]  ;;  %v8029_v6 = vld [vmem:[#allocation85_spill] sm:$0xff] }
 0x269   :  { %1281 = vmatpush.msrb.mxu0 %v7980_v49  ;;  %1321 = vmatpush.msrb.mxu2 %v7981_v51  ;;  %v8030_v49 = vld [vmem:[#allocation54_spill] sm:$0xff]  ;;  %v8031_v51 = vld [vmem:[#allocation55_spill] sm:$0xff] }
 0x26a   :  { %1396 = vmatpush.msra.mxu1 %v7982_v3  ;;  %1436 = vmatpush.msra.mxu3 %v7983_v5  ;;  %v8032_v3 = vld [vmem:[#allocation90_spill] sm:$0xff]  ;;  %v8033_v5 = vld [vmem:[#allocation93_spill] sm:$0xff] }
 0x26b   :  { %1282 = vmatpush.msrb.mxu0 %v7984_v54  ;;  %1322 = vmatpush.msrb.mxu2 %v7985_v7  ;;  %v8034_v54 = vld [vmem:[#allocation86_spill] sm:$0xff]  ;;  %v8035_v7 = vld [vmem:[#allocation89_spill] sm:$0xff] }
 0x26c   :  { %1397 = vmatpush.msra.mxu1 %v7986_v17  ;;  %1437 = vmatpush.msra.mxu3 %v7987_v19  ;;  %v8036_v17 = vld [vmem:[#allocation98_spill] sm:$0xff]  ;;  %v8037_v19 = vld [vmem:[#allocation101_spill] sm:$0xff] }
 0x26d   :  { %1283 = vmatpush.msrb.mxu0 %v7988_v60  ;;  %1323 = vmatpush.msrb.mxu2 %v7989_v62  ;;  %v8038_v60 = vld [vmem:[#allocation94_spill] sm:$0xff]  ;;  %v8039_v62 = vld [vmem:[#allocation97_spill] sm:$0xff] }
 0x26e   :  { %1398 = vmatpush.msra.mxu1 %v7990_v61  ;;  %1438 = vmatpush.msra.mxu3 %v7991_v55  ;;  %v8040_v61 = vld [vmem:[#allocation106_spill] sm:$0xff]  ;;  %v8041_v55 = vld [vmem:[#allocation108_spill] sm:$0xff] }
 0x26f   :  { %1284 = vmatpush.msrb.mxu0 %v7992_v57  ;;  %1324 = vmatpush.msrb.mxu2 %v7993_v28  ;;  %v8042_v57 = vld [vmem:[#allocation102_spill] sm:$0xff]  ;;  %v8043_v28 = vld [vmem:[#allocation105_spill] sm:$0xff] }
 0x270   :  { %1399 = vmatpush.msra.mxu1 %v7994_v48  ;;  %1439 = vmatpush.msra.mxu3 %v7995_v40  ;;  %v8044_v48 = vld [vmem:[#allocation111_spill] sm:$0xff]  ;;  %v8045_v40 = vld [vmem:[#allocation112_spill] sm:$0xff] }
 0x271   :  { %1285 = vmatpush.msrb.mxu0 %v7996_v36  ;;  %1325 = vmatpush.msrb.mxu2 %v7997_v34  ;;  %v8046_v36 = vld [vmem:[#allocation109_spill] sm:$0xff]  ;;  %v8047_v34 = vld [vmem:[#allocation110_spill] sm:$0xff] }
 0x272   :  { %1286 = vmatmul.f32.vlgmr.msrb.gmra.mxu0 %v5053_v22  ;;  %1326 = vmatmul.f32.vlgmr.msrb.gmra.mxu2 %v5053_v22  ;;  %v8008_v22 = vld [vmem:[#allocation96_spill] sm:$0xff] }
 0x273   :  { %1400 = vmatpush.msra.mxu1 %v7998_v59  ;;  %1440 = vmatpush.msra.mxu3 %v7999_v41  ;;  %v8048_v59 = vld [vmem:[#allocation115_spill] sm:$0xff]  ;;  %v8049_v41 = vld [vmem:[#allocation116_spill] sm:$0xff] }
 0x274   :  { %1369 = vmatpush.msra.mxu0 %v8000_v30  ;;  %1409 = vmatpush.msra.mxu2 %v8001_v44  ;;  %v8050_v30 = vld [vmem:[#allocation113_spill] sm:$0xff]  ;;  %v8051_v44 = vld [vmem:[#allocation114_spill] sm:$0xff] }
 0x275   :  { %1401 = vmatpush.msra.mxu1 %v8002_v58  ;;  %1441 = vmatpush.msra.mxu3 %v8003_v4  ;;  %v8052_v58 = vld [vmem:[#allocation119_spill] sm:$0xff]  ;;  %v8053_v4 = vld [vmem:[#allocation120_spill] sm:$0xff] }
 0x276   :  { %1370 = vmatpush.msra.mxu0 %v8004_v12  ;;  %1410 = vmatpush.msra.mxu2 %v8005_v14  ;;  %v8054_v12 = vld [vmem:[#allocation117_spill] sm:$0xff]  ;;  %v8055_v14 = vld [vmem:[#allocation118_spill] sm:$0xff] }
 0x277   :  { %1402 = vmatpush.msra.mxu1 %v8006_v9  ;;  %1442 = vmatpush.msra.mxu3 %v8007_v11  ;;  %v8056_v9 = vld [vmem:[#allocation121_spill] sm:$0xff]  ;;  %v8057_v11 = vld [vmem:[#allocation124_spill] sm:$0xff] }
 0x278   :  { %1371 = vmatpush.msra.mxu0 %v8008_v22  ;;  %1411 = vmatpush.msra.mxu2 %v8009_v15  ;;  %v8058_v22 = vld [vmem:[#allocation123_spill] sm:$0xff]  ;;  %v8059_v15 = vld [vmem:[#allocation122_spill] sm:$0xff] }
 0x279   :  { %1403 = vmatpush.msra.mxu1 %v8010_v21  ;;  %1443 = vmatpush.msra.mxu3 %v8011_v18  ;;  %v8060_v21 = vld [vmem:[#allocation127_spill] sm:$0xff]  ;;  %v8061_v18 = vld [vmem:[#allocation128_spill] sm:$0xff] }
 0x27a   :  { %1372 = vmatpush.msra.mxu0 %v8012_v56  ;;  %1412 = vmatpush.msra.mxu2 %v8013_v25  ;;  %v8062_v56 = vld [vmem:[#allocation125_spill] sm:$0xff]  ;;  %v8063_v25 = vld [vmem:[#allocation126_spill] sm:$0xff] }
 0x27b   :  { %1404 = vmatpush.msra.mxu1 %v8014_v37  ;;  %1444 = vmatpush.msra.mxu3 %v8015_v33  ;;  %v8064_v37 = vld [vmem:[#allocation131_spill] sm:$0xff]  ;;  %v8065_v33 = vld [vmem:[#allocation132_spill] sm:$0xff] }
 0x27c   :  { %1373 = vmatpush.msra.mxu0 %v8018_v13  ;;  %1413 = vmatpush.msra.mxu2 %v8019_v52  ;;  %v8068_v13 = vld [vmem:[#allocation135_spill] sm:$0xff]  ;;  %v8069_v52 = vld [vmem:[#allocation136_spill] sm:$0xff] }
 0x27d   :  { %1469 = vmatpush.msrb.mxu1 %v8016_v32  ;;  %1509 = vmatpush.msrb.mxu3 %v8017_v53  ;;  %v8066_v32 = vld [vmem:[#allocation129_spill] sm:$0xff]  ;;  %v8067_v53 = vld [vmem:[#allocation130_spill] sm:$0xff] }
 0x27e   :  { %1374 = vmatpush.msra.mxu0 %v8022_v0  ;;  %1414 = vmatpush.msra.mxu2 %v8023_v38  ;;  %v8072_v0 = vld [vmem:[#allocation139_spill] sm:$0xff]  ;;  %v8073_v38 = vld [vmem:[#allocation140_spill] sm:$0xff] }
 0x27f   :  { %1470 = vmatpush.msrb.mxu1 %v8020_v50  ;;  %1510 = vmatpush.msrb.mxu3 %v8021_v46  ;;  %v8070_v50 = vld [vmem:[#allocation133_spill] sm:$0xff]  ;;  %v8071_v46 = vld [vmem:[#allocation134_spill] sm:$0xff] }
 0x280   :  { %1375 = vmatpush.msra.mxu0 %v8026_v26  ;;  %1415 = vmatpush.msra.mxu2 %v8027_v8  ;;  %v8076_v26 = vld [vmem:[#allocation143_spill] sm:$0xff]  ;;  %v8077_v8 = vld [vmem:[#allocation144_spill] sm:$0xff] }
 0x281   :  { %1471 = vmatpush.msrb.mxu1 %v8024_v42  ;;  %1511 = vmatpush.msrb.mxu3 %v8025_v10  ;;  %v8074_v42 = vld [vmem:[#allocation137_spill] sm:$0xff]  ;;  %v8075_v10 = vld [vmem:[#allocation138_spill] sm:$0xff] }
 0x282   :  { %1376 = vmatpush.msra.mxu0 %v8030_v49  ;;  %1416 = vmatpush.msra.mxu2 %v8031_v51  ;;  %v8080_v49 = vld [vmem:[#allocation145_spill] sm:$0xff]  ;;  %v8081_v51 = vld [vmem:[#allocation146_spill] sm:$0xff] }
 0x283   :  { %1472 = vmatpush.msrb.mxu1 %v8028_v31  ;;  %1512 = vmatpush.msrb.mxu3 %v8029_v6  ;;  %v8078_v31 = vld [vmem:[#allocation141_spill] sm:$0xff]  ;;  %v8079_v6 = vld [vmem:[#allocation142_spill] sm:$0xff] }
 0x284   :  { %1377 = vmatpush.msra.mxu0 %v8034_v54  ;;  %1417 = vmatpush.msra.mxu2 %v8035_v7  ;;  %v8084_v54 = vld [vmem:[#allocation149_spill] sm:$0xff]  ;;  %v8085_v7 = vld [vmem:[#allocation150_spill] sm:$0xff] }
 0x285   :  { %1473 = vmatpush.msrb.mxu1 %v8032_v3  ;;  %1513 = vmatpush.msrb.mxu3 %v8033_v5  ;;  %v8082_v3 = vld [vmem:[#allocation147_spill] sm:$0xff]  ;;  %v8083_v5 = vld [vmem:[#allocation148_spill] sm:$0xff] }
 0x286   :  { %1378 = vmatpush.msra.mxu0 %v8038_v60  ;;  %1418 = vmatpush.msra.mxu2 %v8039_v62  ;;  %v8088_v60 = vld [vmem:[#allocation153_spill] sm:$0xff]  ;;  %v8089_v62 = vld [vmem:[#allocation154_spill] sm:$0xff] }
 0x287   :  { %1474 = vmatpush.msrb.mxu1 %v8036_v17  ;;  %1514 = vmatpush.msrb.mxu3 %v8037_v19  ;;  %v8086_v17 = vld [vmem:[#allocation151_spill] sm:$0xff]  ;;  %v8087_v19 = vld [vmem:[#allocation152_spill] sm:$0xff] }
 0x288   :  { %1379 = vmatpush.msra.mxu0 %v8042_v57  ;;  %1419 = vmatpush.msra.mxu2 %v8043_v28  ;;  %v8092_v57 = vld [vmem:[#allocation157_spill] sm:$0xff]  ;;  %v8093_v28 = vld [vmem:[#allocation158_spill] sm:$0xff] }
 0x289   :  { %1475 = vmatpush.msrb.mxu1 %v8040_v61  ;;  %1515 = vmatpush.msrb.mxu3 %v8041_v55  ;;  %v8090_v61 = vld [vmem:[#allocation155_spill] sm:$0xff]  ;;  %v8091_v55 = vld [vmem:[#allocation156_spill] sm:$0xff] }
 0x28a   :  { %1380 = vmatpush.msra.mxu0 %v8046_v36  ;;  %1420 = vmatpush.msra.mxu2 %v8047_v34  ;;  %v8096_v36 = vld [vmem:[#allocation161_spill] sm:$0xff]  ;;  %v8097_v34 = vld [vmem:[#allocation162_spill] sm:$0xff] }
 0x28b   :  { %1476 = vmatpush.msrb.mxu1 %v8044_v48  ;;  %1516 = vmatpush.msrb.mxu3 %v8045_v40  ;;  %v8094_v48 = vld [vmem:[#allocation159_spill] sm:$0xff]  ;;  %v8095_v40 = vld [vmem:[#allocation160_spill] sm:$0xff] }
 0x28c   :  { %1381 = vmatpush.msra.mxu0 %v8050_v30  ;;  %1421 = vmatpush.msra.mxu2 %v8051_v44  ;;  %v5229_v30 = vld [vmem:[#allocation6 + $0x30] sm:$0xff]  ;;  %v5232_v44 = vld [vmem:[#allocation6 + $0x38] sm:$0xff] }
 0x28d   :  { %1477 = vmatpush.msrb.mxu1 %v8048_v59  ;;  %1517 = vmatpush.msrb.mxu3 %v8049_v41  ;;  %v8098_v59 = vld [vmem:[#allocation163_spill] sm:$0xff]  ;;  %v8099_v41 = vld [vmem:[#allocation164_spill] sm:$0xff] }
 0x28e   :  { %1382 = vmatpush.msra.mxu0 %v8054_v12  ;;  %1422 = vmatpush.msra.mxu2 %v8055_v14 }
 0x28f   :  { %1478 = vmatpush.msrb.mxu1 %v8052_v58  ;;  %1518 = vmatpush.msrb.mxu3 %v8053_v4  ;;  %v5235_v58 = vld [vmem:[#allocation6 + $0x10] sm:$0xff]  ;;  %v5238_v4 = vld [vmem:[#allocation6 + $0x18] sm:$0xff] }
 0x290   :  { %1383 = vmatpush.msra.mxu0 %v8058_v22  ;;  %1423 = vmatpush.msra.mxu2 %v8059_v15 }
 0x291   :  { %1479 = vmatpush.msrb.mxu1 %v8056_v9  ;;  %1519 = vmatpush.msrb.mxu3 %v8057_v11  ;;  %v8100_v9 = vld [vmem:[#allocation57_spill] sm:$0xff] }
 0x292   :  { %1384 = vmatpush.msra.mxu0 %v8062_v56  ;;  %1424 = vmatpush.msra.mxu2 %v8063_v25 }
 0x293   :  { %1480 = vmatpush.msrb.mxu1 %v8060_v21  ;;  %1520 = vmatpush.msrb.mxu3 %v8061_v18 }
 0x294   :  { %1449 = vmatpush.msrb.mxu0 %v8066_v32  ;;  %1489 = vmatpush.msrb.mxu2 %v8067_v53 }
 0x295   :  { %1481 = vmatpush.msrb.mxu1 %v8064_v37  ;;  %1521 = vmatpush.msrb.mxu3 %v8065_v33 }
 0x296   :  { %1450 = vmatpush.msrb.mxu0 %v8070_v50  ;;  %1490 = vmatpush.msrb.mxu2 %v8071_v46 }
 0x297   :  { %1482 = vmatpush.msrb.mxu1 %v8068_v13  ;;  %1522 = vmatpush.msrb.mxu3 %v8069_v52 }
 0x298   :  { %1451 = vmatpush.msrb.mxu0 %v8074_v42  ;;  %1491 = vmatpush.msrb.mxu2 %v8075_v10 }
 0x299   :  { %1483 = vmatpush.msrb.mxu1 %v8072_v0  ;;  %1523 = vmatpush.msrb.mxu3 %v8073_v38 }
 0x29a   :  { %1452 = vmatpush.msrb.mxu0 %v8078_v31  ;;  %1492 = vmatpush.msrb.mxu2 %v8079_v6  ;;  %v91_v31 = vpop.permute.xlu1 %90 }
 0x29b   :  { %1484 = vmatpush.msrb.mxu1 %v8076_v26  ;;  %1524 = vmatpush.msrb.mxu3 %v8077_v8 }
 0x29c   :  { %1453 = vmatpush.msrb.mxu0 %v8080_v49  ;;  %1493 = vmatpush.msrb.mxu2 %v8081_v51  ;;  %v135_v49 = vmul.f32 %v7788_v20, %v91_v31 }
 0x29e   :  { %1454 = vmatpush.msrb.mxu0 %v8082_v3  ;;  %1494 = vmatpush.msrb.mxu2 %v8083_v5 }
 0x2a0   :  { %1455 = vmatpush.msrb.mxu0 %v8084_v54  ;;  %1495 = vmatpush.msrb.mxu2 %v8085_v7  ;;  %v176_v7 = vadd.f32 %v4187_v23, %v135_v49  ;;  %v5300_v49 = vld [vmem:[#allocation4 + $0x108] sm:$0xff] }
 0x2a2   :  { %1456 = vmatpush.msrb.mxu0 %v8086_v17  ;;  %1496 = vmatpush.msrb.mxu2 %v8087_v19 }
 0x2a4   :  { %1457 = vmatpush.msrb.mxu0 %v8088_v60  ;;  %1497 = vmatpush.msrb.mxu2 %v8089_v62  ;;  %v134_v60 = vmul.f32 %v7789_v1, %v91_v31 }
 0x2a6   :  { %1458 = vmatpush.msrb.mxu0 %v8090_v61  ;;  %1498 = vmatpush.msrb.mxu2 %v8091_v55 }
 0x2a8   :  { %1459 = vmatpush.msrb.mxu0 %v8092_v57  ;;  %1499 = vmatpush.msrb.mxu2 %v8093_v28 }
 0x2aa   :  { %1460 = vmatpush.msrb.mxu0 %v8094_v48  ;;  %1500 = vmatpush.msrb.mxu2 %v8095_v40  ;;  %v136_v48 = vmul.f32 %v7791_v24, %v91_v31  ;;  %v137_v40 = vmul.f32 %v4203_v29, %v91_v31 }
 0x2ac   :  { %1461 = vmatpush.msrb.mxu0 %v8096_v36  ;;  %1501 = vmatpush.msrb.mxu2 %v8097_v34  ;;  %v5255_v36 = vld [vmem:[#allocation4 + $0x1e8] sm:$0xff]  ;;  %v5258_v34 = vld [vmem:[#allocation4 + $0x1f8] sm:$0xff] }
 0x2ae   :  { %1462 = vmatpush.msrb.mxu0 %v8098_v59  ;;  %1502 = vmatpush.msrb.mxu2 %v8099_v41 }
 0x2b0   :  { %1463 = vmatpush.msrb.mxu0 %v5229_v30  ;;  %1503 = vmatpush.msrb.mxu2 %v5232_v44 }
 0x2b2   :  { %1464 = vmatpush.msrb.mxu0 %v5235_v58  ;;  %1504 = vmatpush.msrb.mxu2 %v5238_v4 }
 0x2b7   :  { %v1127_v14 = vpop.f32.mrf.mxu1 }
 0x2bd   :  { %v1167_v21 = vpop.f32.mrf.mxu3 }
 0x2bf   :  { %v1207_v33 = vpop.f32.mrf.mxu1 }
 0x2c5   :  { %v1247_v0 = vpop.f32.mrf.mxu3 }
 0x2cb   :  { %v1107_v12 = vpop.f32.mrf.mxu0 }
 0x2cc   :  { %v1108_v11 = vadd.f32 %v1107_v12, %v8100_v9  ;;  %v177_v12 = vadd.f32 %v4209_v27, %v136_v48 }
 0x2ce   :  { %v1128_v22 = vadd.f32 %v1127_v14, %v1108_v11  ;;  %v5262_v14 = vld [vmem:[#allocation4 + $0x1c8] sm:$0xff]  ;;  %v5265_v11 = vld [vmem:[#allocation4 + $0x1d8] sm:$0xff] }
 0x2d0   :  { %2768 = vtanh.f32 %v1128_v22  ;;  %v178_v22 = vadd.f32 %v4217_v16, %v137_v40  ;;  %v5335_v40 = vld [vmem:[#allocation4 + $0x68] sm:$0xff] }
 0x2d1   :  { %v1147_v15 = vpop.f32.mrf.mxu2 }
 0x2d2   :  { %v1148_v18 = vadd.f32 %v1147_v15, %v4400_v39 }
 0x2d4   :  { %v1168_v56 = vadd.f32 %v1167_v21, %v1148_v18  ;;  %v5269_v18 = vld [vmem:[#allocation4 + $0x1a8] sm:$0xff] }
 0x2d5   :  { %v1187_v25 = vpop.f32.mrf.mxu0 }
 0x2d6   :  { %v1188_v37 = vadd.f32 %v1187_v25, %v4402_v45  ;;  %2770 = vtanh.f32 %v1168_v56  ;;  %v2769_v53 = vpop.eup %2768  ;;  %v5272_v56 = vld [vmem:[#allocation4 + $0x1b8] sm:$0xff] }
 0x2d7   :  { %v1254_v52 = vmul.f32 0.5, %v2769_v53  ;;  %v1307_v5 = vpop.f32.mrf.mxu1  ;;  %v5278_v53 = vld [vmem:[#allocation4 + $0x198] sm:$0xff] }
 0x2d8   :  { %v1208_v32 = vadd.f32 %v1207_v33, %v1188_v37  ;;  %v1351_v19 = vadd.f32 %v1307_v5, %v176_v7  ;;  %v5308_v7 = vld [vmem:[#allocation4 + $0xe8] sm:$0xff] }
 0x2d9   :  { %v1255_v26 = vadd.f32 0.5, %v1254_v52  ;;  %v5281_v52 = vld [vmem:[#allocation4 + $0x168] sm:$0xff] }
 0x2da   :  { %2772 = vtanh.f32 %v1208_v32  ;;  %v5275_v32 = vld [vmem:[#allocation4 + $0x188] sm:$0xff] }
 0x2db   :  { %v1227_v13 = vpop.f32.mrf.mxu2 }
 0x2dc   :  { %v1228_v50 = vadd.f32 %v1227_v13, %v4406_v2  ;;  %v2771_v46 = vpop.eup %2770 }
 0x2dd   :  { %v1256_v38 = vmul.f32 0.5, %v2771_v46  ;;  %v1347_v41 = vpop.f32.mrf.mxu3 }
 0x2de   :  { %v1248_v42 = vadd.f32 %v1247_v0, %v1228_v50  ;;  %v1353_v37 = vadd.f32 %v1347_v41, %v178_v22  ;;  %v5284_v50 = vld [vmem:[#allocation4 + $0x178] sm:$0xff]  ;;  %v5287_v0 = vld [vmem:[#allocation4 + $0x148] sm:$0xff]  ;;  %v5343_v41 = vld [vmem:[#allocation4 + $0x1e0] sm:$0xff] }
 0x2df   :  { %v1257_v8 = vadd.f32 0.5, %v1256_v38  ;;  %v5290_v38 = vld [vmem:[#allocation4 + $0x158] sm:$0xff] }
 0x2e0   :  { %v2773_v10 = vpop.eup %2772  ;;  %2774 = vtanh.f32 %v1248_v42  ;;  %v5350_v22 = vld [vmem:[#allocation4 + $0x58] sm:$0xff] }
 0x2e1   :  { %v1260_v6 = vmul.f32 %v1257_v8, %v5016_v47  ;;  %v1261_v51 = vmul.f32 %v2773_v10, %v1255_v26  ;;  %v175_v47 = vadd.f32 %v7790_v43, %v134_v60  ;;  %v5293_v26 = vld [vmem:[#allocation4 + $0x128] sm:$0xff]  ;;  %v5296_v8 = vld [vmem:[#allocation4 + $0x138] sm:$0xff] }
 0x2e2   :  { %v5318_v60 = vld [vmem:[#allocation4 + $0xd8] sm:$0xff] }
 0x2e3   :  { %v5247_v3 = vadd.f32 %v1261_v51, %v1260_v6  ;;  %v5303_v51 = vld [vmem:[#allocation4 + $0x118] sm:$0xff] }
 0x2e5   :  { %2776 = vtanh.f32 %v5247_v3 }
 0x2e6   :  { %v2775_v54 = vpop.eup %2774  ;;  %2778 = vtanh.f32 %v1351_v19  ;;  %v5315_v19 = vld [vmem:[#allocation4 + $0xc8] sm:$0xff] }
 0x2e7   :  { %v1258_v17 = vmul.f32 0.5, %v2775_v54 }
 0x2e9   :  { %v1259_v62 = vadd.f32 0.5, %v1258_v17  ;;  %v5311_v17 = vld [vmem:[#allocation4 + $0xf8] sm:$0xff] }
 0x2eb   :  { %v2777_v61 = vpop.eup %2776 }
 0x2ec   :  { %v1264_v55 = vmul.f32 %v2777_v61, %v1259_v62  ;;  %v2779_v59 = vpop.eup %2778  ;;  %v5321_v62 = vld [vmem:[#allocation4 + $0xa8] sm:$0xff]  ;;  %v5324_v61 = vld [vmem:[#allocation4 + $0xb8] sm:$0xff] }
 0x2ed   :  { %v1360_v25 = vmul.f32 0.5, %v2779_v59  ;;  %v5338_v59 = vld [vmem:[#allocation4 + $0x78] sm:$0xff] }
 0x2ee   :  { %1405 = vmatmul.f32.vlgmr.msra.gmra.mxu1 %v1264_v55  ;;  %1445 = vmatmul.f32.vlgmr.msra.gmra.mxu3 %v1264_v55 }
 0x2ef   :  { %v1287_v57 = vpop.f32.mrf.mxu0  ;;  %1569 = vmatpush.msra.mxu1 %v5255_v36  ;;  %1609 = vmatpush.msra.mxu3 %v5258_v34  ;;  %v1361_v46 = vadd.f32 0.5, %v1360_v25  ;;  %v5359_v25 = vld [vmem:[#allocation4 + $0x28] sm:$0xff] }
 0x2f0   :  { %v1350_v28 = vadd.f32 %v1287_v57, %v175_v47  ;;  %v5330_v57 = vld [vmem:[#allocation4 + $0x98] sm:$0xff] }
 0x2f1   :  { %1570 = vmatpush.msra.mxu1 %v5262_v14  ;;  %1610 = vmatpush.msra.mxu3 %v5265_v11  ;;  %v1364_v31 = vmul.f32 %v1361_v46, %v5042_v63  ;;  %v5374_v46 = vld [vmem:[#allocation4 + $0x18] sm:$0xff] }
 0x2f2   :  { %2780 = vtanh.f32 %v1350_v28  ;;  %8104 = vst [vmem:[#allocation61_spill] sm:$0xff] %v5374_v46 }
 0x2f3   :  { %1571 = vmatpush.msra.mxu1 %v5269_v18  ;;  %1611 = vmatpush.msra.mxu3 %v5272_v56 }
 0x2f5   :  { %v1327_v15 = vpop.f32.mrf.mxu2  ;;  %1572 = vmatpush.msra.mxu1 %v5275_v32  ;;  %1612 = vmatpush.msra.mxu3 %v5278_v53 }
 0x2f6   :  { %v1352_v21 = vadd.f32 %v1327_v15, %v177_v12  ;;  %1485 = vmatmul.f32.vlgmr.msrb.gmra.mxu1 %v1264_v55  ;;  %1525 = vmatmul.f32.vlgmr.msrb.gmra.mxu3 %v1264_v55  ;;  %v5327_v55 = vld [vmem:[#allocation4 + $0x88] sm:$0xff]  ;;  %v5353_v15 = vld [vmem:[#allocation4 + $0x1c0] sm:$0xff] }
 0x2f7   :  { %1573 = vmatpush.msra.mxu1 %v5281_v52  ;;  %1613 = vmatpush.msra.mxu3 %v5284_v50  ;;  %v5347_v12 = vld [vmem:[#allocation4 + $0x48] sm:$0xff] }
 0x2f8   :  { %v2781_v33 = vpop.eup %2780  ;;  %2782 = vtanh.f32 %v1352_v21  ;;  %v5356_v21 = vld [vmem:[#allocation4 + $0x1d0] sm:$0xff] }
 0x2f9   :  { %v1358_v13 = vmul.f32 0.5, %v2781_v33  ;;  %2784 = vtanh.f32 %v1353_v37  ;;  %1574 = vmatpush.msra.mxu1 %v5287_v0  ;;  %1614 = vmatpush.msra.mxu3 %v5290_v38  ;;  %v5365_v37 = vld [vmem:[#allocation4 + $0x1a0] sm:$0xff]  ;;  %v5368_v33 = vld [vmem:[#allocation4 + $0x1b0] sm:$0xff] }
 0x2fa   :  { %8101 = vst [vmem:[#allocation58_spill] sm:$0xff] %v5365_v37 }
 0x2fb   :  { %v1359_v42 = vadd.f32 0.5, %v1358_v13  ;;  %1575 = vmatpush.msra.mxu1 %v5293_v26  ;;  %1615 = vmatpush.msra.mxu3 %v5296_v8  ;;  %8102 = vst [vmem:[#allocation59_spill] sm:$0xff] %v5368_v33  ;;  %v5371_v13 = vld [vmem:[#allocation4 + $0x8] sm:$0xff] }
 0x2fc   :  { %8103 = vst [vmem:[#allocation60_spill] sm:$0xff] %v5371_v13 }
 0x2fd   :  { %1576 = vmatpush.msra.mxu1 %v5300_v49  ;;  %1616 = vmatpush.msra.mxu3 %v5303_v51 }
 0x2fe   :  { %v2783_v10 = vpop.eup %2782 }
 0x2ff   :  { %v1365_v6 = vmul.f32 %v2783_v10, %v1359_v42  ;;  %v2785_v5 = vpop.eup %2784  ;;  %1577 = vmatpush.msra.mxu1 %v5308_v7  ;;  %1617 = vmatpush.msra.mxu3 %v5311_v17  ;;  %v5377_v42 = vld [vmem:[#allocation4 + $0x180] sm:$0xff]  ;;  %v5381_v10 = vld [vmem:[#allocation4 + $0x190] sm:$0xff] }
 0x300   :  { %v1362_v63 = vmul.f32 0.5, %v2785_v5  ;;  %8105 = vst [vmem:[#allocation62_spill] sm:$0xff] %v5377_v42  ;;  %v5393_v5 = vld [vmem:[#allocation4 + $0x170] sm:$0xff] }
 0x301   :  { %v5306_v54 = vadd.f32 %v1365_v6, %v1364_v31  ;;  %1578 = vmatpush.msra.mxu1 %v5315_v19  ;;  %1618 = vmatpush.msra.mxu3 %v5318_v60  ;;  %8106 = vst [vmem:[#allocation63_spill] sm:$0xff] %v5381_v10  ;;  %v69_v31 = vld [vmem:[%s6961_s0 + $0x20] sm:$0xff] }
 0x302   :  { %v1363_v47 = vadd.f32 0.5, %v1362_v63  ;;  %v5390_v6 = vld [vmem:[#allocation4 + $0x160] sm:$0xff]  ;;  %8108 = vst [vmem:[#allocation65_spill] sm:$0xff] %v5393_v5  ;;  %95 = vperm.xlu2 %2716, %v69_v31  }
 0x303   :  { %2786 = vtanh.f32 %v5306_v54  ;;  %1579 = vmatpush.msra.mxu1 %v5321_v62  ;;  %1619 = vmatpush.msra.mxu3 %v5324_v61  ;;  %8107 = vst [vmem:[#allocation64_spill] sm:$0xff] %v5390_v6  ;;  %v5396_v63 = vld [vmem:[#allocation6 + $0x3e0] sm:$0xff] }
 0x304   :  { %8109 = vst [vmem:[#allocation10_spill] sm:$0xff] %v5396_v63  ;;  %v5411_v31 = vld [vmem:[#allocation4 + $0x120] sm:$0xff] }
 0x305   :  { %1580 = vmatpush.msra.mxu1 %v5327_v55  ;;  %1620 = vmatpush.msra.mxu3 %v5330_v57  ;;  %8114 = vst [vmem:[#allocation13_spill] sm:$0xff] %v5411_v31 }
 0x307   :  { %1581 = vmatpush.msra.mxu1 %v5335_v40  ;;  %1621 = vmatpush.msra.mxu3 %v5338_v59 }
 0x309   :  { %v2787_v28 = vpop.eup %2786  ;;  %1582 = vmatpush.msra.mxu1 %v5347_v12  ;;  %1622 = vmatpush.msra.mxu3 %v5350_v22 }
 0x30a   :  { %v5333_v48 = vmul.f32 %v2787_v28, %v1363_v47  ;;  %v5399_v47 = vld [vmem:[#allocation4 + $0x140] sm:$0xff]  ;;  %v5402_v28 = vld [vmem:[#allocation4 + $0x150] sm:$0xff] }
 0x30b   :  { %1583 = vmatpush.msra.mxu1 %v5359_v25  ;;  %8110 = vst [vmem:[#allocation11_spill] sm:$0xff] %v5399_v47 }
 0x30c   :  { %1385 = vmatmul.f32.vlgmr.msra.gmra.mxu0 %v5333_v48  ;;  %1425 = vmatmul.f32.vlgmr.msra.gmra.mxu2 %v5333_v48  ;;  %8111 = vst [vmem:[#allocation12_spill] sm:$0xff] %v5402_v28 }
 0x30d   :  { %1549 = vmatpush.msra.mxu0 %v5343_v41  ;;  %1589 = vmatpush.msra.mxu2 %v5060_v35  ;;  %v5362_v35 = vld [vmem:[#allocation4 + $0x38] sm:$0xff] }
 0x30e   :  { %1623 = vmatpush.msra.mxu3 %v5362_v35  ;;  %1584 = vmatpush.msra.mxu1 %v5371_v13 }
 0x30f   :  { %1550 = vmatpush.msra.mxu0 %v5353_v15  ;;  %1590 = vmatpush.msra.mxu2 %v5356_v21 }
 0x310   :  { %1624 = vmatpush.msra.mxu3 %v5374_v46  ;;  %1585 = vmatmul.f32.vlgmr.msra.gmra.mxu1 %v5333_v48 }
 0x311   :  { %1551 = vmatpush.msra.mxu0 %v5365_v37  ;;  %1591 = vmatpush.msra.mxu2 %v5368_v33 }
 0x312   :  { %1625 = vmatmul.f32.vlgmr.msra.gmra.mxu3 %v5333_v48  ;;  %1668 = vmatpush.msrb.mxu1 %v5396_v63  ;;  %v5414_v63 = vld [vmem:[#allocation4 + $0x130] sm:$0xff] }
 0x313   :  { %1552 = vmatpush.msra.mxu0 %v5377_v42  ;;  %1592 = vmatpush.msra.mxu2 %v5381_v10  ;;  %v5405_v10 = vld [vmem:[#allocation6 + $0x3e8] sm:$0xff]  ;;  %8115 = vst [vmem:[#allocation14_spill] sm:$0xff] %v5414_v63 }
 0x314   :  { %1465 = vmatmul.f32.vlgmr.msrb.gmra.mxu0 %v5333_v48  ;;  %1505 = vmatmul.f32.vlgmr.msrb.gmra.mxu2 %v5333_v48  ;;  %8112 = vst [vmem:[#allocation66_spill] sm:$0xff] %v5405_v10 }
 0x315   :  { %1553 = vmatpush.msra.mxu0 %v5390_v6  ;;  %1593 = vmatpush.msra.mxu2 %v5393_v5  ;;  %v5408_v6 = vld [vmem:[#allocation6 + $0x3c0] sm:$0xff] }
 0x316   :  { %1708 = vmatpush.msrb.mxu3 %v5405_v10  ;;  %8113 = vst [vmem:[#allocation67_spill] sm:$0xff] %v5408_v6  ;;  %1669 = vmatpush.msrb.mxu1 %v5408_v6  ;;  %v5423_v10 = vld [vmem:[#allocation4 + $0x100] sm:$0xff]  ;;  %v5426_v6 = vld [vmem:[#allocation4 + $0x110] sm:$0xff] }
 0x317   :  { %1554 = vmatpush.msra.mxu0 %v5399_v47  ;;  %1594 = vmatpush.msra.mxu2 %v5402_v28  ;;  %v5417_v47 = vld [vmem:[#allocation6 + $0x3c8] sm:$0xff]  ;;  %v5420_v28 = vld [vmem:[#allocation6 + $0x3a0] sm:$0xff]  ;;  %8118 = vst [vmem:[#allocation15_spill] sm:$0xff] %v5423_v10 }
 0x318   :  { %8116 = vst [vmem:[#allocation68_spill] sm:$0xff] %v5417_v47  ;;  %1709 = vmatpush.msrb.mxu3 %v5417_v47  ;;  %1670 = vmatpush.msrb.mxu1 %v5420_v28  ;;  %v5435_v47 = vld [vmem:[#allocation6 + $0x380] sm:$0xff] }
 0x319   :  { %1555 = vmatpush.msra.mxu0 %v5411_v31  ;;  %1595 = vmatpush.msra.mxu2 %v5414_v63  ;;  %8117 = vst [vmem:[#allocation69_spill] sm:$0xff] %v5420_v28  ;;  %v70_v63 = vld [vmem:[%s6961_s0 + $0x28] sm:$0xff] }
 0x31a   :  { %8119 = vst [vmem:[#allocation16_spill] sm:$0xff] %v5426_v6  ;;  %v5432_v31 = vld [vmem:[#allocation6 + $0x3a8] sm:$0xff]  ;;  %1671 = vmatpush.msrb.mxu1 %v5435_v47  ;;  %v5438_v28 = vld [vmem:[#allocation4 + $0xe0] sm:$0xff]  ;;  %100 = vperm.xlu2 %2716, %v70_v63  }
 0x31b   :  { %1556 = vmatpush.msra.mxu0 %v5423_v10  ;;  %1596 = vmatpush.msra.mxu2 %v5426_v6  ;;  %8120 = vst [vmem:[#allocation70_spill] sm:$0xff] %v5432_v31  ;;  %v5441_v10 = vld [vmem:[#allocation4 + $0xf0] sm:$0xff]  ;;  %v5444_v6 = vld [vmem:[#allocation6 + $0x388] sm:$0xff]  ;;  %v5447_v5 = vld [vmem:[#allocation4 + $0xc0] sm:$0xff] }
 0x31c   :  { %1710 = vmatpush.msrb.mxu3 %v5432_v31  ;;  %8121 = vst [vmem:[#allocation18_spill] sm:$0xff] %v5435_v47  ;;  %v5450_v31 = vld [vmem:[#allocation4 + $0xd0] sm:$0xff]  ;;  %v5453_v47 = vld [vmem:[#allocation6 + $0x360] sm:$0xff] }
 0x31d   :  { %8122 = vst [vmem:[#allocation20_spill] sm:$0xff] %v5438_v28  ;;  %1557 = vmatpush.msra.mxu0 %v5438_v28  ;;  %1597 = vmatpush.msra.mxu2 %v5441_v10  ;;  %v5456_v28 = vld [vmem:[#allocation6 + $0x368] sm:$0xff]  ;;  %v5459_v63 = vld [vmem:[#allocation4 + $0xa0] sm:$0xff] }
 0x31e   :  { %8123 = vst [vmem:[#allocation17_spill] sm:$0xff] %v5441_v10  ;;  %1711 = vmatpush.msrb.mxu3 %v5444_v6  ;;  %1672 = vmatpush.msrb.mxu1 %v5453_v47  ;;  %v5462_v10 = vld [vmem:[#allocation4 + $0xb0] sm:$0xff] }
 0x31f   :  { %8124 = vst [vmem:[#allocation71_spill] sm:$0xff] %v5444_v6  ;;  %1558 = vmatpush.msra.mxu0 %v5447_v5  ;;  %1598 = vmatpush.msra.mxu2 %v5450_v31 }
 0x320   :  { %8125 = vst [vmem:[#allocation73_spill] sm:$0xff] %v5447_v5  ;;  %1712 = vmatpush.msrb.mxu3 %v5456_v28  ;;  %v5465_v5 = vld [vmem:[#allocation6 + $0x340] sm:$0xff] }
 0x321   :  { %8126 = vst [vmem:[#allocation22_spill] sm:$0xff] %v5450_v31  ;;  %1559 = vmatpush.msra.mxu0 %v5459_v63  ;;  %1599 = vmatpush.msra.mxu2 %v5462_v10  ;;  %v5468_v31 = vld [vmem:[#allocation6 + $0x348] sm:$0xff] }
 0x322   :  { %8127 = vst [vmem:[#allocation72_spill] sm:$0xff] %v5453_v47  ;;  %1673 = vmatpush.msrb.mxu1 %v5465_v5  ;;  %1713 = vmatpush.msrb.mxu3 %v5468_v31  ;;  %v5471_v47 = vld [vmem:[#allocation4 + $0x80] sm:$0xff] }
 0x323   :  { %8128 = vst [vmem:[#allocation19_spill] sm:$0xff] %v5456_v28  ;;  %1560 = vmatpush.msra.mxu0 %v5471_v47  ;;  %v5474_v28 = vld [vmem:[#allocation4 + $0x90] sm:$0xff] }
 0x324   :  { %8129 = vst [vmem:[#allocation75_spill] sm:$0xff] %v5459_v63  ;;  %1600 = vmatpush.msra.mxu2 %v5474_v28  ;;  %v5477_v63 = vld [vmem:[#allocation6 + $0x320] sm:$0xff] }
 0x325   :  { %8130 = vst [vmem:[#allocation24_spill] sm:$0xff] %v5462_v10  ;;  %1674 = vmatpush.msrb.mxu1 %v5477_v63  ;;  %v5480_v10 = vld [vmem:[#allocation6 + $0x328] sm:$0xff] }
 0x326   :  { %8131 = vst [vmem:[#allocation74_spill] sm:$0xff] %v5465_v5  ;;  %1714 = vmatpush.msrb.mxu3 %v5480_v10  ;;  %v5483_v5 = vld [vmem:[#allocation4 + $0x60] sm:$0xff] }
 0x327   :  { %8132 = vst [vmem:[#allocation21_spill] sm:$0xff] %v5468_v31  ;;  %1561 = vmatpush.msra.mxu0 %v5483_v5  ;;  %v5486_v31 = vld [vmem:[#allocation4 + $0x70] sm:$0xff] }
 0x328   :  { %8133 = vst [vmem:[#allocation77_spill] sm:$0xff] %v5471_v47  ;;  %1601 = vmatpush.msra.mxu2 %v5486_v31  ;;  %v5489_v47 = vld [vmem:[#allocation6 + $0x300] sm:$0xff] }
 0x329   :  { %8134 = vst [vmem:[#allocation26_spill] sm:$0xff] %v5474_v28  ;;  %1675 = vmatpush.msrb.mxu1 %v5489_v47  ;;  %v5492_v28 = vld [vmem:[#allocation6 + $0x308] sm:$0xff] }
 0x32a   :  { %8135 = vst [vmem:[#allocation76_spill] sm:$0xff] %v5477_v63  ;;  %1715 = vmatpush.msrb.mxu3 %v5492_v28  ;;  %v5495_v63 = vld [vmem:[#allocation4 + $0x40] sm:$0xff] }
 0x32b   :  { %8136 = vst [vmem:[#allocation23_spill] sm:$0xff] %v5480_v10  ;;  %1562 = vmatpush.msra.mxu0 %v5495_v63  ;;  %v5498_v10 = vld [vmem:[#allocation4 + $0x50] sm:$0xff] }
 0x32c   :  { %8137 = vst [vmem:[#allocation79_spill] sm:$0xff] %v5483_v5  ;;  %1602 = vmatpush.msra.mxu2 %v5498_v10  ;;  %v5501_v5 = vld [vmem:[#allocation6 + $0x2e0] sm:$0xff] }
 0x32d   :  { %8138 = vst [vmem:[#allocation28_spill] sm:$0xff] %v5486_v31  ;;  %1676 = vmatpush.msrb.mxu1 %v5501_v5  ;;  %v5504_v31 = vld [vmem:[#allocation6 + $0x2e8] sm:$0xff] }
 0x32e   :  { %8139 = vst [vmem:[#allocation78_spill] sm:$0xff] %v5489_v47  ;;  %1716 = vmatpush.msrb.mxu3 %v5504_v31  ;;  %v5507_v47 = vld [vmem:[#allocation4 + $0x20] sm:$0xff] }
 0x32f   :  { %8140 = vst [vmem:[#allocation25_spill] sm:$0xff] %v5492_v28  ;;  %1563 = vmatpush.msra.mxu0 %v5507_v47  ;;  %v5510_v28 = vld [vmem:[#allocation4 + $0x30] sm:$0xff] }
 0x330   :  { %8141 = vst [vmem:[#allocation81_spill] sm:$0xff] %v5495_v63  ;;  %1603 = vmatpush.msra.mxu2 %v5510_v28  ;;  %v5513_v63 = vld [vmem:[#allocation6 + $0x2c0] sm:$0xff] }
 0x331   :  { %8142 = vst [vmem:[#allocation30_spill] sm:$0xff] %v5498_v10  ;;  %1677 = vmatpush.msrb.mxu1 %v5513_v63  ;;  %v5516_v10 = vld [vmem:[#allocation6 + $0x2c8] sm:$0xff] }
 0x332   :  { %8143 = vst [vmem:[#allocation80_spill] sm:$0xff] %v5501_v5  ;;  %1717 = vmatpush.msrb.mxu3 %v5516_v10  ;;  %v5519_v5 = vld [vmem:[#allocation4] sm:$0xff] }
 0x333   :  { %8144 = vst [vmem:[#allocation27_spill] sm:$0xff] %v5504_v31  ;;  %1564 = vmatpush.msra.mxu0 %v5519_v5  ;;  %v5522_v31 = vld [vmem:[#allocation4 + $0x10] sm:$0xff] }
 0x334   :  { %8145 = vst [vmem:[#allocation83_spill] sm:$0xff] %v5507_v47  ;;  %1604 = vmatpush.msra.mxu2 %v5522_v31  ;;  %1565 = vmatmul.f32.vlgmr.msra.gmra.mxu0 %v5333_v48  ;;  %v5530_v47 = vld [vmem:[#allocation6 + $0x2a8] sm:$0xff] }
 0x335   :  { %8146 = vst [vmem:[#allocation32_spill] sm:$0xff] %v5510_v28  ;;  %1605 = vmatmul.f32.vlgmr.msra.gmra.mxu2 %v5333_v48  ;;  %v5527_v28 = vld [vmem:[#allocation6 + $0x2a0] sm:$0xff]  ;;  %1718 = vmatpush.msrb.mxu3 %v5530_v47  ;;  %v5542_v48 = vld [vmem:[#allocation6 + $0x288] sm:$0xff] }
 0x336   :  { %8147 = vst [vmem:[#allocation82_spill] sm:$0xff] %v5513_v63  ;;  %1678 = vmatpush.msrb.mxu1 %v5527_v28 }
 0x337   :  { %8148 = vst [vmem:[#allocation29_spill] sm:$0xff] %v5516_v10  ;;  %v5533_v10 = vld [vmem:[#allocation6 + $0x1e0] sm:$0xff]  ;;  %1719 = vmatpush.msrb.mxu3 %v5542_v48 }
 0x338   :  { %8149 = vst [vmem:[#allocation87_spill] sm:$0xff] %v5519_v5  ;;  %1648 = vmatpush.msrb.mxu0 %v5533_v10  ;;  %v5536_v5 = vld [vmem:[#allocation6 + $0x1e8] sm:$0xff] }
 0x339   :  { %8150 = vst [vmem:[#allocation34_spill] sm:$0xff] %v5522_v31  ;;  %1688 = vmatpush.msrb.mxu2 %v5536_v5  ;;  %v5539_v31 = vld [vmem:[#allocation6 + $0x280] sm:$0xff] }
 0x33a   :  { %8151 = vst [vmem:[#allocation84_spill] sm:$0xff] %v5527_v28  ;;  %1679 = vmatpush.msrb.mxu1 %v5539_v31  ;;  %v5545_v28 = vld [vmem:[#allocation6 + $0x1c0] sm:$0xff] }
 0x33b   :  { %8152 = vst [vmem:[#allocation31_spill] sm:$0xff] %v5530_v47  ;;  %1649 = vmatpush.msrb.mxu0 %v5545_v28  ;;  %v5548_v47 = vld [vmem:[#allocation6 + $0x1c8] sm:$0xff] }
 0x33c   :  { %8153 = vst [vmem:[#allocation91_spill] sm:$0xff] %v5533_v10  ;;  %1689 = vmatpush.msrb.mxu2 %v5548_v47  ;;  %v5551_v10 = vld [vmem:[#allocation6 + $0x260] sm:$0xff] }
 0x33d   :  { %8154 = vst [vmem:[#allocation36_spill] sm:$0xff] %v5536_v5  ;;  %1680 = vmatpush.msrb.mxu1 %v5551_v10  ;;  %v5554_v5 = vld [vmem:[#allocation6 + $0x268] sm:$0xff] }
 0x33e   :  { %8155 = vst [vmem:[#allocation88_spill] sm:$0xff] %v5539_v31  ;;  %1720 = vmatpush.msrb.mxu3 %v5554_v5  ;;  %v5557_v31 = vld [vmem:[#allocation6 + $0x1a0] sm:$0xff] }
 0x33f   :  { %8156 = vst [vmem:[#allocation33_spill] sm:$0xff] %v5542_v48  ;;  %1650 = vmatpush.msrb.mxu0 %v5557_v31  ;;  %v5560_v48 = vld [vmem:[#allocation6 + $0x1a8] sm:$0xff] }
 0x340   :  { %8157 = vst [vmem:[#allocation95_spill] sm:$0xff] %v5545_v28  ;;  %1690 = vmatpush.msrb.mxu2 %v5560_v48  ;;  %v5563_v28 = vld [vmem:[#allocation6 + $0x240] sm:$0xff] }
 0x341   :  { %8158 = vst [vmem:[#allocation38_spill] sm:$0xff] %v5548_v47  ;;  %1681 = vmatpush.msrb.mxu1 %v5563_v28  ;;  %v5566_v47 = vld [vmem:[#allocation6 + $0x248] sm:$0xff] }
 0x342   :  { %8159 = vst [vmem:[#allocation92_spill] sm:$0xff] %v5551_v10  ;;  %1721 = vmatpush.msrb.mxu3 %v5566_v47  ;;  %v5569_v10 = vld [vmem:[#allocation6 + $0x180] sm:$0xff] }
 0x343   :  { %8160 = vst [vmem:[#allocation35_spill] sm:$0xff] %v5554_v5  ;;  %1651 = vmatpush.msrb.mxu0 %v5569_v10  ;;  %v5572_v5 = vld [vmem:[#allocation6 + $0x188] sm:$0xff] }
 0x344   :  { %8161 = vst [vmem:[#allocation99_spill] sm:$0xff] %v5557_v31  ;;  %1691 = vmatpush.msrb.mxu2 %v5572_v5  ;;  %v5575_v31 = vld [vmem:[#allocation6 + $0x220] sm:$0xff] }
 0x345   :  { %8162 = vst [vmem:[#allocation40_spill] sm:$0xff] %v5560_v48  ;;  %1682 = vmatpush.msrb.mxu1 %v5575_v31  ;;  %v5578_v48 = vld [vmem:[#allocation6 + $0x228] sm:$0xff] }
 0x346   :  { %8163 = vst [vmem:[#allocation96_spill] sm:$0xff] %v5563_v28  ;;  %1722 = vmatpush.msrb.mxu3 %v5578_v48  ;;  %v5581_v28 = vld [vmem:[#allocation6 + $0x160] sm:$0xff] }
 0x347   :  { %8164 = vst [vmem:[#allocation37_spill] sm:$0xff] %v5566_v47  ;;  %1652 = vmatpush.msrb.mxu0 %v5581_v28  ;;  %v5584_v47 = vld [vmem:[#allocation6 + $0x168] sm:$0xff] }
 0x348   :  { %8165 = vst [vmem:[#allocation41_spill] sm:$0xff] %v5569_v10  ;;  %1692 = vmatpush.msrb.mxu2 %v5584_v47  ;;  %v5587_v10 = vld [vmem:[#allocation6 + $0x200] sm:$0xff] }
 0x349   :  { %8166 = vst [vmem:[#allocation42_spill] sm:$0xff] %v5572_v5  ;;  %1683 = vmatpush.msrb.mxu1 %v5587_v10  ;;  %v5590_v5 = vld [vmem:[#allocation6 + $0x208] sm:$0xff] }
 0x34a   :  { %8167 = vst [vmem:[#allocation100_spill] sm:$0xff] %v5575_v31  ;;  %1723 = vmatpush.msrb.mxu3 %v5590_v5  ;;  %v5593_v31 = vld [vmem:[#allocation6 + $0x3f0] sm:$0xff] }
 0x34b   :  { %8168 = vst [vmem:[#allocation39_spill] sm:$0xff] %v5578_v48  ;;  %1748 = vmatpush.msra.mxu1 %v5593_v31  ;;  %v5596_v48 = vld [vmem:[#allocation6 + $0x3f8] sm:$0xff] }
 0x34c   :  { %8169 = vst [vmem:[#allocation104_spill] sm:$0xff] %v5581_v28  ;;  %1788 = vmatpush.msra.mxu3 %v5596_v48  ;;  %v5599_v28 = vld [vmem:[#allocation6 + $0x140] sm:$0xff] }
 0x34d   :  { %8170 = vst [vmem:[#allocation44_spill] sm:$0xff] %v5584_v47  ;;  %1653 = vmatpush.msrb.mxu0 %v5599_v28  ;;  %v5602_v47 = vld [vmem:[#allocation6 + $0x148] sm:$0xff] }
 0x34e   :  { %8171 = vst [vmem:[#allocation107_spill] sm:$0xff] %v5587_v10  ;;  %1693 = vmatpush.msrb.mxu2 %v5602_v47  ;;  %v5605_v10 = vld [vmem:[#allocation6 + $0x3d0] sm:$0xff] }
 0x34f   :  { %8172 = vst [vmem:[#allocation45_spill] sm:$0xff] %v5590_v5  ;;  %1749 = vmatpush.msra.mxu1 %v5605_v10  ;;  %v5608_v5 = vld [vmem:[#allocation6 + $0x3d8] sm:$0xff] }
 0x350   :  { %8173 = vst [vmem:[#allocation103_spill] sm:$0xff] %v5593_v31  ;;  %1789 = vmatpush.msra.mxu3 %v5608_v5  ;;  %v5611_v31 = vld [vmem:[#allocation6 + $0x120] sm:$0xff] }
 0x351   :  { %8174 = vst [vmem:[#allocation43_spill] sm:$0xff] %v5596_v48  ;;  %1654 = vmatpush.msrb.mxu0 %v5611_v31  ;;  %v5614_v48 = vld [vmem:[#allocation6 + $0x128] sm:$0xff] }
 0x352   :  { %8175 = vst [vmem:[#allocation48_spill] sm:$0xff] %v5599_v28  ;;  %1694 = vmatpush.msrb.mxu2 %v5614_v48  ;;  %v5617_v28 = vld [vmem:[#allocation6 + $0x3b0] sm:$0xff] }
 0x353   :  { %8176 = vst [vmem:[#allocation49_spill] sm:$0xff] %v5602_v47  ;;  %1750 = vmatpush.msra.mxu1 %v5617_v28  ;;  %v5620_v47 = vld [vmem:[#allocation6 + $0x3b8] sm:$0xff] }
 0x354   :  { %8177 = vst [vmem:[#allocation46_spill] sm:$0xff] %v5605_v10  ;;  %1790 = vmatpush.msra.mxu3 %v5620_v47  ;;  %v5623_v10 = vld [vmem:[#allocation6 + $0x100] sm:$0xff] }
 0x355   :  { %8178 = vst [vmem:[#allocation47_spill] sm:$0xff] %v5608_v5  ;;  %1655 = vmatpush.msrb.mxu0 %v5623_v10  ;;  %v5626_v5 = vld [vmem:[#allocation6 + $0x108] sm:$0xff] }
 0x356   :  { %8179 = vst [vmem:[#allocation52_spill] sm:$0xff] %v5611_v31  ;;  %1695 = vmatpush.msrb.mxu2 %v5626_v5  ;;  %v5629_v31 = vld [vmem:[#allocation6 + $0x390] sm:$0xff] }
 0x357   :  { %8180 = vst [vmem:[#allocation53_spill] sm:$0xff] %v5614_v48  ;;  %1751 = vmatpush.msra.mxu1 %v5629_v31  ;;  %v5632_v48 = vld [vmem:[#allocation6 + $0x398] sm:$0xff] }
 0x358   :  { %8181 = vst [vmem:[#allocation50_spill] sm:$0xff] %v5617_v28  ;;  %1791 = vmatpush.msra.mxu3 %v5632_v48  ;;  %v5635_v28 = vld [vmem:[#allocation6 + $0xe0] sm:$0xff] }
 0x359   :  { %8182 = vst [vmem:[#allocation51_spill] sm:$0xff] %v5620_v47  ;;  %1656 = vmatpush.msrb.mxu0 %v5635_v28  ;;  %v5638_v47 = vld [vmem:[#allocation6 + $0xe8] sm:$0xff] }
 0x35a   :  { %8183 = vst [vmem:[#allocation56_spill] sm:$0xff] %v5623_v10  ;;  %1696 = vmatpush.msrb.mxu2 %v5638_v47  ;;  %v5641_v10 = vld [vmem:[#allocation6 + $0x370] sm:$0xff] }
 0x35b   :  { %8184 = vst [vmem:[#allocation85_spill] sm:$0xff] %v5626_v5  ;;  %1752 = vmatpush.msra.mxu1 %v5641_v10  ;;  %v5644_v5 = vld [vmem:[#allocation6 + $0x378] sm:$0xff] }
 0x35c   :  { %8185 = vst [vmem:[#allocation54_spill] sm:$0xff] %v5629_v31  ;;  %1792 = vmatpush.msra.mxu3 %v5644_v5  ;;  %v5647_v31 = vld [vmem:[#allocation6 + $0xc0] sm:$0xff] }
 0x35d   :  { %8186 = vst [vmem:[#allocation55_spill] sm:$0xff] %v5632_v48  ;;  %1657 = vmatpush.msrb.mxu0 %v5647_v31  ;;  %v5650_v48 = vld [vmem:[#allocation6 + $0xc8] sm:$0xff] }
 0x35e   :  { %8187 = vst [vmem:[#allocation90_spill] sm:$0xff] %v5635_v28  ;;  %1697 = vmatpush.msrb.mxu2 %v5650_v48  ;;  %v5653_v28 = vld [vmem:[#allocation6 + $0x350] sm:$0xff] }
 0x35f   :  { %8188 = vst [vmem:[#allocation93_spill] sm:$0xff] %v5638_v47  ;;  %1753 = vmatpush.msra.mxu1 %v5653_v28  ;;  %v5656_v47 = vld [vmem:[#allocation6 + $0x358] sm:$0xff] }
 0x360   :  { %8189 = vst [vmem:[#allocation86_spill] sm:$0xff] %v5641_v10  ;;  %1793 = vmatpush.msra.mxu3 %v5656_v47  ;;  %v5659_v10 = vld [vmem:[#allocation6 + $0xa0] sm:$0xff] }
 0x361   :  { %8190 = vst [vmem:[#allocation89_spill] sm:$0xff] %v5644_v5  ;;  %1658 = vmatpush.msrb.mxu0 %v5659_v10  ;;  %v5662_v5 = vld [vmem:[#allocation6 + $0xa8] sm:$0xff] }
 0x362   :  { %8191 = vst [vmem:[#allocation98_spill] sm:$0xff] %v5647_v31  ;;  %1698 = vmatpush.msrb.mxu2 %v5662_v5  ;;  %v5665_v31 = vld [vmem:[#allocation6 + $0x330] sm:$0xff] }
 0x363   :  { %8192 = vst [vmem:[#allocation101_spill] sm:$0xff] %v5650_v48  ;;  %1754 = vmatpush.msra.mxu1 %v5665_v31  ;;  %v5668_v48 = vld [vmem:[#allocation6 + $0x338] sm:$0xff] }
 0x364   :  { %8193 = vst [vmem:[#allocation94_spill] sm:$0xff] %v5653_v28  ;;  %1794 = vmatpush.msra.mxu3 %v5668_v48  ;;  %v5671_v28 = vld [vmem:[#allocation6 + $0x80] sm:$0xff] }
 0x365   :  { %8194 = vst [vmem:[#allocation97_spill] sm:$0xff] %v5656_v47  ;;  %1659 = vmatpush.msrb.mxu0 %v5671_v28  ;;  %v5674_v47 = vld [vmem:[#allocation6 + $0x88] sm:$0xff] }
 0x366   :  { %8195 = vst [vmem:[#allocation106_spill] sm:$0xff] %v5659_v10  ;;  %1699 = vmatpush.msrb.mxu2 %v5674_v47  ;;  %v5677_v10 = vld [vmem:[#allocation6 + $0x310] sm:$0xff] }
 0x367   :  { %8196 = vst [vmem:[#allocation108_spill] sm:$0xff] %v5662_v5  ;;  %1755 = vmatpush.msra.mxu1 %v5677_v10  ;;  %v5680_v5 = vld [vmem:[#allocation6 + $0x318] sm:$0xff] }
 0x368   :  { %8197 = vst [vmem:[#allocation102_spill] sm:$0xff] %v5665_v31  ;;  %1795 = vmatpush.msra.mxu3 %v5680_v5  ;;  %v5683_v31 = vld [vmem:[#allocation6 + $0x60] sm:$0xff] }
 0x369   :  { %8198 = vst [vmem:[#allocation105_spill] sm:$0xff] %v5668_v48  ;;  %1660 = vmatpush.msrb.mxu0 %v5683_v31  ;;  %v5686_v48 = vld [vmem:[#allocation6 + $0x68] sm:$0xff] }
 0x36a   :  { %8199 = vst [vmem:[#allocation111_spill] sm:$0xff] %v5671_v28  ;;  %1700 = vmatpush.msrb.mxu2 %v5686_v48  ;;  %v5689_v28 = vld [vmem:[#allocation6 + $0x2f0] sm:$0xff] }
 0x36b   :  { %8200 = vst [vmem:[#allocation112_spill] sm:$0xff] %v5674_v47  ;;  %1756 = vmatpush.msra.mxu1 %v5689_v28  ;;  %v5692_v47 = vld [vmem:[#allocation6 + $0x2f8] sm:$0xff] }
 0x36c   :  { %8201 = vst [vmem:[#allocation109_spill] sm:$0xff] %v5677_v10  ;;  %1796 = vmatpush.msra.mxu3 %v5692_v47  ;;  %v5695_v10 = vld [vmem:[#allocation6 + $0x40] sm:$0xff] }
 0x36d   :  { %8202 = vst [vmem:[#allocation110_spill] sm:$0xff] %v5680_v5  ;;  %1661 = vmatpush.msrb.mxu0 %v5695_v10  ;;  %v5698_v5 = vld [vmem:[#allocation6 + $0x48] sm:$0xff] }
 0x36e   :  { %8203 = vst [vmem:[#allocation115_spill] sm:$0xff] %v5683_v31  ;;  %1701 = vmatpush.msrb.mxu2 %v5698_v5  ;;  %v5701_v31 = vld [vmem:[#allocation6 + $0x2d0] sm:$0xff] }
 0x36f   :  { %8204 = vst [vmem:[#allocation116_spill] sm:$0xff] %v5686_v48  ;;  %1757 = vmatpush.msra.mxu1 %v5701_v31  ;;  %v5704_v48 = vld [vmem:[#allocation6 + $0x2d8] sm:$0xff] }
 0x370   :  { %8205 = vst [vmem:[#allocation113_spill] sm:$0xff] %v5689_v28  ;;  %1797 = vmatpush.msra.mxu3 %v5704_v48  ;;  %v5707_v28 = vld [vmem:[#allocation6 + $0x20] sm:$0xff] }
 0x371   :  { %8206 = vst [vmem:[#allocation114_spill] sm:$0xff] %v5692_v47  ;;  %1662 = vmatpush.msrb.mxu0 %v5707_v28  ;;  %v5710_v47 = vld [vmem:[#allocation6 + $0x28] sm:$0xff]  ;;  %v1446_v6 = vpop.f32.mrf.mxu3 }
 0x372   :  { %8207 = vst [vmem:[#allocation119_spill] sm:$0xff] %v5695_v10  ;;  %1702 = vmatpush.msrb.mxu2 %v5710_v47  ;;  %v5713_v10 = vld [vmem:[#allocation6 + $0x2b0] sm:$0xff] }
 0x373   :  { %8208 = vst [vmem:[#allocation120_spill] sm:$0xff] %v5698_v5  ;;  %1758 = vmatpush.msra.mxu1 %v5713_v10  ;;  %v5716_v5 = vld [vmem:[#allocation6 + $0x2b8] sm:$0xff] }
 0x374   :  { %8209 = vst [vmem:[#allocation117_spill] sm:$0xff] %v5701_v31  ;;  %1798 = vmatpush.msra.mxu3 %v5716_v5  ;;  %v5719_v31 = vld [vmem:[#allocation6] sm:$0xff] }
 0x375   :  { %8210 = vst [vmem:[#allocation118_spill] sm:$0xff] %v5704_v48  ;;  %1663 = vmatpush.msrb.mxu0 %v5719_v31  ;;  %v5722_v48 = vld [vmem:[#allocation6 + $0x8] sm:$0xff] }
 0x376   :  { %8211 = vst [vmem:[#allocation121_spill] sm:$0xff] %v5707_v28  ;;  %1703 = vmatpush.msrb.mxu2 %v5722_v48  ;;  %v5725_v28 = vld [vmem:[#allocation6 + $0x290] sm:$0xff] }
 0x377   :  { %8212 = vst [vmem:[#allocation124_spill] sm:$0xff] %v5710_v47  ;;  %1759 = vmatpush.msra.mxu1 %v5725_v28  ;;  %v5728_v47 = vld [vmem:[#allocation6 + $0x298] sm:$0xff] }
 0x378   :  { %8213 = vst [vmem:[#allocation123_spill] sm:$0xff] %v5713_v10  ;;  %1799 = vmatpush.msra.mxu3 %v5728_v47  ;;  %v5731_v10 = vld [vmem:[#allocation6 + $0x1f0] sm:$0xff] }
 0x379   :  { %8214 = vst [vmem:[#allocation122_spill] sm:$0xff] %v5716_v5  ;;  %1728 = vmatpush.msra.mxu0 %v5731_v10  ;;  %v5734_v5 = vld [vmem:[#allocation6 + $0x1f8] sm:$0xff] }
 0x37a   :  { %8215 = vst [vmem:[#allocation127_spill] sm:$0xff] %v5719_v31  ;;  %1768 = vmatpush.msra.mxu2 %v5734_v5  ;;  %v5737_v31 = vld [vmem:[#allocation6 + $0x270] sm:$0xff] }
 0x37b   :  { %8216 = vst [vmem:[#allocation128_spill] sm:$0xff] %v5722_v48  ;;  %1760 = vmatpush.msra.mxu1 %v5737_v31  ;;  %v5740_v48 = vld [vmem:[#allocation6 + $0x278] sm:$0xff] }
 0x37c   :  { %8217 = vst [vmem:[#allocation125_spill] sm:$0xff] %v5725_v28  ;;  %1800 = vmatpush.msra.mxu3 %v5740_v48  ;;  %v5743_v28 = vld [vmem:[#allocation6 + $0x1d0] sm:$0xff] }
 0x37d   :  { %8218 = vst [vmem:[#allocation126_spill] sm:$0xff] %v5728_v47  ;;  %1729 = vmatpush.msra.mxu0 %v5743_v28  ;;  %v5746_v47 = vld [vmem:[#allocation6 + $0x1d8] sm:$0xff] }
 0x37e   :  { %8219 = vst [vmem:[#allocation131_spill] sm:$0xff] %v5731_v10  ;;  %1769 = vmatpush.msra.mxu2 %v5746_v47  ;;  %v5749_v10 = vld [vmem:[#allocation6 + $0x250] sm:$0xff] }
 0x37f   :  { %8220 = vst [vmem:[#allocation132_spill] sm:$0xff] %v5734_v5  ;;  %1761 = vmatpush.msra.mxu1 %v5749_v10  ;;  %v5752_v5 = vld [vmem:[#allocation6 + $0x258] sm:$0xff] }
 0x380   :  { %8221 = vst [vmem:[#allocation129_spill] sm:$0xff] %v5737_v31  ;;  %1801 = vmatpush.msra.mxu3 %v5752_v5  ;;  %v5755_v31 = vld [vmem:[#allocation6 + $0x1b0] sm:$0xff] }
 0x381   :  { %8222 = vst [vmem:[#allocation130_spill] sm:$0xff] %v5740_v48  ;;  %1730 = vmatpush.msra.mxu0 %v5755_v31  ;;  %v5758_v48 = vld [vmem:[#allocation6 + $0x1b8] sm:$0xff] }
 0x382   :  { %8223 = vst [vmem:[#allocation135_spill] sm:$0xff] %v5743_v28  ;;  %1770 = vmatpush.msra.mxu2 %v5758_v48  ;;  %v5761_v28 = vld [vmem:[#allocation6 + $0x230] sm:$0xff] }
 0x383   :  { %8224 = vst [vmem:[#allocation136_spill] sm:$0xff] %v5746_v47  ;;  %1762 = vmatpush.msra.mxu1 %v5761_v28  ;;  %v5764_v47 = vld [vmem:[#allocation6 + $0x238] sm:$0xff] }
 0x384   :  { %8225 = vst [vmem:[#allocation133_spill] sm:$0xff] %v5749_v10  ;;  %1802 = vmatpush.msra.mxu3 %v5764_v47  ;;  %v5767_v10 = vld [vmem:[#allocation6 + $0x190] sm:$0xff] }
 0x385   :  { %8226 = vst [vmem:[#allocation134_spill] sm:$0xff] %v5752_v5  ;;  %1731 = vmatpush.msra.mxu0 %v5767_v10  ;;  %v5770_v5 = vld [vmem:[#allocation6 + $0x198] sm:$0xff] }
 0x386   :  { %8227 = vst [vmem:[#allocation139_spill] sm:$0xff] %v5755_v31  ;;  %1771 = vmatpush.msra.mxu2 %v5770_v5  ;;  %v5773_v31 = vld [vmem:[#allocation6 + $0x210] sm:$0xff] }
 0x387   :  { %8228 = vst [vmem:[#allocation140_spill] sm:$0xff] %v5758_v48  ;;  %1763 = vmatpush.msra.mxu1 %v5773_v31  ;;  %v5776_v48 = vld [vmem:[#allocation6 + $0x218] sm:$0xff] }
 0x388   :  { %8229 = vst [vmem:[#allocation137_spill] sm:$0xff] %v5761_v28  ;;  %1803 = vmatpush.msra.mxu3 %v5776_v48  ;;  %v5779_v28 = vld [vmem:[#allocation6 + $0x170] sm:$0xff] }
 0x389   :  { %8230 = vst [vmem:[#allocation138_spill] sm:$0xff] %v5764_v47  ;;  %1732 = vmatpush.msra.mxu0 %v5779_v28  ;;  %v5782_v47 = vld [vmem:[#allocation6 + $0x178] sm:$0xff] }
 0x38a   :  { %8231 = vst [vmem:[#allocation143_spill] sm:$0xff] %v5767_v10  ;;  %1772 = vmatpush.msra.mxu2 %v5782_v47  ;;  %v5785_v10 = vld [vmem:[#allocation6 + $0x150] sm:$0xff] }
 0x38b   :  { %8232 = vst [vmem:[#allocation144_spill] sm:$0xff] %v5770_v5  ;;  %1733 = vmatpush.msra.mxu0 %v5785_v10  ;;  %v5788_v5 = vld [vmem:[#allocation6 + $0x158] sm:$0xff] }
 0x38c   :  { %8233 = vst [vmem:[#allocation141_spill] sm:$0xff] %v5773_v31  ;;  %1773 = vmatpush.msra.mxu2 %v5788_v5  ;;  %v5791_v31 = vld [vmem:[#allocation6 + $0x130] sm:$0xff] }
 0x38d   :  { %8234 = vst [vmem:[#allocation142_spill] sm:$0xff] %v5776_v48  ;;  %1734 = vmatpush.msra.mxu0 %v5791_v31  ;;  %v5794_v48 = vld [vmem:[#allocation6 + $0x138] sm:$0xff] }
 0x38e   :  { %8235 = vst [vmem:[#allocation145_spill] sm:$0xff] %v5779_v28  ;;  %1774 = vmatpush.msra.mxu2 %v5794_v48  ;;  %v5797_v28 = vld [vmem:[#allocation6 + $0x110] sm:$0xff] }
 0x38f   :  { %8236 = vst [vmem:[#allocation146_spill] sm:$0xff] %v5782_v47  ;;  %1735 = vmatpush.msra.mxu0 %v5797_v28  ;;  %v5800_v47 = vld [vmem:[#allocation6 + $0x118] sm:$0xff]  ;;  %v1426_v63 = vpop.f32.mrf.mxu2 }
 0x390   :  { %8237 = vst [vmem:[#allocation147_spill] sm:$0xff] %v5785_v10  ;;  %1775 = vmatpush.msra.mxu2 %v5800_v47  ;;  %v5803_v10 = vld [vmem:[#allocation6 + $0xf0] sm:$0xff] }
 0x391   :  { %8238 = vst [vmem:[#allocation148_spill] sm:$0xff] %v5788_v5  ;;  %1736 = vmatpush.msra.mxu0 %v5803_v10  ;;  %v5806_v5 = vld [vmem:[#allocation6 + $0xf8] sm:$0xff] }
 0x392   :  { %8239 = vst [vmem:[#allocation149_spill] sm:$0xff] %v5791_v31  ;;  %1776 = vmatpush.msra.mxu2 %v5806_v5  ;;  %v5809_v31 = vld [vmem:[#allocation6 + $0xd0] sm:$0xff] }
 0x393   :  { %8240 = vst [vmem:[#allocation150_spill] sm:$0xff] %v5794_v48  ;;  %1737 = vmatpush.msra.mxu0 %v5809_v31  ;;  %v5812_v48 = vld [vmem:[#allocation6 + $0xd8] sm:$0xff] }
 0x394   :  { %8241 = vst [vmem:[#allocation151_spill] sm:$0xff] %v5797_v28  ;;  %1777 = vmatpush.msra.mxu2 %v5812_v48  ;;  %v5815_v28 = vld [vmem:[#allocation6 + $0xb0] sm:$0xff] }
 0x395   :  { %8242 = vst [vmem:[#allocation152_spill] sm:$0xff] %v5800_v47  ;;  %1738 = vmatpush.msra.mxu0 %v5815_v28  ;;  %v5818_v47 = vld [vmem:[#allocation6 + $0xb8] sm:$0xff] }
 0x396   :  { %8243 = vst [vmem:[#allocation153_spill] sm:$0xff] %v5803_v10  ;;  %1778 = vmatpush.msra.mxu2 %v5818_v47  ;;  %v5821_v10 = vld [vmem:[#allocation6 + $0x90] sm:$0xff] }
 0x397   :  { %8244 = vst [vmem:[#allocation154_spill] sm:$0xff] %v5806_v5  ;;  %1739 = vmatpush.msra.mxu0 %v5821_v10  ;;  %v5824_v5 = vld [vmem:[#allocation6 + $0x98] sm:$0xff] }
 0x398   :  { %8245 = vst [vmem:[#allocation155_spill] sm:$0xff] %v5809_v31  ;;  %1779 = vmatpush.msra.mxu2 %v5824_v5  ;;  %v5827_v31 = vld [vmem:[#allocation6 + $0x70] sm:$0xff] }
 0x399   :  { %8246 = vst [vmem:[#allocation156_spill] sm:$0xff] %v5812_v48  ;;  %1740 = vmatpush.msra.mxu0 %v5827_v31  ;;  %v5830_v48 = vld [vmem:[#allocation6 + $0x78] sm:$0xff] }
 0x39a   :  { %8247 = vst [vmem:[#allocation157_spill] sm:$0xff] %v5815_v28  ;;  %1780 = vmatpush.msra.mxu2 %v5830_v48  ;;  %v5833_v28 = vld [vmem:[#allocation6 + $0x50] sm:$0xff] }
 0x39b   :  { %8248 = vst [vmem:[#allocation158_spill] sm:$0xff] %v5818_v47  ;;  %1741 = vmatpush.msra.mxu0 %v5833_v28  ;;  %v5836_v47 = vld [vmem:[#allocation6 + $0x58] sm:$0xff] }
 0x39c   :  { %8249 = vst [vmem:[#allocation159_spill] sm:$0xff] %v5821_v10  ;;  %1781 = vmatpush.msra.mxu2 %v5836_v47 }
 0x39d   :  { %8250 = vst [vmem:[#allocation160_spill] sm:$0xff] %v5824_v5  ;;  %1742 = vmatpush.msra.mxu0 %v5229_v30  ;;  %v1406_v5 = vpop.f32.mrf.mxu1 }
 0x39e   :  { %8251 = vst [vmem:[#allocation161_spill] sm:$0xff] %v5827_v31  ;;  %1782 = vmatpush.msra.mxu2 %v5232_v44  ;;  %v1386_v31 = vpop.f32.mrf.mxu0 }
 0x39f   :  { %8252 = vst [vmem:[#allocation162_spill] sm:$0xff] %v5830_v48  ;;  %1743 = vmatpush.msra.mxu0 %v5235_v58  ;;  %v1387_v48 = vadd.f32 %v1386_v31, %v8100_v9 }
 0x3a0   :  { %8253 = vst [vmem:[#allocation163_spill] sm:$0xff] %v5833_v28  ;;  %1783 = vmatpush.msra.mxu2 %v5238_v4  ;;  %v1427_v28 = vadd.f32 %v1426_v63, %v4400_v39  ;;  %v1506_v4 = vpop.f32.mrf.mxu2 }
 0x3a1   :  { %8254 = vst [vmem:[#allocation164_spill] sm:$0xff] %v5836_v47  ;;  %v1407_v10 = vadd.f32 %v1406_v5, %v1387_v48  ;;  %v1507_v33 = vadd.f32 %v1506_v4, %v4406_v2  ;;  %v1526_v5 = vpop.f32.mrf.mxu3  ;;  %v96_v48 = vpop.permute.xlu2 %95 }
 0x3a2   :  { %v1447_v42 = vadd.f32 %v1446_v6, %v1427_v28  ;;  %v139_v28 = vmul.f32 %v7788_v20, %v96_v48  ;;  %v138_v4 = vmul.f32 %v7789_v1, %v96_v48 }
 0x3a3   :  { %2788 = vtanh.f32 %v1407_v10  ;;  %v1527_v10 = vadd.f32 %v1526_v5, %v1507_v33 }
 0x3a4   :  { %2790 = vtanh.f32 %v1447_v42 }
 0x3a5   :  { %v1486_v46 = vpop.f32.mrf.mxu1 }
 0x3a6   :  { %v1466_v47 = vpop.f32.mrf.mxu0 }
 0x3a7   :  { %v1467_v30 = vadd.f32 %v1466_v47, %v4402_v45  ;;  %v180_v47 = vadd.f32 %v4187_v23, %v139_v28 }
 0x3a9   :  { %v1487_v44 = vadd.f32 %v1486_v46, %v1467_v30  ;;  %v2789_v58 = vpop.eup %2788 }
 0x3aa   :  { %v1533_v13 = vmul.f32 0.5, %v2789_v58  ;;  %v2791_v31 = vpop.eup %2790 }
 0x3ab   :  { %2792 = vtanh.f32 %v1487_v44  ;;  %v1535_v9 = vmul.f32 0.5, %v2791_v31 }
 0x3ac   :  { %v1534_v63 = vadd.f32 0.5, %v1533_v13  ;;  %2794 = vtanh.f32 %v1527_v10 }
 0x3ad   :  { %v1536_v6 = vadd.f32 0.5, %v1535_v9  ;;  %v1586_v44 = vpop.f32.mrf.mxu1  ;;  %v179_v9 = vadd.f32 %v7790_v43, %v138_v4 }
 0x3ae   :  { %v1630_v31 = vadd.f32 %v1586_v44, %v180_v47 }
 0x3af   :  { %v1539_v42 = vmul.f32 %v1536_v6, %v5247_v3  ;;  %v141_v3 = vmul.f32 %v4203_v29, %v96_v48  ;;  %v140_v6 = vmul.f32 %v7791_v24, %v96_v48 }
 0x3b1   :  { %v2793_v37 = vpop.eup %2792  ;;  %v1566_v10 = vpop.f32.mrf.mxu0  ;;  %v182_v28 = vadd.f32 %v4217_v16, %v141_v3  ;;  %v181_v47 = vadd.f32 %v4209_v27, %v140_v6  ;;  %v8280_v3 = vld [vmem:[#allocation19_spill] sm:$0xff]  ;;  %v8284_v6 = vld [vmem:[#allocation21_spill] sm:$0xff] }
 0x3b2   :  { %v1540_v46 = vmul.f32 %v2793_v37, %v1534_v63  ;;  %v2795_v58 = vpop.eup %2794  ;;  %v1629_v63 = vadd.f32 %v1566_v10, %v179_v9  ;;  %v8277_v9 = vld [vmem:[#allocation20_spill] sm:$0xff]  ;;  %v8282_v10 = vld [vmem:[#allocation22_spill] sm:$0xff] }
 0x3b3   :  { %v1537_v33 = vmul.f32 0.5, %v2795_v58 }
 0x3b4   :  { %v5850_v30 = vadd.f32 %v1540_v46, %v1539_v42  ;;  %v1626_v46 = vpop.f32.mrf.mxu3 }
 0x3b5   :  { %v1538_v13 = vadd.f32 0.5, %v1537_v33  ;;  %v8275_v33 = vld [vmem:[#allocation18_spill] sm:$0xff] }
 0x3b6   :  { %2796 = vtanh.f32 %v5850_v30 }
 0x3b7   :  { %2798 = vtanh.f32 %v1630_v31  ;;  %v8276_v31 = vld [vmem:[#allocation71_spill] sm:$0xff] }
 0x3b8   :  { %2800 = vtanh.f32 %v1629_v63  ;;  %v1606_v44 = vpop.f32.mrf.mxu2  ;;  %v8283_v63 = vld [vmem:[#allocation74_spill] sm:$0xff] }
 0x3b9   :  { %v1631_v58 = vadd.f32 %v1606_v44, %v181_v47  ;;  %v8288_v47 = vld [vmem:[#allocation23_spill] sm:$0xff]  ;;  %v8289_v44 = vld [vmem:[#allocation77_spill] sm:$0xff] }
 0x3bb   :  { %2802 = vtanh.f32 %v1631_v58  ;;  %v8290_v58 = vld [vmem:[#allocation26_spill] sm:$0xff] }
 0x3bc   :  { %v2797_v5 = vpop.eup %2796 }
 0x3bd   :  { %v1543_v37 = vmul.f32 %v2797_v5, %v1538_v13  ;;  %v2799_v42 = vpop.eup %2798  ;;  %v8278_v13 = vld [vmem:[#allocation17_spill] sm:$0xff]  ;;  %v8279_v5 = vld [vmem:[#allocation72_spill] sm:$0xff] }
 0x3be   :  { %v1639_v48 = vmul.f32 0.5, %v2799_v42  ;;  %v2801_v4 = vpop.eup %2800  ;;  %v8286_v42 = vld [vmem:[#allocation24_spill] sm:$0xff] }
 0x3bf   :  { %1684 = vmatmul.f32.vlgmr.msrb.gmra.mxu1 %v1543_v37  ;;  %1724 = vmatmul.f32.vlgmr.msrb.gmra.mxu3 %v1543_v37 }
 0x3c0   :  { %1848 = vmatpush.msrb.mxu1 %v5255_v36  ;;  %1888 = vmatpush.msrb.mxu3 %v5258_v34  ;;  %v1632_v36 = vadd.f32 %v1626_v46, %v182_v28  ;;  %v1637_v34 = vmul.f32 0.5, %v2801_v4  ;;  %v8285_v28 = vld [vmem:[#allocation75_spill] sm:$0xff]  ;;  %v8287_v46 = vld [vmem:[#allocation76_spill] sm:$0xff] }
 0x3c1   :  { %v8293_v4 = vld [vmem:[#allocation79_spill] sm:$0xff] }
 0x3c2   :  { %1849 = vmatpush.msrb.mxu1 %v5262_v14  ;;  %1889 = vmatpush.msrb.mxu3 %v5265_v11  ;;  %v1640_v14 = vadd.f32 0.5, %v1639_v48  ;;  %2804 = vtanh.f32 %v1632_v36  ;;  %v1638_v11 = vadd.f32 0.5, %v1637_v34  ;;  %v8291_v48 = vld [vmem:[#allocation78_spill] sm:$0xff]  ;;  %v8292_v36 = vld [vmem:[#allocation25_spill] sm:$0xff]  ;;  %v8294_v34 = vld [vmem:[#allocation28_spill] sm:$0xff] }
 0x3c4   :  { %1850 = vmatpush.msrb.mxu1 %v5269_v18  ;;  %1890 = vmatpush.msrb.mxu3 %v5272_v56  ;;  %v2803_v18 = vpop.eup %2802  ;;  %v1643_v56 = vmul.f32 %v1640_v14, %v5306_v54  ;;  %v8257_v54 = vld [vmem:[#allocation60_spill] sm:$0xff] }
 0x3c5   :  { %v8295_v14 = vld [vmem:[#allocation80_spill] sm:$0xff] }
 0x3c6   :  { %1851 = vmatpush.msrb.mxu1 %v5275_v32  ;;  %1891 = vmatpush.msrb.mxu3 %v5278_v53  ;;  %v1644_v32 = vmul.f32 %v2803_v18, %v1638_v11  ;;  %v8296_v11 = vld [vmem:[#allocation27_spill] sm:$0xff]  ;;  %v8297_v18 = vld [vmem:[#allocation81_spill] sm:$0xff] }
 0x3c7   :  { %1764 = vmatmul.f32.vlgmr.msra.gmra.mxu1 %v1543_v37  ;;  %1804 = vmatmul.f32.vlgmr.msra.gmra.mxu3 %v1543_v37  ;;  %v8281_v37 = vld [vmem:[#allocation73_spill] sm:$0xff] }
 0x3c8   :  { %1852 = vmatpush.msrb.mxu1 %v5281_v52  ;;  %1892 = vmatpush.msrb.mxu3 %v5284_v50  ;;  %v2805_v53 = vpop.eup %2804  ;;  %v5876_v52 = vadd.f32 %v1644_v32, %v1643_v56  ;;  %v8298_v56 = vld [vmem:[#allocation30_spill] sm:$0xff] }
 0x3c9   :  { %v1641_v50 = vmul.f32 0.5, %v2805_v53  ;;  %v8299_v32 = vld [vmem:[#allocation82_spill] sm:$0xff]  ;;  %v8300_v53 = vld [vmem:[#allocation29_spill] sm:$0xff] }
 0x3ca   :  { %1853 = vmatpush.msrb.mxu1 %v5287_v0  ;;  %1893 = vmatpush.msrb.mxu3 %v5290_v38  ;;  %2806 = vtanh.f32 %v5876_v52 }
 0x3cb   :  { %v1642_v0 = vadd.f32 0.5, %v1641_v50  ;;  %v8301_v50 = vld [vmem:[#allocation83_spill] sm:$0xff] }
 0x3cc   :  { %1854 = vmatpush.msrb.mxu1 %v5293_v26  ;;  %1894 = vmatpush.msrb.mxu3 %v5296_v8  ;;  %v5894_v8 = vld [vmem:[#allocation4 + $0x1f0] sm:$0xff] }
 0x3ce   :  { %1855 = vmatpush.msrb.mxu1 %v5300_v49  ;;  %1895 = vmatpush.msrb.mxu3 %v5303_v51  ;;  %v8255_v49 = vld [vmem:[#allocation58_spill] sm:$0xff]  ;;  %v8256_v51 = vld [vmem:[#allocation59_spill] sm:$0xff] }
 0x3d0   :  { %1856 = vmatpush.msrb.mxu1 %v5308_v7  ;;  %1896 = vmatpush.msrb.mxu3 %v5311_v17  ;;  %v2807_v38 = vpop.eup %2806  ;;  %v8258_v7 = vld [vmem:[#allocation61_spill] sm:$0xff]  ;;  %v8259_v17 = vld [vmem:[#allocation62_spill] sm:$0xff] }
 0x3d1   :  { %v5887_v26 = vmul.f32 %v2807_v38, %v1642_v0  ;;  %v8302_v0 = vld [vmem:[#allocation32_spill] sm:$0xff] }
 0x3d2   :  { %1857 = vmatpush.msrb.mxu1 %v5315_v19  ;;  %1897 = vmatpush.msrb.mxu3 %v5318_v60  ;;  %v8260_v19 = vld [vmem:[#allocation63_spill] sm:$0xff]  ;;  %v8261_v60 = vld [vmem:[#allocation64_spill] sm:$0xff] }
 0x3d3   :  { %1664 = vmatmul.f32.vlgmr.msrb.gmra.mxu0 %v5887_v26  ;;  %1704 = vmatmul.f32.vlgmr.msrb.gmra.mxu2 %v5887_v26  ;;  %v8303_v38 = vld [vmem:[#allocation84_spill] sm:$0xff] }
 0x3d4   :  { %1858 = vmatpush.msrb.mxu1 %v5321_v62  ;;  %1898 = vmatpush.msrb.mxu3 %v5324_v61  ;;  %v8262_v62 = vld [vmem:[#allocation65_spill] sm:$0xff]  ;;  %v8263_v61 = vld [vmem:[#allocation10_spill] sm:$0xff] }
 0x3d5   :  { %1828 = vmatpush.msrb.mxu0 %v5343_v41  ;;  %1868 = vmatpush.msrb.mxu2 %v5894_v8  ;;  %v8268_v41 = vld [vmem:[#allocation68_spill] sm:$0xff] }
 0x3d6   :  { %1859 = vmatpush.msrb.mxu1 %v5327_v55  ;;  %1899 = vmatpush.msrb.mxu3 %v5330_v57  ;;  %v8264_v55 = vld [vmem:[#allocation66_spill] sm:$0xff]  ;;  %v8265_v57 = vld [vmem:[#allocation11_spill] sm:$0xff] }
 0x3d7   :  { %1829 = vmatpush.msrb.mxu0 %v5353_v15  ;;  %1869 = vmatpush.msrb.mxu2 %v5356_v21  ;;  %v8271_v15 = vld [vmem:[#allocation69_spill] sm:$0xff]  ;;  %v8272_v21 = vld [vmem:[#allocation70_spill] sm:$0xff] }
 0x3d8   :  { %1860 = vmatpush.msrb.mxu1 %v5335_v40  ;;  %1900 = vmatpush.msrb.mxu3 %v5338_v59  ;;  %v8266_v40 = vld [vmem:[#allocation12_spill] sm:$0xff]  ;;  %v8267_v59 = vld [vmem:[#allocation67_spill] sm:$0xff] }
 0x3d9   :  { %1830 = vmatpush.msrb.mxu0 %v8255_v49  ;;  %1870 = vmatpush.msrb.mxu2 %v8256_v51  ;;  %v8304_v49 = vld [vmem:[#allocation31_spill] sm:$0xff] }
 0x3da   :  { %1861 = vmatpush.msrb.mxu1 %v5347_v12  ;;  %1901 = vmatpush.msrb.mxu3 %v5350_v22  ;;  %v8269_v12 = vld [vmem:[#allocation13_spill] sm:$0xff]  ;;  %v8270_v22 = vld [vmem:[#allocation14_spill] sm:$0xff]  ;;  %v8305_v51 = vld [vmem:[#allocation87_spill] sm:$0xff] }
 0x3db   :  { %1831 = vmatpush.msrb.mxu0 %v8259_v17  ;;  %1871 = vmatpush.msrb.mxu2 %v8260_v19  ;;  %v8308_v17 = vld [vmem:[#allocation33_spill] sm:$0xff]  ;;  %v8309_v19 = vld [vmem:[#allocation91_spill] sm:$0xff] }
 0x3dc   :  { %1862 = vmatpush.msrb.mxu1 %v5359_v25  ;;  %1902 = vmatpush.msrb.mxu3 %v5362_v35  ;;  %v8273_v25 = vld [vmem:[#allocation15_spill] sm:$0xff]  ;;  %v8274_v35 = vld [vmem:[#allocation16_spill] sm:$0xff] }
 0x3dd   :  { %1744 = vmatmul.f32.vlgmr.msra.gmra.mxu0 %v5887_v26  ;;  %1784 = vmatmul.f32.vlgmr.msra.gmra.mxu2 %v5887_v26 }
 0x3de   :  { %1863 = vmatpush.msrb.mxu1 %v8257_v54  ;;  %1903 = vmatpush.msrb.mxu3 %v8258_v7  ;;  %v8306_v54 = vld [vmem:[#allocation34_spill] sm:$0xff]  ;;  %v8307_v7 = vld [vmem:[#allocation88_spill] sm:$0xff] }
 0x3df   :  { %1864 = vmatmul.f32.vlgmr.msrb.gmra.mxu1 %v5887_v26  ;;  %1904 = vmatmul.f32.vlgmr.msrb.gmra.mxu3 %v5887_v26 }
 0x3e0   :  { %1832 = vmatpush.msrb.mxu0 %v8261_v60  ;;  %1872 = vmatpush.msrb.mxu2 %v8262_v62  ;;  %v8310_v60 = vld [vmem:[#allocation36_spill] sm:$0xff] }
 0x3e1   :  { %1947 = vmatpush.msra.mxu1 %v8263_v61  ;;  %1987 = vmatpush.msra.mxu3 %v8264_v55  ;;  %v8311_v62 = vld [vmem:[#allocation92_spill] sm:$0xff]  ;;  %v8312_v61 = vld [vmem:[#allocation35_spill] sm:$0xff] }
 0x3e2   :  { %1833 = vmatpush.msrb.mxu0 %v8265_v57  ;;  %1873 = vmatpush.msrb.mxu2 %v8266_v40  ;;  %v8313_v55 = vld [vmem:[#allocation95_spill] sm:$0xff]  ;;  %v8314_v57 = vld [vmem:[#allocation38_spill] sm:$0xff]  ;;  %v8315_v40 = vld [vmem:[#allocation96_spill] sm:$0xff] }
 0x3e3   :  { %1948 = vmatpush.msra.mxu1 %v8267_v59  ;;  %1988 = vmatpush.msra.mxu3 %v8268_v41  ;;  %v8316_v59 = vld [vmem:[#allocation37_spill] sm:$0xff]  ;;  %v8318_v41 = vld [vmem:[#allocation40_spill] sm:$0xff] }
 0x3e4   :  { %1834 = vmatpush.msrb.mxu0 %v8269_v12  ;;  %1874 = vmatpush.msrb.mxu2 %v8270_v22  ;;  %v8319_v12 = vld [vmem:[#allocation100_spill] sm:$0xff]  ;;  %v8320_v22 = vld [vmem:[#allocation39_spill] sm:$0xff] }
 0x3e5   :  { %1949 = vmatpush.msra.mxu1 %v8271_v15  ;;  %1989 = vmatpush.msra.mxu3 %v8272_v21  ;;  %v8321_v15 = vld [vmem:[#allocation41_spill] sm:$0xff]  ;;  %v8322_v21 = vld [vmem:[#allocation42_spill] sm:$0xff] }
 0x3e6   :  { %1835 = vmatpush.msrb.mxu0 %v8273_v25  ;;  %1875 = vmatpush.msrb.mxu2 %v8274_v35  ;;  %v8323_v25 = vld [vmem:[#allocation107_spill] sm:$0xff]  ;;  %v8324_v35 = vld [vmem:[#allocation45_spill] sm:$0xff] }
 0x3e7   :  { %1950 = vmatpush.msra.mxu1 %v8275_v33  ;;  %1990 = vmatpush.msra.mxu3 %v8276_v31  ;;  %v8325_v33 = vld [vmem:[#allocation103_spill] sm:$0xff] }
 0x3e8   :  { %1836 = vmatpush.msrb.mxu0 %v8277_v9  ;;  %1876 = vmatpush.msrb.mxu2 %v8278_v13  ;;  %v8326_v31 = vld [vmem:[#allocation43_spill] sm:$0xff]  ;;  %v8327_v9 = vld [vmem:[#allocation104_spill] sm:$0xff] }
 0x3e9   :  { %1951 = vmatpush.msra.mxu1 %v8279_v5  ;;  %1991 = vmatpush.msra.mxu3 %v8280_v3  ;;  %v8328_v13 = vld [vmem:[#allocation44_spill] sm:$0xff]  ;;  %v8329_v5 = vld [vmem:[#allocation46_spill] sm:$0xff]  ;;  %v8330_v3 = vld [vmem:[#allocation47_spill] sm:$0xff] }
 0x3ea   :  { %1837 = vmatpush.msrb.mxu0 %v8281_v37  ;;  %1877 = vmatpush.msrb.mxu2 %v8282_v10  ;;  %v8331_v37 = vld [vmem:[#allocation48_spill] sm:$0xff]  ;;  %v8332_v10 = vld [vmem:[#allocation49_spill] sm:$0xff] }
 0x3eb   :  { %1952 = vmatpush.msra.mxu1 %v8283_v63  ;;  %1992 = vmatpush.msra.mxu3 %v8284_v6  ;;  %v8333_v63 = vld [vmem:[#allocation50_spill] sm:$0xff]  ;;  %v8334_v6 = vld [vmem:[#allocation51_spill] sm:$0xff] }
 0x3ec   :  { %1838 = vmatpush.msrb.mxu0 %v8285_v28  ;;  %1878 = vmatpush.msrb.mxu2 %v8286_v42  ;;  %v8335_v28 = vld [vmem:[#allocation52_spill] sm:$0xff]  ;;  %v8336_v42 = vld [vmem:[#allocation53_spill] sm:$0xff] }
 0x3ed   :  { %1953 = vmatpush.msra.mxu1 %v8287_v46  ;;  %1993 = vmatpush.msra.mxu3 %v8288_v47  ;;  %v8337_v46 = vld [vmem:[#allocation54_spill] sm:$0xff]  ;;  %v8338_v47 = vld [vmem:[#allocation55_spill] sm:$0xff] }
 0x3ee   :  { %1839 = vmatpush.msrb.mxu0 %v8289_v44  ;;  %1879 = vmatpush.msrb.mxu2 %v8290_v58  ;;  %v8339_v44 = vld [vmem:[#allocation56_spill] sm:$0xff]  ;;  %v8340_v58 = vld [vmem:[#allocation85_spill] sm:$0xff] }
 0x3ef   :  { %1954 = vmatpush.msra.mxu1 %v8291_v48  ;;  %1994 = vmatpush.msra.mxu3 %v8292_v36  ;;  %v8341_v48 = vld [vmem:[#allocation86_spill] sm:$0xff]  ;;  %v8342_v36 = vld [vmem:[#allocation89_spill] sm:$0xff] }
 0x3f0   :  { %1840 = vmatpush.msrb.mxu0 %v8293_v4  ;;  %1880 = vmatpush.msrb.mxu2 %v8294_v34  ;;  %v8343_v4 = vld [vmem:[#allocation90_spill] sm:$0xff]  ;;  %v8344_v34 = vld [vmem:[#allocation93_spill] sm:$0xff] }
 0x3f1   :  { %1955 = vmatpush.msra.mxu1 %v8295_v14  ;;  %1995 = vmatpush.msra.mxu3 %v8296_v11  ;;  %v8345_v14 = vld [vmem:[#allocation94_spill] sm:$0xff]  ;;  %v8346_v11 = vld [vmem:[#allocation97_spill] sm:$0xff] }
 0x3f2   :  { %1841 = vmatpush.msrb.mxu0 %v8297_v18  ;;  %1881 = vmatpush.msrb.mxu2 %v8298_v56  ;;  %v8347_v18 = vld [vmem:[#allocation98_spill] sm:$0xff]  ;;  %v8348_v56 = vld [vmem:[#allocation101_spill] sm:$0xff] }
 0x3f3   :  { %1956 = vmatpush.msra.mxu1 %v8299_v32  ;;  %1996 = vmatpush.msra.mxu3 %v8300_v53  ;;  %v8349_v32 = vld [vmem:[#allocation102_spill] sm:$0xff]  ;;  %v8350_v53 = vld [vmem:[#allocation105_spill] sm:$0xff] }
 0x3f4   :  { %1842 = vmatpush.msrb.mxu0 %v8301_v50  ;;  %1882 = vmatpush.msrb.mxu2 %v8302_v0  ;;  %v8351_v50 = vld [vmem:[#allocation106_spill] sm:$0xff]  ;;  %v8352_v0 = vld [vmem:[#allocation108_spill] sm:$0xff] }
 0x3f5   :  { %1957 = vmatpush.msra.mxu1 %v8303_v38  ;;  %1997 = vmatpush.msra.mxu3 %v8304_v49  ;;  %v8353_v38 = vld [vmem:[#allocation109_spill] sm:$0xff]  ;;  %v8354_v49 = vld [vmem:[#allocation110_spill] sm:$0xff] }
 0x3f6   :  { %1843 = vmatpush.msrb.mxu0 %v8305_v51  ;;  %1883 = vmatpush.msrb.mxu2 %v8306_v54  ;;  %v8355_v51 = vld [vmem:[#allocation111_spill] sm:$0xff]  ;;  %v8356_v54 = vld [vmem:[#allocation112_spill] sm:$0xff] }
 0x3f7   :  { %1844 = vmatmul.f32.vlgmr.msrb.gmra.mxu0 %v5887_v26  ;;  %1884 = vmatmul.f32.vlgmr.msrb.gmra.mxu2 %v5887_v26  ;;  %v8317_v26 = vld [vmem:[#allocation99_spill] sm:$0xff] }
 0x3f8   :  { %1958 = vmatpush.msra.mxu1 %v8307_v7  ;;  %1998 = vmatpush.msra.mxu3 %v8308_v17  ;;  %v8357_v7 = vld [vmem:[#allocation113_spill] sm:$0xff]  ;;  %v8358_v17 = vld [vmem:[#allocation114_spill] sm:$0xff] }
 0x3f9   :  { %1927 = vmatpush.msra.mxu0 %v8309_v19  ;;  %1967 = vmatpush.msra.mxu2 %v8310_v60  ;;  %v8359_v19 = vld [vmem:[#allocation115_spill] sm:$0xff]  ;;  %v8360_v60 = vld [vmem:[#allocation116_spill] sm:$0xff] }
 0x3fa   :  { %1959 = vmatpush.msra.mxu1 %v8311_v62  ;;  %1999 = vmatpush.msra.mxu3 %v8312_v61  ;;  %v8361_v62 = vld [vmem:[#allocation117_spill] sm:$0xff]  ;;  %v8362_v61 = vld [vmem:[#allocation118_spill] sm:$0xff] }
 0x3fb   :  { %1928 = vmatpush.msra.mxu0 %v8313_v55  ;;  %1968 = vmatpush.msra.mxu2 %v8314_v57  ;;  %v8363_v55 = vld [vmem:[#allocation119_spill] sm:$0xff]  ;;  %v8364_v57 = vld [vmem:[#allocation120_spill] sm:$0xff] }
 0x3fc   :  { %1960 = vmatpush.msra.mxu1 %v8315_v40  ;;  %2000 = vmatpush.msra.mxu3 %v8316_v59  ;;  %v8365_v40 = vld [vmem:[#allocation123_spill] sm:$0xff]  ;;  %v8366_v59 = vld [vmem:[#allocation122_spill] sm:$0xff] }
 0x3fd   :  { %1929 = vmatpush.msra.mxu0 %v8317_v26  ;;  %1969 = vmatpush.msra.mxu2 %v8318_v41  ;;  %v8367_v26 = vld [vmem:[#allocation121_spill] sm:$0xff]  ;;  %v8368_v41 = vld [vmem:[#allocation124_spill] sm:$0xff] }
 0x3fe   :  { %1961 = vmatpush.msra.mxu1 %v8319_v12  ;;  %2001 = vmatpush.msra.mxu3 %v8320_v22  ;;  %v8369_v12 = vld [vmem:[#allocation125_spill] sm:$0xff]  ;;  %v8370_v22 = vld [vmem:[#allocation126_spill] sm:$0xff] }
 0x3ff   :  { %1930 = vmatpush.msra.mxu0 %v8321_v15  ;;  %1970 = vmatpush.msra.mxu2 %v8322_v21  ;;  %v8371_v15 = vld [vmem:[#allocation127_spill] sm:$0xff]  ;;  %v8372_v21 = vld [vmem:[#allocation128_spill] sm:$0xff] }
 0x400   :  { %1962 = vmatpush.msra.mxu1 %v8323_v25  ;;  %2002 = vmatpush.msra.mxu3 %v8324_v35  ;;  %v8373_v25 = vld [vmem:[#allocation129_spill] sm:$0xff]  ;;  %v8374_v35 = vld [vmem:[#allocation130_spill] sm:$0xff] }
 0x401   :  { %1931 = vmatpush.msra.mxu0 %v8327_v9  ;;  %1971 = vmatpush.msra.mxu2 %v8328_v13  ;;  %v8377_v9 = vld [vmem:[#allocation133_spill] sm:$0xff]  ;;  %v8378_v13 = vld [vmem:[#allocation134_spill] sm:$0xff] }
 0x402   :  { %2027 = vmatpush.msrb.mxu1 %v8325_v33  ;;  %2067 = vmatpush.msrb.mxu3 %v8326_v31  ;;  %v8375_v33 = vld [vmem:[#allocation131_spill] sm:$0xff]  ;;  %v8376_v31 = vld [vmem:[#allocation132_spill] sm:$0xff] }
 0x403   :  { %1932 = vmatpush.msra.mxu0 %v8331_v37  ;;  %1972 = vmatpush.msra.mxu2 %v8332_v10  ;;  %v8381_v37 = vld [vmem:[#allocation137_spill] sm:$0xff]  ;;  %v8382_v10 = vld [vmem:[#allocation138_spill] sm:$0xff] }
 0x404   :  { %2028 = vmatpush.msrb.mxu1 %v8329_v5  ;;  %2068 = vmatpush.msrb.mxu3 %v8330_v3  ;;  %v8379_v5 = vld [vmem:[#allocation135_spill] sm:$0xff]  ;;  %v8380_v3 = vld [vmem:[#allocation136_spill] sm:$0xff] }
 0x405   :  { %1933 = vmatpush.msra.mxu0 %v8335_v28  ;;  %1973 = vmatpush.msra.mxu2 %v8336_v42  ;;  %v8385_v28 = vld [vmem:[#allocation141_spill] sm:$0xff]  ;;  %v8386_v42 = vld [vmem:[#allocation142_spill] sm:$0xff] }
 0x406   :  { %2029 = vmatpush.msrb.mxu1 %v8333_v63  ;;  %2069 = vmatpush.msrb.mxu3 %v8334_v6  ;;  %v8383_v63 = vld [vmem:[#allocation139_spill] sm:$0xff]  ;;  %v8384_v6 = vld [vmem:[#allocation140_spill] sm:$0xff] }
 0x407   :  { %1934 = vmatpush.msra.mxu0 %v8339_v44  ;;  %1974 = vmatpush.msra.mxu2 %v8340_v58  ;;  %v8389_v44 = vld [vmem:[#allocation145_spill] sm:$0xff]  ;;  %v8390_v58 = vld [vmem:[#allocation146_spill] sm:$0xff] }
 0x408   :  { %2030 = vmatpush.msrb.mxu1 %v8337_v46  ;;  %2070 = vmatpush.msrb.mxu3 %v8338_v47  ;;  %v8387_v46 = vld [vmem:[#allocation143_spill] sm:$0xff]  ;;  %v8388_v47 = vld [vmem:[#allocation144_spill] sm:$0xff] }
 0x409   :  { %1935 = vmatpush.msra.mxu0 %v8343_v4  ;;  %1975 = vmatpush.msra.mxu2 %v8344_v34  ;;  %v8393_v4 = vld [vmem:[#allocation149_spill] sm:$0xff]  ;;  %v8394_v34 = vld [vmem:[#allocation150_spill] sm:$0xff] }
 0x40a   :  { %2031 = vmatpush.msrb.mxu1 %v8341_v48  ;;  %2071 = vmatpush.msrb.mxu3 %v8342_v36  ;;  %v8391_v48 = vld [vmem:[#allocation147_spill] sm:$0xff]  ;;  %v8392_v36 = vld [vmem:[#allocation148_spill] sm:$0xff] }
 0x40b   :  { %1936 = vmatpush.msra.mxu0 %v8347_v18  ;;  %1976 = vmatpush.msra.mxu2 %v8348_v56  ;;  %v8397_v18 = vld [vmem:[#allocation153_spill] sm:$0xff]  ;;  %v8398_v56 = vld [vmem:[#allocation154_spill] sm:$0xff] }
 0x40c   :  { %2032 = vmatpush.msrb.mxu1 %v8345_v14  ;;  %2072 = vmatpush.msrb.mxu3 %v8346_v11  ;;  %v8395_v14 = vld [vmem:[#allocation151_spill] sm:$0xff]  ;;  %v8396_v11 = vld [vmem:[#allocation152_spill] sm:$0xff] }
 0x40d   :  { %1937 = vmatpush.msra.mxu0 %v8351_v50  ;;  %1977 = vmatpush.msra.mxu2 %v8352_v0  ;;  %v8401_v50 = vld [vmem:[#allocation157_spill] sm:$0xff]  ;;  %v8402_v0 = vld [vmem:[#allocation158_spill] sm:$0xff] }
 0x40e   :  { %2033 = vmatpush.msrb.mxu1 %v8349_v32  ;;  %2073 = vmatpush.msrb.mxu3 %v8350_v53  ;;  %v8399_v32 = vld [vmem:[#allocation155_spill] sm:$0xff]  ;;  %v8400_v53 = vld [vmem:[#allocation156_spill] sm:$0xff] }
 0x40f   :  { %1938 = vmatpush.msra.mxu0 %v8355_v51  ;;  %1978 = vmatpush.msra.mxu2 %v8356_v54  ;;  %v8405_v51 = vld [vmem:[#allocation161_spill] sm:$0xff]  ;;  %v8406_v54 = vld [vmem:[#allocation162_spill] sm:$0xff] }
 0x410   :  { %2034 = vmatpush.msrb.mxu1 %v8353_v38  ;;  %2074 = vmatpush.msrb.mxu3 %v8354_v49  ;;  %v8403_v38 = vld [vmem:[#allocation159_spill] sm:$0xff]  ;;  %v8404_v49 = vld [vmem:[#allocation160_spill] sm:$0xff] }
 0x411   :  { %1939 = vmatpush.msra.mxu0 %v8359_v19  ;;  %1979 = vmatpush.msra.mxu2 %v8360_v60  ;;  %v6063_v19 = vld [vmem:[#allocation6 + $0x30] sm:$0xff]  ;;  %v6066_v60 = vld [vmem:[#allocation6 + $0x38] sm:$0xff] }
 0x412   :  { %2035 = vmatpush.msrb.mxu1 %v8357_v7  ;;  %2075 = vmatpush.msrb.mxu3 %v8358_v17  ;;  %v8407_v7 = vld [vmem:[#allocation163_spill] sm:$0xff]  ;;  %v8408_v17 = vld [vmem:[#allocation164_spill] sm:$0xff] }
 0x413   :  { %1940 = vmatpush.msra.mxu0 %v8363_v55  ;;  %1980 = vmatpush.msra.mxu2 %v8364_v57 }
 0x414   :  { %2036 = vmatpush.msrb.mxu1 %v8361_v62  ;;  %2076 = vmatpush.msrb.mxu3 %v8362_v61  ;;  %v6069_v62 = vld [vmem:[#allocation6 + $0x10] sm:$0xff]  ;;  %v6072_v61 = vld [vmem:[#allocation6 + $0x18] sm:$0xff] }
 0x415   :  { %1941 = vmatpush.msra.mxu0 %v8367_v26  ;;  %1981 = vmatpush.msra.mxu2 %v8368_v41 }
 0x416   :  { %2037 = vmatpush.msrb.mxu1 %v8365_v40  ;;  %2077 = vmatpush.msrb.mxu3 %v8366_v59  ;;  %v8409_v40 = vld [vmem:[#allocation57_spill] sm:$0xff] }
 0x417   :  { %1942 = vmatpush.msra.mxu0 %v8371_v15  ;;  %1982 = vmatpush.msra.mxu2 %v8372_v21 }
 0x418   :  { %2038 = vmatpush.msrb.mxu1 %v8369_v12  ;;  %2078 = vmatpush.msrb.mxu3 %v8370_v22 }
 0x419   :  { %2007 = vmatpush.msrb.mxu0 %v8375_v33  ;;  %2047 = vmatpush.msrb.mxu2 %v8376_v31 }
 0x41a   :  { %2039 = vmatpush.msrb.mxu1 %v8373_v25  ;;  %2079 = vmatpush.msrb.mxu3 %v8374_v35 }
 0x41b   :  { %2008 = vmatpush.msrb.mxu0 %v8379_v5  ;;  %2048 = vmatpush.msrb.mxu2 %v8380_v3 }
 0x41c   :  { %2040 = vmatpush.msrb.mxu1 %v8377_v9  ;;  %2080 = vmatpush.msrb.mxu3 %v8378_v13 }
 0x41d   :  { %2009 = vmatpush.msrb.mxu0 %v8383_v63  ;;  %2049 = vmatpush.msrb.mxu2 %v8384_v6  ;;  %v101_v6 = vpop.permute.xlu2 %100 }
 0x41e   :  { %2041 = vmatpush.msrb.mxu1 %v8381_v37  ;;  %2081 = vmatpush.msrb.mxu3 %v8382_v10 }
 0x41f   :  { %2010 = vmatpush.msrb.mxu0 %v8387_v46  ;;  %2050 = vmatpush.msrb.mxu2 %v8388_v47  ;;  %v143_v47 = vmul.f32 %v7788_v20, %v101_v6 }
 0x420   :  { %2042 = vmatpush.msrb.mxu1 %v8385_v28  ;;  %2082 = vmatpush.msrb.mxu3 %v8386_v42 }
 0x421   :  { %2011 = vmatpush.msrb.mxu0 %v8389_v44  ;;  %2051 = vmatpush.msrb.mxu2 %v8390_v58 }
 0x423   :  { %2012 = vmatpush.msrb.mxu0 %v8391_v48  ;;  %2052 = vmatpush.msrb.mxu2 %v8392_v36 }
 0x425   :  { %2013 = vmatpush.msrb.mxu0 %v8393_v4  ;;  %2053 = vmatpush.msrb.mxu2 %v8394_v34  ;;  %v184_v34 = vadd.f32 %v4187_v23, %v143_v47 }
 0x427   :  { %2014 = vmatpush.msrb.mxu0 %v8395_v14  ;;  %2054 = vmatpush.msrb.mxu2 %v8396_v11  ;;  %v142_v11 = vmul.f32 %v7789_v1, %v101_v6 }
 0x429   :  { %2015 = vmatpush.msrb.mxu0 %v8397_v18  ;;  %2055 = vmatpush.msrb.mxu2 %v8398_v56 }
 0x42b   :  { %2016 = vmatpush.msrb.mxu0 %v8399_v32  ;;  %2056 = vmatpush.msrb.mxu2 %v8400_v53  ;;  %v183_v53 = vadd.f32 %v7790_v43, %v142_v11  ;;  %v6149_v11 = vld [vmem:[#allocation4 + $0xc8] sm:$0xff] }
 0x42d   :  { %2017 = vmatpush.msrb.mxu0 %v8401_v50  ;;  %2057 = vmatpush.msrb.mxu2 %v8402_v0  ;;  %v144_v0 = vmul.f32 %v7791_v24, %v101_v6 }
 0x42f   :  { %2018 = vmatpush.msrb.mxu0 %v8403_v38  ;;  %2058 = vmatpush.msrb.mxu2 %v8404_v49  ;;  %v145_v49 = vmul.f32 %v4203_v29, %v101_v6 }
 0x431   :  { %2019 = vmatpush.msrb.mxu0 %v8405_v51  ;;  %2059 = vmatpush.msrb.mxu2 %v8406_v54  ;;  %v6089_v51 = vld [vmem:[#allocation4 + $0x1e8] sm:$0xff]  ;;  %v6092_v54 = vld [vmem:[#allocation4 + $0x1f8] sm:$0xff] }
 0x433   :  { %2020 = vmatpush.msrb.mxu0 %v8407_v7  ;;  %2060 = vmatpush.msrb.mxu2 %v8408_v17 }
 0x435   :  { %2021 = vmatpush.msrb.mxu0 %v6063_v19  ;;  %2061 = vmatpush.msrb.mxu2 %v6066_v60 }
 0x437   :  { %2022 = vmatpush.msrb.mxu0 %v6069_v62  ;;  %2062 = vmatpush.msrb.mxu2 %v6072_v61 }
 0x43c   :  { %v1685_v57 = vpop.f32.mrf.mxu1 }
 0x442   :  { %v1725_v12 = vpop.f32.mrf.mxu3 }
 0x444   :  { %v1765_v35 = vpop.f32.mrf.mxu1 }
 0x44a   :  { %v1805_v37 = vpop.f32.mrf.mxu3 }
 0x450   :  { %v1665_v55 = vpop.f32.mrf.mxu0 }
 0x451   :  { %v1666_v59 = vadd.f32 %v1665_v55, %v8409_v40  ;;  %v185_v55 = vadd.f32 %v4209_v27, %v144_v0 }
 0x453   :  { %v1686_v26 = vadd.f32 %v1685_v57, %v1666_v59  ;;  %v6096_v57 = vld [vmem:[#allocation4 + $0x1c8] sm:$0xff]  ;;  %v6099_v59 = vld [vmem:[#allocation4 + $0x1d8] sm:$0xff] }
 0x455   :  { %2808 = vtanh.f32 %v1686_v26  ;;  %v186_v26 = vadd.f32 %v4217_v16, %v145_v49  ;;  %v6169_v49 = vld [vmem:[#allocation4 + $0x68] sm:$0xff] }
 0x456   :  { %v1705_v41 = vpop.f32.mrf.mxu2 }
 0x457   :  { %v1706_v22 = vadd.f32 %v1705_v41, %v4400_v39 }
 0x459   :  { %v1726_v15 = vadd.f32 %v1725_v12, %v1706_v22  ;;  %v6103_v22 = vld [vmem:[#allocation4 + $0x1a8] sm:$0xff] }
 0x45a   :  { %v1745_v21 = vpop.f32.mrf.mxu0 }
 0x45b   :  { %v1746_v25 = vadd.f32 %v1745_v21, %v4402_v45  ;;  %2810 = vtanh.f32 %v1726_v15  ;;  %v2809_v31 = vpop.eup %2808  ;;  %v6106_v15 = vld [vmem:[#allocation4 + $0x1b8] sm:$0xff] }
 0x45c   :  { %v1812_v13 = vmul.f32 0.5, %v2809_v31  ;;  %v1865_v36 = vpop.f32.mrf.mxu1  ;;  %v6112_v31 = vld [vmem:[#allocation4 + $0x198] sm:$0xff] }
 0x45d   :  { %v1766_v33 = vadd.f32 %v1765_v35, %v1746_v25  ;;  %v1909_v18 = vadd.f32 %v1865_v36, %v184_v34  ;;  %v6142_v34 = vld [vmem:[#allocation4 + $0xe8] sm:$0xff] }
 0x45e   :  { %v1813_v42 = vadd.f32 0.5, %v1812_v13  ;;  %v6115_v13 = vld [vmem:[#allocation4 + $0x168] sm:$0xff] }
 0x45f   :  { %2812 = vtanh.f32 %v1766_v33  ;;  %v6109_v33 = vld [vmem:[#allocation4 + $0x188] sm:$0xff] }
 0x460   :  { %v1785_v9 = vpop.f32.mrf.mxu2 }
 0x461   :  { %v1786_v5 = vadd.f32 %v1785_v9, %v4406_v2  ;;  %v2811_v3 = vpop.eup %2810 }
 0x462   :  { %v1814_v10 = vmul.f32 0.5, %v2811_v3  ;;  %v1905_v17 = vpop.f32.mrf.mxu3 }
 0x463   :  { %v1806_v63 = vadd.f32 %v1805_v37, %v1786_v5  ;;  %v1911_v25 = vadd.f32 %v1905_v17, %v186_v26  ;;  %v6118_v5 = vld [vmem:[#allocation4 + $0x178] sm:$0xff]  ;;  %v6121_v37 = vld [vmem:[#allocation4 + $0x148] sm:$0xff]  ;;  %v6177_v17 = vld [vmem:[#allocation4 + $0x1e0] sm:$0xff] }
 0x464   :  { %v1815_v46 = vadd.f32 0.5, %v1814_v10  ;;  %v6124_v10 = vld [vmem:[#allocation4 + $0x158] sm:$0xff] }
 0x465   :  { %v2813_v28 = vpop.eup %2812  ;;  %2814 = vtanh.f32 %v1806_v63  ;;  %v6184_v26 = vld [vmem:[#allocation4 + $0x58] sm:$0xff] }
 0x466   :  { %v1818_v44 = vmul.f32 %v1815_v46, %v5850_v30  ;;  %v1819_v58 = vmul.f32 %v2813_v28, %v1813_v42  ;;  %v6127_v28 = vld [vmem:[#allocation4 + $0x128] sm:$0xff]  ;;  %v6130_v42 = vld [vmem:[#allocation4 + $0x138] sm:$0xff] }
 0x468   :  { %v6081_v48 = vadd.f32 %v1819_v58, %v1818_v44  ;;  %v6134_v44 = vld [vmem:[#allocation4 + $0x108] sm:$0xff]  ;;  %v6137_v58 = vld [vmem:[#allocation4 + $0x118] sm:$0xff] }
 0x46a   :  { %2816 = vtanh.f32 %v6081_v48 }
 0x46b   :  { %v2815_v4 = vpop.eup %2814  ;;  %2818 = vtanh.f32 %v1909_v18  ;;  %v6152_v18 = vld [vmem:[#allocation4 + $0xd8] sm:$0xff] }
 0x46c   :  { %v1816_v14 = vmul.f32 0.5, %v2815_v4 }
 0x46e   :  { %v1817_v56 = vadd.f32 0.5, %v1816_v14  ;;  %v6145_v14 = vld [vmem:[#allocation4 + $0xf8] sm:$0xff] }
 0x470   :  { %v2817_v32 = vpop.eup %2816 }
 0x471   :  { %v1822_v50 = vmul.f32 %v2817_v32, %v1817_v56  ;;  %v2819_v7 = vpop.eup %2818  ;;  %v6155_v56 = vld [vmem:[#allocation4 + $0xa8] sm:$0xff]  ;;  %v6158_v32 = vld [vmem:[#allocation4 + $0xb8] sm:$0xff] }
 0x472   :  { %v1918_v21 = vmul.f32 0.5, %v2819_v7  ;;  %v6172_v7 = vld [vmem:[#allocation4 + $0x78] sm:$0xff] }
 0x473   :  { %1963 = vmatmul.f32.vlgmr.msra.gmra.mxu1 %v1822_v50  ;;  %2003 = vmatmul.f32.vlgmr.msra.gmra.mxu3 %v1822_v50 }
 0x474   :  { %v1845_v30 = vpop.f32.mrf.mxu0  ;;  %2127 = vmatpush.msra.mxu1 %v6089_v51  ;;  %2167 = vmatpush.msra.mxu3 %v6092_v54  ;;  %v1919_v3 = vadd.f32 0.5, %v1918_v21  ;;  %v6193_v21 = vld [vmem:[#allocation4 + $0x28] sm:$0xff] }
 0x475   :  { %v1908_v38 = vadd.f32 %v1845_v30, %v183_v53  ;;  %v6164_v30 = vld [vmem:[#allocation4 + $0x98] sm:$0xff] }
 0x476   :  { %2128 = vmatpush.msra.mxu1 %v6096_v57  ;;  %2168 = vmatpush.msra.mxu3 %v6099_v59  ;;  %v1922_v46 = vmul.f32 %v1919_v3, %v5876_v52  ;;  %v6208_v3 = vld [vmem:[#allocation4 + $0x18] sm:$0xff] }
 0x477   :  { %2820 = vtanh.f32 %v1908_v38  ;;  %8413 = vst [vmem:[#allocation61_spill] sm:$0xff] %v6208_v3 }
 0x478   :  { %2129 = vmatpush.msra.mxu1 %v6103_v22  ;;  %2169 = vmatpush.msra.mxu3 %v6106_v15 }
 0x47a   :  { %v1885_v41 = vpop.f32.mrf.mxu2  ;;  %2130 = vmatpush.msra.mxu1 %v6109_v33  ;;  %2170 = vmatpush.msra.mxu3 %v6112_v31 }
 0x47b   :  { %v1910_v12 = vadd.f32 %v1885_v41, %v185_v55  ;;  %2043 = vmatmul.f32.vlgmr.msrb.gmra.mxu1 %v1822_v50  ;;  %2083 = vmatmul.f32.vlgmr.msrb.gmra.mxu3 %v1822_v50  ;;  %v6161_v50 = vld [vmem:[#allocation4 + $0x88] sm:$0xff]  ;;  %v6187_v41 = vld [vmem:[#allocation4 + $0x1c0] sm:$0xff] }
 0x47c   :  { %2131 = vmatpush.msra.mxu1 %v6115_v13  ;;  %2171 = vmatpush.msra.mxu3 %v6118_v5  ;;  %v6181_v55 = vld [vmem:[#allocation4 + $0x48] sm:$0xff] }
 0x47d   :  { %v2821_v35 = vpop.eup %2820  ;;  %2822 = vtanh.f32 %v1910_v12  ;;  %v6190_v12 = vld [vmem:[#allocation4 + $0x1d0] sm:$0xff] }
 0x47e   :  { %v1916_v9 = vmul.f32 0.5, %v2821_v35  ;;  %2824 = vtanh.f32 %v1911_v25  ;;  %2132 = vmatpush.msra.mxu1 %v6121_v37  ;;  %2172 = vmatpush.msra.mxu3 %v6124_v10  ;;  %v6199_v25 = vld [vmem:[#allocation4 + $0x1a0] sm:$0xff]  ;;  %v6202_v35 = vld [vmem:[#allocation4 + $0x1b0] sm:$0xff] }
 0x47f   :  { %8410 = vst [vmem:[#allocation58_spill] sm:$0xff] %v6199_v25 }
 0x480   :  { %v1917_v63 = vadd.f32 0.5, %v1916_v9  ;;  %2133 = vmatpush.msra.mxu1 %v6127_v28  ;;  %2173 = vmatpush.msra.mxu3 %v6130_v42  ;;  %8411 = vst [vmem:[#allocation59_spill] sm:$0xff] %v6202_v35  ;;  %v6205_v9 = vld [vmem:[#allocation4 + $0x8] sm:$0xff] }
 0x481   :  { %8412 = vst [vmem:[#allocation60_spill] sm:$0xff] %v6205_v9 }
 0x482   :  { %2134 = vmatpush.msra.mxu1 %v6134_v44  ;;  %2174 = vmatpush.msra.mxu3 %v6137_v58 }
 0x483   :  { %v2823_v6 = vpop.eup %2822 }
 0x484   :  { %v1923_v47 = vmul.f32 %v2823_v6, %v1917_v63  ;;  %v2825_v36 = vpop.eup %2824  ;;  %2135 = vmatpush.msra.mxu1 %v6142_v34  ;;  %2175 = vmatpush.msra.mxu3 %v6145_v14  ;;  %v6211_v63 = vld [vmem:[#allocation4 + $0x180] sm:$0xff]  ;;  %v6215_v6 = vld [vmem:[#allocation4 + $0x190] sm:$0xff] }
 0x485   :  { %v1920_v52 = vmul.f32 0.5, %v2825_v36  ;;  %8414 = vst [vmem:[#allocation62_spill] sm:$0xff] %v6211_v63  ;;  %v6227_v36 = vld [vmem:[#allocation6 + $0x3e0] sm:$0xff] }
 0x486   :  { %v6140_v4 = vadd.f32 %v1923_v47, %v1922_v46  ;;  %2136 = vmatpush.msra.mxu1 %v6149_v11  ;;  %2176 = vmatpush.msra.mxu3 %v6152_v18  ;;  %8415 = vst [vmem:[#allocation63_spill] sm:$0xff] %v6215_v6  ;;  %v6221_v46 = vld [vmem:[#allocation4 + $0x160] sm:$0xff]  ;;  %v6224_v47 = vld [vmem:[#allocation4 + $0x170] sm:$0xff] }
 0x487   :  { %v1921_v53 = vadd.f32 0.5, %v1920_v52  ;;  %8416 = vst [vmem:[#allocation64_spill] sm:$0xff] %v6221_v46  ;;  %v6230_v52 = vld [vmem:[#allocation6 + $0x3e8] sm:$0xff] }
 0x488   :  { %2826 = vtanh.f32 %v6140_v4  ;;  %2137 = vmatpush.msra.mxu1 %v6155_v56  ;;  %2177 = vmatpush.msra.mxu3 %v6158_v32  ;;  %8417 = vst [vmem:[#allocation65_spill] sm:$0xff] %v6224_v47 }
 0x489   :  { %8418 = vst [vmem:[#allocation10_spill] sm:$0xff] %v6227_v36 }
 0x48a   :  { %2138 = vmatpush.msra.mxu1 %v6161_v50  ;;  %2178 = vmatpush.msra.mxu3 %v6164_v30  ;;  %8419 = vst [vmem:[#allocation66_spill] sm:$0xff] %v6230_v52 }
 0x48c   :  { %2139 = vmatpush.msra.mxu1 %v6169_v49  ;;  %2179 = vmatpush.msra.mxu3 %v6172_v7 }
 0x48e   :  { %v2827_v0 = vpop.eup %2826  ;;  %2140 = vmatpush.msra.mxu1 %v6181_v55  ;;  %2180 = vmatpush.msra.mxu3 %v6184_v26 }
 0x48f   :  { %v6167_v38 = vmul.f32 %v2827_v0, %v1921_v53  ;;  %v6233_v53 = vld [vmem:[#allocation4 + $0x140] sm:$0xff]  ;;  %v6236_v0 = vld [vmem:[#allocation4 + $0x150] sm:$0xff] }
 0x490   :  { %2141 = vmatpush.msra.mxu1 %v6193_v21  ;;  %8420 = vst [vmem:[#allocation11_spill] sm:$0xff] %v6233_v53 }
 0x491   :  { %1943 = vmatmul.f32.vlgmr.msra.gmra.mxu0 %v6167_v38  ;;  %1983 = vmatmul.f32.vlgmr.msra.gmra.mxu2 %v6167_v38  ;;  %8421 = vst [vmem:[#allocation12_spill] sm:$0xff] %v6236_v0 }
 0x492   :  { %2107 = vmatpush.msra.mxu0 %v6177_v17  ;;  %2147 = vmatpush.msra.mxu2 %v5894_v8  ;;  %v6196_v8 = vld [vmem:[#allocation4 + $0x38] sm:$0xff] }
 0x493   :  { %2181 = vmatpush.msra.mxu3 %v6196_v8  ;;  %2142 = vmatpush.msra.mxu1 %v6205_v9 }
 0x494   :  { %2108 = vmatpush.msra.mxu0 %v6187_v41  ;;  %2148 = vmatpush.msra.mxu2 %v6190_v12 }
 0x495   :  { %2182 = vmatpush.msra.mxu3 %v6208_v3  ;;  %2143 = vmatmul.f32.vlgmr.msra.gmra.mxu1 %v6167_v38 }
 0x496   :  { %2109 = vmatpush.msra.mxu0 %v6199_v25  ;;  %2149 = vmatpush.msra.mxu2 %v6202_v35 }
 0x497   :  { %2183 = vmatmul.f32.vlgmr.msra.gmra.mxu3 %v6167_v38  ;;  %2226 = vmatpush.msrb.mxu1 %v6227_v36  ;;  %v6245_v36 = vld [vmem:[#allocation4 + $0x120] sm:$0xff] }
 0x498   :  { %2110 = vmatpush.msra.mxu0 %v6211_v63  ;;  %2150 = vmatpush.msra.mxu2 %v6215_v6  ;;  %8424 = vst [vmem:[#allocation13_spill] sm:$0xff] %v6245_v36 }
 0x499   :  { %2023 = vmatmul.f32.vlgmr.msrb.gmra.mxu0 %v6167_v38  ;;  %2063 = vmatmul.f32.vlgmr.msrb.gmra.mxu2 %v6167_v38 }
 0x49a   :  { %2111 = vmatpush.msra.mxu0 %v6221_v46  ;;  %2151 = vmatpush.msra.mxu2 %v6224_v47  ;;  %v6239_v46 = vld [vmem:[#allocation6 + $0x3c0] sm:$0xff]  ;;  %v6242_v47 = vld [vmem:[#allocation6 + $0x3c8] sm:$0xff] }
 0x49b   :  { %2266 = vmatpush.msrb.mxu3 %v6230_v52  ;;  %8422 = vst [vmem:[#allocation67_spill] sm:$0xff] %v6239_v46  ;;  %2227 = vmatpush.msrb.mxu1 %v6239_v46  ;;  %v6248_v52 = vld [vmem:[#allocation4 + $0x130] sm:$0xff]  ;;  %v6257_v46 = vld [vmem:[#allocation4 + $0x100] sm:$0xff] }
 0x49c   :  { %2112 = vmatpush.msra.mxu0 %v6233_v53  ;;  %2152 = vmatpush.msra.mxu2 %v6236_v0  ;;  %8423 = vst [vmem:[#allocation68_spill] sm:$0xff] %v6242_v47  ;;  %v6251_v53 = vld [vmem:[#allocation6 + $0x3a0] sm:$0xff]  ;;  %v6254_v0 = vld [vmem:[#allocation6 + $0x3a8] sm:$0xff] }
 0x49d   :  { %2267 = vmatpush.msrb.mxu3 %v6242_v47  ;;  %8425 = vst [vmem:[#allocation14_spill] sm:$0xff] %v6248_v52  ;;  %2228 = vmatpush.msrb.mxu1 %v6251_v53  ;;  %v6260_v47 = vld [vmem:[#allocation4 + $0x110] sm:$0xff] }
 0x49e   :  { %2113 = vmatpush.msra.mxu0 %v6245_v36  ;;  %2153 = vmatpush.msra.mxu2 %v6248_v52  ;;  %8426 = vst [vmem:[#allocation69_spill] sm:$0xff] %v6251_v53  ;;  %v6263_v36 = vld [vmem:[#allocation6 + $0x380] sm:$0xff]  ;;  %v6266_v52 = vld [vmem:[#allocation6 + $0x388] sm:$0xff] }
 0x49f   :  { %8427 = vst [vmem:[#allocation70_spill] sm:$0xff] %v6254_v0  ;;  %2268 = vmatpush.msrb.mxu3 %v6254_v0  ;;  %2229 = vmatpush.msrb.mxu1 %v6263_v36  ;;  %v6269_v53 = vld [vmem:[#allocation4 + $0xe0] sm:$0xff]  ;;  %v6272_v0 = vld [vmem:[#allocation4 + $0xf0] sm:$0xff] }
 0x4a0   :  { %8428 = vst [vmem:[#allocation15_spill] sm:$0xff] %v6257_v46  ;;  %2114 = vmatpush.msra.mxu0 %v6257_v46  ;;  %2154 = vmatpush.msra.mxu2 %v6260_v47  ;;  %v6275_v46 = vld [vmem:[#allocation6 + $0x360] sm:$0xff] }
 0x4a1   :  { %8429 = vst [vmem:[#allocation16_spill] sm:$0xff] %v6260_v47  ;;  %2269 = vmatpush.msrb.mxu3 %v6266_v52  ;;  %2230 = vmatpush.msrb.mxu1 %v6275_v46  ;;  %v6278_v47 = vld [vmem:[#allocation6 + $0x368] sm:$0xff] }
 0x4a2   :  { %8430 = vst [vmem:[#allocation18_spill] sm:$0xff] %v6263_v36  ;;  %2115 = vmatpush.msra.mxu0 %v6269_v53  ;;  %2155 = vmatpush.msra.mxu2 %v6272_v0  ;;  %v6281_v36 = vld [vmem:[#allocation4 + $0xc0] sm:$0xff] }
 0x4a3   :  { %8431 = vst [vmem:[#allocation71_spill] sm:$0xff] %v6266_v52  ;;  %2270 = vmatpush.msrb.mxu3 %v6278_v47  ;;  %v6284_v52 = vld [vmem:[#allocation4 + $0xd0] sm:$0xff] }
 0x4a4   :  { %8432 = vst [vmem:[#allocation20_spill] sm:$0xff] %v6269_v53  ;;  %2116 = vmatpush.msra.mxu0 %v6281_v36  ;;  %2156 = vmatpush.msra.mxu2 %v6284_v52  ;;  %v6287_v53 = vld [vmem:[#allocation6 + $0x340] sm:$0xff] }
 0x4a5   :  { %8433 = vst [vmem:[#allocation17_spill] sm:$0xff] %v6272_v0  ;;  %2231 = vmatpush.msrb.mxu1 %v6287_v53  ;;  %v6290_v0 = vld [vmem:[#allocation6 + $0x348] sm:$0xff] }
 0x4a6   :  { %8434 = vst [vmem:[#allocation72_spill] sm:$0xff] %v6275_v46  ;;  %2271 = vmatpush.msrb.mxu3 %v6290_v0  ;;  %v6293_v46 = vld [vmem:[#allocation4 + $0xa0] sm:$0xff] }
 0x4a7   :  { %8435 = vst [vmem:[#allocation19_spill] sm:$0xff] %v6278_v47  ;;  %2117 = vmatpush.msra.mxu0 %v6293_v46  ;;  %v6296_v47 = vld [vmem:[#allocation4 + $0xb0] sm:$0xff] }
 0x4a8   :  { %8436 = vst [vmem:[#allocation73_spill] sm:$0xff] %v6281_v36  ;;  %2157 = vmatpush.msra.mxu2 %v6296_v47  ;;  %v6299_v36 = vld [vmem:[#allocation6 + $0x320] sm:$0xff] }
 0x4a9   :  { %8437 = vst [vmem:[#allocation22_spill] sm:$0xff] %v6284_v52  ;;  %2232 = vmatpush.msrb.mxu1 %v6299_v36  ;;  %v6302_v52 = vld [vmem:[#allocation6 + $0x328] sm:$0xff] }
 0x4aa   :  { %8438 = vst [vmem:[#allocation74_spill] sm:$0xff] %v6287_v53  ;;  %2272 = vmatpush.msrb.mxu3 %v6302_v52  ;;  %v6305_v53 = vld [vmem:[#allocation4 + $0x80] sm:$0xff] }
 0x4ab   :  { %8439 = vst [vmem:[#allocation21_spill] sm:$0xff] %v6290_v0  ;;  %2118 = vmatpush.msra.mxu0 %v6305_v53  ;;  %v6308_v0 = vld [vmem:[#allocation4 + $0x90] sm:$0xff] }
 0x4ac   :  { %8440 = vst [vmem:[#allocation75_spill] sm:$0xff] %v6293_v46  ;;  %2158 = vmatpush.msra.mxu2 %v6308_v0  ;;  %v6311_v46 = vld [vmem:[#allocation6 + $0x300] sm:$0xff] }
 0x4ad   :  { %8441 = vst [vmem:[#allocation24_spill] sm:$0xff] %v6296_v47  ;;  %2233 = vmatpush.msrb.mxu1 %v6311_v46  ;;  %v6314_v47 = vld [vmem:[#allocation6 + $0x308] sm:$0xff] }
 0x4ae   :  { %8442 = vst [vmem:[#allocation76_spill] sm:$0xff] %v6299_v36  ;;  %2273 = vmatpush.msrb.mxu3 %v6314_v47  ;;  %v6317_v36 = vld [vmem:[#allocation4 + $0x60] sm:$0xff] }
 0x4af   :  { %8443 = vst [vmem:[#allocation23_spill] sm:$0xff] %v6302_v52  ;;  %2119 = vmatpush.msra.mxu0 %v6317_v36  ;;  %v6320_v52 = vld [vmem:[#allocation4 + $0x70] sm:$0xff] }
 0x4b0   :  { %8444 = vst [vmem:[#allocation77_spill] sm:$0xff] %v6305_v53  ;;  %2159 = vmatpush.msra.mxu2 %v6320_v52  ;;  %v6323_v53 = vld [vmem:[#allocation6 + $0x2e0] sm:$0xff] }
 0x4b1   :  { %8445 = vst [vmem:[#allocation26_spill] sm:$0xff] %v6308_v0  ;;  %2234 = vmatpush.msrb.mxu1 %v6323_v53  ;;  %v6326_v0 = vld [vmem:[#allocation6 + $0x2e8] sm:$0xff] }
 0x4b2   :  { %8446 = vst [vmem:[#allocation78_spill] sm:$0xff] %v6311_v46  ;;  %2274 = vmatpush.msrb.mxu3 %v6326_v0  ;;  %v6329_v46 = vld [vmem:[#allocation4 + $0x40] sm:$0xff] }
 0x4b3   :  { %8447 = vst [vmem:[#allocation25_spill] sm:$0xff] %v6314_v47  ;;  %2120 = vmatpush.msra.mxu0 %v6329_v46  ;;  %v6332_v47 = vld [vmem:[#allocation4 + $0x50] sm:$0xff] }
 0x4b4   :  { %8448 = vst [vmem:[#allocation79_spill] sm:$0xff] %v6317_v36  ;;  %2160 = vmatpush.msra.mxu2 %v6332_v47  ;;  %v6335_v36 = vld [vmem:[#allocation6 + $0x2c0] sm:$0xff] }
 0x4b5   :  { %8449 = vst [vmem:[#allocation28_spill] sm:$0xff] %v6320_v52  ;;  %2235 = vmatpush.msrb.mxu1 %v6335_v36  ;;  %v6338_v52 = vld [vmem:[#allocation6 + $0x2c8] sm:$0xff] }
 0x4b6   :  { %8450 = vst [vmem:[#allocation80_spill] sm:$0xff] %v6323_v53  ;;  %2275 = vmatpush.msrb.mxu3 %v6338_v52  ;;  %v6341_v53 = vld [vmem:[#allocation4 + $0x20] sm:$0xff] }
 0x4b7   :  { %8451 = vst [vmem:[#allocation27_spill] sm:$0xff] %v6326_v0  ;;  %2121 = vmatpush.msra.mxu0 %v6341_v53  ;;  %v6344_v0 = vld [vmem:[#allocation4 + $0x30] sm:$0xff] }
 0x4b8   :  { %8452 = vst [vmem:[#allocation81_spill] sm:$0xff] %v6329_v46  ;;  %2161 = vmatpush.msra.mxu2 %v6344_v0  ;;  %v6347_v46 = vld [vmem:[#allocation6 + $0x2a0] sm:$0xff] }
 0x4b9   :  { %8453 = vst [vmem:[#allocation30_spill] sm:$0xff] %v6332_v47  ;;  %2236 = vmatpush.msrb.mxu1 %v6347_v46  ;;  %v6350_v47 = vld [vmem:[#allocation6 + $0x2a8] sm:$0xff] }
 0x4ba   :  { %8454 = vst [vmem:[#allocation82_spill] sm:$0xff] %v6335_v36  ;;  %2276 = vmatpush.msrb.mxu3 %v6350_v47  ;;  %v6353_v36 = vld [vmem:[#allocation4] sm:$0xff] }
 0x4bb   :  { %8455 = vst [vmem:[#allocation29_spill] sm:$0xff] %v6338_v52  ;;  %2122 = vmatpush.msra.mxu0 %v6353_v36  ;;  %v6356_v52 = vld [vmem:[#allocation4 + $0x10] sm:$0xff] }
 0x4bc   :  { %8456 = vst [vmem:[#allocation83_spill] sm:$0xff] %v6341_v53  ;;  %2162 = vmatpush.msra.mxu2 %v6356_v52  ;;  %2123 = vmatmul.f32.vlgmr.msra.gmra.mxu0 %v6167_v38 }
 0x4bd   :  { %8457 = vst [vmem:[#allocation32_spill] sm:$0xff] %v6344_v0  ;;  %2163 = vmatmul.f32.vlgmr.msra.gmra.mxu2 %v6167_v38  ;;  %v6361_v0 = vld [vmem:[#allocation6 + $0x280] sm:$0xff]  ;;  %v6376_v38 = vld [vmem:[#allocation6 + $0x268] sm:$0xff] }
 0x4be   :  { %8458 = vst [vmem:[#allocation84_spill] sm:$0xff] %v6347_v46  ;;  %2237 = vmatpush.msrb.mxu1 %v6361_v0  ;;  %v6364_v46 = vld [vmem:[#allocation6 + $0x288] sm:$0xff] }
 0x4bf   :  { %8459 = vst [vmem:[#allocation31_spill] sm:$0xff] %v6350_v47  ;;  %2277 = vmatpush.msrb.mxu3 %v6364_v46  ;;  %v6367_v47 = vld [vmem:[#allocation6 + $0x1e0] sm:$0xff] }
 0x4c0   :  { %8460 = vst [vmem:[#allocation87_spill] sm:$0xff] %v6353_v36  ;;  %2206 = vmatpush.msrb.mxu0 %v6367_v47  ;;  %v6370_v36 = vld [vmem:[#allocation6 + $0x1e8] sm:$0xff] }
 0x4c1   :  { %8461 = vst [vmem:[#allocation34_spill] sm:$0xff] %v6356_v52  ;;  %2246 = vmatpush.msrb.mxu2 %v6370_v36  ;;  %v6373_v52 = vld [vmem:[#allocation6 + $0x260] sm:$0xff]  ;;  %2278 = vmatpush.msrb.mxu3 %v6376_v38 }
 0x4c2   :  { %8462 = vst [vmem:[#allocation88_spill] sm:$0xff] %v6361_v0  ;;  %2238 = vmatpush.msrb.mxu1 %v6373_v52  ;;  %v6379_v0 = vld [vmem:[#allocation6 + $0x1c0] sm:$0xff] }
 0x4c3   :  { %8463 = vst [vmem:[#allocation33_spill] sm:$0xff] %v6364_v46  ;;  %2207 = vmatpush.msrb.mxu0 %v6379_v0  ;;  %v6382_v46 = vld [vmem:[#allocation6 + $0x1c8] sm:$0xff] }
 0x4c4   :  { %8464 = vst [vmem:[#allocation91_spill] sm:$0xff] %v6367_v47  ;;  %2247 = vmatpush.msrb.mxu2 %v6382_v46  ;;  %v6385_v47 = vld [vmem:[#allocation6 + $0x240] sm:$0xff] }
 0x4c5   :  { %8465 = vst [vmem:[#allocation36_spill] sm:$0xff] %v6370_v36  ;;  %2239 = vmatpush.msrb.mxu1 %v6385_v47  ;;  %v6388_v36 = vld [vmem:[#allocation6 + $0x248] sm:$0xff] }
 0x4c6   :  { %8466 = vst [vmem:[#allocation92_spill] sm:$0xff] %v6373_v52  ;;  %2279 = vmatpush.msrb.mxu3 %v6388_v36  ;;  %v6391_v52 = vld [vmem:[#allocation6 + $0x1a0] sm:$0xff] }
 0x4c7   :  { %8467 = vst [vmem:[#allocation35_spill] sm:$0xff] %v6376_v38  ;;  %2208 = vmatpush.msrb.mxu0 %v6391_v52  ;;  %v6394_v38 = vld [vmem:[#allocation6 + $0x1a8] sm:$0xff] }
 0x4c8   :  { %8468 = vst [vmem:[#allocation95_spill] sm:$0xff] %v6379_v0  ;;  %2248 = vmatpush.msrb.mxu2 %v6394_v38  ;;  %v6397_v0 = vld [vmem:[#allocation6 + $0x220] sm:$0xff] }
 0x4c9   :  { %8469 = vst [vmem:[#allocation38_spill] sm:$0xff] %v6382_v46  ;;  %2240 = vmatpush.msrb.mxu1 %v6397_v0  ;;  %v6400_v46 = vld [vmem:[#allocation6 + $0x228] sm:$0xff] }
 0x4ca   :  { %8470 = vst [vmem:[#allocation96_spill] sm:$0xff] %v6385_v47  ;;  %2280 = vmatpush.msrb.mxu3 %v6400_v46  ;;  %v6403_v47 = vld [vmem:[#allocation6 + $0x180] sm:$0xff] }
 0x4cb   :  { %8471 = vst [vmem:[#allocation37_spill] sm:$0xff] %v6388_v36  ;;  %2209 = vmatpush.msrb.mxu0 %v6403_v47  ;;  %v6406_v36 = vld [vmem:[#allocation6 + $0x188] sm:$0xff] }
 0x4cc   :  { %8472 = vst [vmem:[#allocation99_spill] sm:$0xff] %v6391_v52  ;;  %2249 = vmatpush.msrb.mxu2 %v6406_v36  ;;  %v6409_v52 = vld [vmem:[#allocation6 + $0x200] sm:$0xff] }
 0x4cd   :  { %8473 = vst [vmem:[#allocation40_spill] sm:$0xff] %v6394_v38  ;;  %2241 = vmatpush.msrb.mxu1 %v6409_v52  ;;  %v6412_v38 = vld [vmem:[#allocation6 + $0x208] sm:$0xff] }
 0x4ce   :  { %8474 = vst [vmem:[#allocation100_spill] sm:$0xff] %v6397_v0  ;;  %2281 = vmatpush.msrb.mxu3 %v6412_v38  ;;  %v6415_v0 = vld [vmem:[#allocation6 + $0x3f0] sm:$0xff] }
 0x4cf   :  { %8475 = vst [vmem:[#allocation39_spill] sm:$0xff] %v6400_v46  ;;  %2306 = vmatpush.msra.mxu1 %v6415_v0  ;;  %v6418_v46 = vld [vmem:[#allocation6 + $0x3f8] sm:$0xff] }
 0x4d0   :  { %8476 = vst [vmem:[#allocation41_spill] sm:$0xff] %v6403_v47  ;;  %2346 = vmatpush.msra.mxu3 %v6418_v46  ;;  %v6421_v47 = vld [vmem:[#allocation6 + $0x160] sm:$0xff] }
 0x4d1   :  { %8477 = vst [vmem:[#allocation42_spill] sm:$0xff] %v6406_v36  ;;  %2210 = vmatpush.msrb.mxu0 %v6421_v47  ;;  %v6424_v36 = vld [vmem:[#allocation6 + $0x168] sm:$0xff] }
 0x4d2   :  { %8478 = vst [vmem:[#allocation107_spill] sm:$0xff] %v6409_v52  ;;  %2250 = vmatpush.msrb.mxu2 %v6424_v36  ;;  %v6427_v52 = vld [vmem:[#allocation6 + $0x3d0] sm:$0xff] }
 0x4d3   :  { %8479 = vst [vmem:[#allocation45_spill] sm:$0xff] %v6412_v38  ;;  %2307 = vmatpush.msra.mxu1 %v6427_v52  ;;  %v6430_v38 = vld [vmem:[#allocation6 + $0x3d8] sm:$0xff] }
 0x4d4   :  { %8480 = vst [vmem:[#allocation103_spill] sm:$0xff] %v6415_v0  ;;  %2347 = vmatpush.msra.mxu3 %v6430_v38  ;;  %v6433_v0 = vld [vmem:[#allocation6 + $0x140] sm:$0xff] }
 0x4d5   :  { %8481 = vst [vmem:[#allocation43_spill] sm:$0xff] %v6418_v46  ;;  %2211 = vmatpush.msrb.mxu0 %v6433_v0  ;;  %v6436_v46 = vld [vmem:[#allocation6 + $0x148] sm:$0xff] }
 0x4d6   :  { %8482 = vst [vmem:[#allocation104_spill] sm:$0xff] %v6421_v47  ;;  %2251 = vmatpush.msrb.mxu2 %v6436_v46  ;;  %v6439_v47 = vld [vmem:[#allocation6 + $0x3b0] sm:$0xff] }
 0x4d7   :  { %8483 = vst [vmem:[#allocation44_spill] sm:$0xff] %v6424_v36  ;;  %2308 = vmatpush.msra.mxu1 %v6439_v47  ;;  %v6442_v36 = vld [vmem:[#allocation6 + $0x3b8] sm:$0xff] }
 0x4d8   :  { %8484 = vst [vmem:[#allocation46_spill] sm:$0xff] %v6427_v52  ;;  %2348 = vmatpush.msra.mxu3 %v6442_v36  ;;  %v6445_v52 = vld [vmem:[#allocation6 + $0x120] sm:$0xff] }
 0x4d9   :  { %8485 = vst [vmem:[#allocation47_spill] sm:$0xff] %v6430_v38  ;;  %2212 = vmatpush.msrb.mxu0 %v6445_v52  ;;  %v6448_v38 = vld [vmem:[#allocation6 + $0x128] sm:$0xff] }
 0x4da   :  { %8486 = vst [vmem:[#allocation48_spill] sm:$0xff] %v6433_v0  ;;  %2252 = vmatpush.msrb.mxu2 %v6448_v38  ;;  %v6451_v0 = vld [vmem:[#allocation6 + $0x390] sm:$0xff] }
 0x4db   :  { %8487 = vst [vmem:[#allocation49_spill] sm:$0xff] %v6436_v46  ;;  %2309 = vmatpush.msra.mxu1 %v6451_v0  ;;  %v6454_v46 = vld [vmem:[#allocation6 + $0x398] sm:$0xff] }
 0x4dc   :  { %8488 = vst [vmem:[#allocation50_spill] sm:$0xff] %v6439_v47  ;;  %2349 = vmatpush.msra.mxu3 %v6454_v46  ;;  %v6457_v47 = vld [vmem:[#allocation6 + $0x100] sm:$0xff] }
 0x4dd   :  { %8489 = vst [vmem:[#allocation51_spill] sm:$0xff] %v6442_v36  ;;  %2213 = vmatpush.msrb.mxu0 %v6457_v47  ;;  %v6460_v36 = vld [vmem:[#allocation6 + $0x108] sm:$0xff] }
 0x4de   :  { %8490 = vst [vmem:[#allocation52_spill] sm:$0xff] %v6445_v52  ;;  %2253 = vmatpush.msrb.mxu2 %v6460_v36  ;;  %v6463_v52 = vld [vmem:[#allocation6 + $0x370] sm:$0xff] }
 0x4df   :  { %8491 = vst [vmem:[#allocation53_spill] sm:$0xff] %v6448_v38  ;;  %2310 = vmatpush.msra.mxu1 %v6463_v52  ;;  %v6466_v38 = vld [vmem:[#allocation6 + $0x378] sm:$0xff] }
 0x4e0   :  { %8492 = vst [vmem:[#allocation54_spill] sm:$0xff] %v6451_v0  ;;  %2350 = vmatpush.msra.mxu3 %v6466_v38  ;;  %v6469_v0 = vld [vmem:[#allocation6 + $0xe0] sm:$0xff] }
 0x4e1   :  { %8493 = vst [vmem:[#allocation55_spill] sm:$0xff] %v6454_v46  ;;  %2214 = vmatpush.msrb.mxu0 %v6469_v0  ;;  %v6472_v46 = vld [vmem:[#allocation6 + $0xe8] sm:$0xff] }
 0x4e2   :  { %8494 = vst [vmem:[#allocation56_spill] sm:$0xff] %v6457_v47  ;;  %2254 = vmatpush.msrb.mxu2 %v6472_v46  ;;  %v6475_v47 = vld [vmem:[#allocation6 + $0x350] sm:$0xff] }
 0x4e3   :  { %8495 = vst [vmem:[#allocation85_spill] sm:$0xff] %v6460_v36  ;;  %2311 = vmatpush.msra.mxu1 %v6475_v47  ;;  %v6478_v36 = vld [vmem:[#allocation6 + $0x358] sm:$0xff] }
 0x4e4   :  { %8496 = vst [vmem:[#allocation86_spill] sm:$0xff] %v6463_v52  ;;  %2351 = vmatpush.msra.mxu3 %v6478_v36  ;;  %v6481_v52 = vld [vmem:[#allocation6 + $0xc0] sm:$0xff] }
 0x4e5   :  { %8497 = vst [vmem:[#allocation89_spill] sm:$0xff] %v6466_v38  ;;  %2215 = vmatpush.msrb.mxu0 %v6481_v52  ;;  %v6484_v38 = vld [vmem:[#allocation6 + $0xc8] sm:$0xff] }
 0x4e6   :  { %8498 = vst [vmem:[#allocation90_spill] sm:$0xff] %v6469_v0  ;;  %2255 = vmatpush.msrb.mxu2 %v6484_v38  ;;  %v6487_v0 = vld [vmem:[#allocation6 + $0x330] sm:$0xff] }
 0x4e7   :  { %8499 = vst [vmem:[#allocation93_spill] sm:$0xff] %v6472_v46  ;;  %2312 = vmatpush.msra.mxu1 %v6487_v0  ;;  %v6490_v46 = vld [vmem:[#allocation6 + $0x338] sm:$0xff] }
 0x4e8   :  { %8500 = vst [vmem:[#allocation94_spill] sm:$0xff] %v6475_v47  ;;  %2352 = vmatpush.msra.mxu3 %v6490_v46  ;;  %v6493_v47 = vld [vmem:[#allocation6 + $0xa0] sm:$0xff] }
 0x4e9   :  { %8501 = vst [vmem:[#allocation97_spill] sm:$0xff] %v6478_v36  ;;  %2216 = vmatpush.msrb.mxu0 %v6493_v47  ;;  %v6496_v36 = vld [vmem:[#allocation6 + $0xa8] sm:$0xff] }
 0x4ea   :  { %8502 = vst [vmem:[#allocation98_spill] sm:$0xff] %v6481_v52  ;;  %2256 = vmatpush.msrb.mxu2 %v6496_v36  ;;  %v6499_v52 = vld [vmem:[#allocation6 + $0x310] sm:$0xff] }
 0x4eb   :  { %8503 = vst [vmem:[#allocation101_spill] sm:$0xff] %v6484_v38  ;;  %2313 = vmatpush.msra.mxu1 %v6499_v52  ;;  %v6502_v38 = vld [vmem:[#allocation6 + $0x318] sm:$0xff] }
 0x4ec   :  { %8504 = vst [vmem:[#allocation102_spill] sm:$0xff] %v6487_v0  ;;  %2353 = vmatpush.msra.mxu3 %v6502_v38  ;;  %v6505_v0 = vld [vmem:[#allocation6 + $0x80] sm:$0xff] }
 0x4ed   :  { %8505 = vst [vmem:[#allocation105_spill] sm:$0xff] %v6490_v46  ;;  %2217 = vmatpush.msrb.mxu0 %v6505_v0  ;;  %v6508_v46 = vld [vmem:[#allocation6 + $0x88] sm:$0xff] }
 0x4ee   :  { %8506 = vst [vmem:[#allocation106_spill] sm:$0xff] %v6493_v47  ;;  %2257 = vmatpush.msrb.mxu2 %v6508_v46  ;;  %v6511_v47 = vld [vmem:[#allocation6 + $0x2f0] sm:$0xff] }
 0x4ef   :  { %8507 = vst [vmem:[#allocation108_spill] sm:$0xff] %v6496_v36  ;;  %2314 = vmatpush.msra.mxu1 %v6511_v47  ;;  %v6514_v36 = vld [vmem:[#allocation6 + $0x2f8] sm:$0xff] }
 0x4f0   :  { %8508 = vst [vmem:[#allocation109_spill] sm:$0xff] %v6499_v52  ;;  %2354 = vmatpush.msra.mxu3 %v6514_v36  ;;  %v6517_v52 = vld [vmem:[#allocation6 + $0x60] sm:$0xff] }
 0x4f1   :  { %8509 = vst [vmem:[#allocation110_spill] sm:$0xff] %v6502_v38  ;;  %2218 = vmatpush.msrb.mxu0 %v6517_v52  ;;  %v6520_v38 = vld [vmem:[#allocation6 + $0x68] sm:$0xff] }
 0x4f2   :  { %8510 = vst [vmem:[#allocation111_spill] sm:$0xff] %v6505_v0  ;;  %2258 = vmatpush.msrb.mxu2 %v6520_v38  ;;  %v6523_v0 = vld [vmem:[#allocation6 + $0x2d0] sm:$0xff] }
 0x4f3   :  { %8511 = vst [vmem:[#allocation112_spill] sm:$0xff] %v6508_v46  ;;  %2315 = vmatpush.msra.mxu1 %v6523_v0  ;;  %v6526_v46 = vld [vmem:[#allocation6 + $0x2d8] sm:$0xff] }
 0x4f4   :  { %8512 = vst [vmem:[#allocation113_spill] sm:$0xff] %v6511_v47  ;;  %2355 = vmatpush.msra.mxu3 %v6526_v46  ;;  %v6529_v47 = vld [vmem:[#allocation6 + $0x40] sm:$0xff] }
 0x4f5   :  { %8513 = vst [vmem:[#allocation114_spill] sm:$0xff] %v6514_v36  ;;  %2219 = vmatpush.msrb.mxu0 %v6529_v47  ;;  %v6532_v36 = vld [vmem:[#allocation6 + $0x48] sm:$0xff] }
 0x4f6   :  { %8514 = vst [vmem:[#allocation115_spill] sm:$0xff] %v6517_v52  ;;  %2259 = vmatpush.msrb.mxu2 %v6532_v36  ;;  %v6535_v52 = vld [vmem:[#allocation6 + $0x2b0] sm:$0xff]  ;;  %v2004_v6 = vpop.f32.mrf.mxu3 }
 0x4f7   :  { %8515 = vst [vmem:[#allocation116_spill] sm:$0xff] %v6520_v38  ;;  %2316 = vmatpush.msra.mxu1 %v6535_v52  ;;  %v6538_v38 = vld [vmem:[#allocation6 + $0x2b8] sm:$0xff] }
 0x4f8   :  { %8516 = vst [vmem:[#allocation117_spill] sm:$0xff] %v6523_v0  ;;  %2356 = vmatpush.msra.mxu3 %v6538_v38  ;;  %v6541_v0 = vld [vmem:[#allocation6 + $0x20] sm:$0xff] }
 0x4f9   :  { %8517 = vst [vmem:[#allocation118_spill] sm:$0xff] %v6526_v46  ;;  %2220 = vmatpush.msrb.mxu0 %v6541_v0  ;;  %v6544_v46 = vld [vmem:[#allocation6 + $0x28] sm:$0xff] }
 0x4fa   :  { %8518 = vst [vmem:[#allocation119_spill] sm:$0xff] %v6529_v47  ;;  %2260 = vmatpush.msrb.mxu2 %v6544_v46  ;;  %v6547_v47 = vld [vmem:[#allocation6 + $0x290] sm:$0xff] }
 0x4fb   :  { %8519 = vst [vmem:[#allocation120_spill] sm:$0xff] %v6532_v36  ;;  %2317 = vmatpush.msra.mxu1 %v6547_v47  ;;  %v6550_v36 = vld [vmem:[#allocation6 + $0x298] sm:$0xff] }
 0x4fc   :  { %8520 = vst [vmem:[#allocation123_spill] sm:$0xff] %v6535_v52  ;;  %2357 = vmatpush.msra.mxu3 %v6550_v36  ;;  %v6553_v52 = vld [vmem:[#allocation6] sm:$0xff] }
 0x4fd   :  { %8521 = vst [vmem:[#allocation122_spill] sm:$0xff] %v6538_v38  ;;  %2221 = vmatpush.msrb.mxu0 %v6553_v52  ;;  %v6556_v38 = vld [vmem:[#allocation6 + $0x8] sm:$0xff] }
 0x4fe   :  { %8522 = vst [vmem:[#allocation121_spill] sm:$0xff] %v6541_v0  ;;  %2261 = vmatpush.msrb.mxu2 %v6556_v38  ;;  %v6559_v0 = vld [vmem:[#allocation6 + $0x270] sm:$0xff] }
 0x4ff   :  { %8523 = vst [vmem:[#allocation124_spill] sm:$0xff] %v6544_v46  ;;  %2318 = vmatpush.msra.mxu1 %v6559_v0  ;;  %v6562_v46 = vld [vmem:[#allocation6 + $0x278] sm:$0xff] }
 0x500   :  { %8524 = vst [vmem:[#allocation125_spill] sm:$0xff] %v6547_v47  ;;  %2358 = vmatpush.msra.mxu3 %v6562_v46  ;;  %v6565_v47 = vld [vmem:[#allocation6 + $0x1f0] sm:$0xff] }
 0x501   :  { %8525 = vst [vmem:[#allocation126_spill] sm:$0xff] %v6550_v36  ;;  %2286 = vmatpush.msra.mxu0 %v6565_v47  ;;  %v6568_v36 = vld [vmem:[#allocation6 + $0x1f8] sm:$0xff] }
 0x502   :  { %8526 = vst [vmem:[#allocation127_spill] sm:$0xff] %v6553_v52  ;;  %2326 = vmatpush.msra.mxu2 %v6568_v36  ;;  %v6571_v52 = vld [vmem:[#allocation6 + $0x250] sm:$0xff] }
 0x503   :  { %8527 = vst [vmem:[#allocation128_spill] sm:$0xff] %v6556_v38  ;;  %2319 = vmatpush.msra.mxu1 %v6571_v52  ;;  %v6574_v38 = vld [vmem:[#allocation6 + $0x258] sm:$0xff] }
 0x504   :  { %8528 = vst [vmem:[#allocation129_spill] sm:$0xff] %v6559_v0  ;;  %2359 = vmatpush.msra.mxu3 %v6574_v38  ;;  %v6577_v0 = vld [vmem:[#allocation6 + $0x1d0] sm:$0xff] }
 0x505   :  { %8529 = vst [vmem:[#allocation130_spill] sm:$0xff] %v6562_v46  ;;  %2287 = vmatpush.msra.mxu0 %v6577_v0  ;;  %v6580_v46 = vld [vmem:[#allocation6 + $0x1d8] sm:$0xff] }
 0x506   :  { %8530 = vst [vmem:[#allocation131_spill] sm:$0xff] %v6565_v47  ;;  %2327 = vmatpush.msra.mxu2 %v6580_v46  ;;  %v6583_v47 = vld [vmem:[#allocation6 + $0x230] sm:$0xff] }
 0x507   :  { %8531 = vst [vmem:[#allocation132_spill] sm:$0xff] %v6568_v36  ;;  %2320 = vmatpush.msra.mxu1 %v6583_v47  ;;  %v6586_v36 = vld [vmem:[#allocation6 + $0x238] sm:$0xff] }
 0x508   :  { %8532 = vst [vmem:[#allocation133_spill] sm:$0xff] %v6571_v52  ;;  %2360 = vmatpush.msra.mxu3 %v6586_v36  ;;  %v6589_v52 = vld [vmem:[#allocation6 + $0x1b0] sm:$0xff] }
 0x509   :  { %8533 = vst [vmem:[#allocation134_spill] sm:$0xff] %v6574_v38  ;;  %2288 = vmatpush.msra.mxu0 %v6589_v52  ;;  %v6592_v38 = vld [vmem:[#allocation6 + $0x1b8] sm:$0xff] }
 0x50a   :  { %8534 = vst [vmem:[#allocation135_spill] sm:$0xff] %v6577_v0  ;;  %2328 = vmatpush.msra.mxu2 %v6592_v38  ;;  %v6595_v0 = vld [vmem:[#allocation6 + $0x210] sm:$0xff] }
 0x50b   :  { %8535 = vst [vmem:[#allocation136_spill] sm:$0xff] %v6580_v46  ;;  %2321 = vmatpush.msra.mxu1 %v6595_v0  ;;  %v6598_v46 = vld [vmem:[#allocation6 + $0x218] sm:$0xff] }
 0x50c   :  { %8536 = vst [vmem:[#allocation137_spill] sm:$0xff] %v6583_v47  ;;  %2361 = vmatpush.msra.mxu3 %v6598_v46  ;;  %v6601_v47 = vld [vmem:[#allocation6 + $0x190] sm:$0xff] }
 0x50d   :  { %8537 = vst [vmem:[#allocation138_spill] sm:$0xff] %v6586_v36  ;;  %2289 = vmatpush.msra.mxu0 %v6601_v47  ;;  %v6604_v36 = vld [vmem:[#allocation6 + $0x198] sm:$0xff] }
 0x50e   :  { %8538 = vst [vmem:[#allocation139_spill] sm:$0xff] %v6589_v52  ;;  %2329 = vmatpush.msra.mxu2 %v6604_v36  ;;  %v6607_v52 = vld [vmem:[#allocation6 + $0x170] sm:$0xff] }
 0x50f   :  { %8539 = vst [vmem:[#allocation140_spill] sm:$0xff] %v6592_v38  ;;  %2290 = vmatpush.msra.mxu0 %v6607_v52  ;;  %v6610_v38 = vld [vmem:[#allocation6 + $0x178] sm:$0xff] }
 0x510   :  { %8540 = vst [vmem:[#allocation141_spill] sm:$0xff] %v6595_v0  ;;  %2330 = vmatpush.msra.mxu2 %v6610_v38  ;;  %v6613_v0 = vld [vmem:[#allocation6 + $0x150] sm:$0xff] }
 0x511   :  { %8541 = vst [vmem:[#allocation142_spill] sm:$0xff] %v6598_v46  ;;  %2291 = vmatpush.msra.mxu0 %v6613_v0  ;;  %v6616_v46 = vld [vmem:[#allocation6 + $0x158] sm:$0xff] }
 0x512   :  { %8542 = vst [vmem:[#allocation143_spill] sm:$0xff] %v6601_v47  ;;  %2331 = vmatpush.msra.mxu2 %v6616_v46  ;;  %v6619_v47 = vld [vmem:[#allocation6 + $0x130] sm:$0xff] }
 0x513   :  { %8543 = vst [vmem:[#allocation144_spill] sm:$0xff] %v6604_v36  ;;  %2292 = vmatpush.msra.mxu0 %v6619_v47  ;;  %v6622_v36 = vld [vmem:[#allocation6 + $0x138] sm:$0xff] }
 0x514   :  { %8544 = vst [vmem:[#allocation145_spill] sm:$0xff] %v6607_v52  ;;  %2332 = vmatpush.msra.mxu2 %v6622_v36  ;;  %v6625_v52 = vld [vmem:[#allocation6 + $0x110] sm:$0xff]  ;;  %v1984_v53 = vpop.f32.mrf.mxu2 }
 0x515   :  { %8545 = vst [vmem:[#allocation146_spill] sm:$0xff] %v6610_v38  ;;  %2293 = vmatpush.msra.mxu0 %v6625_v52  ;;  %v6628_v38 = vld [vmem:[#allocation6 + $0x118] sm:$0xff] }
 0x516   :  { %8546 = vst [vmem:[#allocation147_spill] sm:$0xff] %v6613_v0  ;;  %2333 = vmatpush.msra.mxu2 %v6628_v38  ;;  %v6631_v0 = vld [vmem:[#allocation6 + $0xf0] sm:$0xff] }
 0x517   :  { %8547 = vst [vmem:[#allocation148_spill] sm:$0xff] %v6616_v46  ;;  %2294 = vmatpush.msra.mxu0 %v6631_v0  ;;  %v6634_v46 = vld [vmem:[#allocation6 + $0xf8] sm:$0xff] }
 0x518   :  { %8548 = vst [vmem:[#allocation149_spill] sm:$0xff] %v6619_v47  ;;  %2334 = vmatpush.msra.mxu2 %v6634_v46  ;;  %v6637_v47 = vld [vmem:[#allocation6 + $0xd0] sm:$0xff] }
 0x519   :  { %8549 = vst [vmem:[#allocation150_spill] sm:$0xff] %v6622_v36  ;;  %2295 = vmatpush.msra.mxu0 %v6637_v47  ;;  %v6640_v36 = vld [vmem:[#allocation6 + $0xd8] sm:$0xff] }
 0x51a   :  { %8550 = vst [vmem:[#allocation151_spill] sm:$0xff] %v6625_v52  ;;  %2335 = vmatpush.msra.mxu2 %v6640_v36  ;;  %v6643_v52 = vld [vmem:[#allocation6 + $0xb0] sm:$0xff] }
 0x51b   :  { %8551 = vst [vmem:[#allocation152_spill] sm:$0xff] %v6628_v38  ;;  %2296 = vmatpush.msra.mxu0 %v6643_v52  ;;  %v6646_v38 = vld [vmem:[#allocation6 + $0xb8] sm:$0xff] }
 0x51c   :  { %8552 = vst [vmem:[#allocation153_spill] sm:$0xff] %v6631_v0  ;;  %2336 = vmatpush.msra.mxu2 %v6646_v38  ;;  %v6649_v0 = vld [vmem:[#allocation6 + $0x90] sm:$0xff] }
 0x51d   :  { %8553 = vst [vmem:[#allocation154_spill] sm:$0xff] %v6634_v46  ;;  %2297 = vmatpush.msra.mxu0 %v6649_v0  ;;  %v6652_v46 = vld [vmem:[#allocation6 + $0x98] sm:$0xff] }
 0x51e   :  { %8554 = vst [vmem:[#allocation155_spill] sm:$0xff] %v6637_v47  ;;  %2337 = vmatpush.msra.mxu2 %v6652_v46  ;;  %v6655_v47 = vld [vmem:[#allocation6 + $0x70] sm:$0xff] }
 0x51f   :  { %8555 = vst [vmem:[#allocation156_spill] sm:$0xff] %v6640_v36  ;;  %2298 = vmatpush.msra.mxu0 %v6655_v47  ;;  %v6658_v36 = vld [vmem:[#allocation6 + $0x78] sm:$0xff] }
 0x520   :  { %8556 = vst [vmem:[#allocation157_spill] sm:$0xff] %v6643_v52  ;;  %2338 = vmatpush.msra.mxu2 %v6658_v36  ;;  %v6661_v52 = vld [vmem:[#allocation6 + $0x50] sm:$0xff] }
 0x521   :  { %8557 = vst [vmem:[#allocation158_spill] sm:$0xff] %v6646_v38  ;;  %2299 = vmatpush.msra.mxu0 %v6661_v52  ;;  %v6664_v38 = vld [vmem:[#allocation6 + $0x58] sm:$0xff] }
 0x522   :  { %8558 = vst [vmem:[#allocation159_spill] sm:$0xff] %v6649_v0  ;;  %2339 = vmatpush.msra.mxu2 %v6664_v38 }
 0x523   :  { %8559 = vst [vmem:[#allocation160_spill] sm:$0xff] %v6652_v46  ;;  %2300 = vmatpush.msra.mxu0 %v6063_v19  ;;  %v1964_v46 = vpop.f32.mrf.mxu1 }
 0x524   :  { %8560 = vst [vmem:[#allocation161_spill] sm:$0xff] %v6655_v47  ;;  %2340 = vmatpush.msra.mxu2 %v6066_v60  ;;  %v1944_v47 = vpop.f32.mrf.mxu0 }
 0x525   :  { %8561 = vst [vmem:[#allocation162_spill] sm:$0xff] %v6658_v36  ;;  %2301 = vmatpush.msra.mxu0 %v6069_v62  ;;  %v1945_v36 = vadd.f32 %v1944_v47, %v8409_v40 }
 0x526   :  { %8562 = vst [vmem:[#allocation163_spill] sm:$0xff] %v6661_v52  ;;  %2341 = vmatpush.msra.mxu2 %v6072_v61  ;;  %v1985_v52 = vadd.f32 %v1984_v53, %v4400_v39  ;;  %v2064_v61 = vpop.f32.mrf.mxu2 }
 0x527   :  { %8563 = vst [vmem:[#allocation164_spill] sm:$0xff] %v6664_v38  ;;  %v1965_v0 = vadd.f32 %v1964_v46, %v1945_v36  ;;  %v2065_v35 = vadd.f32 %v2064_v61, %v4406_v2  ;;  %v2084_v46 = vpop.f32.mrf.mxu3 }
 0x528   :  { %v2005_v63 = vadd.f32 %v2004_v6, %v1985_v52 }
 0x529   :  { %2828 = vtanh.f32 %v1965_v0  ;;  %v2085_v40 = vadd.f32 %v2084_v46, %v2065_v35  ;;  %v106_v0 = vpop.permute.xlu0 %105 }
 0x52a   :  { %2830 = vtanh.f32 %v2005_v63  ;;  %v147_v52 = vmul.f32 %v7788_v20, %v106_v0  ;;  %v146_v35 = vmul.f32 %v7789_v1, %v106_v0 }
 0x52b   :  { %v2044_v3 = vpop.f32.mrf.mxu1 }
 0x52c   :  { %v2024_v38 = vpop.f32.mrf.mxu0 }
 0x52d   :  { %v2025_v19 = vadd.f32 %v2024_v38, %v4402_v45 }
 0x52f   :  { %v2045_v60 = vadd.f32 %v2044_v3, %v2025_v19  ;;  %v2829_v62 = vpop.eup %2828 }
 0x530   :  { %v2091_v9 = vmul.f32 0.5, %v2829_v62  ;;  %v2831_v47 = vpop.eup %2830  ;;  %v188_v62 = vadd.f32 %v4187_v23, %v147_v52 }
 0x531   :  { %2832 = vtanh.f32 %v2045_v60  ;;  %v2093_v36 = vmul.f32 0.5, %v2831_v47 }
 0x532   :  { %v2092_v53 = vadd.f32 0.5, %v2091_v9  ;;  %2834 = vtanh.f32 %v2085_v40  ;;  %v187_v40 = vadd.f32 %v7790_v43, %v146_v35  ;;  %v8584_v35 = vld [vmem:[#allocation18_spill] sm:$0xff] }
 0x533   :  { %v2094_v6 = vadd.f32 0.5, %v2093_v36  ;;  %v2144_v19 = vpop.f32.mrf.mxu1 }
 0x534   :  { %v2188_v47 = vadd.f32 %v2144_v19, %v188_v62 }
 0x535   :  { %v2097_v63 = vmul.f32 %v2094_v6, %v6081_v48  ;;  %v149_v6 = vmul.f32 %v4203_v29, %v106_v0 }
 0x537   :  { %v2833_v25 = vpop.eup %2832  ;;  %v190_v19 = vadd.f32 %v4217_v16, %v149_v6  ;;  %v8593_v6 = vld [vmem:[#allocation21_spill] sm:$0xff] }
 0x538   :  { %v2098_v3 = vmul.f32 %v2833_v25, %v2092_v53  ;;  %v2835_v60 = vpop.eup %2834  ;;  %v148_v25 = vmul.f32 %v7791_v24, %v106_v0 }
 0x539   :  { %v2095_v61 = vmul.f32 0.5, %v2835_v60  ;;  %v2124_v48 = vpop.f32.mrf.mxu0 }
 0x53a   :  { %v6677_v38 = vadd.f32 %v2098_v3, %v2097_v63  ;;  %v2187_v53 = vadd.f32 %v2124_v48, %v187_v40  ;;  %v2184_v63 = vpop.f32.mrf.mxu3  ;;  %v189_v3 = vadd.f32 %v4209_v27, %v148_v25  ;;  %v8588_v40 = vld [vmem:[#allocation72_spill] sm:$0xff]  ;;  %v8590_v48 = vld [vmem:[#allocation73_spill] sm:$0xff]  ;;  %v8591_v25 = vld [vmem:[#allocation22_spill] sm:$0xff] }
 0x53b   :  { %v2096_v9 = vadd.f32 0.5, %v2095_v61 }
 0x53c   :  { %2836 = vtanh.f32 %v6677_v38 }
 0x53d   :  { %2838 = vtanh.f32 %v2188_v47  ;;  %v8585_v47 = vld [vmem:[#allocation71_spill] sm:$0xff] }
 0x53e   :  { %2840 = vtanh.f32 %v2187_v53  ;;  %v8592_v53 = vld [vmem:[#allocation74_spill] sm:$0xff] }
 0x540   :  { %v2164_v60 = vpop.f32.mrf.mxu2 }
 0x541   :  { %v2189_v62 = vadd.f32 %v2164_v60, %v189_v3  ;;  %v8596_v3 = vld [vmem:[#allocation76_spill] sm:$0xff]  ;;  %v8598_v60 = vld [vmem:[#allocation77_spill] sm:$0xff] }
 0x542   :  { %v2837_v46 = vpop.eup %2836 }
 0x543   :  { %v2101_v36 = vmul.f32 %v2837_v46, %v2096_v9  ;;  %v2839_v52 = vpop.eup %2838  ;;  %2842 = vtanh.f32 %v2189_v62  ;;  %v8586_v9 = vld [vmem:[#allocation20_spill] sm:$0xff]  ;;  %v8587_v46 = vld [vmem:[#allocation17_spill] sm:$0xff]  ;;  %v8599_v62 = vld [vmem:[#allocation26_spill] sm:$0xff] }
 0x544   :  { %v2197_v0 = vmul.f32 0.5, %v2839_v52  ;;  %v2841_v61 = vpop.eup %2840  ;;  %v8594_v52 = vld [vmem:[#allocation75_spill] sm:$0xff] }
 0x545   :  { %2242 = vmatmul.f32.vlgmr.msrb.gmra.mxu1 %v2101_v36  ;;  %2282 = vmatmul.f32.vlgmr.msrb.gmra.mxu3 %v2101_v36 }
 0x546   :  { %2406 = vmatpush.msrb.mxu1 %v6089_v51  ;;  %2446 = vmatpush.msrb.mxu3 %v6092_v54  ;;  %v2190_v51 = vadd.f32 %v2184_v63, %v190_v19  ;;  %v2195_v54 = vmul.f32 0.5, %v2841_v61  ;;  %v8595_v63 = vld [vmem:[#allocation24_spill] sm:$0xff]  ;;  %v8597_v19 = vld [vmem:[#allocation23_spill] sm:$0xff] }
 0x547   :  { %v8602_v61 = vld [vmem:[#allocation79_spill] sm:$0xff] }
 0x548   :  { %2407 = vmatpush.msrb.mxu1 %v6096_v57  ;;  %2447 = vmatpush.msrb.mxu3 %v6099_v59  ;;  %v2198_v57 = vadd.f32 0.5, %v2197_v0  ;;  %2844 = vtanh.f32 %v2190_v51  ;;  %v2196_v59 = vadd.f32 0.5, %v2195_v54  ;;  %v8600_v0 = vld [vmem:[#allocation78_spill] sm:$0xff]  ;;  %v8601_v51 = vld [vmem:[#allocation25_spill] sm:$0xff]  ;;  %v8603_v54 = vld [vmem:[#allocation28_spill] sm:$0xff] }
 0x54a   :  { %2408 = vmatpush.msrb.mxu1 %v6103_v22  ;;  %2448 = vmatpush.msrb.mxu3 %v6106_v15  ;;  %v2843_v22 = vpop.eup %2842  ;;  %v2201_v15 = vmul.f32 %v2198_v57, %v6140_v4  ;;  %v8566_v4 = vld [vmem:[#allocation60_spill] sm:$0xff] }
 0x54b   :  { %v8604_v57 = vld [vmem:[#allocation80_spill] sm:$0xff] }
 0x54c   :  { %2409 = vmatpush.msrb.mxu1 %v6109_v33  ;;  %2449 = vmatpush.msrb.mxu3 %v6112_v31  ;;  %v2202_v33 = vmul.f32 %v2843_v22, %v2196_v59  ;;  %v8605_v59 = vld [vmem:[#allocation27_spill] sm:$0xff]  ;;  %v8606_v22 = vld [vmem:[#allocation81_spill] sm:$0xff] }
 0x54d   :  { %2322 = vmatmul.f32.vlgmr.msra.gmra.mxu1 %v2101_v36  ;;  %2362 = vmatmul.f32.vlgmr.msra.gmra.mxu3 %v2101_v36  ;;  %v8589_v36 = vld [vmem:[#allocation19_spill] sm:$0xff] }
 0x54e   :  { %2410 = vmatpush.msrb.mxu1 %v6115_v13  ;;  %2450 = vmatpush.msrb.mxu3 %v6118_v5  ;;  %v2845_v31 = vpop.eup %2844  ;;  %v6704_v13 = vadd.f32 %v2202_v33, %v2201_v15  ;;  %v8607_v15 = vld [vmem:[#allocation30_spill] sm:$0xff] }
 0x54f   :  { %v2199_v5 = vmul.f32 0.5, %v2845_v31  ;;  %v8608_v33 = vld [vmem:[#allocation82_spill] sm:$0xff]  ;;  %v8609_v31 = vld [vmem:[#allocation29_spill] sm:$0xff] }
 0x550   :  { %2411 = vmatpush.msrb.mxu1 %v6121_v37  ;;  %2451 = vmatpush.msrb.mxu3 %v6124_v10  ;;  %2846 = vtanh.f32 %v6704_v13 }
 0x551   :  { %v2200_v37 = vadd.f32 0.5, %v2199_v5  ;;  %v8610_v5 = vld [vmem:[#allocation83_spill] sm:$0xff] }
 0x552   :  { %2412 = vmatpush.msrb.mxu1 %v6127_v28  ;;  %2452 = vmatpush.msrb.mxu3 %v6130_v42  ;;  %v3450_v42 = vld [vmem:[#allocation4 + $0x1f0] sm:$0xff] }
 0x554   :  { %2413 = vmatpush.msrb.mxu1 %v6134_v44  ;;  %2453 = vmatpush.msrb.mxu3 %v6137_v58  ;;  %v8564_v44 = vld [vmem:[#allocation58_spill] sm:$0xff]  ;;  %v8565_v58 = vld [vmem:[#allocation59_spill] sm:$0xff] }
 0x556   :  { %2414 = vmatpush.msrb.mxu1 %v6142_v34  ;;  %2454 = vmatpush.msrb.mxu3 %v6145_v14  ;;  %v2847_v10 = vpop.eup %2846  ;;  %v8567_v34 = vld [vmem:[#allocation61_spill] sm:$0xff]  ;;  %v8568_v14 = vld [vmem:[#allocation62_spill] sm:$0xff] }
 0x557   :  { %v6715_v28 = vmul.f32 %v2847_v10, %v2200_v37  ;;  %v8611_v37 = vld [vmem:[#allocation32_spill] sm:$0xff] }
 0x558   :  { %2415 = vmatpush.msrb.mxu1 %v6149_v11  ;;  %2455 = vmatpush.msrb.mxu3 %v6152_v18  ;;  %v8569_v11 = vld [vmem:[#allocation63_spill] sm:$0xff]  ;;  %v8570_v18 = vld [vmem:[#allocation64_spill] sm:$0xff] }
 0x559   :  { %2222 = vmatmul.f32.vlgmr.msrb.gmra.mxu0 %v6715_v28  ;;  %2262 = vmatmul.f32.vlgmr.msrb.gmra.mxu2 %v6715_v28  ;;  %v8612_v10 = vld [vmem:[#allocation84_spill] sm:$0xff] }
 0x55a   :  { %2416 = vmatpush.msrb.mxu1 %v6155_v56  ;;  %2456 = vmatpush.msrb.mxu3 %v6158_v32  ;;  %v8571_v56 = vld [vmem:[#allocation65_spill] sm:$0xff]  ;;  %v8572_v32 = vld [vmem:[#allocation10_spill] sm:$0xff] }
 0x55b   :  { %2386 = vmatpush.msrb.mxu0 %v6177_v17  ;;  %2426 = vmatpush.msrb.mxu2 %v3450_v42  ;;  %v8577_v17 = vld [vmem:[#allocation68_spill] sm:$0xff]  ;;  %v8613_v42 = vld [vmem:[#allocation31_spill] sm:$0xff] }
 0x55c   :  { %2417 = vmatpush.msrb.mxu1 %v6161_v50  ;;  %2457 = vmatpush.msrb.mxu3 %v6164_v30  ;;  %v8573_v50 = vld [vmem:[#allocation66_spill] sm:$0xff]  ;;  %v8574_v30 = vld [vmem:[#allocation11_spill] sm:$0xff] }
 0x55d   :  { %2387 = vmatpush.msrb.mxu0 %v6187_v41  ;;  %2427 = vmatpush.msrb.mxu2 %v6190_v12  ;;  %v8580_v41 = vld [vmem:[#allocation69_spill] sm:$0xff]  ;;  %v8581_v12 = vld [vmem:[#allocation70_spill] sm:$0xff] }
 0x55e   :  { %2418 = vmatpush.msrb.mxu1 %v6169_v49  ;;  %2458 = vmatpush.msrb.mxu3 %v6172_v7  ;;  %v8575_v49 = vld [vmem:[#allocation12_spill] sm:$0xff]  ;;  %v8576_v7 = vld [vmem:[#allocation67_spill] sm:$0xff] }
 0x55f   :  { %2388 = vmatpush.msrb.mxu0 %v8564_v44  ;;  %2428 = vmatpush.msrb.mxu2 %v8565_v58  ;;  %v8614_v44 = vld [vmem:[#allocation87_spill] sm:$0xff]  ;;  %v8615_v58 = vld [vmem:[#allocation34_spill] sm:$0xff] }
 0x560   :  { %2419 = vmatpush.msrb.mxu1 %v6181_v55  ;;  %2459 = vmatpush.msrb.mxu3 %v6184_v26  ;;  %v8578_v55 = vld [vmem:[#allocation13_spill] sm:$0xff]  ;;  %v8579_v26 = vld [vmem:[#allocation14_spill] sm:$0xff] }
 0x561   :  { %2389 = vmatpush.msrb.mxu0 %v8568_v14  ;;  %2429 = vmatpush.msrb.mxu2 %v8569_v11  ;;  %v8618_v14 = vld [vmem:[#allocation91_spill] sm:$0xff]  ;;  %v8619_v11 = vld [vmem:[#allocation36_spill] sm:$0xff] }
 0x562   :  { %2420 = vmatpush.msrb.mxu1 %v6193_v21  ;;  %2460 = vmatpush.msrb.mxu3 %v6196_v8  ;;  %v8582_v21 = vld [vmem:[#allocation15_spill] sm:$0xff]  ;;  %v8583_v8 = vld [vmem:[#allocation16_spill] sm:$0xff] }
 0x563   :  { %2302 = vmatmul.f32.vlgmr.msra.gmra.mxu0 %v6715_v28  ;;  %2342 = vmatmul.f32.vlgmr.msra.gmra.mxu2 %v6715_v28 }
 0x564   :  { %2421 = vmatpush.msrb.mxu1 %v8566_v4  ;;  %2461 = vmatpush.msrb.mxu3 %v8567_v34  ;;  %v8616_v4 = vld [vmem:[#allocation88_spill] sm:$0xff]  ;;  %v8617_v34 = vld [vmem:[#allocation33_spill] sm:$0xff] }
 0x565   :  { %2422 = vmatmul.f32.vlgmr.msrb.gmra.mxu1 %v6715_v28  ;;  %2462 = vmatmul.f32.vlgmr.msrb.gmra.mxu3 %v6715_v28 }
 0x566   :  { %2390 = vmatpush.msrb.mxu0 %v8570_v18  ;;  %2430 = vmatpush.msrb.mxu2 %v8571_v56  ;;  %v8620_v18 = vld [vmem:[#allocation92_spill] sm:$0xff]  ;;  %v8621_v56 = vld [vmem:[#allocation35_spill] sm:$0xff] }
 0x567   :  { %2505 = vmatpush.msra.mxu1 %v8572_v32  ;;  %2545 = vmatpush.msra.mxu3 %v8573_v50  ;;  %v8622_v32 = vld [vmem:[#allocation95_spill] sm:$0xff]  ;;  %v8623_v50 = vld [vmem:[#allocation38_spill] sm:$0xff] }
 0x568   :  { %2391 = vmatpush.msrb.mxu0 %v8574_v30  ;;  %2431 = vmatpush.msrb.mxu2 %v8575_v49  ;;  %v8624_v30 = vld [vmem:[#allocation96_spill] sm:$0xff]  ;;  %v8625_v49 = vld [vmem:[#allocation37_spill] sm:$0xff] }
 0x569   :  { %2506 = vmatpush.msra.mxu1 %v8576_v7  ;;  %2546 = vmatpush.msra.mxu3 %v8577_v17  ;;  %v8627_v7 = vld [vmem:[#allocation40_spill] sm:$0xff] }
 0x56a   :  { %2392 = vmatpush.msrb.mxu0 %v8578_v55  ;;  %2432 = vmatpush.msrb.mxu2 %v8579_v26  ;;  %v8628_v17 = vld [vmem:[#allocation100_spill] sm:$0xff]  ;;  %v8629_v55 = vld [vmem:[#allocation39_spill] sm:$0xff]  ;;  %v8630_v26 = vld [vmem:[#allocation41_spill] sm:$0xff] }
 0x56b   :  { %2507 = vmatpush.msra.mxu1 %v8580_v41  ;;  %2547 = vmatpush.msra.mxu3 %v8581_v12  ;;  %v8631_v41 = vld [vmem:[#allocation42_spill] sm:$0xff]  ;;  %v8632_v12 = vld [vmem:[#allocation107_spill] sm:$0xff] }
 0x56c   :  { %2393 = vmatpush.msrb.mxu0 %v8582_v21  ;;  %2433 = vmatpush.msrb.mxu2 %v8583_v8  ;;  %v8633_v21 = vld [vmem:[#allocation45_spill] sm:$0xff]  ;;  %v8634_v8 = vld [vmem:[#allocation103_spill] sm:$0xff] }
 0x56d   :  { %2508 = vmatpush.msra.mxu1 %v8584_v35  ;;  %2548 = vmatpush.msra.mxu3 %v8585_v47  ;;  %v8635_v35 = vld [vmem:[#allocation43_spill] sm:$0xff]  ;;  %v8636_v47 = vld [vmem:[#allocation104_spill] sm:$0xff] }
 0x56e   :  { %2394 = vmatpush.msrb.mxu0 %v8586_v9  ;;  %2434 = vmatpush.msrb.mxu2 %v8587_v46  ;;  %v8637_v9 = vld [vmem:[#allocation44_spill] sm:$0xff]  ;;  %v8638_v46 = vld [vmem:[#allocation46_spill] sm:$0xff] }
 0x56f   :  { %2509 = vmatpush.msra.mxu1 %v8588_v40  ;;  %2549 = vmatpush.msra.mxu3 %v8589_v36  ;;  %v8639_v40 = vld [vmem:[#allocation47_spill] sm:$0xff]  ;;  %v8640_v36 = vld [vmem:[#allocation48_spill] sm:$0xff] }
 0x570   :  { %2395 = vmatpush.msrb.mxu0 %v8590_v48  ;;  %2435 = vmatpush.msrb.mxu2 %v8591_v25  ;;  %v8641_v48 = vld [vmem:[#allocation49_spill] sm:$0xff]  ;;  %v8642_v25 = vld [vmem:[#allocation50_spill] sm:$0xff] }
 0x571   :  { %2510 = vmatpush.msra.mxu1 %v8592_v53  ;;  %2550 = vmatpush.msra.mxu3 %v8593_v6  ;;  %v8643_v53 = vld [vmem:[#allocation51_spill] sm:$0xff]  ;;  %v8644_v6 = vld [vmem:[#allocation52_spill] sm:$0xff] }
 0x572   :  { %2396 = vmatpush.msrb.mxu0 %v8594_v52  ;;  %2436 = vmatpush.msrb.mxu2 %v8595_v63  ;;  %v8645_v52 = vld [vmem:[#allocation53_spill] sm:$0xff]  ;;  %v8646_v63 = vld [vmem:[#allocation54_spill] sm:$0xff] }
 0x573   :  { %2511 = vmatpush.msra.mxu1 %v8596_v3  ;;  %2551 = vmatpush.msra.mxu3 %v8597_v19  ;;  %v8647_v3 = vld [vmem:[#allocation55_spill] sm:$0xff]  ;;  %v8648_v19 = vld [vmem:[#allocation56_spill] sm:$0xff] }
 0x574   :  { %2397 = vmatpush.msrb.mxu0 %v8598_v60  ;;  %2437 = vmatpush.msrb.mxu2 %v8599_v62  ;;  %v8649_v60 = vld [vmem:[#allocation85_spill] sm:$0xff]  ;;  %v8650_v62 = vld [vmem:[#allocation86_spill] sm:$0xff] }
 0x575   :  { %2512 = vmatpush.msra.mxu1 %v8600_v0  ;;  %2552 = vmatpush.msra.mxu3 %v8601_v51  ;;  %v8651_v0 = vld [vmem:[#allocation89_spill] sm:$0xff]  ;;  %v8652_v51 = vld [vmem:[#allocation90_spill] sm:$0xff] }
 0x576   :  { %2398 = vmatpush.msrb.mxu0 %v8602_v61  ;;  %2438 = vmatpush.msrb.mxu2 %v8603_v54  ;;  %v8653_v61 = vld [vmem:[#allocation93_spill] sm:$0xff]  ;;  %v8654_v54 = vld [vmem:[#allocation94_spill] sm:$0xff] }
 0x577   :  { %2513 = vmatpush.msra.mxu1 %v8604_v57  ;;  %2553 = vmatpush.msra.mxu3 %v8605_v59  ;;  %v8655_v57 = vld [vmem:[#allocation97_spill] sm:$0xff]  ;;  %v8656_v59 = vld [vmem:[#allocation98_spill] sm:$0xff] }
 0x578   :  { %2399 = vmatpush.msrb.mxu0 %v8606_v22  ;;  %2439 = vmatpush.msrb.mxu2 %v8607_v15  ;;  %v8657_v22 = vld [vmem:[#allocation101_spill] sm:$0xff]  ;;  %v8658_v15 = vld [vmem:[#allocation102_spill] sm:$0xff] }
 0x579   :  { %2514 = vmatpush.msra.mxu1 %v8608_v33  ;;  %2554 = vmatpush.msra.mxu3 %v8609_v31  ;;  %v8659_v33 = vld [vmem:[#allocation105_spill] sm:$0xff]  ;;  %v8660_v31 = vld [vmem:[#allocation106_spill] sm:$0xff] }
 0x57a   :  { %2400 = vmatpush.msrb.mxu0 %v8610_v5  ;;  %2440 = vmatpush.msrb.mxu2 %v8611_v37  ;;  %v8661_v5 = vld [vmem:[#allocation108_spill] sm:$0xff]  ;;  %v8662_v37 = vld [vmem:[#allocation109_spill] sm:$0xff] }
 0x57b   :  { %2515 = vmatpush.msra.mxu1 %v8612_v10  ;;  %2555 = vmatpush.msra.mxu3 %v8613_v42  ;;  %v8663_v10 = vld [vmem:[#allocation110_spill] sm:$0xff]  ;;  %v8664_v42 = vld [vmem:[#allocation111_spill] sm:$0xff] }
 0x57c   :  { %2401 = vmatpush.msrb.mxu0 %v8614_v44  ;;  %2441 = vmatpush.msrb.mxu2 %v8615_v58  ;;  %v8665_v44 = vld [vmem:[#allocation112_spill] sm:$0xff]  ;;  %v8666_v58 = vld [vmem:[#allocation113_spill] sm:$0xff] }
 0x57d   :  { %2402 = vmatmul.f32.vlgmr.msrb.gmra.mxu0 %v6715_v28  ;;  %2442 = vmatmul.f32.vlgmr.msrb.gmra.mxu2 %v6715_v28  ;;  %v8626_v28 = vld [vmem:[#allocation99_spill] sm:$0xff] }
 0x57e   :  { %2516 = vmatpush.msra.mxu1 %v8616_v4  ;;  %2556 = vmatpush.msra.mxu3 %v8617_v34  ;;  %v8667_v4 = vld [vmem:[#allocation114_spill] sm:$0xff]  ;;  %v8668_v34 = vld [vmem:[#allocation115_spill] sm:$0xff] }
 0x57f   :  { %2485 = vmatpush.msra.mxu0 %v8618_v14  ;;  %2525 = vmatpush.msra.mxu2 %v8619_v11  ;;  %v8669_v14 = vld [vmem:[#allocation116_spill] sm:$0xff]  ;;  %v8670_v11 = vld [vmem:[#allocation117_spill] sm:$0xff] }
 0x580   :  { %2517 = vmatpush.msra.mxu1 %v8620_v18  ;;  %2557 = vmatpush.msra.mxu3 %v8621_v56  ;;  %v8671_v18 = vld [vmem:[#allocation118_spill] sm:$0xff]  ;;  %v8672_v56 = vld [vmem:[#allocation119_spill] sm:$0xff] }
 0x581   :  { %2486 = vmatpush.msra.mxu0 %v8622_v32  ;;  %2526 = vmatpush.msra.mxu2 %v8623_v50  ;;  %v8673_v32 = vld [vmem:[#allocation120_spill] sm:$0xff]  ;;  %v8674_v50 = vld [vmem:[#allocation123_spill] sm:$0xff] }
 0x582   :  { %2518 = vmatpush.msra.mxu1 %v8624_v30  ;;  %2558 = vmatpush.msra.mxu3 %v8625_v49  ;;  %v8675_v30 = vld [vmem:[#allocation122_spill] sm:$0xff]  ;;  %v8676_v49 = vld [vmem:[#allocation121_spill] sm:$0xff] }
 0x583   :  { %2487 = vmatpush.msra.mxu0 %v8626_v28  ;;  %2527 = vmatpush.msra.mxu2 %v8627_v7  ;;  %v8677_v28 = vld [vmem:[#allocation124_spill] sm:$0xff]  ;;  %v8678_v7 = vld [vmem:[#allocation125_spill] sm:$0xff] }
 0x584   :  { %2519 = vmatpush.msra.mxu1 %v8628_v17  ;;  %2559 = vmatpush.msra.mxu3 %v8629_v55  ;;  %v8679_v17 = vld [vmem:[#allocation126_spill] sm:$0xff]  ;;  %v8680_v55 = vld [vmem:[#allocation127_spill] sm:$0xff] }
 0x585   :  { %2488 = vmatpush.msra.mxu0 %v8630_v26  ;;  %2528 = vmatpush.msra.mxu2 %v8631_v41  ;;  %v8681_v26 = vld [vmem:[#allocation128_spill] sm:$0xff]  ;;  %v8682_v41 = vld [vmem:[#allocation129_spill] sm:$0xff] }
 0x586   :  { %2520 = vmatpush.msra.mxu1 %v8632_v12  ;;  %2560 = vmatpush.msra.mxu3 %v8633_v21  ;;  %v8683_v12 = vld [vmem:[#allocation130_spill] sm:$0xff]  ;;  %v8684_v21 = vld [vmem:[#allocation131_spill] sm:$0xff] }
 0x587   :  { %2489 = vmatpush.msra.mxu0 %v8636_v47  ;;  %2529 = vmatpush.msra.mxu2 %v8637_v9  ;;  %v8687_v47 = vld [vmem:[#allocation134_spill] sm:$0xff]  ;;  %v8688_v9 = vld [vmem:[#allocation135_spill] sm:$0xff] }
 0x588   :  { %2585 = vmatpush.msrb.mxu1 %v8634_v8  ;;  %2625 = vmatpush.msrb.mxu3 %v8635_v35  ;;  %v8685_v8 = vld [vmem:[#allocation132_spill] sm:$0xff]  ;;  %v8686_v35 = vld [vmem:[#allocation133_spill] sm:$0xff] }
 0x589   :  { %2490 = vmatpush.msra.mxu0 %v8640_v36  ;;  %2530 = vmatpush.msra.mxu2 %v8641_v48  ;;  %v8691_v36 = vld [vmem:[#allocation138_spill] sm:$0xff]  ;;  %v8692_v48 = vld [vmem:[#allocation139_spill] sm:$0xff] }
 0x58a   :  { %2586 = vmatpush.msrb.mxu1 %v8638_v46  ;;  %2626 = vmatpush.msrb.mxu3 %v8639_v40  ;;  %v8689_v46 = vld [vmem:[#allocation136_spill] sm:$0xff]  ;;  %v8690_v40 = vld [vmem:[#allocation137_spill] sm:$0xff] }
 0x58b   :  { %2491 = vmatpush.msra.mxu0 %v8644_v6  ;;  %2531 = vmatpush.msra.mxu2 %v8645_v52  ;;  %v8695_v6 = vld [vmem:[#allocation142_spill] sm:$0xff]  ;;  %v8696_v52 = vld [vmem:[#allocation143_spill] sm:$0xff] }
 0x58c   :  { %2587 = vmatpush.msrb.mxu1 %v8642_v25  ;;  %2627 = vmatpush.msrb.mxu3 %v8643_v53  ;;  %v8693_v25 = vld [vmem:[#allocation140_spill] sm:$0xff]  ;;  %v8694_v53 = vld [vmem:[#allocation141_spill] sm:$0xff] }
 0x58d   :  { %2492 = vmatpush.msra.mxu0 %v8648_v19  ;;  %2532 = vmatpush.msra.mxu2 %v8649_v60  ;;  %v8699_v19 = vld [vmem:[#allocation146_spill] sm:$0xff]  ;;  %v8700_v60 = vld [vmem:[#allocation147_spill] sm:$0xff] }
 0x58e   :  { %2588 = vmatpush.msrb.mxu1 %v8646_v63  ;;  %2628 = vmatpush.msrb.mxu3 %v8647_v3  ;;  %v8697_v63 = vld [vmem:[#allocation144_spill] sm:$0xff]  ;;  %v8698_v3 = vld [vmem:[#allocation145_spill] sm:$0xff] }
 0x58f   :  { %2493 = vmatpush.msra.mxu0 %v8652_v51  ;;  %2533 = vmatpush.msra.mxu2 %v8653_v61  ;;  %v8703_v51 = vld [vmem:[#allocation150_spill] sm:$0xff]  ;;  %v8704_v61 = vld [vmem:[#allocation151_spill] sm:$0xff] }
 0x590   :  { %2589 = vmatpush.msrb.mxu1 %v8650_v62  ;;  %2629 = vmatpush.msrb.mxu3 %v8651_v0  ;;  %v8701_v62 = vld [vmem:[#allocation148_spill] sm:$0xff]  ;;  %v8702_v0 = vld [vmem:[#allocation149_spill] sm:$0xff] }
 0x591   :  { %2494 = vmatpush.msra.mxu0 %v8656_v59  ;;  %2534 = vmatpush.msra.mxu2 %v8657_v22  ;;  %v8707_v59 = vld [vmem:[#allocation154_spill] sm:$0xff]  ;;  %v8708_v22 = vld [vmem:[#allocation155_spill] sm:$0xff] }
 0x592   :  { %2590 = vmatpush.msrb.mxu1 %v8654_v54  ;;  %2630 = vmatpush.msrb.mxu3 %v8655_v57  ;;  %v8705_v54 = vld [vmem:[#allocation152_spill] sm:$0xff]  ;;  %v8706_v57 = vld [vmem:[#allocation153_spill] sm:$0xff] }
 0x593   :  { %2495 = vmatpush.msra.mxu0 %v8660_v31  ;;  %2535 = vmatpush.msra.mxu2 %v8661_v5  ;;  %v8711_v31 = vld [vmem:[#allocation158_spill] sm:$0xff]  ;;  %v8712_v5 = vld [vmem:[#allocation159_spill] sm:$0xff] }
 0x594   :  { %2591 = vmatpush.msrb.mxu1 %v8658_v15  ;;  %2631 = vmatpush.msrb.mxu3 %v8659_v33  ;;  %v8709_v15 = vld [vmem:[#allocation156_spill] sm:$0xff]  ;;  %v8710_v33 = vld [vmem:[#allocation157_spill] sm:$0xff] }
 0x595   :  { %2496 = vmatpush.msra.mxu0 %v8664_v42  ;;  %2536 = vmatpush.msra.mxu2 %v8665_v44  ;;  %v8715_v42 = vld [vmem:[#allocation162_spill] sm:$0xff]  ;;  %v8716_v44 = vld [vmem:[#allocation163_spill] sm:$0xff] }
 0x596   :  { %2592 = vmatpush.msrb.mxu1 %v8662_v37  ;;  %2632 = vmatpush.msrb.mxu3 %v8663_v10  ;;  %v8713_v37 = vld [vmem:[#allocation160_spill] sm:$0xff]  ;;  %v8714_v10 = vld [vmem:[#allocation161_spill] sm:$0xff] }
 0x597   :  { %2497 = vmatpush.msra.mxu0 %v8668_v34  ;;  %2537 = vmatpush.msra.mxu2 %v8669_v14  ;;  %v3452_v34 = vld [vmem:[#allocation6 + $0x38] sm:$0xff]  ;;  %v3453_v14 = vld [vmem:[#allocation6 + $0x10] sm:$0xff] }
 0x598   :  { %2593 = vmatpush.msrb.mxu1 %v8666_v58  ;;  %2633 = vmatpush.msrb.mxu3 %v8667_v4  ;;  %v8717_v58 = vld [vmem:[#allocation164_spill] sm:$0xff] }
 0x599   :  { %2498 = vmatpush.msra.mxu0 %v8672_v56  ;;  %2538 = vmatpush.msra.mxu2 %v8673_v32  ;;  %v3451_v4 = vld [vmem:[#allocation6 + $0x30] sm:$0xff]  ;;  %v8718_v32 = vld [vmem:[#allocation57_spill] sm:$0xff] }
 0x59a   :  { %2594 = vmatpush.msrb.mxu1 %v8670_v11  ;;  %2634 = vmatpush.msrb.mxu3 %v8671_v18  ;;  %v3454_v11 = vld [vmem:[#allocation6 + $0x18] sm:$0xff] }
 0x59b   :  { %2499 = vmatpush.msra.mxu0 %v8676_v49  ;;  %2539 = vmatpush.msra.mxu2 %v8677_v28 }
 0x59c   :  { %2595 = vmatpush.msrb.mxu1 %v8674_v50  ;;  %2635 = vmatpush.msrb.mxu3 %v8675_v30 }
 0x59d   :  { %2500 = vmatpush.msra.mxu0 %v8680_v55  ;;  %2540 = vmatpush.msra.mxu2 %v8681_v26 }
 0x59e   :  { %2596 = vmatpush.msrb.mxu1 %v8678_v7  ;;  %2636 = vmatpush.msrb.mxu3 %v8679_v17 }
 0x59f   :  { %2565 = vmatpush.msrb.mxu0 %v8684_v21  ;;  %2605 = vmatpush.msrb.mxu2 %v8685_v8 }
 0x5a0   :  { %2597 = vmatpush.msrb.mxu1 %v8682_v41  ;;  %2637 = vmatpush.msrb.mxu3 %v8683_v12 }
 0x5a1   :  { %2566 = vmatpush.msrb.mxu0 %v8688_v9  ;;  %2606 = vmatpush.msrb.mxu2 %v8689_v46 }
 0x5a2   :  { %2598 = vmatpush.msrb.mxu1 %v8686_v35  ;;  %2638 = vmatpush.msrb.mxu3 %v8687_v47 }
 0x5a3   :  { %2567 = vmatpush.msrb.mxu0 %v8692_v48  ;;  %2607 = vmatpush.msrb.mxu2 %v8693_v25  ;;  %v111_v48 = vpop.permute.xlu1 %110 }
 0x5a4   :  { %2599 = vmatpush.msrb.mxu1 %v8690_v40  ;;  %2639 = vmatpush.msrb.mxu3 %v8691_v36 }
 0x5a5   :  { %2568 = vmatpush.msrb.mxu0 %v8696_v52  ;;  %2608 = vmatpush.msrb.mxu2 %v8697_v63  ;;  %v151_v52 = vmul.f32 %v7788_v20, %v111_v48 }
 0x5a6   :  { %2600 = vmatpush.msrb.mxu1 %v8694_v53  ;;  %2640 = vmatpush.msrb.mxu3 %v8695_v6 }
 0x5a7   :  { %2569 = vmatpush.msrb.mxu0 %v8698_v3  ;;  %2609 = vmatpush.msrb.mxu2 %v8699_v19 }
 0x5a9   :  { %2570 = vmatpush.msrb.mxu0 %v8700_v60  ;;  %2610 = vmatpush.msrb.mxu2 %v8701_v62 }
 0x5ab   :  { %2571 = vmatpush.msrb.mxu0 %v8702_v0  ;;  %2611 = vmatpush.msrb.mxu2 %v8703_v51  ;;  %v192_v0 = vadd.f32 %v4187_v23, %v151_v52 }
 0x5ad   :  { %2572 = vmatpush.msrb.mxu0 %v8704_v61  ;;  %2612 = vmatpush.msrb.mxu2 %v8705_v54  ;;  %v150_v61 = vmul.f32 %v7789_v1, %v111_v48 }
 0x5af   :  { %2573 = vmatpush.msrb.mxu0 %v8706_v57  ;;  %2613 = vmatpush.msrb.mxu2 %v8707_v59  ;;  %v191_v20 = vadd.f32 %v7790_v43, %v150_v61 }
 0x5b1   :  { %2574 = vmatpush.msrb.mxu0 %v8708_v22  ;;  %2614 = vmatpush.msrb.mxu2 %v8709_v15  ;;  %v152_v15 = vmul.f32 %v7791_v24, %v111_v48 }
 0x5b3   :  { %2575 = vmatpush.msrb.mxu0 %v8710_v33  ;;  %2615 = vmatpush.msrb.mxu2 %v8711_v31  ;;  %v153_v31 = vmul.f32 %v4203_v29, %v111_v48  ;;  %v193_v1 = vadd.f32 %v4209_v27, %v152_v15 }
 0x5b5   :  { %2576 = vmatpush.msrb.mxu0 %v8712_v5  ;;  %2616 = vmatpush.msrb.mxu2 %v8713_v37  ;;  %v194_v37 = vadd.f32 %v4217_v16, %v153_v31 }
 0x5b7   :  { %2577 = vmatpush.msrb.mxu0 %v8714_v10  ;;  %2617 = vmatpush.msrb.mxu2 %v8715_v42 }
 0x5b9   :  { %2578 = vmatpush.msrb.mxu0 %v8716_v44  ;;  %2618 = vmatpush.msrb.mxu2 %v8717_v58 }
 0x5bb   :  { %2579 = vmatpush.msrb.mxu0 %v3451_v4  ;;  %2619 = vmatpush.msrb.mxu2 %v3452_v34 }
 0x5bd   :  { %2580 = vmatpush.msrb.mxu0 %v3453_v14  ;;  %2620 = vmatpush.msrb.mxu2 %v3454_v11 }
 0x5c2   :  { %v2243_v56 = vpop.f32.mrf.mxu1 }
 0x5c8   :  { %v2283_v28 = vpop.f32.mrf.mxu3 }
 0x5ca   :  { %v2323_v41 = vpop.f32.mrf.mxu1 }
 0x5d0   :  { %v2363_v46 = vpop.f32.mrf.mxu3 }
 0x5d6   :  { %v2223_v18 = vpop.f32.mrf.mxu0 }
 0x5d7   :  { %v2224_v50 = vadd.f32 %v2223_v18, %v8718_v32 }
 0x5d9   :  { %v2244_v30 = vadd.f32 %v2243_v56, %v2224_v50 }
 0x5db   :  { %2848 = vtanh.f32 %v2244_v30 }
 0x5dc   :  { %v2263_v49 = vpop.f32.mrf.mxu2 }
 0x5dd   :  { %v2264_v7 = vadd.f32 %v2263_v49, %v4400_v39  ;;  %v2675_v49 = vld [vmem:[%s6967_s6 + $0x78] sm:$0xff] }
 0x5df   :  { %v2284_v17 = vadd.f32 %v2283_v28, %v2264_v7  ;;  %v2673_v28 = vld [vmem:[%s6967_s6 + $0x68] sm:$0xff]  ;;  %v2672_v7 = vld [vmem:[%s6967_s6 + $0x60] sm:$0xff] }
 0x5e0   :  { %v2303_v55 = vpop.f32.mrf.mxu0 }
 0x5e1   :  { %v2304_v26 = vadd.f32 %v2303_v55, %v4402_v45  ;;  %2850 = vtanh.f32 %v2284_v17  ;;  %v2849_v21 = vpop.eup %2848  ;;  %v2671_v17 = vld [vmem:[%s6967_s6 + $0x58] sm:$0xff]  ;;  %v2670_v55 = vld [vmem:[%s6967_s6 + $0x50] sm:$0xff] }
 0x5e2   :  { %v2370_v35 = vmul.f32 0.5, %v2849_v21  ;;  %v2423_v60 = vpop.f32.mrf.mxu1  ;;  %v2666_v21 = vld [vmem:[%s6967_s6 + $0x30] sm:$0xff] }
 0x5e3   :  { %v2324_v12 = vadd.f32 %v2323_v41, %v2304_v26  ;;  %v2467_v54 = vadd.f32 %v2423_v60, %v192_v0  ;;  %v2669_v26 = vld [vmem:[%s6967_s6 + $0x48] sm:$0xff]  ;;  %v2668_v41 = vld [vmem:[%s6967_s6 + $0x40] sm:$0xff] }
 0x5e4   :  { %v2371_v53 = vadd.f32 0.5, %v2370_v35  ;;  %v2664_v35 = vld [vmem:[%s6967_s6 + $0x20] sm:$0xff] }
 0x5e5   :  { %2852 = vtanh.f32 %v2324_v12  ;;  %v2667_v12 = vld [vmem:[%s6967_s6 + $0x38] sm:$0xff] }
 0x5e6   :  { %v2343_v8 = vpop.f32.mrf.mxu2 }
 0x5e7   :  { %v2344_v47 = vadd.f32 %v2343_v8, %v4406_v2  ;;  %v2851_v9 = vpop.eup %2850  ;;  %v2665_v8 = vld [vmem:[%s6967_s6 + $0x28] sm:$0xff] }
 0x5e8   :  { %v2372_v40 = vmul.f32 0.5, %v2851_v9  ;;  %v2463_v5 = vpop.f32.mrf.mxu3  ;;  %v2662_v9 = vld [vmem:[%s6967_s6 + $0x10] sm:$0xff] }
 0x5e9   :  { %v2364_v36 = vadd.f32 %v2363_v46, %v2344_v47  ;;  %v2469_v43 = vadd.f32 %v2463_v5, %v194_v37  ;;  %v2663_v47 = vld [vmem:[%s6967_s6 + $0x18] sm:$0xff]  ;;  %v2661_v46 = vld [vmem:[%s6967_s6 + $0x8] sm:$0xff] }
 0x5ea   :  { %v2373_v6 = vadd.f32 0.5, %v2372_v40 }
 0x5eb   :  { %v2853_v25 = vpop.eup %2852  ;;  %2854 = vtanh.f32 %v2364_v36 }
 0x5ec   :  { %v2376_v63 = vmul.f32 %v2373_v6, %v6677_v38  ;;  %v2377_v3 = vmul.f32 %v2853_v25, %v2371_v53  ;;  %v2660_v25 = vld [vmem:[%s6967_s6] sm:$0xff] }
 0x5ee   :  { %v6894_v19 = vadd.f32 %v2377_v3, %v2376_v63 }
 0x5f0   :  { %2856 = vtanh.f32 %v6894_v19 }
 0x5f1   :  { %v2855_v62 = vpop.eup %2854  ;;  %2858 = vtanh.f32 %v2467_v54 }
 0x5f2   :  { %v2374_v51 = vmul.f32 0.5, %v2855_v62 }
 0x5f4   :  { %v2375_v57 = vadd.f32 0.5, %v2374_v51 }
 0x5f6   :  { %v2857_v59 = vpop.eup %2856 }
 0x5f7   :  { %v2380_v22 = vmul.f32 %v2857_v59, %v2375_v57  ;;  %v2859_v23 = vpop.eup %2858 }
 0x5f8   :  { %v2476_v44 = vmul.f32 0.5, %v2859_v23 }
 0x5f9   :  { %2521 = vmatmul.f32.vlgmr.msra.gmra.mxu1 %v2380_v22  ;;  %2561 = vmatmul.f32.vlgmr.msra.gmra.mxu3 %v2380_v22 }
 0x5fa   :  { %v2403_v38 = vpop.f32.mrf.mxu0  ;;  %v2477_v24 = vadd.f32 0.5, %v2476_v44 }
 0x5fb   :  { %v2466_v33 = vadd.f32 %v2403_v38, %v191_v20 }
 0x5fc   :  { %v2480_v14 = vmul.f32 %v2477_v24, %v6704_v13  ;;  %v2674_v13 = vld [vmem:[%s6967_s6 + $0x70] sm:$0xff] }
 0x5fd   :  { %2860 = vtanh.f32 %v2466_v33 }
 0x600   :  { %v2443_v10 = vpop.f32.mrf.mxu2 }
 0x601   :  { %v2468_v42 = vadd.f32 %v2443_v10, %v193_v1  ;;  %2601 = vmatmul.f32.vlgmr.msrb.gmra.mxu1 %v2380_v22  ;;  %2641 = vmatmul.f32.vlgmr.msrb.gmra.mxu3 %v2380_v22 }
 0x603   :  { %v2861_v58 = vpop.eup %2860  ;;  %2862 = vtanh.f32 %v2468_v42 }
 0x604   :  { %v2474_v4 = vmul.f32 0.5, %v2861_v58  ;;  %2864 = vtanh.f32 %v2469_v43 }
 0x606   :  { %v2475_v29 = vadd.f32 0.5, %v2474_v4 }
 0x609   :  { %v2863_v34 = vpop.eup %2862 }
 0x60a   :  { %v2481_v11 = vmul.f32 %v2863_v34, %v2475_v29  ;;  %v2865_v18 = vpop.eup %2864 }
 0x60b   :  { %v2478_v16 = vmul.f32 0.5, %v2865_v18 }
 0x60c   :  { %v2482_v27 = vadd.f32 %v2481_v11, %v2480_v14 }
 0x60d   :  { %v2479_v56 = vadd.f32 0.5, %v2478_v16 }
 0x60e   :  { %2866 = vtanh.f32 %v2482_v27 }
 0x614   :  { %v2867_v50 = vpop.eup %2866 }
 0x615   :  { %v2484_v30 = vmul.f32 %v2867_v50, %v2479_v56 }
 0x617   :  { %2501 = vmatmul.f32.vlgmr.msra.gmra.mxu0 %v2484_v30  ;;  %2541 = vmatmul.f32.vlgmr.msra.gmra.mxu2 %v2484_v30 }
 0x618   :  { %2680 = vmatpush.msra.mxu0 %v2675_v49 }
 0x61a   :  { %2681 = vmatpush.msra.mxu0 %v2674_v13 }
 0x61c   :  { %2682 = vmatpush.msra.mxu0 %v2673_v28 }
 0x61e   :  { %2683 = vmatpush.msra.mxu0 %v2672_v7 }
 0x61f   :  { %2581 = vmatmul.f32.vlgmr.msrb.gmra.mxu0 %v2484_v30  ;;  %2621 = vmatmul.f32.vlgmr.msrb.gmra.mxu2 %v2484_v30 }
 0x620   :  { %2684 = vmatpush.msra.mxu0 %v2671_v17 }
 0x622   :  { %2685 = vmatpush.msra.mxu0 %v2670_v55 }
 0x624   :  { %2686 = vmatpush.msra.mxu0 %v2669_v26 }
 0x626   :  { %2687 = vmatpush.msra.mxu0 %v2668_v41 }
 0x628   :  { %2688 = vmatpush.msra.mxu0 %v2667_v12 }
 0x62a   :  { %2689 = vmatpush.msra.mxu0 %v2666_v21 }
 0x62c   :  { %2690 = vmatpush.msra.mxu0 %v2665_v8 }
 0x62e   :  { %2691 = vmatpush.msra.mxu0 %v2664_v35 }
 0x630   :  { %2692 = vmatpush.msra.mxu0 %v2663_v47 }
 0x632   :  { %2693 = vmatpush.msra.mxu0 %v2662_v9 }
 0x634   :  { %2694 = vmatpush.msra.mxu0 %v2661_v46 }
 0x636   :  { %2695 = vmatpush.msra.mxu0 %v2660_v25 }
 0x676   :  { %v2522_v40 = vpop.f32.mrf.mxu1 }
 0x67c   :  { %v2562_v6 = vpop.f32.mrf.mxu3 }
 0x67e   :  { %v2602_v0 = vpop.f32.mrf.mxu1 }
 0x684   :  { %v2642_v57 = vpop.f32.mrf.mxu3 }
 0x694   :  { %v2502_v36 = vpop.f32.mrf.mxu0 }
 0x695   :  { %v2503_v48 = vadd.f32 %v2502_v36, %v8718_v32 }
 0x697   :  { %v2523_v53 = vadd.f32 %v2522_v40, %v2503_v48 }
 0x699   :  { %2868 = vtanh.f32 %v2523_v53 }
 0x69a   :  { %v2542_v52 = vpop.f32.mrf.mxu2 }
 0x69b   :  { %v2543_v63 = vadd.f32 %v2542_v52, %v4400_v39 }
 0x69c   :  { %v2582_v3 = vpop.f32.mrf.mxu0 }
 0x69d   :  { %v2563_v60 = vadd.f32 %v2562_v6, %v2543_v63  ;;  %v2583_v62 = vadd.f32 %v2582_v3, %v4402_v45 }
 0x69f   :  { %2870 = vtanh.f32 %v2563_v60  ;;  %v2603_v51 = vadd.f32 %v2602_v0, %v2583_v62  ;;  %v2869_v61 = vpop.eup %2868 }
 0x6a0   :  { %v2649_v59 = vmul.f32 0.5, %v2869_v61 }
 0x6a1   :  { %2872 = vtanh.f32 %v2603_v51 }
 0x6a2   :  { %v2622_v32 = vpop.f32.mrf.mxu2  ;;  %v2650_v39 = vadd.f32 0.5, %v2649_v59 }
 0x6a3   :  { %v2623_v54 = vadd.f32 %v2622_v32, %v4406_v2  ;;  %v2717_v2 = vld [vmem:[#allocation3] ss:$0 sm:$0xff] }
 0x6a5   :  { %v2871_v20 = vpop.eup %2870  ;;  %v2643_v22 = vadd.f32 %v2642_v57, %v2623_v54 }
 0x6a6   :  { %v2651_v38 = vmul.f32 0.5, %v2871_v20 }
 0x6a7   :  { %v2873_v15 = vpop.eup %2872  ;;  %2874 = vtanh.f32 %v2643_v22 }
 0x6a8   :  { %v2652_v33 = vadd.f32 0.5, %v2651_v38  ;;  %v2656_v45 = vmul.f32 %v2873_v15, %v2650_v39 }
 0x6aa   :  { %v2655_v31 = vmul.f32 %v2652_v33, %v6894_v19 }
 0x6ac   :  { %v2657_v23 = vadd.f32 %v2656_v45, %v2655_v31 }
 0x6ad   :  { %v2875_v5 = vpop.eup %2874 }
 0x6ae   :  { %2876 = vtanh.f32 %v2657_v23  ;;  %v2653_v1 = vmul.f32 0.5, %v2875_v5 }
 0x6b0   :  { %v2654_v37 = vadd.f32 0.5, %v2653_v1 }
 0x6b4   :  { %v2877_v10 = vpop.eup %2876 }
 0x6b5   :  { %v2659_v42 = vmul.f32 %v2877_v10, %v2654_v37 }
 0x6b7   :  { %2696 = vmatmul.f32.vlgmr.msra.gmra.mxu0 %v2659_v42 }
 0x734   :  { %v2697_v44 = vpop.f32.mrf.mxu0 }
 0x735   :  { %v2698_v43 = vadd.f32 %v2717_v2, %v2697_v44 }
 0x737   :  { %2701 = vst.msk [vmem:[%s6969_s8] sm:$0xff] %vm2700_vm0, %v2698_v43 }
 0x738   :  { %2706 = vsyncpa [#allocation5], 1 }
 0x739   :  { %2707 = vsyncpa [#allocation7], 1 }

</bundles_post_ra>
